<compile_context>
chip_gen: v7x
topology: tpu7x:2x2x1
jax: 0.10.0
libtpu: 0.0.40
codegen_flags: <defaults>
</compile_context>

<pallas_src>
import functools

import jax
import jax.numpy as jnp
import numpy as np
from jax.experimental import pallas as pl
from jax.experimental.pallas import tpu as pltpu

EPS = 1e-5
LANE = 128
LEFT = 16          # bf16 sublane-aligned start column of the hpad interior


def _round_up(v, m):
    return (v + m - 1) // m * m


def _silu(x, approx):
    s = 1.0 + jnp.exp(-x)
    if approx:
        # exp + approximate reciprocal both land on the EUP slot
        return x * pl.reciprocal(s, approx=True)
    return x / s


def _group_norm_silu(h, ecg, egc, gw, gb, inv_n, approx):
    """GroupNorm over one image + SiLU (all f32 math).

    h   : (HW, Cp) f32 conv output (padded channels are exact zeros).
    ecg : (Cp, G) channel->group one-hot (zero rows for padded channels).
    egc : (G, Cp) group->channel one-hot (zero cols for padded channels).
    gw, gb : (1, Cp) affine params (zero on padded channels).
    inv_n  : 1 / (H * W * channels_per_group) with the REAL (unpadded) count.
    Two-pass mean / (x-mean)^2 variance (no E[x^2]-E[x]^2 cancellation).
    """
    s_c = jnp.sum(h, axis=0, keepdims=True)                                  # (1, Cp)
    mean_g = jnp.dot(s_c, ecg, preferred_element_type=jnp.float32) * inv_n   # (1, G)
    mean_c = jnp.dot(mean_g, egc, preferred_element_type=jnp.float32)        # (1, Cp)
    d = h - mean_c
    q_c = jnp.sum(d * d, axis=0, keepdims=True)                              # (1, Cp)
    var_g = jnp.dot(q_c, ecg, preferred_element_type=jnp.float32) * inv_n    # (1, G)
    rstd_c = jnp.dot(jax.lax.rsqrt(var_g + EPS), egc,
                     preferred_element_type=jnp.float32)                     # (1, Cp)
    return _silu(d * rstd_c * gw + gb, approx)


def _conv3x3_taps(read_patch, w_ref, bias, hw):
    """9 shifted-window bf16 matmuls, f32 accumulation (v5e-friendly path)."""
    h = jnp.zeros((hw, w_ref.shape[-1]), jnp.float32)
    for tap in range(9):                      # static unroll: 9 MXU matmuls
        dy, dx = divmod(tap, 3)
        h = h + jnp.dot(read_patch(dy, dx), w_ref[tap],
                        preferred_element_type=jnp.float32)
    return h + bias


def _conv3x3_folded(read_patch, slab_ref, w_ref, bias):
    """im2col fold: 9 lane-aligned slab stores + ONE K=9*C matmul (v6e/v7x)."""
    c = slab_ref.shape[-1] // 9
    for tap in range(9):                      # static unroll: 9 unmasked stores
        dy, dx = divmod(tap, 3)
        slab_ref[:, tap * c:(tap + 1) * c] = read_patch(dy, dx)
    return jnp.dot(slab_ref[...], w_ref[...],
                   preferred_element_type=jnp.float32) + bias


def _resnet_block_kernel(xp_ref, w1_ref, b1_ref, g1w_ref, g1b_ref,
                         te_ref,
                         w2_ref, b2_ref, g2w_ref, g2b_ref,
                         wr_ref, br_ref, ecg_ref, egc_ref,
                         out_ref, *scratch,
                         H, W, inv_n, fold_taps, approx):
    if fold_taps:
        hpad_ref, slab1_ref, slab2_ref = scratch
    else:
        (hpad_ref,) = scratch

    HW = H * W
    cin_p = xp_ref.shape[-1]
    cp = out_ref.shape[-1]
    ecg = ecg_ref[...]
    egc = egc_ref[...]

    # ---- block1: conv3x3 + GroupNorm + SiLU -------------------------------
    def x_patch(dy, dx):                       # input already bf16 -> no cast
        return xp_ref[0, dy:dy + H, dx:dx + W, :].reshape(HW, cin_p)

    if fold_taps:
        h1 = _conv3x3_folded(x_patch, slab1_ref, w1_ref, b1_ref[...])
    else:
        center_x = x_patch(1, 1)               # hoisted: reused by residual 1x1
        h1 = _conv3x3_taps(
            lambda dy, dx: center_x if (dy, dx) == (1, 1) else x_patch(dy, dx),
            w1_ref, b1_ref[...], HW)

    y1 = _group_norm_silu(h1, ecg, egc, g1w_ref[...], g1b_ref[...], inv_n, approx)

    # time-embedding row (precomputed in the wrapper), broadcast over pixels
    y1 = y1 + te_ref[0]                        # (HW, Cp) + (1, Cp)

    # ---- stage padded hidden in VMEM (bf16, cast once) ---------------------
    # Interior [1:H+1, LEFT:LEFT+W] is fully overwritten every grid step; only
    # the thin border strips conv2 reads as zero padding are re-zeroed.
    zrow = jnp.zeros((1,) + hpad_ref.shape[1:], hpad_ref.dtype)
    hpad_ref[0:1, :, :] = zrow
    hpad_ref[H + 1:H + 2, :, :] = zrow
    zcol = jnp.zeros((H, 16, cp), hpad_ref.dtype)
    hpad_ref[1:H + 1, LEFT - 16:LEFT, :] = zcol
    hpad_ref[1:H + 1, LEFT + W:LEFT + W + 16, :] = zcol
    # sublane-aligned, unmasked interior store (single f32->bf16 cast)
    hpad_ref[1:H + 1, LEFT:LEFT + W, :] = (
        y1.astype(hpad_ref.dtype).reshape(H, W, cp))

    # ---- block2: conv3x3 + GroupNorm + SiLU --------------------------------
    def h_patch(dy, dx):                       # bf16 reads straight from scratch
        c0 = LEFT - 1 + dx
        return hpad_ref[dy:dy + H, c0:c0 + W, :].reshape(HW, cp)

    if fold_taps:
        h2 = _conv3x3_folded(h_patch, slab2_ref, w2_ref, b2_ref[...])
    else:
        h2 = _conv3x3_taps(h_patch, w2_ref, b2_ref[...], HW)

    y2 = _group_norm_silu(h2, ecg, egc, g2w_ref[...], g2b_ref[...], inv_n, approx)

    # ---- residual 1x1 conv: reuse the conv1 center-tap patch ---------------
    if fold_taps:
        xc = slab1_ref[:, 4 * cin_p:5 * cin_p]     # lane-aligned slab read-back
    else:
        xc = center_x
    res = jnp.dot(xc, wr_ref[...], preferred_element_type=jnp.float32) + br_ref[...]

    out_ref[0] = (y2 + res).reshape(H, W, cp)


def resnet_block_forward(x_nchw, t, params, groups=8, *,
                         fold_taps=True, approx_silu=True):
    """ResNetBlock forward: block1 -> (+time MLP) -> block2 -> (+residual).

    fold_taps=True  : im2col slab + one K=9*C matmul per conv (v6e/v7x).
    fold_taps=False : 9-tap matmul loop (preferable on v5e's 128-deep MXU).
    approx_silu     : EUP approximate reciprocal in SiLU; False = exact divide.
    """
    x = jnp.transpose(x_nchw, (0, 2, 3, 1)).astype(jnp.float32)   # NCHW -> NHWC
    B, H, W, cin = x.shape
    cout = params["w1"].shape[-1]
    G = groups
    cg = cout // G
    inv_n = 1.0 / float(H * W * cg)

    cin_p = _round_up(cin, LANE)        # lane-dense channel counts
    cp = _round_up(cout, LANE)

    def pad_last(a, target):
        return jnp.pad(a, [(0, 0)] * (a.ndim - 1) + [(0, target - a.shape[-1])])

    def row(a):                         # (C,) -> (1, Cp) f32, zero-padded
        return pad_last(a.reshape(1, -1).astype(jnp.float32), cp)

    # Per-image input: 1-pixel halo + channel pad, shipped as bf16 (only ever
    # consumed as MXU operands).
    xp = jnp.pad(x, ((0, 0), (1, 1), (1, 1), (0, cin_p - cin))).astype(jnp.bfloat16)

    # Weights: zero-pad channels, flatten the 3x3 taps, ship as bf16.
    w1 = pad_last(jnp.pad(params["w1"], ((0, 0), (0, 0), (0, cin_p - cin), (0, 0))), cp)
    w2 = pad_last(jnp.pad(params["w2"], ((0, 0), (0, 0), (0, cp - cout), (0, 0))), cp)
    if fold_taps:
        w1 = w1.reshape(9 * cin_p, cp).astype(jnp.bfloat16)
        w2 = w2.reshape(9 * cp, cp).astype(jnp.bfloat16)
    else:
        w1 = w1.reshape(9, cin_p, cp).astype(jnp.bfloat16)
        w2 = w2.reshape(9, cp, cp).astype(jnp.bfloat16)
    wr = pad_last(jnp.pad(params["wr"], ((0, cin_p - cin), (0, 0))), cp).astype(jnp.bfloat16)

    # Time-embedding MLP (SiLU + Linear) computed once here in f32; the kernel
    # only DMAs a (1, Cp) row per image.
    tf = t.astype(jnp.float32)
    te = (tf / (1.0 + jnp.exp(-tf))) @ params["mlp_w"].astype(jnp.float32) + params["mlp_b"]
    te = pad_last(te, cp).reshape(B, 1, cp)

    # Tiny channel<->group one-hots (zero rows/cols for padded channels).
    ecg = jnp.concatenate(
        [jnp.repeat(jnp.eye(G, dtype=jnp.float32), cg, axis=0),
         jnp.zeros((cp - cout, G), jnp.float32)], axis=0)          # (Cp, G)
    egc = jnp.transpose(ecg)                                       # (G, Cp)

    def full(shape):                    # whole-array block, constant index map
        nd = len(shape)
        return pl.BlockSpec(shape, lambda b, nd=nd: (0,) * nd)

    args = (xp, w1, row(params["b1"]), row(params["gn1_w"]), row(params["gn1_b"]),
            te,
            w2, row(params["b2"]), row(params["gn2_w"]), row(params["gn2_b"]),
            wr, row(params["br"]), ecg, egc)
    in_specs = [
        pl.BlockSpec((1, H + 2, W + 2, cin_p), lambda b: (b, 0, 0, 0)),   # x
        full(w1.shape), full((1, cp)), full((1, cp)), full((1, cp)),
        pl.BlockSpec((1, 1, cp), lambda b: (b, 0, 0)),                    # te row
        full(w2.shape), full((1, cp)), full((1, cp)), full((1, cp)),
        full((cin_p, cp)), full((1, cp)), full((cp, G)), full((G, cp)),
    ]

    w_pad = LEFT + W + 16               # aligned interior + zero border strips
    scratch = [pltpu.VMEM((H + 2, w_pad, cp), jnp.bfloat16)]       # padded hidden
    if fold_taps:
        scratch += [pltpu.VMEM((H * W, 9 * cin_p), jnp.bfloat16),  # conv1 im2col
                    pltpu.VMEM((H * W, 9 * cp), jnp.bfloat16)]     # conv2 im2col

    try:
        vmem_cap = pltpu.get_tpu_info().vmem_capacity_bytes
    except Exception:
        vmem_cap = 64 * 1024 * 1024
    vmem_limit = int(vmem_cap * 3 // 4)

    out = pl.pallas_call(
        functools.partial(_resnet_block_kernel, H=H, W=W, inv_n=inv_n,
                          fold_taps=fold_taps, approx=approx_silu),
        out_shape=jax.ShapeDtypeStruct((B, H, W, cp), jnp.float32),
        grid=(B,),
        in_specs=in_specs,
        out_specs=pl.BlockSpec((1, H, W, cp), lambda b: (b, 0, 0, 0)),
        scratch_shapes=scratch,
        compiler_params=pltpu.CompilerParams(
            dimension_semantics=("parallel",),      # batch images across TCs
            vmem_limit_bytes=vmem_limit),
    )(*args)

    out = out[..., :cout]                                          # drop channel pad
    return jnp.transpose(out, (0, 3, 1, 2))                        # NHWC -> NCHW


# ---------------------------------------------------------------------------
# Pure-JAX f32 reference (independent path via lax.conv) for a sanity check.
# ---------------------------------------------------------------------------
def ref_forward(x_nchw, t, params, groups=8):
    x = jnp.transpose(x_nchw, (0, 2, 3, 1)).astype(jnp.float32)
    B, H, W, _ = x.shape

    def conv3(z, w, b):
        return jax.lax.conv_general_dilated(
            z, w, (1, 1), ((1, 1), (1, 1)),
            dimension_numbers=("NHWC", "HWIO", "NHWC")) + b

    def gn(z, gw, gb):
        C = z.shape[-1]
        cg = C // groups
        zr = z.reshape(B, H * W, groups, cg)
        mean = zr.mean(axis=(1, 3), keepdims=True)
        var = ((zr - mean) ** 2).mean(axis=(1, 3), keepdims=True)
        zn = ((zr - mean) * jax.lax.rsqrt(var + EPS)).reshape(B, H, W, C)
        return zn * gw + gb

    def silu(v):
        return v / (1.0 + jnp.exp(-v))

    h = silu(gn(conv3(x, params["w1"], params["b1"]),
                params["gn1_w"], params["gn1_b"]))
    te = silu(t.astype(jnp.float32)) @ params["mlp_w"] + params["mlp_b"]
    h = h + te[:, None, None, :]
    h2 = silu(gn(conv3(h, params["w2"], params["b2"]),
                 params["gn2_w"], params["gn2_b"]))
    res = jnp.einsum("bhwc,cd->bhwd", x, params["wr"]) + params["br"]
    return jnp.transpose(h2 + res, (0, 3, 1, 2))


def init_params(key, c_in, c_out, t_dim):
    ks = jax.random.split(key, 12)

    def nrm(k, shape, s=0.1):
        return s * jax.random.normal(k, shape, jnp.float32)

    return dict(
        w1=nrm(ks[0], (3, 3, c_in, c_out)), b1=nrm(ks[1], (c_out,)),
        gn1_w=1.0 + nrm(ks[2], (c_out,)), gn1_b=nrm(ks[3], (c_out,)),
        mlp_w=nrm(ks[4], (t_dim, c_out)), mlp_b=nrm(ks[5], (c_out,)),
        w2=nrm(ks[6], (3, 3, c_out, c_out)), b2=nrm(ks[7], (c_out,)),
        gn2_w=1.0 + nrm(ks[8], (c_out,)), gn2_b=nrm(ks[9], (c_out,)),
        # residual 1x1 conv (module uses Identity when dim_in == dim_out)
        wr=nrm(ks[10], (c_in, c_out)), br=nrm(ks[11], (c_out,)),
    )


if __name__ == "__main__":
    B, C_IN, C_OUT, H, W = 2, 4, 8, 16, 16
    T_DIM, GROUPS = 32, 8

    key = jax.random.PRNGKey(0)
    kx, kt, kp = jax.random.split(key, 3)
    x = jax.random.normal(kx, (B, C_IN, H, W), jnp.float32)        # NCHW like PyTorch
    t_emb = jax.random.normal(kt, (B, T_DIM), jnp.float32)
    params = init_params(kp, C_IN, C_OUT, T_DIM)

    out = jax.block_until_ready(resnet_block_forward(x, t_emb, params, groups=GROUPS))
    ref = jax.block_until_ready(ref_forward(x, t_emb, params, groups=GROUPS))

    assert out.shape == (B, C_OUT, H, W)
    # bf16 MXU operands (f32 accumulation) vs. an all-f32 reference -> compare
    # at bf16-level tolerance.
    np.testing.assert_allclose(np.asarray(out), np.asarray(ref), rtol=2e-2, atol=2e-2)

    print("KERNEL_OK")
</pallas_src>

<mosaic_0001>
module attributes {stable_mosaic.version = 11 : i64} {
  func.func @_resnet_block_kernel(%arg0: i32, %arg1: memref<1x18x18x128xbf16, #tpu.memory_space<vmem>>, %arg2: memref<1152x128xbf16, #tpu.memory_space<vmem>>, %arg3: memref<1x128xf32, #tpu.memory_space<vmem>>, %arg4: memref<1x128xf32, #tpu.memory_space<vmem>>, %arg5: memref<1x128xf32, #tpu.memory_space<vmem>>, %arg6: memref<1x1x128xf32, #tpu.memory_space<vmem>>, %arg7: memref<1152x128xbf16, #tpu.memory_space<vmem>>, %arg8: memref<1x128xf32, #tpu.memory_space<vmem>>, %arg9: memref<1x128xf32, #tpu.memory_space<vmem>>, %arg10: memref<1x128xf32, #tpu.memory_space<vmem>>, %arg11: memref<128x128xbf16, #tpu.memory_space<vmem>>, %arg12: memref<1x128xf32, #tpu.memory_space<vmem>>, %arg13: memref<128x8xf32, #tpu.memory_space<vmem>>, %arg14: memref<8x128xf32, #tpu.memory_space<vmem>>, %arg15: memref<1x16x16x128xf32, #tpu.memory_space<vmem>>, %arg16: memref<18x48x128xbf16, #tpu.memory_space<vmem>>, %arg17: memref<256x1152xbf16, #tpu.memory_space<vmem>>, %arg18: memref<256x1152xbf16, #tpu.memory_space<vmem>>) attributes {dimension_semantics = [#tpu.dimension_semantics<parallel>], iteration_bounds = array<i64: 2>, scalar_prefetch = 0 : i64, scratch_operands = 3 : i64, tpu.core_type = #tpu.core_type<tc>, window_params = [{transform_indices = @transform_0, window_bounds = array<i64: 1, 18, 18, 128>}, {pipeline_mode = #tpu.pipeline_mode<synchronous>, transform_indices = @transform_1, window_bounds = array<i64: 1152, 128>}, {pipeline_mode = #tpu.pipeline_mode<synchronous>, transform_indices = @transform_2, window_bounds = array<i64: 1, 128>}, {pipeline_mode = #tpu.pipeline_mode<synchronous>, transform_indices = @transform_3, window_bounds = array<i64: 1, 128>}, {pipeline_mode = #tpu.pipeline_mode<synchronous>, transform_indices = @transform_4, window_bounds = array<i64: 1, 128>}, {transform_indices = @transform_5, window_bounds = array<i64: 1, 1, 128>}, {pipeline_mode = #tpu.pipeline_mode<synchronous>, transform_indices = @transform_6, window_bounds = array<i64: 1152, 128>}, {pipeline_mode = #tpu.pipeline_mode<synchronous>, transform_indices = @transform_7, window_bounds = array<i64: 1, 128>}, {pipeline_mode = #tpu.pipeline_mode<synchronous>, transform_indices = @transform_8, window_bounds = array<i64: 1, 128>}, {pipeline_mode = #tpu.pipeline_mode<synchronous>, transform_indices = @transform_9, window_bounds = array<i64: 1, 128>}, {pipeline_mode = #tpu.pipeline_mode<synchronous>, transform_indices = @transform_10, window_bounds = array<i64: 128, 128>}, {pipeline_mode = #tpu.pipeline_mode<synchronous>, transform_indices = @transform_11, window_bounds = array<i64: 1, 128>}, {pipeline_mode = #tpu.pipeline_mode<synchronous>, transform_indices = @transform_12, window_bounds = array<i64: 128, 8>}, {pipeline_mode = #tpu.pipeline_mode<synchronous>, transform_indices = @transform_13, window_bounds = array<i64: 8, 128>}, {transform_indices = @transform_14, window_bounds = array<i64: 1, 16, 16, 128>}]} {
    %c0 = arith.constant 0 : index
    %c0_0 = arith.constant 0 : index
    %0 = vector.load %arg13[%c0, %c0_0] : memref<128x8xf32, #tpu.memory_space<vmem>>, vector<128x8xf32>
    %c0_1 = arith.constant 0 : index
    %c0_2 = arith.constant 0 : index
    %1 = vector.load %arg14[%c0_1, %c0_2] : memref<8x128xf32, #tpu.memory_space<vmem>>, vector<8x128xf32>
    %c0_3 = arith.constant 0 : index
    %c0_4 = arith.constant 0 : index
    %2 = vector.load %arg3[%c0_3, %c0_4] : memref<1x128xf32, #tpu.memory_space<vmem>>, vector<1x128xf32>
    %c0_5 = arith.constant 0 : index
    %c0_6 = arith.constant 0 : index
    %c0_7 = arith.constant 0 : index
    %c0_8 = arith.constant 0 : index
    %3 = vector.load %arg1[%c0_5, %c0_6, %c0_7, %c0_8] : memref<1x18x18x128xbf16, #tpu.memory_space<vmem>>, vector<1x16x16x128xbf16>
    %4 = vector.shape_cast %3 : vector<1x16x16x128xbf16> to vector<16x16x128xbf16>
    %5 = vector.shape_cast %4 : vector<16x16x128xbf16> to vector<256x128xbf16>
    %c0_9 = arith.constant 0 : index
    %c0_10 = arith.constant 0 : index
    %6 = vector.load %arg17[%c0_9, %c0_10] : memref<256x1152xbf16, #tpu.memory_space<vmem>>, vector<256x128xbf16>
    tpu.vector_store %arg17[%c0_9, %c0_10], %5 {strides = array<i32>} : memref<256x1152xbf16, #tpu.memory_space<vmem>>, vector<256x128xbf16>,
    %c0_11 = arith.constant 0 : index
    %c0_12 = arith.constant 0 : index
    %c1 = arith.constant 1 : index
    %c0_13 = arith.constant 0 : index
    %7 = vector.load %arg1[%c0_11, %c0_12, %c1, %c0_13] : memref<1x18x18x128xbf16, #tpu.memory_space<vmem>>, vector<1x16x16x128xbf16>
    %8 = vector.shape_cast %7 : vector<1x16x16x128xbf16> to vector<16x16x128xbf16>
    %9 = vector.shape_cast %8 : vector<16x16x128xbf16> to vector<256x128xbf16>
    %c0_14 = arith.constant 0 : index
    %c128 = arith.constant 128 : index
    %10 = vector.load %arg17[%c0_14, %c128] : memref<256x1152xbf16, #tpu.memory_space<vmem>>, vector<256x128xbf16>
    tpu.vector_store %arg17[%c0_14, %c128], %9 {strides = array<i32>} : memref<256x1152xbf16, #tpu.memory_space<vmem>>, vector<256x128xbf16>,
    %c0_15 = arith.constant 0 : index
    %c0_16 = arith.constant 0 : index
    %c2 = arith.constant 2 : index
    %c0_17 = arith.constant 0 : index
    %11 = vector.load %arg1[%c0_15, %c0_16, %c2, %c0_17] : memref<1x18x18x128xbf16, #tpu.memory_space<vmem>>, vector<1x16x16x128xbf16>
    %12 = vector.shape_cast %11 : vector<1x16x16x128xbf16> to vector<16x16x128xbf16>
    %13 = vector.shape_cast %12 : vector<16x16x128xbf16> to vector<256x128xbf16>
    %c0_18 = arith.constant 0 : index
    %c256 = arith.constant 256 : index
    %14 = vector.load %arg17[%c0_18, %c256] : memref<256x1152xbf16, #tpu.memory_space<vmem>>, vector<256x128xbf16>
    tpu.vector_store %arg17[%c0_18, %c256], %13 {strides = array<i32>} : memref<256x1152xbf16, #tpu.memory_space<vmem>>, vector<256x128xbf16>,
    %c0_19 = arith.constant 0 : index
    %c1_20 = arith.constant 1 : index
    %c0_21 = arith.constant 0 : index
    %c0_22 = arith.constant 0 : index
    %15 = vector.load %arg1[%c0_19, %c1_20, %c0_21, %c0_22] : memref<1x18x18x128xbf16, #tpu.memory_space<vmem>>, vector<1x16x16x128xbf16>
    %16 = vector.shape_cast %15 : vector<1x16x16x128xbf16> to vector<16x16x128xbf16>
    %17 = vector.shape_cast %16 : vector<16x16x128xbf16> to vector<256x128xbf16>
    %c0_23 = arith.constant 0 : index
    %c384 = arith.constant 384 : index
    %18 = vector.load %arg17[%c0_23, %c384] : memref<256x1152xbf16, #tpu.memory_space<vmem>>, vector<256x128xbf16>
    tpu.vector_store %arg17[%c0_23, %c384], %17 {strides = array<i32>} : memref<256x1152xbf16, #tpu.memory_space<vmem>>, vector<256x128xbf16>,
    %c0_24 = arith.constant 0 : index
    %c1_25 = arith.constant 1 : index
    %c1_26 = arith.constant 1 : index
    %c0_27 = arith.constant 0 : index
    %19 = vector.load %arg1[%c0_24, %c1_25, %c1_26, %c0_27] : memref<1x18x18x128xbf16, #tpu.memory_space<vmem>>, vector<1x16x16x128xbf16>
    %20 = vector.shape_cast %19 : vector<1x16x16x128xbf16> to vector<16x16x128xbf16>
    %21 = vector.shape_cast %20 : vector<16x16x128xbf16> to vector<256x128xbf16>
    %c0_28 = arith.constant 0 : index
    %c512 = arith.constant 512 : index
    %22 = vector.load %arg17[%c0_28, %c512] : memref<256x1152xbf16, #tpu.memory_space<vmem>>, vector<256x128xbf16>
    tpu.vector_store %arg17[%c0_28, %c512], %21 {strides = array<i32>} : memref<256x1152xbf16, #tpu.memory_space<vmem>>, vector<256x128xbf16>,
    %c0_29 = arith.constant 0 : index
    %c1_30 = arith.constant 1 : index
    %c2_31 = arith.constant 2 : index
    %c0_32 = arith.constant 0 : index
    %23 = vector.load %arg1[%c0_29, %c1_30, %c2_31, %c0_32] : memref<1x18x18x128xbf16, #tpu.memory_space<vmem>>, vector<1x16x16x128xbf16>
    %24 = vector.shape_cast %23 : vector<1x16x16x128xbf16> to vector<16x16x128xbf16>
    %25 = vector.shape_cast %24 : vector<16x16x128xbf16> to vector<256x128xbf16>
    %c0_33 = arith.constant 0 : index
    %c640 = arith.constant 640 : index
    %26 = vector.load %arg17[%c0_33, %c640] : memref<256x1152xbf16, #tpu.memory_space<vmem>>, vector<256x128xbf16>
    tpu.vector_store %arg17[%c0_33, %c640], %25 {strides = array<i32>} : memref<256x1152xbf16, #tpu.memory_space<vmem>>, vector<256x128xbf16>,
    %c0_34 = arith.constant 0 : index
    %c2_35 = arith.constant 2 : index
    %c0_36 = arith.constant 0 : index
    %c0_37 = arith.constant 0 : index
    %27 = vector.load %arg1[%c0_34, %c2_35, %c0_36, %c0_37] : memref<1x18x18x128xbf16, #tpu.memory_space<vmem>>, vector<1x16x16x128xbf16>
    %28 = vector.shape_cast %27 : vector<1x16x16x128xbf16> to vector<16x16x128xbf16>
    %29 = vector.shape_cast %28 : vector<16x16x128xbf16> to vector<256x128xbf16>
    %c0_38 = arith.constant 0 : index
    %c768 = arith.constant 768 : index
    %30 = vector.load %arg17[%c0_38, %c768] : memref<256x1152xbf16, #tpu.memory_space<vmem>>, vector<256x128xbf16>
    tpu.vector_store %arg17[%c0_38, %c768], %29 {strides = array<i32>} : memref<256x1152xbf16, #tpu.memory_space<vmem>>, vector<256x128xbf16>,
    %c0_39 = arith.constant 0 : index
    %c2_40 = arith.constant 2 : index
    %c1_41 = arith.constant 1 : index
    %c0_42 = arith.constant 0 : index
    %31 = vector.load %arg1[%c0_39, %c2_40, %c1_41, %c0_42] : memref<1x18x18x128xbf16, #tpu.memory_space<vmem>>, vector<1x16x16x128xbf16>
    %32 = vector.shape_cast %31 : vector<1x16x16x128xbf16> to vector<16x16x128xbf16>
    %33 = vector.shape_cast %32 : vector<16x16x128xbf16> to vector<256x128xbf16>
    %c0_43 = arith.constant 0 : index
    %c896 = arith.constant 896 : index
    %34 = vector.load %arg17[%c0_43, %c896] : memref<256x1152xbf16, #tpu.memory_space<vmem>>, vector<256x128xbf16>
    tpu.vector_store %arg17[%c0_43, %c896], %33 {strides = array<i32>} : memref<256x1152xbf16, #tpu.memory_space<vmem>>, vector<256x128xbf16>,
    %c0_44 = arith.constant 0 : index
    %c2_45 = arith.constant 2 : index
    %c2_46 = arith.constant 2 : index
    %c0_47 = arith.constant 0 : index
    %35 = vector.load %arg1[%c0_44, %c2_45, %c2_46, %c0_47] : memref<1x18x18x128xbf16, #tpu.memory_space<vmem>>, vector<1x16x16x128xbf16>
    %36 = vector.shape_cast %35 : vector<1x16x16x128xbf16> to vector<16x16x128xbf16>
    %37 = vector.shape_cast %36 : vector<16x16x128xbf16> to vector<256x128xbf16>
    %c0_48 = arith.constant 0 : index
    %c1024 = arith.constant 1024 : index
    %38 = vector.load %arg17[%c0_48, %c1024] : memref<256x1152xbf16, #tpu.memory_space<vmem>>, vector<256x128xbf16>
    tpu.vector_store %arg17[%c0_48, %c1024], %37 {strides = array<i32>} : memref<256x1152xbf16, #tpu.memory_space<vmem>>, vector<256x128xbf16>,
    %c0_49 = arith.constant 0 : index
    %c0_50 = arith.constant 0 : index
    %39 = vector.load %arg17[%c0_49, %c0_50] : memref<256x1152xbf16, #tpu.memory_space<vmem>>, vector<256x1152xbf16>
    %c0_51 = arith.constant 0 : index
    %c0_52 = arith.constant 0 : index
    %40 = vector.load %arg2[%c0_51, %c0_52] : memref<1152x128xbf16, #tpu.memory_space<vmem>>, vector<1152x128xbf16>
    %cst = arith.constant dense<0.000000e+00> : vector<256x128xf32>
    %41 = tpu.matmul %39, %40, %cst {dimension_numbers = #tpu.dot_dimension_numbers<[1], [0], [0], [1], [0, 0, 1, 1], [], []>} : vector<256x1152xbf16>, vector<1152x128xbf16>, vector<256x128xf32> -> vector<256x128xf32>
    %42 = vector.broadcast %2 : vector<1x128xf32> to vector<256x128xf32>
    %43 = arith.addf %41, %42 : vector<256x128xf32>
    %c0_53 = arith.constant 0 : index
    %c0_54 = arith.constant 0 : index
    %44 = vector.load %arg4[%c0_53, %c0_54] : memref<1x128xf32, #tpu.memory_space<vmem>>, vector<1x128xf32>
    %c0_55 = arith.constant 0 : index
    %c0_56 = arith.constant 0 : index
    %45 = vector.load %arg5[%c0_55, %c0_56] : memref<1x128xf32, #tpu.memory_space<vmem>>, vector<1x128xf32>
    %cst_57 = arith.constant dense<0.000000e+00> : vector<128xf32>
    %46 = vector.multi_reduction <add>, %43, %cst_57 [0] : vector<256x128xf32> to vector<128xf32>
    %47 = vector.shape_cast %46 : vector<128xf32> to vector<1x128xf32>
    %cst_58 = arith.constant dense<0.000000e+00> : vector<1x8xf32>
    %48 = tpu.matmul %47, %0, %cst_58 {dimension_numbers = #tpu.dot_dimension_numbers<[1], [0], [0], [1], [0, 0, 1, 1], [], []>} : vector<1x128xf32>, vector<128x8xf32>, vector<1x8xf32> -> vector<1x8xf32>
    %cst_59 = arith.constant 3.906250e-03 : f32
    %49 = vector.broadcast %cst_59 : f32 to vector<1x8xf32>
    %50 = arith.mulf %48, %49 : vector<1x8xf32>
    %cst_60 = arith.constant dense<0.000000e+00> : vector<1x128xf32>
    %51 = tpu.matmul %50, %1, %cst_60 {dimension_numbers = #tpu.dot_dimension_numbers<[1], [0], [0], [1], [0, 0, 1, 1], [], []>} : vector<1x8xf32>, vector<8x128xf32>, vector<1x128xf32> -> vector<1x128xf32>
    %52 = vector.broadcast %51 : vector<1x128xf32> to vector<256x128xf32>
    %53 = arith.subf %43, %52 : vector<256x128xf32>
    %54 = arith.mulf %53, %53 : vector<256x128xf32>
    %cst_61 = arith.constant dense<0.000000e+00> : vector<128xf32>
    %55 = vector.multi_reduction <add>, %54, %cst_61 [0] : vector<256x128xf32> to vector<128xf32>
    %56 = vector.shape_cast %55 : vector<128xf32> to vector<1x128xf32>
    %cst_62 = arith.constant dense<0.000000e+00> : vector<1x8xf32>
    %57 = tpu.matmul %56, %0, %cst_62 {dimension_numbers = #tpu.dot_dimension_numbers<[1], [0], [0], [1], [0, 0, 1, 1], [], []>} : vector<1x128xf32>, vector<128x8xf32>, vector<1x8xf32> -> vector<1x8xf32>
    %cst_63 = arith.constant 3.906250e-03 : f32
    %58 = vector.broadcast %cst_63 : f32 to vector<1x8xf32>
    %59 = arith.mulf %57, %58 : vector<1x8xf32>
    %cst_64 = arith.constant 9.99999974E-6 : f32
    %60 = vector.broadcast %cst_64 : f32 to vector<1x8xf32>
    %61 = arith.addf %59, %60 : vector<1x8xf32>
    %62 = math.rsqrt %61 : vector<1x8xf32>
    %cst_65 = arith.constant dense<0.000000e+00> : vector<1x128xf32>
    %63 = tpu.matmul %62, %1, %cst_65 {dimension_numbers = #tpu.dot_dimension_numbers<[1], [0], [0], [1], [0, 0, 1, 1], [], []>} : vector<1x8xf32>, vector<8x128xf32>, vector<1x128xf32> -> vector<1x128xf32>
    %64 = vector.broadcast %63 : vector<1x128xf32> to vector<256x128xf32>
    %65 = arith.mulf %53, %64 : vector<256x128xf32>
    %66 = vector.broadcast %44 : vector<1x128xf32> to vector<256x128xf32>
    %67 = arith.mulf %65, %66 : vector<256x128xf32>
    %68 = vector.broadcast %45 : vector<1x128xf32> to vector<256x128xf32>
    %69 = arith.addf %67, %68 : vector<256x128xf32>
    %cst_66 = arith.constant 0.000000e+00 : f32
    %70 = vector.broadcast %cst_66 : f32 to vector<256x128xf32>
    %71 = arith.subf %70, %69 : vector<256x128xf32>
    %72 = math.exp %71 : vector<256x128xf32>
    %cst_67 = arith.constant 1.000000e+00 : f32
    %73 = vector.broadcast %cst_67 : f32 to vector<256x128xf32>
    %74 = arith.addf %73, %72 : vector<256x128xf32>
    %75 = tpu.reciprocal %74 {approx = true} : vector<256x128xf32> -> vector<256x128xf32>
    %76 = arith.mulf %69, %75 : vector<256x128xf32>
    %c0_68 = arith.constant 0 : index
    %c0_69 = arith.constant 0 : index
    %c0_70 = arith.constant 0 : index
    %77 = vector.load %arg6[%c0_68, %c0_69, %c0_70] : memref<1x1x128xf32, #tpu.memory_space<vmem>>, vector<1x1x128xf32>
    %78 = vector.shape_cast %77 : vector<1x1x128xf32> to vector<1x128xf32>
    %79 = vector.broadcast %78 : vector<1x128xf32> to vector<256x128xf32>
    %80 = arith.addf %76, %79 : vector<256x128xf32>
    %cst_71 = arith.constant 0.000000e+00 : bf16
    %81 = vector.broadcast %cst_71 : bf16 to vector<1x48x128xbf16>
    %c0_72 = arith.constant 0 : index
    %c0_73 = arith.constant 0 : index
    %c0_74 = arith.constant 0 : index
    %82 = vector.load %arg16[%c0_72, %c0_73, %c0_74] : memref<18x48x128xbf16, #tpu.memory_space<vmem>>, vector<1x48x128xbf16>
    tpu.vector_store %arg16[%c0_72, %c0_73, %c0_74], %81 {strides = array<i32>} : memref<18x48x128xbf16, #tpu.memory_space<vmem>>, vector<1x48x128xbf16>,
    %c17 = arith.constant 17 : index
    %c0_75 = arith.constant 0 : index
    %c0_76 = arith.constant 0 : index
    %83 = vector.load %arg16[%c17, %c0_75, %c0_76] : memref<18x48x128xbf16, #tpu.memory_space<vmem>>, vector<1x48x128xbf16>
    tpu.vector_store %arg16[%c17, %c0_75, %c0_76], %81 {strides = array<i32>} : memref<18x48x128xbf16, #tpu.memory_space<vmem>>, vector<1x48x128xbf16>,
    %cst_77 = arith.constant 0.000000e+00 : bf16
    %84 = vector.broadcast %cst_77 : bf16 to vector<16x16x128xbf16>
    %c1_78 = arith.constant 1 : index
    %c0_79 = arith.constant 0 : index
    %c0_80 = arith.constant 0 : index
    %85 = vector.load %arg16[%c1_78, %c0_79, %c0_80] : memref<18x48x128xbf16, #tpu.memory_space<vmem>>, vector<16x16x128xbf16>
    tpu.vector_store %arg16[%c1_78, %c0_79, %c0_80], %84 {strides = array<i32>} : memref<18x48x128xbf16, #tpu.memory_space<vmem>>, vector<16x16x128xbf16>,
    %c1_81 = arith.constant 1 : index
    %c32 = arith.constant 32 : index
    %c0_82 = arith.constant 0 : index
    %86 = vector.load %arg16[%c1_81, %c32, %c0_82] : memref<18x48x128xbf16, #tpu.memory_space<vmem>>, vector<16x16x128xbf16>
    tpu.vector_store %arg16[%c1_81, %c32, %c0_82], %84 {strides = array<i32>} : memref<18x48x128xbf16, #tpu.memory_space<vmem>>, vector<16x16x128xbf16>,
    %87 = arith.truncf %80 : vector<256x128xf32> to vector<256x128xbf16>
    %88 = vector.shape_cast %87 : vector<256x128xbf16> to vector<16x16x128xbf16>
    %c1_83 = arith.constant 1 : index
    %c16 = arith.constant 16 : index
    %c0_84 = arith.constant 0 : index
    %89 = vector.load %arg16[%c1_83, %c16, %c0_84] : memref<18x48x128xbf16, #tpu.memory_space<vmem>>, vector<16x16x128xbf16>
    tpu.vector_store %arg16[%c1_83, %c16, %c0_84], %88 {strides = array<i32>} : memref<18x48x128xbf16, #tpu.memory_space<vmem>>, vector<16x16x128xbf16>,
    %c0_85 = arith.constant 0 : index
    %c0_86 = arith.constant 0 : index
    %90 = vector.load %arg8[%c0_85, %c0_86] : memref<1x128xf32, #tpu.memory_space<vmem>>, vector<1x128xf32>
    %c0_87 = arith.constant 0 : index
    %c15 = arith.constant 15 : index
    %c0_88 = arith.constant 0 : index
    %91 = vector.load %arg16[%c0_87, %c15, %c0_88] : memref<18x48x128xbf16, #tpu.memory_space<vmem>>, vector<16x16x128xbf16>
    %92 = vector.shape_cast %91 : vector<16x16x128xbf16> to vector<256x128xbf16>
    %c0_89 = arith.constant 0 : index
    %c0_90 = arith.constant 0 : index
    %93 = vector.load %arg18[%c0_89, %c0_90] : memref<256x1152xbf16, #tpu.memory_space<vmem>>, vector<256x128xbf16>
    tpu.vector_store %arg18[%c0_89, %c0_90], %92 {strides = array<i32>} : memref<256x1152xbf16, #tpu.memory_space<vmem>>, vector<256x128xbf16>,
    %c0_91 = arith.constant 0 : index
    %c16_92 = arith.constant 16 : index
    %c0_93 = arith.constant 0 : index
    %94 = vector.load %arg16[%c0_91, %c16_92, %c0_93] : memref<18x48x128xbf16, #tpu.memory_space<vmem>>, vector<16x16x128xbf16>
    %95 = vector.shape_cast %94 : vector<16x16x128xbf16> to vector<256x128xbf16>
    %c0_94 = arith.constant 0 : index
    %c128_95 = arith.constant 128 : index
    %96 = vector.load %arg18[%c0_94, %c128_95] : memref<256x1152xbf16, #tpu.memory_space<vmem>>, vector<256x128xbf16>
    tpu.vector_store %arg18[%c0_94, %c128_95], %95 {strides = array<i32>} : memref<256x1152xbf16, #tpu.memory_space<vmem>>, vector<256x128xbf16>,
    %c0_96 = arith.constant 0 : index
    %c17_97 = arith.constant 17 : index
    %c0_98 = arith.constant 0 : index
    %97 = vector.load %arg16[%c0_96, %c17_97, %c0_98] : memref<18x48x128xbf16, #tpu.memory_space<vmem>>, vector<16x16x128xbf16>
    %98 = vector.shape_cast %97 : vector<16x16x128xbf16> to vector<256x128xbf16>
    %c0_99 = arith.constant 0 : index
    %c256_100 = arith.constant 256 : index
    %99 = vector.load %arg18[%c0_99, %c256_100] : memref<256x1152xbf16, #tpu.memory_space<vmem>>, vector<256x128xbf16>
    tpu.vector_store %arg18[%c0_99, %c256_100], %98 {strides = array<i32>} : memref<256x1152xbf16, #tpu.memory_space<vmem>>, vector<256x128xbf16>,
    %c1_101 = arith.constant 1 : index
    %c15_102 = arith.constant 15 : index
    %c0_103 = arith.constant 0 : index
    %100 = vector.load %arg16[%c1_101, %c15_102, %c0_103] : memref<18x48x128xbf16, #tpu.memory_space<vmem>>, vector<16x16x128xbf16>
    %101 = vector.shape_cast %100 : vector<16x16x128xbf16> to vector<256x128xbf16>
    %c0_104 = arith.constant 0 : index
    %c384_105 = arith.constant 384 : index
    %102 = vector.load %arg18[%c0_104, %c384_105] : memref<256x1152xbf16, #tpu.memory_space<vmem>>, vector<256x128xbf16>
    tpu.vector_store %arg18[%c0_104, %c384_105], %101 {strides = array<i32>} : memref<256x1152xbf16, #tpu.memory_space<vmem>>, vector<256x128xbf16>,
    %c1_106 = arith.constant 1 : index
    %c16_107 = arith.constant 16 : index
    %c0_108 = arith.constant 0 : index
    %103 = vector.load %arg16[%c1_106, %c16_107, %c0_108] : memref<18x48x128xbf16, #tpu.memory_space<vmem>>, vector<16x16x128xbf16>
    %104 = vector.shape_cast %103 : vector<16x16x128xbf16> to vector<256x128xbf16>
    %c0_109 = arith.constant 0 : index
    %c512_110 = arith.constant 512 : index
    %105 = vector.load %arg18[%c0_109, %c512_110] : memref<256x1152xbf16, #tpu.memory_space<vmem>>, vector<256x128xbf16>
    tpu.vector_store %arg18[%c0_109, %c512_110], %104 {strides = array<i32>} : memref<256x1152xbf16, #tpu.memory_space<vmem>>, vector<256x128xbf16>,
    %c1_111 = arith.constant 1 : index
    %c17_112 = arith.constant 17 : index
    %c0_113 = arith.constant 0 : index
    %106 = vector.load %arg16[%c1_111, %c17_112, %c0_113] : memref<18x48x128xbf16, #tpu.memory_space<vmem>>, vector<16x16x128xbf16>
    %107 = vector.shape_cast %106 : vector<16x16x128xbf16> to vector<256x128xbf16>
    %c0_114 = arith.constant 0 : index
    %c640_115 = arith.constant 640 : index
    %108 = vector.load %arg18[%c0_114, %c640_115] : memref<256x1152xbf16, #tpu.memory_space<vmem>>, vector<256x128xbf16>
    tpu.vector_store %arg18[%c0_114, %c640_115], %107 {strides = array<i32>} : memref<256x1152xbf16, #tpu.memory_space<vmem>>, vector<256x128xbf16>,
    %c2_116 = arith.constant 2 : index
    %c15_117 = arith.constant 15 : index
    %c0_118 = arith.constant 0 : index
    %109 = vector.load %arg16[%c2_116, %c15_117, %c0_118] : memref<18x48x128xbf16, #tpu.memory_space<vmem>>, vector<16x16x128xbf16>
    %110 = vector.shape_cast %109 : vector<16x16x128xbf16> to vector<256x128xbf16>
    %c0_119 = arith.constant 0 : index
    %c768_120 = arith.constant 768 : index
    %111 = vector.load %arg18[%c0_119, %c768_120] : memref<256x1152xbf16, #tpu.memory_space<vmem>>, vector<256x128xbf16>
    tpu.vector_store %arg18[%c0_119, %c768_120], %110 {strides = array<i32>} : memref<256x1152xbf16, #tpu.memory_space<vmem>>, vector<256x128xbf16>,
    %c2_121 = arith.constant 2 : index
    %c16_122 = arith.constant 16 : index
    %c0_123 = arith.constant 0 : index
    %112 = vector.load %arg16[%c2_121, %c16_122, %c0_123] : memref<18x48x128xbf16, #tpu.memory_space<vmem>>, vector<16x16x128xbf16>
    %113 = vector.shape_cast %112 : vector<16x16x128xbf16> to vector<256x128xbf16>
    %c0_124 = arith.constant 0 : index
    %c896_125 = arith.constant 896 : index
    %114 = vector.load %arg18[%c0_124, %c896_125] : memref<256x1152xbf16, #tpu.memory_space<vmem>>, vector<256x128xbf16>
    tpu.vector_store %arg18[%c0_124, %c896_125], %113 {strides = array<i32>} : memref<256x1152xbf16, #tpu.memory_space<vmem>>, vector<256x128xbf16>,
    %c2_126 = arith.constant 2 : index
    %c17_127 = arith.constant 17 : index
    %c0_128 = arith.constant 0 : index
    %115 = vector.load %arg16[%c2_126, %c17_127, %c0_128] : memref<18x48x128xbf16, #tpu.memory_space<vmem>>, vector<16x16x128xbf16>
    %116 = vector.shape_cast %115 : vector<16x16x128xbf16> to vector<256x128xbf16>
    %c0_129 = arith.constant 0 : index
    %c1024_130 = arith.constant 1024 : index
    %117 = vector.load %arg18[%c0_129, %c1024_130] : memref<256x1152xbf16, #tpu.memory_space<vmem>>, vector<256x128xbf16>
    tpu.vector_store %arg18[%c0_129, %c1024_130], %116 {strides = array<i32>} : memref<256x1152xbf16, #tpu.memory_space<vmem>>, vector<256x128xbf16>,
    %c0_131 = arith.constant 0 : index
    %c0_132 = arith.constant 0 : index
    %118 = vector.load %arg18[%c0_131, %c0_132] : memref<256x1152xbf16, #tpu.memory_space<vmem>>, vector<256x1152xbf16>
    %c0_133 = arith.constant 0 : index
    %c0_134 = arith.constant 0 : index
    %119 = vector.load %arg7[%c0_133, %c0_134] : memref<1152x128xbf16, #tpu.memory_space<vmem>>, vector<1152x128xbf16>
    %cst_135 = arith.constant dense<0.000000e+00> : vector<256x128xf32>
    %120 = tpu.matmul %118, %119, %cst_135 {dimension_numbers = #tpu.dot_dimension_numbers<[1], [0], [0], [1], [0, 0, 1, 1], [], []>} : vector<256x1152xbf16>, vector<1152x128xbf16>, vector<256x128xf32> -> vector<256x128xf32>
    %121 = vector.broadcast %90 : vector<1x128xf32> to vector<256x128xf32>
    %122 = arith.addf %120, %121 : vector<256x128xf32>
    %c0_136 = arith.constant 0 : index
    %c0_137 = arith.constant 0 : index
    %123 = vector.load %arg9[%c0_136, %c0_137] : memref<1x128xf32, #tpu.memory_space<vmem>>, vector<1x128xf32>
    %c0_138 = arith.constant 0 : index
    %c0_139 = arith.constant 0 : index
    %124 = vector.load %arg10[%c0_138, %c0_139] : memref<1x128xf32, #tpu.memory_space<vmem>>, vector<1x128xf32>
    %cst_140 = arith.constant dense<0.000000e+00> : vector<128xf32>
    %125 = vector.multi_reduction <add>, %122, %cst_140 [0] : vector<256x128xf32> to vector<128xf32>
    %126 = vector.shape_cast %125 : vector<128xf32> to vector<1x128xf32>
    %cst_141 = arith.constant dense<0.000000e+00> : vector<1x8xf32>
    %127 = tpu.matmul %126, %0, %cst_141 {dimension_numbers = #tpu.dot_dimension_numbers<[1], [0], [0], [1], [0, 0, 1, 1], [], []>} : vector<1x128xf32>, vector<128x8xf32>, vector<1x8xf32> -> vector<1x8xf32>
    %cst_142 = arith.constant 3.906250e-03 : f32
    %128 = vector.broadcast %cst_142 : f32 to vector<1x8xf32>
    %129 = arith.mulf %127, %128 : vector<1x8xf32>
    %cst_143 = arith.constant dense<0.000000e+00> : vector<1x128xf32>
    %130 = tpu.matmul %129, %1, %cst_143 {dimension_numbers = #tpu.dot_dimension_numbers<[1], [0], [0], [1], [0, 0, 1, 1], [], []>} : vector<1x8xf32>, vector<8x128xf32>, vector<1x128xf32> -> vector<1x128xf32>
    %131 = vector.broadcast %130 : vector<1x128xf32> to vector<256x128xf32>
    %132 = arith.subf %122, %131 : vector<256x128xf32>
    %133 = arith.mulf %132, %132 : vector<256x128xf32>
    %cst_144 = arith.constant dense<0.000000e+00> : vector<128xf32>
    %134 = vector.multi_reduction <add>, %133, %cst_144 [0] : vector<256x128xf32> to vector<128xf32>
    %135 = vector.shape_cast %134 : vector<128xf32> to vector<1x128xf32>
    %cst_145 = arith.constant dense<0.000000e+00> : vector<1x8xf32>
    %136 = tpu.matmul %135, %0, %cst_145 {dimension_numbers = #tpu.dot_dimension_numbers<[1], [0], [0], [1], [0, 0, 1, 1], [], []>} : vector<1x128xf32>, vector<128x8xf32>, vector<1x8xf32> -> vector<1x8xf32>
    %cst_146 = arith.constant 3.906250e-03 : f32
    %137 = vector.broadcast %cst_146 : f32 to vector<1x8xf32>
    %138 = arith.mulf %136, %137 : vector<1x8xf32>
    %cst_147 = arith.constant 9.99999974E-6 : f32
    %139 = vector.broadcast %cst_147 : f32 to vector<1x8xf32>
    %140 = arith.addf %138, %139 : vector<1x8xf32>
    %141 = math.rsqrt %140 : vector<1x8xf32>
    %cst_148 = arith.constant dense<0.000000e+00> : vector<1x128xf32>
    %142 = tpu.matmul %141, %1, %cst_148 {dimension_numbers = #tpu.dot_dimension_numbers<[1], [0], [0], [1], [0, 0, 1, 1], [], []>} : vector<1x8xf32>, vector<8x128xf32>, vector<1x128xf32> -> vector<1x128xf32>
    %143 = vector.broadcast %142 : vector<1x128xf32> to vector<256x128xf32>
    %144 = arith.mulf %132, %143 : vector<256x128xf32>
    %145 = vector.broadcast %123 : vector<1x128xf32> to vector<256x128xf32>
    %146 = arith.mulf %144, %145 : vector<256x128xf32>
    %147 = vector.broadcast %124 : vector<1x128xf32> to vector<256x128xf32>
    %148 = arith.addf %146, %147 : vector<256x128xf32>
    %cst_149 = arith.constant 0.000000e+00 : f32
    %149 = vector.broadcast %cst_149 : f32 to vector<256x128xf32>
    %150 = arith.subf %149, %148 : vector<256x128xf32>
    %151 = math.exp %150 : vector<256x128xf32>
    %cst_150 = arith.constant 1.000000e+00 : f32
    %152 = vector.broadcast %cst_150 : f32 to vector<256x128xf32>
    %153 = arith.addf %152, %151 : vector<256x128xf32>
    %154 = tpu.reciprocal %153 {approx = true} : vector<256x128xf32> -> vector<256x128xf32>
    %155 = arith.mulf %148, %154 : vector<256x128xf32>
    %c0_151 = arith.constant 0 : index
    %c512_152 = arith.constant 512 : index
    %156 = vector.load %arg17[%c0_151, %c512_152] : memref<256x1152xbf16, #tpu.memory_space<vmem>>, vector<256x128xbf16>
    %c0_153 = arith.constant 0 : index
    %c0_154 = arith.constant 0 : index
    %157 = vector.load %arg11[%c0_153, %c0_154] : memref<128x128xbf16, #tpu.memory_space<vmem>>, vector<128x128xbf16>
    %cst_155 = arith.constant dense<0.000000e+00> : vector<256x128xf32>
    %158 = tpu.matmul %156, %157, %cst_155 {dimension_numbers = #tpu.dot_dimension_numbers<[1], [0], [0], [1], [0, 0, 1, 1], [], []>} : vector<256x128xbf16>, vector<128x128xbf16>, vector<256x128xf32> -> vector<256x128xf32>
    %c0_156 = arith.constant 0 : index
    %c0_157 = arith.constant 0 : index
    %159 = vector.load %arg12[%c0_156, %c0_157] : memref<1x128xf32, #tpu.memory_space<vmem>>, vector<1x128xf32>
    %160 = vector.broadcast %159 : vector<1x128xf32> to vector<256x128xf32>
    %161 = arith.addf %158, %160 : vector<256x128xf32>
    %162 = arith.addf %155, %161 : vector<256x128xf32>
    %163 = vector.shape_cast %162 : vector<256x128xf32> to vector<16x16x128xf32>
    %c0_158 = arith.constant 0 : index
    %c0_159 = arith.constant 0 : index
    %c0_160 = arith.constant 0 : index
    %c0_161 = arith.constant 0 : index
    %164 = vector.load %arg15[%c0_158, %c0_159, %c0_160, %c0_161] : memref<1x16x16x128xf32, #tpu.memory_space<vmem>>, vector<1x16x16x128xf32>
    %165 = vector.shape_cast %164 : vector<1x16x16x128xf32> to vector<16x16x128xf32>
    %166 = vector.shape_cast %163 : vector<16x16x128xf32> to vector<1x16x16x128xf32>
    tpu.vector_store %arg15[%c0_158, %c0_159, %c0_160, %c0_161], %166 {strides = array<i32>} : memref<1x16x16x128xf32, #tpu.memory_space<vmem>>, vector<1x16x16x128xf32>,
    return
  }
  func.func @transform_0(%arg0: i32) -> (i32, i32, i32, i32) {
    %c0_i32 = arith.constant 0 : i32
    %c0_i32_0 = arith.constant 0 : i32
    %c0_i32_1 = arith.constant 0 : i32
    %c0_i32_2 = arith.constant 0 : i32
    return %arg0, %c0_i32, %c0_i32_0, %c0_i32_1 : i32, i32, i32, i32
  }
  func.func @transform_1(%arg0: i32) -> (i32, i32) {
    %c0_i32 = arith.constant 0 : i32
    %c0_i32_0 = arith.constant 0 : i32
    %c0_i32_1 = arith.constant 0 : i32
    return %c0_i32, %c0_i32_0 : i32, i32
  }
  func.func @transform_2(%arg0: i32) -> (i32, i32) {
    %c0_i32 = arith.constant 0 : i32
    %c0_i32_0 = arith.constant 0 : i32
    %c0_i32_1 = arith.constant 0 : i32
    return %c0_i32, %c0_i32_0 : i32, i32
  }
  func.func @transform_3(%arg0: i32) -> (i32, i32) {
    %c0_i32 = arith.constant 0 : i32
    %c0_i32_0 = arith.constant 0 : i32
    %c0_i32_1 = arith.constant 0 : i32
    return %c0_i32, %c0_i32_0 : i32, i32
  }
  func.func @transform_4(%arg0: i32) -> (i32, i32) {
    %c0_i32 = arith.constant 0 : i32
    %c0_i32_0 = arith.constant 0 : i32
    %c0_i32_1 = arith.constant 0 : i32
    return %c0_i32, %c0_i32_0 : i32, i32
  }
  func.func @transform_5(%arg0: i32) -> (i32, i32, i32) {
    %c0_i32 = arith.constant 0 : i32
    %c0_i32_0 = arith.constant 0 : i32
    %c0_i32_1 = arith.constant 0 : i32
    return %arg0, %c0_i32, %c0_i32_0 : i32, i32, i32
  }
  func.func @transform_6(%arg0: i32) -> (i32, i32) {
    %c0_i32 = arith.constant 0 : i32
    %c0_i32_0 = arith.constant 0 : i32
    %c0_i32_1 = arith.constant 0 : i32
    return %c0_i32, %c0_i32_0 : i32, i32
  }
  func.func @transform_7(%arg0: i32) -> (i32, i32) {
    %c0_i32 = arith.constant 0 : i32
    %c0_i32_0 = arith.constant 0 : i32
    %c0_i32_1 = arith.constant 0 : i32
    return %c0_i32, %c0_i32_0 : i32, i32
  }
  func.func @transform_8(%arg0: i32) -> (i32, i32) {
    %c0_i32 = arith.constant 0 : i32
    %c0_i32_0 = arith.constant 0 : i32
    %c0_i32_1 = arith.constant 0 : i32
    return %c0_i32, %c0_i32_0 : i32, i32
  }
  func.func @transform_9(%arg0: i32) -> (i32, i32) {
    %c0_i32 = arith.constant 0 : i32
    %c0_i32_0 = arith.constant 0 : i32
    %c0_i32_1 = arith.constant 0 : i32
    return %c0_i32, %c0_i32_0 : i32, i32
  }
  func.func @transform_10(%arg0: i32) -> (i32, i32) {
    %c0_i32 = arith.constant 0 : i32
    %c0_i32_0 = arith.constant 0 : i32
    %c0_i32_1 = arith.constant 0 : i32
    return %c0_i32, %c0_i32_0 : i32, i32
  }
  func.func @transform_11(%arg0: i32) -> (i32, i32) {
    %c0_i32 = arith.constant 0 : i32
    %c0_i32_0 = arith.constant 0 : i32
    %c0_i32_1 = arith.constant 0 : i32
    return %c0_i32, %c0_i32_0 : i32, i32
  }
  func.func @transform_12(%arg0: i32) -> (i32, i32) {
    %c0_i32 = arith.constant 0 : i32
    %c0_i32_0 = arith.constant 0 : i32
    %c0_i32_1 = arith.constant 0 : i32
    return %c0_i32, %c0_i32_0 : i32, i32
  }
  func.func @transform_13(%arg0: i32) -> (i32, i32) {
    %c0_i32 = arith.constant 0 : i32
    %c0_i32_0 = arith.constant 0 : i32
    %c0_i32_1 = arith.constant 0 : i32
    return %c0_i32, %c0_i32_0 : i32, i32
  }
  func.func @transform_14(%arg0: i32) -> (i32, i32, i32, i32) {
    %c0_i32 = arith.constant 0 : i32
    %c0_i32_0 = arith.constant 0 : i32
    %c0_i32_1 = arith.constant 0 : i32
    %c0_i32_2 = arith.constant 0 : i32
    return %arg0, %c0_i32, %c0_i32_0, %c0_i32_1 : i32, i32, i32, i32
  }
}

</mosaic_0001>

<bundles_post_ra>
// kernel: tpu_custom_call.1
= control target key start
LH: loop header
LB: loop body
LE: loop exit
PB: predicated region body
PF: predicated region fallthrough
CT: control target
= control target key end

     0   :  { %19 = vsyncpa [#allocation6], 0  ;;  %s17121_s0 = inlined_call_operand.vmem [shape: bf16[2,18,18,128], index: 0, kind: input, shape index: {}]   ;;  %s17122_s1 = inlined_call_operand.vmem [shape: bf16[1152,128], index: 1, kind: input, shape index: {}]   ;;  %s17123_s2 = inlined_call_operand.vmem [shape: f32[1,128], index: 2, kind: input, shape index: {}]   ;;  %s17124_s3 = inlined_call_operand.vmem [shape: f32[1,128], index: 3, kind: input, shape index: {}]   ;;  %s17125_s4 = inlined_call_operand.vmem [shape: f32[1,128], index: 4, kind: input, shape index: {}]   ;;  %s17126_s5 = inlined_call_operand.vmem [shape: f32[2,1,128], index: 5, kind: input, shape index: {}]   ;;  %s17127_s6 = inlined_call_operand.hbm [shape: bf16[1152,128], index: 6, kind: input, shape index: {}]   ;;  %s17128_s7 = inlined_call_operand.vmem [shape: f32[1,128], index: 7, kind: input, shape index: {}]   ;;  %s17129_s8 = inlined_call_operand.vmem [shape: f32[1,128], index: 8, kind: input, shape index: {}]   ;;  %s17130_s9 = inlined_call_operand.vmem [shape: f32[1,128], index: 9, kind: input, shape index: {}]   ;;  %s17131_s10 = inlined_call_operand.vmem [shape: bf16[128,128], index: 10, kind: input, shape index: {}]   ;;  %s17132_s11 = inlined_call_operand.vmem [shape: f32[1,128], index: 11, kind: input, shape index: {}]   ;;  %s17133_s12 = inlined_call_operand.vmem [shape: f32[128,8], index: 12, kind: input, shape index: {}]   ;;  %s17134_s13 = inlined_call_operand.vmem [shape: f32[8,128], index: 13, kind: input, shape index: {}]   ;;  %s17135_s14 = inlined_call_operand.hbm [shape: f32[2,16,16,128], index: 14, kind: output, shape index: {}]  }
   0x1   :  { %20 = vsyncpa [#allocation7], 0 }
   0x2   :  { %22 = vsyncpa [#allocation7 + $0x1], 0  ;;  %s12839_s29 = smov 0   ;;  %s12841_s30 = smov 0  }
   0x3   :  { %s12843_s15 = smov 0   ;;  %s12845_s16 = smov 0  }
   0x4 LB: > { %17212 = sst [smem:[#allocation11_spill]] %s12748_s15  ;;  %s12860_s17 = sadd.s32 4294967295, %s12752_s16   ;;  %s12752_s16 = sphi %s12845_s16, %s17416_s16   ;;  %s12748_s15 = sphi %s12843_s15, %s17418_s15   ;;  %s12744_s30 = sphi %s12841_s30, %s17420_s30   ;;  %s12740_s29 = sphi %s12839_s29, %s17419_s29  }
   0x5   : > { %s10049_s18 = sadd.s32 4294967294, %s12752_s16   ;;  %s12864_s19 = sadd.s32 1, %s12752_s16  }
   0x6   : > { %17213 = sst [smem:[#allocation12_spill]] %s12864_s19  ;;  %s339_s20 = sadd.s32 1, %s12748_s15 }
   0x7   : > { %s336_s21 = ssub.s32 %s12752_s16, %s12864_s19  ;;  %p349_p0 = scmp.ne.s32.totalorder %s12748_s15, %s12744_s30 }
   0x8   : > { %p337_p1 = scmp.eq.s32.totalorder %s336_s21, 0  ;;  %p350_p2 = scmp.eq.s32.totalorder %s12860_s17, 1 }
   0x9   : > { %p355_p3 = scmp.ne.s32.totalorder %s12744_s30, %s12740_s29  ;;  %p356_p4 = scmp.eq.s32.totalorder %s10049_s18, 1 }
   0xa   : > { %s12875_s22 = scalar_select %p337_p1, %s12748_s15, %s339_s20  }
   0xb   : > { %p12877_p5 = por %p350_p2, %p349_p0  ;;  %p12881_p6 = por %p356_p4, %p355_p3 }
   0xc   : > { %17214 = sst [smem:[#allocation13_spill]] %s12875_s22  ;;  %p10050_p7 = scmp.ge.s32.totalorder %s12752_s16, 1 }
   0xd   : > { %s17215_s23 = scalar_select %p12877_p5, 1, 0 }
   0xe   : > { %s17216_s24 = scalar_select %p12881_p6, 1, 0 }
   0xf   : > { %p363_p8 = scmp.lt.s32.totalorder %s12752_s16, 3  ;;  %p17140_p9 = scmp.eq.s32.totalorder %s12860_s17, 0 }
  0x10   : > { %17217 = sst [smem:[#allocation14_spill]] %s17216_s24  ;;  %s12754_s26 = smov [#allocation5]  }
  0x11   : > { %p12888_p10 = pnand %p10050_p7, %p363_p8  ;;  %s387_s27 = sshll.u32 %s12754_s26, 4  ;;  %s388_s27 = int_to_ptr.vmem [resolvable:$true] %s387_s27 }
  0x12   : > { %s12658_s21 = scalar_lea.hbm %s17127_s6, 9216 }
  0x13   : > { %s17218_s25 = scalar_select %p12888_p10, 1, 0 }
  0x14   : > { %p12142_p11 = pneg %p12888_p10  ;;  %p12659_p13 = scmp.ne.s32.totalorder %s17127_s6, %s12658_s21 }
  0x15   : > { %p12665_p3 = scmp.lt.u32.totalorder %s12658_s21, %s17127_s6 }
  0x16   : > { %p12896_p12 = pnand %p17140_p9, %p12142_p11 }
  0x18   : > { %p12660_p0 = pneg %p12896_p12 }
  0x1a   : > { %p12661_p1 = pnand %p12660_p0, %p12659_p13 }
  0x1c   : > { %p12662_p2 = pneg %p12661_p1 }
  0x1e   : > { %p12667_p4 = pnand %p12665_p3, %p12662_p2 }
  0x20   : > { %12670 = shalt.err (!%p12667_p4)
}
  0x21   : > { %s12671_s24 = scalar_lea.vmem %s388_s27, 9216  ;;  %p12679_p9 = scmp.lt.s32.totalorder %s388_s27, %s388_s27 }
  0x22   : > { %p12672_p7 = scmp.ne.s32.totalorder %s388_s27, %s12671_s24  ;;  %p12680_p6 = scmp.lt.s32.totalorder %s12671_s24, %s12671_s24 }
  0x24   : > { %p12674_p8 = pnand %p12672_p7, %p12660_p0  ;;  %p12681_p5 = por %p12680_p6, %p12679_p9 }
  0x26   : > { %p12675_p11 = pneg %p12674_p8 }
  0x28   : > { %p12682_p10 = pnand %p12681_p5, %p12675_p11 }
  0x2a   : > { %12685 = shalt.err (!%p12682_p10)
}
  0x2b   : > { %s12755_s15 = smov 64   ;;  %s12756_s22 = smov 4  }
  0x2c   : > { %12145 = dma.hbm_to_vmem [thread:$0]  (!%p12896_p12), %s17127_s6, 9216, %s388_s27, [#allocation6], %s12755_s15, %s12755_s15, %s12756_s22  }
  0x2d   : > { %p17220_p13 = scmp.ne.s32.totalorder %s17218_s25, 0 }
  0x2f   : > { %438 = sbr.rel (%p17220_p13) target bundleno = 3267 (0xcc3), region = 76 }
  0x36   : > { %p17221_p1 = scmp.eq.s32.totalorder %s12860_s17, 0 }
  0x38   : > { %12731 = dma.done.wait (%p17221_p1), [#allocation6], 9216   ;;  %p17222_p0 = pmov %p17221_p1 }
  0x39   : > { %v12194_v0 = vld [vmem:[%s17122_s1 + $0x40] sm:$0xff]   ;;  %p487_p5 = scmp.lt.s32.totalorder %s12860_s17, 1  ;;  %v12196_v2 = vld [vmem:[%s17122_s1 + $0x48] sm:$0xff]   ;;  %v12198_v4 = vld [vmem:[%s17122_s1 + $0x50] sm:$0xff]   ;;  %vm706_vm0 = vsmask.f32 3328 }
  0x3a   : > { %12733 = vsyncadd (%p17222_p0), [#allocation6], 4294958080  ;;  %v12195_v1 = vld [vmem:[%s17122_s1] sm:$0xff]   ;;  %10675 = vmatprep.subr.bf16.mxu0 %v12194_v0  ;;  %12119 = vmatprep.subr.bf16.mxu1 %v12194_v0  ;;  %v12197_v3 = vld [vmem:[%s17122_s1 + $0x8] sm:$0xff]   ;;  %vm707_vm1 = vsmask.f32 7440 }
  0x3b   : > { %10676 = vmatpush3.bf16.msra.mxu0 %v12195_v1  ;;  %12127 = vmatpush3.bf16.msra.mxu1 %v12195_v1  ;;  %s12939_s20 = scalar_select %p487_p5, %s12860_s17, 1  ;;  %v12199_v5 = vld [vmem:[%s17122_s1 + $0x10] sm:$0xff]   ;;  %v12200_v6 = vld [vmem:[%s17122_s1 + $0x58] sm:$0xff]   ;;  %v12202_v8 = vld [vmem:[%s17122_s1 + $0x60] sm:$0xff]   ;;  %vm1269_vm3 = vcmask 1042432   ;;  %vm1270_vm4 = vcmask 1046532  }
  0x3c   : > { %10677 = vmatprep.subr.bf16.mxu0 %v12196_v2  ;;  %12120 = vmatprep.subr.bf16.mxu1 %v12196_v2  ;;  %v12201_v7 = vld [vmem:[%s17122_s1 + $0x18] sm:$0xff]   ;;  %v12203_v9 = vld [vmem:[%s17122_s1 + $0x20] sm:$0xff]   ;;  %v12204_v10 = vld [vmem:[%s17122_s1 + $0x68] sm:$0xff]   ;;  %vm12758_vm6 = vmmov 0   ;;  %vm4995_vm7 = vcmask 64512   ;;  %s484_s18 = sand.u32 1, %s12744_s30  }
  0x3d   : > { %s12135_s25 = smul.u32 216, %s12939_s20  ;;  %v12205_v14 = vld [vmem:[%s17122_s1 + $0x28] sm:$0xff]   ;;  %v12206_v20 = vld [vmem:[%s17122_s1 + $0x70] sm:$0xff]   ;;  %vm12979_vm2 = vmor %vm706_vm0, %vm707_vm1  ;;  %vm5768_vm8 = vsmask.f32 256  ;;  %s16898_s19 = sshll.u32 %s484_s18, 8 }
  0x3e   : > { %v12207_v40 = vld [vmem:[%s17122_s1 + $0x30] sm:$0xff]   ;;  %v12208_v44 = vld [vmem:[%s17122_s1 + $0x78] sm:$0xff]   ;;  %v12212_v54 = vld [vmem:[%s17122_s1 + $0xc0] sm:$0xff]   ;;  %vm6057_vm9 = vsmask.f32 7424  ;;  %s16927_s28 = scalar_lea.vmem [#allocation8], %s16898_s19 }
  0x3f   : > { %10678 = vmatpush3.bf16.msra.mxu0 %v12197_v3  ;;  %12128 = vmatpush3.bf16.msra.mxu1 %v12197_v3  ;;  %s12957_s24 = scalar_lea.vmem %s17121_s0, %s12135_s25  ;;  %v12209_v50 = vld [vmem:[%s17122_s1 + $0x38] sm:$0xff]   ;;  %v12213_v58 = vld [vmem:[%s17122_s1 + $0x140] sm:$0xff]   ;;  %v12216_v1 = vld [vmem:[%s17122_s1 + $0xc8] sm:$0xff]   ;;  %s10674_s21 = sshll.u32 %s12860_s17, 12 }
  0x40   : > { %10679 = vmatprep.subr.bf16.mxu0 %v12198_v4  ;;  %12121 = vmatprep.subr.bf16.mxu1 %v12198_v4  ;;  %v658_v11 = vld [vmem:[%s12957_s24] sm:$0xf]  ;;  %v659_v12 = vld [vmem:[%s12957_s24 + $0x4] sm:$0xf]  ;;  %v660_v13 = vld [vmem:[%s12957_s24 + $0x8] sm:$0x1] }
  0x41   : > { %v710_v15 = vshrl.u32 %v658_v11, 16  ;;  %v713_v16 = vshll.u32 %v658_v11, 16  ;;  %v719_v17 = vshll.u32 %v659_v12, 16  ;;  %v723_v18 = vshrl.u32 %v659_v12, 16  ;;  %v694_v19 = vld [vmem:[%s12957_s24 + $0x90] sm:$0xf]  ;;  %vm13123_vm5 = vmor %vm1269_vm3, %vm1270_vm4 }
  0x42   : > { %v729_v21 = vshll.u32 %v660_v13, 16  ;;  %v695_v22 = vld [vmem:[%s12957_s24 + $0x94] sm:$0xf]  ;;  %v696_v23 = vld [vmem:[%s12957_s24 + $0x98] sm:$0x1]  ;;  %v998_v24 = vshrl.u32 %v694_v19, 16 }
  0x43   : > { %10680 = vmatpush3.bf16.msra.mxu0 %v12199_v5  ;;  %12129 = vmatpush3.bf16.msra.mxu1 %v12199_v5  ;;  %v712_v25 = vrot.slane %v710_v15, 4  ;;  %v715_v26 = vrot.slane %v713_v16, 5  ;;  %v721_v27 = vrot.slane %v719_v17, 5  ;;  %v725_v28 = vrot.slane %v723_v18, 4  ;;  %v12210_v56 = vld [vmem:[%s12957_s24] sm:$0xff]   ;;  %v12211_v57 = vld [vmem:[%s12957_s24 + $0x90] sm:$0xff]  }
  0x44   : > { %10681 = vmatprep.subr.bf16.mxu0 %v12200_v6  ;;  %12122 = vmatprep.subr.bf16.mxu1 %v12200_v6  ;;  %v731_v29 = vrot.slane %v729_v21, 5  ;;  %v1000_v30 = vrot.slane %v998_v24, 4  ;;  %v1001_v31 = vshll.u32 %v694_v19, 16  ;;  %v1007_v32 = vshll.u32 %v695_v22, 16  ;;  %v12214_v60 = vld [vmem:[%s17122_s1 + $0x80] sm:$0xff]   ;;  %v12217_v19 = vld [vmem:[%s17122_s1 + $0x88] sm:$0xff]  }
  0x45   : > { %v716_v33 = vor.u32 %v715_v26, %v712_v25  ;;  %v726_v34 = vor.u32 %v725_v28, %v721_v27  ;;  %v1011_v35 = vshrl.u32 %v695_v22, 16  ;;  %v1017_v36 = vshll.u32 %v696_v23, 16  ;;  %v12215_v61 = vld [vmem:[%s17122_s1 + $0x100] sm:$0xff]   ;;  %v661_v62 = vld [vmem:[%s12957_s24 + $0xc] sm:$0xf]  ;;  %s9966_s27 = sshll.u32 %s16927_s28, 4  ;;  %s17073_s27 = int_to_ptr.vmem [resolvable:$true] %s9966_s27 }
  0x46   : > { %v1003_v38 = vrot.slane %v1001_v31, 5  ;;  %v1009_v39 = vrot.slane %v1007_v32, 5  ;;  %v662_v63 = vld [vmem:[%s12957_s24 + $0x10] sm:$0xf]  ;;  %v663_v2 = vld [vmem:[%s12957_s24 + $0x14] sm:$0x1] }
  0x47   : > { %10682 = vmatpush3.bf16.msra.mxu0 %v12201_v7  ;;  %12130 = vmatpush3.bf16.msra.mxu1 %v12201_v7  ;;  %v717_v41 = vrot.slane %v716_v33, 4  ;;  %v727_v42 = vrot.slane %v726_v34, 4  ;;  %v1013_v43 = vrot.slane %v1011_v35, 4  ;;  %v1019_v49 = vrot.slane %v1017_v36, 5  ;;  %v699_v13 = vld [vmem:[%s12957_s24 + $0xa4] sm:$0x1] }
  0x48   : > { %10683 = vmatprep.subr.bf16.mxu0 %v12202_v8  ;;  %12123 = vmatprep.subr.bf16.mxu1 %v12202_v8  ;;  %v1004_v45 = vor.u32 %v1003_v38, %v1000_v30  ;;  %v734_v3 = vshrl.u32 %v661_v62, 16  ;;  %v737_v4 = vshll.u32 %v661_v62, 16  ;;  %v743_v5 = vshll.u32 %v662_v63, 16  ;;  %v697_v8 = vld [vmem:[%s12957_s24 + $0x9c] sm:$0xf]  ;;  %v12220_v30 = vld [vmem:[%s17122_s1 + $0xd0] sm:$0xff]  }
  0x49   : > { %v722_v46 = vsel %vm12979_vm2, %v717_v41, %v721_v27  ;;  %v732_v47 = vsel %vm12979_vm2, %v727_v42, %v731_v29  ;;  %v1014_v48 = vor.u32 %v1013_v43, %v1009_v39  ;;  %v747_v6 = vshrl.u32 %v662_v63, 16  ;;  %v12218_v33 = vld [vmem:[%s12957_s24 + $0xc] sm:$0xff]   ;;  %s12686_s25 = scalar_lea.vmem %s17073_s27, 4096  ;;  %p17413_p9 = scmp.ne.s32.totalorder %s17215_s23, 0 }
  0x4a   : > { %v10073_v51 = vcombine.low %v722_v46, %v732_v47  ;;  %v1005_v52 = vrot.slane %v1004_v45, 4  ;;  %v753_v7 = vshll.u32 %v663_v2, 16  ;;  %v739_v11 = vrot.slane %v737_v4, 5  ;;  %v12221_v34 = vld [vmem:[%s17122_s1 + $0x90] sm:$0xff]   ;;  %v12223_v43 = vld [vmem:[%s17122_s1 + $0x148] sm:$0xff]   ;;  %v12219_v45 = vld [vmem:[%s12957_s24 + $0x9c] sm:$0xff]   ;;  %p12687_p6 = scmp.ne.s32.totalorder %s17073_s27, %s12686_s25 }
  0x4b   : > { %10684 = vmatpush3.bf16.msra.mxu0 %v12203_v9  ;;  %12131 = vmatpush3.bf16.msra.mxu1 %v12203_v9  ;;  %v1015_v53 = vrot.slane %v1014_v48, 4  ;;  %v698_v9 = vld [vmem:[%s12957_s24 + $0xa0] sm:$0xf]  ;;  %v745_v12 = vrot.slane %v743_v5, 5  ;;  %v749_v15 = vrot.slane %v747_v6, 4  ;;  %v1025_v17 = vshll.u32 %v697_v8, 16 }
  0x4c   : > { %10685 = vmatprep.subr.bf16.mxu0 %v12204_v10  ;;  %12124 = vmatprep.subr.bf16.mxu1 %v12204_v10  ;;  %v1010_v55 = vsel %vm12979_vm2, %v1005_v52, %v1009_v39  ;;  %v736_v10 = vrot.slane %v734_v3, 4  ;;  %v755_v16 = vrot.slane %v753_v7, 5  ;;  %v1031_v18 = vshll.u32 %v698_v9, 16  ;;  %v12225_v47 = vld [vmem:[%s17122_s1 + $0x108] sm:$0xff]   ;;  %v664_v48 = vld [vmem:[%s12957_s24 + $0x18] sm:$0xf]  ;;  %p12688_p10 = pnand %p12687_p6, %p17413_p9 }
  0x4d   : > { %4112 = vmatprep.mubr.bf16.mxu0 %v10073_v51  ;;  %v1020_v59 = vsel %vm12979_vm2, %v1015_v53, %v1019_v49  ;;  %v1035_v22 = vshrl.u32 %v698_v9, 16  ;;  %v1041_v23 = vshll.u32 %v699_v13, 16  ;;  %v750_v24 = vor.u32 %v749_v15, %v745_v12  ;;  %v665_v49 = vld [vmem:[%s12957_s24 + $0x1c] sm:$0xf]  ;;  %v666_v52 = vld [vmem:[%s12957_s24 + $0x20] sm:$0x1] }
  0x4e   : > { %v10085_v0 = vcombine.low %v1010_v55, %v1020_v59  ;;  %v1027_v25 = vrot.slane %v1025_v17, 5  ;;  %v1033_v26 = vrot.slane %v1031_v18, 5  ;;  %v12224_v51 = vld [vmem:[%s17122_s1 + $0x98] sm:$0xff]   ;;  %v758_v53 = vshrl.u32 %v664_v48, 16  ;;  %v701_v59 = vld [vmem:[%s12957_s24 + $0xac] sm:$0xf]  ;;  %p12689_p12 = pneg %p12688_p10 }
  0x4f   : > { %10686 = vmatpush3.bf16.msra.mxu0 %v12205_v14  ;;  %12132 = vmatpush3.bf16.msra.mxu1 %v12205_v14  ;;  %v1022_v14 = vshrl.u32 %v697_v8, 16  ;;  %v1037_v28 = vrot.slane %v1035_v22, 4  ;;  %v1043_v29 = vrot.slane %v1041_v23, 5  ;;  %v751_v31 = vrot.slane %v750_v24, 4  ;;  %v702_v63 = vld [vmem:[%s12957_s24 + $0xb0] sm:$0x1] }
  0x50   : > { %10687 = vmatprep.subr.bf16.mxu0 %v12206_v20  ;;  %12125 = vmatprep.subr.bf16.mxu1 %v12206_v20  ;;  %v740_v20 = vor.u32 %v739_v11, %v736_v10  ;;  %v767_v55 = vshll.u32 %v665_v49, 16  ;;  %v1055_v4 = vshll.u32 %v701_v59, 16  ;;  %v1059_v7 = vshrl.u32 %v701_v59, 16  ;;  %v12228_v15 = vld [vmem:[%s17122_s1 + $0xe0] sm:$0xff]   ;;  %v12226_v18 = vld [vmem:[%s12957_s24 + $0x18] sm:$0xff]   ;;  %v12230_v24 = vld [vmem:[%s17122_s1 + $0xe8] sm:$0xff]  }
  0x51   : > { %4208 = vmatprep.mubr.bf16.mxu1 %v10085_v0  ;;  %v1024_v21 = vrot.slane %v1022_v14, 4  ;;  %v1038_v36 = vor.u32 %v1037_v28, %v1033_v26  ;;  %v756_v38 = vsel %vm12979_vm2, %v751_v31, %v755_v16  ;;  %v1065_v8 = vshll.u32 %v702_v63, 16  ;;  %v667_v28 = vld [vmem:[%s12957_s24 + $0x24] sm:$0xf]  ;;  %v12227_v31 = vld [vmem:[%s12957_s24 + $0xa8] sm:$0xff]   ;;  %s12761_s15 = smov [#allocation8]  }
  0x52   : > { %v741_v27 = vrot.slane %v740_v20, 4  ;;  %v769_v62 = vrot.slane %v767_v55, 5  ;;  %v1057_v11 = vrot.slane %v1055_v4, 5  ;;  %v1061_v13 = vrot.slane %v1059_v7, 4  ;;  %v12234_v55 = vld [vmem:[%s17122_s1 + $0xf0] sm:$0xff]   ;;  %s12690_s22 = sshll.u32 %s12761_s15, 4  ;;  %s12691_s22 = int_to_ptr.vmem [resolvable:$false] %s12690_s22 }
  0x53   : > { %10688 = vmatpush3.bf16.msra.mxu0 %v12207_v40  ;;  %12133 = vmatpush3.bf16.msra.mxu1 %v12207_v40  ;;  %v1028_v32 = vor.u32 %v1027_v25, %v1024_v21  ;;  %v12222_v40 = vld [vmem:[%s17122_s1 + $0xd8] sm:$0xff]   ;;  %v1039_v42 = vrot.slane %v1038_v36, 4  ;;  %v1067_v14 = vrot.slane %v1065_v8, 5  ;;  %v12236_v7 = vld [vmem:[%s17122_s1 + $0xb0] sm:$0xff]   ;;  %s12692_s19 = scalar_lea.vmem %s12691_s22, 8192  ;;  %p12693_p2 = scmp.lt.s32.totalorder %s17073_s27, %s12691_s22 }
  0x54   : > { %10689 = vmatprep.subr.bf16.mxu0 %v12208_v44  ;;  %12126 = vmatprep.subr.bf16.mxu1 %v12208_v44  ;;  %v746_v35 = vsel %vm12979_vm2, %v741_v27, %v745_v12  ;;  %v1062_v21 = vor.u32 %v1061_v13, %v1057_v11  ;;  %v12231_v27 = vld [vmem:[%s17122_s1 + $0xa8] sm:$0xff]   ;;  %v12238_v13 = vld [vmem:[%s17122_s1 + $0xf8] sm:$0xff]   ;;  %p12694_p3 = scmp.lt.s32.totalorder %s12692_s19, %s12686_s25 }
  0x55   : > { %v1029_v39 = vrot.slane %v1028_v32, 4  ;;  %v10074_v41 = vcombine.low %v746_v35, %v756_v38  ;;  %v1044_v46 = vsel %vm12979_vm2, %v1039_v42, %v1043_v29  ;;  %v668_v29 = vld [vmem:[%s12957_s24 + $0x28] sm:$0xf]  ;;  %v669_v32 = vld [vmem:[%s12957_s24 + $0x2c] sm:$0x1] }
  0x56   : > { %v791_v35 = vshll.u32 %v668_v29, 16  ;;  %v795_v38 = vshrl.u32 %v668_v29, 16  ;;  %p12695_p4 = por %p12694_p3, %p12693_p2 }
  0x57   : > { %10690 = vmatpush3.bf16.msra.mxu0 %v12209_v50  ;;  %12134 = vmatpush3.bf16.msra.mxu1 %v12209_v50  ;;  %v1034_v44 = vsel %vm12979_vm2, %v1029_v39, %v1033_v26  ;;  %v1063_v26 = vrot.slane %v1062_v21, 4  ;;  %v801_v39 = vshll.u32 %v669_v32, 16 }
  0x58   : > { %10787 = vmatprep.subr.bf16.mxu1 %v12212_v54  ;;  %10899 = vmatprep.subr.bf16.mxu0 %v12213_v58  ;;  %v10086_v50 = vcombine.low %v1034_v44, %v1044_v46  ;;  %v761_v54 = vshll.u32 %v664_v48, 16  ;;  %v700_v58 = vld [vmem:[%s12957_s24 + $0xa8] sm:$0xf]  ;;  %v705_v46 = vld [vmem:[%s12957_s24 + $0xbc] sm:$0x1]  ;;  %p12696_p7 = pnand %p12695_p4, %p12689_p12 }
  0x59   : > { %v1046_v0 = vshrl.u32 %v700_v58, 16  ;;  %v1049_v3 = vshll.u32 %v700_v58, 16  ;;  %v1068_v36 = vsel %vm12979_vm2, %v1063_v26, %v1067_v14  ;;  %v803_v48 = vrot.slane %v801_v39, 5 }
  0x5a   : > { %4113 = vmatmul.mubr.bf16.vlgmr.msra.gmra.mrb[0].mxu0 %v12210_v56  ;;  %4209 = vmatmul.mubr.bf16.vlgmr.msra.gmra.mrb[0].mxu1 %v12211_v57  ;;  %v771_v56 = vshrl.u32 %v665_v49, 16  ;;  %v777_v57 = vshll.u32 %v666_v52, 16 }
  0x5b   : > { %10788 = vmatpush3.bf16.msra.mxu1 %v12214_v60  ;;  %10900 = vmatpush3.bf16.msra.mxu0 %v12215_v61  ;;  %v760_v60 = vrot.slane %v758_v53, 4  ;;  %v763_v61 = vrot.slane %v761_v54, 5  ;;  %v1048_v6 = vrot.slane %v1046_v0, 4  ;;  %v1051_v10 = vrot.slane %v1049_v3, 5 }
  0x5c   : > { %10789 = vmatprep.subr.bf16.mxu1 %v12216_v1  ;;  %4120 = vmatprep.mubr.bf16.mxu0 %v10074_v41  ;;  %v773_v1 = vrot.slane %v771_v56, 4  ;;  %v779_v2 = vrot.slane %v777_v57, 5  ;;  %v704_v41 = vld [vmem:[%s12957_s24 + $0xb8] sm:$0xf]  ;;  %v1089_v54 = vshll.u32 %v705_v46, 16 }
  0x5d   : > { %10901 = vmatprep.subr.bf16.mxu0 %v12223_v43  ;;  %4216 = vmatprep.mubr.bf16.mxu1 %v10086_v50  ;;  %v764_v5 = vor.u32 %v763_v61, %v760_v60  ;;  %v1052_v17 = vor.u32 %v1051_v10, %v1048_v6  ;;  %v1079_v52 = vshll.u32 %v704_v41, 16  ;;  %v1083_v53 = vshrl.u32 %v704_v41, 16  ;;  %v12233_v10 = vld [vmem:[%s12957_s24 + $0xb4] sm:$0xff]  }
  0x5e   : > { %v774_v9 = vor.u32 %v773_v1, %v769_v62  ;;  %v12232_v1 = vld [vmem:[%s12957_s24 + $0x24] sm:$0xff]  }
  0x5f   : > { %10790 = vmatpush3.bf16.msra.mxu1 %v12217_v19  ;;  %10902 = vmatpush3.bf16.msra.mxu0 %v12225_v47  ;;  %v765_v12 = vrot.slane %v764_v5, 4  ;;  %v12229_v19 = vld [vmem:[%s17122_s1 + $0xa0] sm:$0xff]   ;;  %v1053_v23 = vrot.slane %v1052_v17, 4  ;;  %v797_v47 = vrot.slane %v795_v38, 4  ;;  %v1081_v60 = vrot.slane %v1079_v52, 5  ;;  %v12245_v52 = vld [vmem:[%s17122_s1 + $0x118] sm:$0xff]  }
  0x60   : > { %10791 = vmatprep.subr.bf16.mxu1 %v12220_v30  ;;  %v775_v16 = vrot.slane %v774_v9, 4  ;;  %v1085_v61 = vrot.slane %v1083_v53, 4  ;;  %v671_v17 = vld [vmem:[%s12957_s24 + $0x34] sm:$0xf]  ;;  %v12242_v38 = vld [vmem:[%s17122_s1 + $0x1c0] sm:$0xff]  }
  0x61   : > { %v770_v20 = vsel %vm12979_vm2, %v765_v12, %v769_v62  ;;  %v1058_v30 = vsel %vm12979_vm2, %v1053_v23, %v1057_v11  ;;  %v1091_v62 = vrot.slane %v1089_v54, 5  ;;  %v12237_v11 = vld [vmem:[%s17122_s1 + $0x110] sm:$0xff]   ;;  %v673_v53 = vld [vmem:[%s12957_s24 + $0x3c] sm:$0xf]  ;;  %v674_v54 = vld [vmem:[%s12957_s24 + $0x40] sm:$0xf] }
  0x62   : > { %4121 = vmatmul.mubr.bf16.gmra.mrb[4].mxu0 %v12218_v33  ;;  %4217 = vmatmul.mubr.bf16.gmra.mrb[4].mxu1 %v12219_v45  ;;  %v780_v22 = vsel %vm12979_vm2, %v775_v16, %v779_v2  ;;  %v782_v33 = vshrl.u32 %v667_v28, 16  ;;  %v10087_v42 = vcombine.low %v1058_v30, %v1068_v36  ;;  %v793_v45 = vrot.slane %v791_v35, 5  ;;  %v12235_v2 = vld [vmem:[%s17122_s1 + $0x150] sm:$0xff]   ;;  %v1175_v35 = vld [vmem:[%s12957_s24 + $0x8] sm:$0x1] }
  0x63   : > { %10792 = vmatpush3.bf16.msra.mxu1 %v12221_v34  ;;  %v10075_v25 = vcombine.low %v770_v20, %v780_v22  ;;  %v785_v34 = vshll.u32 %v667_v28, 16  ;;  %v1086_v4 = vor.u32 %v1085_v61, %v1081_v60  ;;  %10903 = vmatprep.subr.bf16.mxu0 %v12235_v2  ;;  %v670_v16 = vld [vmem:[%s12957_s24 + $0x30] sm:$0xf]  ;;  %v815_v22 = vshll.u32 %v671_v17, 16 }
  0x64   : > { %10793 = vmatprep.subr.bf16.mxu1 %v12222_v40  ;;  %v703_v40 = vld [vmem:[%s12957_s24 + $0xb4] sm:$0xf]  ;;  %v784_v43 = vrot.slane %v782_v33, 4  ;;  %4224 = vmatprep.mubr.bf16.mxu1 %v10087_v42  ;;  %v798_v56 = vor.u32 %v797_v47, %v793_v45  ;;  %v806_v20 = vshrl.u32 %v670_v16, 16  ;;  %v809_v21 = vshll.u32 %v670_v16, 16  ;;  %v12240_v23 = vld [vmem:[%s12957_s24 + $0xc] sm:$0xff]  }
  0x65   : > { %4128 = vmatprep.mubr.bf16.mxu0 %v10075_v25  ;;  %v787_v44 = vrot.slane %v785_v34, 5  ;;  %v1070_v49 = vshrl.u32 %v703_v40, 16  ;;  %v1073_v50 = vshll.u32 %v703_v40, 16  ;;  %v1087_v9 = vrot.slane %v1086_v4, 4  ;;  %10904 = vmatpush3.bf16.msra.mxu0 %v12237_v11  ;;  %v1174_v34 = vld [vmem:[%s12957_s24 + $0x4] sm:$0xf] }
  0x66   : > { %v799_v63 = vrot.slane %v798_v56, 4  ;;  %v808_v26 = vrot.slane %v806_v20, 4  ;;  %v817_v28 = vrot.slane %v815_v22, 5  ;;  %v1274_v40 = vrot.slane %v1174_v34, 5  ;;  %v12243_v47 = vld [vmem:[%s17122_s1 + $0x180] sm:$0xff]  }
  0x67   : > { %10794 = vmatpush3.bf16.msra.mxu1 %v12224_v51  ;;  %v788_v51 = vor.u32 %v787_v44, %v784_v43  ;;  %v1072_v57 = vrot.slane %v1070_v49, 4  ;;  %v1075_v58 = vrot.slane %v1073_v50, 5  ;;  %v1092_v14 = vsel %vm12979_vm2, %v1087_v9, %v1091_v62  ;;  %v12241_v44 = vld [vmem:[%s12957_s24 + $0x30] sm:$0xff]   ;;  %v12244_v49 = vld [vmem:[%s17122_s1 + $0x158] sm:$0xff]   ;;  %v1176_v4 = vld [vmem:[%s12957_s24 + $0xc] sm:$0xe] }
  0x68   : > { %10795 = vmatprep.subr.bf16.mxu1 %v12228_v15  ;;  %v804_v5 = vsel %vm12979_vm2, %v799_v63, %v803_v48  ;;  %v12239_v15 = vld [vmem:[%s17122_s1 + $0xb8] sm:$0xff]   ;;  %v1277_v41 = vrot.slane %v1175_v35, 5  ;;  %v1276_v46 = vrot.slane %v1274_v40, 4  ;;  %10905 = vmatprep.subr.bf16.mxu0 %v12244_v49  ;;  %v843_v61 = vshrl.u32 %v674_v54, 16  ;;  %v678_v16 = vld [vmem:[%s12957_s24 + $0x50] sm:$0x1] }
  0x69   : > { %v789_v59 = vrot.slane %v788_v51, 4  ;;  %v1076_v0 = vor.u32 %v1075_v58, %v1072_v57  ;;  %v675_v57 = vld [vmem:[%s12957_s24 + $0x44] sm:$0x1]  ;;  %v830_v58 = vshrl.u32 %v673_v53, 16  ;;  %10906 = vmatpush3.bf16.msra.mxu0 %v12245_v52  ;;  %v12246_v63 = vld [vmem:[%s12957_s24 + $0x18] sm:$0xff]   ;;  %v10090_v9 = vrot.slane %v1176_v4, 9 }
  0x6a   : > { %4129 = vmatmul.mubr.bf16.gmra.mrb[8].mxu0 %v12226_v18  ;;  %4225 = vmatmul.mubr.bf16.gmra.mrb[8].mxu1 %v12227_v31  ;;  %v1173_v31 = vld [vmem:[%s12957_s24] sm:$0xe]  ;;  %v1278_v51 = vsel %vm13123_vm5, %v1276_v46, %v1277_v41  ;;  %v849_v62 = vshll.u32 %v675_v57, 16  ;;  %v873_v35 = vshll.u32 %v678_v16, 16  ;;  %v1180_v41 = vld [vmem:[%s12957_s24 + $0x1c] sm:$0xf] }
  0x6b   : > { %10796 = vmatpush3.bf16.msra.mxu1 %v12229_v19  ;;  %v794_v3 = vsel %vm12979_vm2, %v789_v59, %v793_v45  ;;  %v1077_v6 = vrot.slane %v1076_v0, 4  ;;  %v672_v19 = vld [vmem:[%s12957_s24 + $0x38] sm:$0x1]  ;;  %v10089_v36 = vrot.slane %v1173_v31, 9  ;;  %v833_v59 = vshll.u32 %v673_v53, 16 }
  0x6c   : > { %10797 = vmatprep.subr.bf16.mxu1 %v12230_v24  ;;  %v10076_v8 = vcombine.low %v794_v3, %v804_v5  ;;  %v819_v24 = vshrl.u32 %v671_v17, 16  ;;  %v825_v25 = vshll.u32 %v672_v19, 16  ;;  %v832_v0 = vrot.slane %v830_v58, 4  ;;  %v12253_v58 = vld [vmem:[%s17122_s1 + $0x188] sm:$0xff]  }
  0x6d   : > { %v1082_v12 = vsel %vm12979_vm2, %v1077_v6, %v1081_v60  ;;  %v1275_v45 = vsel %vm13123_vm5, %v10089_v36, %v1274_v40  ;;  %v839_v60 = vshll.u32 %v674_v54, 16  ;;  %v845_v3 = vrot.slane %v843_v61, 4  ;;  %v1179_v40 = vld [vmem:[%s12957_s24 + $0x18] sm:$0xe]  ;;  %v12252_v54 = vld [vmem:[%s17122_s1 + $0x120] sm:$0xff]  }
  0x6e   : > { %4136 = vmatprep.mubr.bf16.mxu0 %v10076_v8  ;;  %v10088_v18 = vcombine.low %v1082_v12, %v1092_v14  ;;  %v821_v29 = vrot.slane %v819_v24, 4  ;;  %v827_v30 = vrot.slane %v825_v25, 5  ;;  %v10105_v56 = vcombine.low %v1275_v45, %v1278_v51  ;;  %v1178_v8 = vld [vmem:[%s12957_s24 + $0x14] sm:$0x1]  ;;  %v677_v14 = vld [vmem:[%s12957_s24 + $0x4c] sm:$0xf] }
  0x6f   : > { %10798 = vmatpush3.bf16.msra.mxu1 %v12231_v27  ;;  %v811_v27 = vrot.slane %v809_v21, 5  ;;  %v841_v2 = vrot.slane %v839_v60, 5  ;;  %v851_v6 = vrot.slane %v849_v62, 5  ;;  %v1284_v12 = vrot.slane %v1178_v8, 5  ;;  %v12247_v21 = vld [vmem:[%s12957_s24 + $0x3c] sm:$0xff]   ;;  %v12248_v25 = vld [vmem:[%s12957_s24 + $0x24] sm:$0xff]  }
  0x70   : > { %10799 = vmatprep.subr.bf16.mxu1 %v12234_v55  ;;  %4232 = vmatprep.mubr.bf16.mxu1 %v10088_v18  ;;  %v822_v39 = vor.u32 %v821_v29, %v817_v28  ;;  %v863_v19 = vshll.u32 %v677_v14, 16  ;;  %v867_v24 = vshrl.u32 %v677_v14, 16  ;;  %v10091_v45 = vrot.slane %v1179_v40, 9  ;;  %v680_v62 = vld [vmem:[%s12957_s24 + $0x58] sm:$0xf] }
  0x71   : > { %v812_v33 = vor.u32 %v811_v27, %v808_v26  ;;  %v1288_v46 = vrot.slane %v1180_v41, 5  ;;  %v1184_v14 = vld [vmem:[%s12957_s24 + $0x2c] sm:$0x1] }
  0x72   : > { %4137 = vmatmul.mubr.bf16.gmra.mrb[12].mxu0 %v12232_v1  ;;  %4233 = vmatmul.mubr.bf16.gmra.mrb[12].mxu1 %v12233_v10  ;;  %v823_v43 = vrot.slane %v822_v39, 4  ;;  %v835_v1 = vrot.slane %v833_v59, 5  ;;  %v846_v10 = vor.u32 %v845_v3, %v841_v2  ;;  %v865_v29 = vrot.slane %v863_v19, 5  ;;  %v679_v59 = vld [vmem:[%s12957_s24 + $0x54] sm:$0xf]  ;;  %v12256_v19 = vld [vmem:[%s17122_s1 + $0x168] sm:$0xff]  }
  0x73   : > { %10800 = vmatpush3.bf16.msra.mxu1 %v12236_v7  ;;  %4273 = vmatprep.mubr.bf16.mxu1 %v12240_v23  ;;  %v813_v42 = vrot.slane %v812_v33, 4  ;;  %v1177_v7 = vld [vmem:[%s12957_s24 + $0x10] sm:$0xf]  ;;  %v869_v34 = vrot.slane %v867_v24, 4  ;;  %v1289_v51 = vsel %vm13123_vm5, %v10091_v45, %v1288_v46  ;;  %v1290_v52 = vrot.slane %v1288_v46, 4 }
  0x74   : > { %10801 = vmatprep.subr.bf16.mxu1 %v12238_v13  ;;  %v828_v50 = vsel %vm12979_vm2, %v823_v43, %v827_v30  ;;  %v836_v5 = vor.u32 %v835_v1, %v832_v0  ;;  %v1281_v11 = vrot.slane %v1177_v7, 5  ;;  %v676_v13 = vld [vmem:[%s12957_s24 + $0x48] sm:$0xf]  ;;  %v847_v20 = vrot.slane %v846_v10, 4  ;;  %v12250_v30 = vld [vmem:[%s17122_s1 + $0x160] sm:$0xff]   ;;  %v12260_v46 = vld [vmem:[%s17122_s1 + $0x1d0] sm:$0xff]  }
  0x75   : > { %v818_v48 = vsel %vm12979_vm2, %v813_v42, %v817_v28  ;;  %v854_v17 = vshrl.u32 %v676_v13, 16  ;;  %v857_v18 = vshll.u32 %v676_v13, 16  ;;  %v1181_v42 = vld [vmem:[%s12957_s24 + $0x20] sm:$0x1]  ;;  %10907 = vmatprep.subr.bf16.mxu0 %v12250_v30  ;;  %v870_v43 = vor.u32 %v869_v34, %v865_v29  ;;  %v1183_v13 = vld [vmem:[%s12957_s24 + $0x28] sm:$0xf] }
  0x76   : > { %v10077_v55 = vcombine.low %v818_v48, %v828_v50  ;;  %v1282_v22 = vsel %vm13123_vm5, %v10090_v9, %v1281_v11  ;;  %v1283_v23 = vrot.slane %v1281_v11, 4  ;;  %v852_v31 = vsel %vm12979_vm2, %v847_v20, %v851_v6  ;;  %10908 = vmatpush3.bf16.msra.mxu0 %v12252_v54 }
  0x77   : > { %10802 = vmatpush3.bf16.msra.mxu1 %v12239_v15  ;;  %v837_v15 = vrot.slane %v836_v5, 4  ;;  %v856_v27 = vrot.slane %v854_v17, 4  ;;  %v859_v28 = vrot.slane %v857_v18, 5  ;;  %v1291_v49 = vrot.slane %v1181_v42, 5  ;;  %v12254_v5 = vld [vmem:[%s12957_s24 + $0x30] sm:$0xff]   ;;  %10909 = vmatprep.subr.bf16.mxu0 %v12256_v19  ;;  %v12258_v42 = vld [vmem:[%s12957_s24 + $0x3c] sm:$0xff]  }
  0x78   : > { %11011 = vmatprep.subr.bf16.mxu1 %v12242_v38  ;;  %4144 = vmatprep.mubr.bf16.mxu0 %v10077_v55  ;;  %v1285_v33 = vsel %vm13123_vm5, %v1283_v23, %v1284_v12  ;;  %v871_v50 = vrot.slane %v870_v43, 4  ;;  %v878_v0 = vshrl.u32 %v679_v59, 16  ;;  %v881_v1 = vshll.u32 %v679_v59, 16  ;;  %v1182_v12 = vld [vmem:[%s12957_s24 + $0x24] sm:$0xe]  ;;  %v12255_v23 = vld [vmem:[%s12957_s24 + $0x54] sm:$0xff]  }
  0x79   : > { %v842_v26 = vsel %vm12979_vm2, %v837_v15, %v841_v2  ;;  %v10106_v38 = vcombine.low %v1282_v22, %v1285_v33  ;;  %v860_v39 = vor.u32 %v859_v28, %v856_v27  ;;  %v1292_v57 = vsel %vm13123_vm5, %v1290_v52, %v1291_v49  ;;  %v683_v28 = vld [vmem:[%s12957_s24 + $0x64] sm:$0xf]  ;;  %v1186_v49 = vld [vmem:[%s12957_s24 + $0x34] sm:$0xf]  ;;  %v1189_v19 = vld [vmem:[%s12957_s24 + $0x40] sm:$0xf] }
  0x7a   : > { %4274 = vmatmul.mubr.bf16.vlgmr.msra.gmra.mrb[16].mxu1 %v10105_v56  ;;  %4145 = vmatmul.mubr.bf16.gmra.mrb[16].mxu0 %v12241_v44  ;;  %v10078_v36 = vcombine.low %v842_v26, %v852_v31  ;;  %v875_v44 = vrot.slane %v873_v35, 5  ;;  %v12249_v56 = vld [vmem:[%s12957_s24 + $0x48] sm:$0xff]   ;;  %v10107_v61 = vcombine.low %v1289_v51, %v1292_v57  ;;  %v887_v2 = vshll.u32 %v680_v62, 16  ;;  %v682_v26 = vld [vmem:[%s12957_s24 + $0x60] sm:$0xf] }
  0x7b   : > { %11012 = vmatpush3.bf16.msra.mxu1 %v12243_v47  ;;  %4281 = vmatprep.mubr.bf16.mxu1 %v12246_v63  ;;  %v12251_v47 = vld [vmem:[%s17122_s1 + $0x1c8] sm:$0xff]   ;;  %v861_v48 = vrot.slane %v860_v39, 4  ;;  %v681_v63 = vld [vmem:[%s12957_s24 + $0x5c] sm:$0x1]  ;;  %v891_v3 = vshrl.u32 %v680_v62, 16  ;;  %v880_v6 = vrot.slane %v878_v0, 4 }
  0x7c   : > { %4152 = vmatprep.mubr.bf16.mxu0 %v10078_v36  ;;  %11013 = vmatprep.subr.bf16.mxu1 %v12251_v47  ;;  %v876_v55 = vsel %vm12979_vm2, %v871_v50, %v875_v44  ;;  %v897_v4 = vshll.u32 %v681_v63, 16  ;;  %v883_v7 = vrot.slane %v881_v1, 5  ;;  %v889_v8 = vrot.slane %v887_v2, 5  ;;  %v1187_v50 = vld [vmem:[%s12957_s24 + $0x38] sm:$0x1]  ;;  %v12259_v59 = vld [vmem:[%s12957_s24 + $0x60] sm:$0xff]  }
  0x7d   : > { %v866_v53 = vsel %vm12979_vm2, %v861_v48, %v865_v29  ;;  %v893_v9 = vrot.slane %v891_v3, 4  ;;  %v10092_v16 = vrot.slane %v1182_v12, 9  ;;  %v1295_v17 = vrot.slane %v1183_v13, 5  ;;  %v684_v29 = vld [vmem:[%s12957_s24 + $0x68] sm:$0x1] }
  0x7e   : > { %v10079_v60 = vcombine.low %v866_v53, %v876_v55  ;;  %v899_v10 = vrot.slane %v897_v4, 5  ;;  %v884_v11 = vor.u32 %v883_v7, %v880_v6  ;;  %v1298_v18 = vrot.slane %v1184_v14, 5  ;;  %v1185_v48 = vld [vmem:[%s12957_s24 + $0x30] sm:$0xe]  ;;  %v685_v62 = vld [vmem:[%s12957_s24 + $0x6c] sm:$0xf] }
  0x7f   : > { %11014 = vmatpush3.bf16.msra.mxu1 %v12253_v58  ;;  %v894_v15 = vor.u32 %v893_v9, %v889_v8  ;;  %v1296_v24 = vsel %vm13123_vm5, %v10092_v16, %v1295_v17  ;;  %v902_v30 = vshrl.u32 %v682_v26, 16  ;;  %v905_v31 = vshll.u32 %v682_v26, 16  ;;  %v12261_v55 = vld [vmem:[%s17122_s1 + $0x190] sm:$0xff]   ;;  %v12262_v12 = vld [vmem:[%s12957_s24 + $0x48] sm:$0xff]  }
  0x80   : > { %v885_v20 = vrot.slane %v884_v11, 4  ;;  %v911_v35 = vshll.u32 %v683_v28, 16  ;;  %v915_v36 = vshrl.u32 %v683_v28, 16  ;;  %v921_v45 = vshll.u32 %v684_v29, 16  ;;  %11015 = vmatprep.subr.bf16.mxu1 %v12260_v46  ;;  %v686_v0 = vld [vmem:[%s12957_s24 + $0x70] sm:$0xf] }
  0x81   : > { %v895_v22 = vrot.slane %v894_v15, 4  ;;  %v904_v40 = vrot.slane %v902_v30, 4  ;;  %v907_v41 = vrot.slane %v905_v31, 5  ;;  %v10093_v53 = vrot.slane %v1185_v48, 9  ;;  %v687_v1 = vld [vmem:[%s12957_s24 + $0x74] sm:$0x1] }
  0x82   : > { %4282 = vmatmul.mubr.bf16.gmra.mrb[20].mxu1 %v10106_v38  ;;  %4153 = vmatmul.mubr.bf16.gmra.mrb[20].mxu0 %v12247_v21  ;;  %v12257_v21 = vld [vmem:[%s17122_s1 + $0x128] sm:$0xff]   ;;  %v890_v27 = vsel %vm12979_vm2, %v885_v20, %v889_v8  ;;  %v913_v43 = vrot.slane %v911_v35, 5  ;;  %v917_v44 = vrot.slane %v915_v36, 4  ;;  %v923_v52 = vrot.slane %v921_v45, 5  ;;  %v12264_v16 = vld [vmem:[%s17122_s1 + $0x170] sm:$0xff]  }
  0x83   : > { %4289 = vmatprep.mubr.bf16.mxu1 %v12248_v25  ;;  %4160 = vmatprep.mubr.bf16.mxu0 %v10079_v60  ;;  %v1297_v25 = vrot.slane %v1295_v17, 4  ;;  %v900_v33 = vsel %vm12979_vm2, %v895_v22, %v899_v10  ;;  %v908_v47 = vor.u32 %v907_v41, %v904_v40  ;;  %v1302_v54 = vrot.slane %v1186_v49, 5  ;;  %v1190_v20 = vld [vmem:[%s12957_s24 + $0x44] sm:$0x1]  ;;  %v12263_v29 = vld [vmem:[%s12957_s24 + $0x6c] sm:$0xff]   ;;  %v12266_v48 = vld [vmem:[%s12957_s24 + $0x54] sm:$0xff]  }
  0x84   : > { %10910 = vmatpush3.bf16.msra.mxu0 %v12257_v21  ;;  %v10080_v38 = vcombine.low %v890_v27, %v900_v33  ;;  %v918_v51 = vor.u32 %v917_v44, %v913_v43  ;;  %v1305_v57 = vrot.slane %v1187_v50, 5  ;;  %11016 = vmatpush3.bf16.msra.mxu1 %v12261_v55  ;;  %v926_v2 = vshrl.u32 %v685_v62, 16  ;;  %v688_v33 = vld [vmem:[%s12957_s24 + $0x78] sm:$0xf]  ;;  %v689_v35 = vld [vmem:[%s12957_s24 + $0x7c] sm:$0xf] }
  0x85   : > { %v1299_v34 = vsel %vm13123_vm5, %v1297_v25, %v1298_v18  ;;  %v1303_v60 = vsel %vm13123_vm5, %v10093_v53, %v1302_v54  ;;  %v929_v3 = vshll.u32 %v685_v62, 16  ;;  %v935_v6 = vshll.u32 %v686_v0, 16  ;;  %v1188_v18 = vld [vmem:[%s12957_s24 + $0x3c] sm:$0xe]  ;;  %v12265_v25 = vld [vmem:[%s17122_s1 + $0x130] sm:$0xff]   ;;  %10911 = vmatprep.subr.bf16.mxu0 %v12264_v16 }
  0x86   : > { %v10108_v39 = vcombine.low %v1296_v24, %v1299_v34  ;;  %v919_v58 = vrot.slane %v918_v51, 4  ;;  %v939_v7 = vshrl.u32 %v686_v0, 16  ;;  %v928_v10 = vrot.slane %v926_v2, 4  ;;  %v690_v36 = vld [vmem:[%s12957_s24 + $0x80] sm:$0x1] }
  0x87   : > { %v931_v11 = vrot.slane %v929_v3, 5  ;;  %v937_v13 = vrot.slane %v935_v6, 5  ;;  %v945_v15 = vshll.u32 %v687_v1, 16  ;;  %v1309_v24 = vrot.slane %v1189_v19, 5  ;;  %v1192_v55 = vld [vmem:[%s12957_s24 + $0x4c] sm:$0xf] }
  0x88   : > { %v924_v4 = vsel %vm12979_vm2, %v919_v58, %v923_v52  ;;  %v941_v14 = vrot.slane %v939_v7, 4  ;;  %v1312_v27 = vrot.slane %v1190_v20, 5  ;;  %10912 = vmatpush3.bf16.msra.mxu0 %v12265_v25  ;;  %v969_v51 = vshll.u32 %v690_v36, 16  ;;  %v12268_v52 = vld [vmem:[%s17122_s1 + $0x1d8] sm:$0xff]   ;;  %v12272_v19 = vld [vmem:[%s12957_s24 + $0x60] sm:$0xff]  }
  0x89   : > { %v932_v17 = vor.u32 %v931_v11, %v928_v10  ;;  %v947_v22 = vrot.slane %v945_v15, 5  ;;  %v1311_v31 = vrot.slane %v1309_v24, 4  ;;  %11017 = vmatprep.subr.bf16.mxu1 %v12268_v52  ;;  %v12267_v1 = vld [vmem:[%s12957_s24 + $0x78] sm:$0xff]   ;;  %v12275_v36 = vld [vmem:[%s17122_s1 + $0x1e0] sm:$0xff]  }
  0x8a   : > { %4290 = vmatmul.mubr.bf16.gmra.mrb[24].mxu1 %v10107_v61  ;;  %4161 = vmatmul.mubr.bf16.gmra.mrb[24].mxu0 %v12249_v56  ;;  %v909_v56 = vrot.slane %v908_v47, 4  ;;  %v1304_v61 = vrot.slane %v1302_v54, 4  ;;  %v942_v21 = vor.u32 %v941_v14, %v937_v13  ;;  %v1191_v54 = vld [vmem:[%s12957_s24 + $0x48] sm:$0xe]  ;;  %v971_v58 = vrot.slane %v969_v51, 5 }
  0x8b   : > { %4297 = vmatprep.mubr.bf16.mxu1 %v12254_v5  ;;  %4168 = vmatprep.mubr.bf16.mxu0 %v10080_v38  ;;  %v933_v26 = vrot.slane %v932_v17, 4  ;;  %v950_v38 = vshrl.u32 %v688_v33, 16  ;;  %v1313_v41 = vsel %vm13123_vm5, %v1311_v31, %v1312_v27  ;;  %v1195_v27 = vld [vmem:[%s12957_s24 + $0x58] sm:$0xf] }
  0x8c   : > { %v914_v63 = vsel %vm12979_vm2, %v909_v56, %v913_v43  ;;  %v1306_v5 = vsel %vm13123_vm5, %v1304_v61, %v1305_v57  ;;  %v943_v28 = vrot.slane %v942_v21, 4  ;;  %v963_v43 = vshrl.u32 %v689_v35, 16  ;;  %v1193_v56 = vld [vmem:[%s12957_s24 + $0x50] sm:$0x1]  ;;  %v12269_v61 = vld [vmem:[%s17122_s1 + $0x198] sm:$0xff]  }
  0x8d   : > { %v10081_v8 = vcombine.low %v914_v63, %v924_v4  ;;  %v10109_v9 = vcombine.low %v1303_v60, %v1306_v5  ;;  %v938_v34 = vsel %vm12979_vm2, %v933_v26, %v937_v13  ;;  %v952_v46 = vrot.slane %v950_v38, 4  ;;  %11018 = vmatpush3.bf16.msra.mxu1 %v12269_v61  ;;  %v12270_v5 = vld [vmem:[%s17122_s1 + $0x178] sm:$0xff]   ;;  %v693_v13 = vld [vmem:[%s12957_s24 + $0x8c] sm:$0x1]  ;;  %v1194_v26 = vld [vmem:[%s12957_s24 + $0x54] sm:$0xe] }
  0x8e   : > { %v948_v40 = vsel %vm12979_vm2, %v943_v28, %v947_v22  ;;  %v965_v50 = vrot.slane %v963_v43, 4  ;;  %v1316_v60 = vrot.slane %v1192_v55, 5  ;;  %v1319_v63 = vrot.slane %v1193_v56, 5  ;;  %10913 = vmatprep.subr.bf16.mxu0 %v12270_v5  ;;  %v1196_v28 = vld [vmem:[%s12957_s24 + $0x5c] sm:$0x1]  ;;  %11019 = vmatprep.subr.bf16.mxu1 %v12275_v36  ;;  %v12277_v56 = vld [vmem:[%s17122_s1 + $0x1a0] sm:$0xff]  }
  0x8f   : > { %v10082_v44 = vcombine.low %v938_v34, %v948_v40  ;;  %v1323_v31 = vrot.slane %v1195_v27, 5  ;;  %v10234_v43 = vld [vmem:[%s12957_s24 + $0x10] sm:$0xf]  ;;  %v10169_v61 = vld [vmem:[%s12957_s24 + $0xc] sm:$0xf] }
  0x90   : > { %v1318_v3 = vrot.slane %v1316_v60, 4 }
  0x91   : > { %11020 = vmatpush3.bf16.msra.mxu1 %v12277_v56  ;;  %v12281_v56 = vld [vmem:[%s17122_s1 + $0x208] sm:$0xff]  }
  0x92   : > { %4298 = vmatmul.mubr.bf16.gmra.mrb[28].mxu1 %v10108_v39  ;;  %4169 = vmatmul.mubr.bf16.gmra.mrb[28].mxu0 %v12255_v23  ;;  %v10094_v23 = vrot.slane %v1188_v18, 9  ;;  %v953_v39 = vshll.u32 %v688_v33, 16  ;;  %v1320_v7 = vsel %vm13123_vm5, %v1318_v3, %v1319_v63  ;;  %v993_v18 = vshll.u32 %v693_v13, 16 }
  0x93   : > { %4305 = vmatprep.mubr.bf16.mxu1 %v12258_v42  ;;  %4176 = vmatprep.mubr.bf16.mxu0 %v10081_v8  ;;  %v959_v42 = vshll.u32 %v689_v35, 16  ;;  %v12271_v8 = vld [vmem:[%s17122_s1 + $0x138] sm:$0xff]   ;;  %v1326_v33 = vrot.slane %v1196_v28, 5  ;;  %v10233_v35 = vld [vmem:[%s12957_s24 + $0xc] sm:$0xe]  ;;  %v1661_v3 = vshll.u32 %v10169_v61, 16 }
  0x94   : > { %v1310_v30 = vsel %vm13123_vm5, %v10094_v23, %v1309_v24  ;;  %v955_v47 = vrot.slane %v953_v39, 5  ;;  %10914 = vmatpush3.bf16.msra.mxu0 %v12271_v8  ;;  %v995_v24 = vrot.slane %v993_v18, 5  ;;  %v12273_v39 = vld [vmem:[%s12957_s24 + $0x84] sm:$0xff]  }
  0x95   : > { %v10110_v45 = vcombine.low %v1310_v30, %v1313_v41  ;;  %v961_v49 = vrot.slane %v959_v42, 5  ;;  %v10096_v30 = vrot.slane %v1194_v26, 9  ;;  %v1325_v41 = vrot.slane %v1323_v31, 4  ;;  %v12274_v42 = vld [vmem:[%s12957_s24 + $0x6c] sm:$0xff]  }
  0x96   : > { %v956_v53 = vor.u32 %v955_v47, %v952_v46  ;;  %v10281_v46 = vrot.slane %v10233_v35, 9  ;;  %v2219_v47 = vrot.slane %v10234_v43, 5  ;;  %v1200_v26 = vld [vmem:[%s12957_s24 + $0x6c] sm:$0xe]  ;;  %v1202_v35 = vld [vmem:[%s12957_s24 + $0x74] sm:$0x1] }
  0x97   : > { %v966_v57 = vor.u32 %v965_v50, %v961_v49  ;;  %v1324_v40 = vsel %vm13123_vm5, %v10096_v30, %v1323_v31  ;;  %v13311_v50 = vld [vmem:[%s17122_s1 + $0x200] sm:$0xff]   ;;  %v1327_v52 = vsel %vm13123_vm5, %v1325_v41, %v1326_v33  ;;  %v1201_v30 = vld [vmem:[%s12957_s24 + $0x70] sm:$0xf]  ;;  %v10098_v31 = vrot.slane %v1200_v26, 9 }
  0x98   : > { %v957_v62 = vrot.slane %v956_v53, 4  ;;  %v1198_v53 = vld [vmem:[%s12957_s24 + $0x64] sm:$0xf]  ;;  %11719 = vmatprep.subr.bf16.mxu0 %v13311_v50  ;;  %v1337_v36 = vrot.slane %v1201_v30, 5  ;;  %v1340_v41 = vrot.slane %v1202_v35, 5 }
  0x99   : > { %v967_v0 = vrot.slane %v966_v57, 4  ;;  %v1330_v63 = vrot.slane %v1198_v53, 5  ;;  %v10174_v43 = vld [vmem:[%s12957_s24 + $0x20] sm:$0x1] }
  0x9a   : > { %4306 = vmatmul.mubr.bf16.gmra.mrb[32].mxu1 %v10109_v9  ;;  %4177 = vmatmul.mubr.bf16.gmra.mrb[32].mxu0 %v12259_v59  ;;  %v10095_v59 = vrot.slane %v1191_v54, 9  ;;  %v962_v4 = vsel %vm12979_vm2, %v957_v62, %v961_v49  ;;  %v691_v9 = vld [vmem:[%s12957_s24 + $0x84] sm:$0xf]  ;;  %v1197_v49 = vld [vmem:[%s12957_s24 + $0x60] sm:$0xe] }
  0x9b   : > { %4313 = vmatprep.mubr.bf16.mxu1 %v12262_v12  ;;  %4184 = vmatprep.mubr.bf16.mxu0 %v10082_v44  ;;  %v972_v6 = vsel %vm12979_vm2, %v967_v0, %v971_v58  ;;  %v692_v12 = vld [vmem:[%s12957_s24 + $0x88] sm:$0xf]  ;;  %v974_v14 = vshrl.u32 %v691_v9, 16  ;;  %v977_v15 = vshll.u32 %v691_v9, 16  ;;  %v10235_v44 = vld [vmem:[%s12957_s24 + $0x14] sm:$0x1]  ;;  %v10112_v58 = vcombine.low %v1324_v40, %v1327_v52 }
  0x9c   : > { %v1317_v2 = vsel %vm13123_vm5, %v10095_v59, %v1316_v60  ;;  %v10083_v10 = vcombine.low %v962_v4, %v972_v6  ;;  %v983_v16 = vshll.u32 %v692_v12, 16  ;;  %v987_v17 = vshrl.u32 %v692_v12, 16  ;;  %v1199_v54 = vld [vmem:[%s12957_s24 + $0x68] sm:$0x1]  ;;  %v10170_v62 = vld [vmem:[%s12957_s24 + $0x10] sm:$0xf] }
  0x9d   : > { %v10111_v11 = vcombine.low %v1317_v2, %v1320_v7  ;;  %v976_v20 = vrot.slane %v974_v14, 4  ;;  %v979_v21 = vrot.slane %v977_v15, 5  ;;  %v10097_v55 = vrot.slane %v1197_v49, 9  ;;  %v12280_v49 = vld [vmem:[%s17122_s1 + $0x1e8] sm:$0xff]  }
  0x9e   : > { %v985_v22 = vrot.slane %v983_v16, 5  ;;  %v989_v23 = vrot.slane %v987_v17, 4  ;;  %v2220_v59 = vsel %vm13123_vm5, %v10281_v46, %v2219_v47  ;;  %v2221_v60 = vrot.slane %v2219_v47, 4  ;;  %v12278_v17 = vld [vmem:[%s12957_s24 + $0x78] sm:$0xff]   ;;  %11021 = vmatprep.subr.bf16.mxu1 %v12280_v49 }
  0x9f   : > { %v980_v25 = vor.u32 %v979_v21, %v976_v20  ;;  %v1333_v0 = vrot.slane %v1199_v54, 5  ;;  %v1658_v2 = vshrl.u32 %v10169_v61, 16  ;;  %v1667_v5 = vshll.u32 %v10170_v62, 16  ;;  %v10236_v21 = vld [vmem:[%s12957_s24 + $0x18] sm:$0xe] }
  0xa0   : > { %v1671_v6 = vshrl.u32 %v10170_v62, 16  ;;  %v1331_v9 = vsel %vm13123_vm5, %v10097_v55, %v1330_v63  ;;  %v1663_v12 = vrot.slane %v1661_v3, 5  ;;  %v1338_v47 = vsel %vm13123_vm5, %v10098_v31, %v1337_v36  ;;  %v10239_v55 = vld [vmem:[%s12957_s24 + $0x24] sm:$0xe]  ;;  %v10240_v61 = vld [vmem:[%s12957_s24 + $0x28] sm:$0xf] }
  0xa1   : > { %v981_v34 = vrot.slane %v980_v25, 4  ;;  %v1669_v13 = vrot.slane %v1667_v5, 5  ;;  %v10241_v62 = vld [vmem:[%s12957_s24 + $0x2c] sm:$0x1]  ;;  %v1203_v3 = vld [vmem:[%s12957_s24 + $0x78] sm:$0xe] }
  0xa2   : > { %4314 = vmatmul.mubr.bf16.gmra.mrb[36].mxu1 %v10110_v45  ;;  %4185 = vmatmul.mubr.bf16.gmra.mrb[36].mxu0 %v12263_v29  ;;  %v990_v29 = vor.u32 %v989_v23, %v985_v22  ;;  %v1673_v14 = vrot.slane %v1671_v6, 4  ;;  %v10238_v23 = vld [vmem:[%s12957_s24 + $0x20] sm:$0x1]  ;;  %v12285_v31 = vld [vmem:[%s17122_s1 + $0x1f0] sm:$0xff]  }
  0xa3   : > { %4321 = vmatprep.mubr.bf16.mxu1 %v12266_v48  ;;  %4192 = vmatprep.mubr.bf16.mxu0 %v10083_v10  ;;  %v986_v45 = vsel %vm12979_vm2, %v981_v34, %v985_v22  ;;  %v2222_v48 = vrot.slane %v10235_v44, 5  ;;  %v1332_v10 = vrot.slane %v1330_v63, 4  ;;  %v10237_v22 = vld [vmem:[%s12957_s24 + $0x1c] sm:$0xf] }
  0xa4   : > { %v991_v38 = vrot.slane %v990_v29, 4  ;;  %v1674_v20 = vor.u32 %v1673_v14, %v1669_v13  ;;  %v2226_v25 = vrot.slane %v10237_v22, 5  ;;  %v2229_v29 = vrot.slane %v10238_v23, 5 }
  0xa5   : > { %v2223_v4 = vsel %vm13123_vm5, %v2221_v60, %v2222_v48  ;;  %v1334_v16 = vsel %vm13123_vm5, %v1332_v10, %v1333_v0  ;;  %v1339_v48 = vrot.slane %v1337_v36, 4  ;;  %v12279_v60 = vld [vmem:[%s12957_s24 + $0x84] sm:$0xff]   ;;  %v1205_v10 = vld [vmem:[%s12957_s24 + $0x80] sm:$0x1] }
  0xa6   : > { %v996_v51 = vsel %vm12979_vm2, %v991_v38, %v995_v24  ;;  %v10297_v8 = vcombine.low %v2220_v59, %v2223_v4  ;;  %v10113_v18 = vcombine.low %v1331_v9, %v1334_v16  ;;  %v10282_v24 = vrot.slane %v10236_v21, 9  ;;  %v10172_v38 = vld [vmem:[%s12957_s24 + $0x18] sm:$0xf]  ;;  %v12282_v4 = vld [vmem:[%s17122_s1 + $0x1a8] sm:$0xff]   ;;  %v1204_v9 = vld [vmem:[%s12957_s24 + $0x7c] sm:$0xf] }
  0xa7   : > { %v10084_v57 = vcombine.low %v986_v45, %v996_v51  ;;  %v1675_v28 = vrot.slane %v1674_v20, 4  ;;  %v2228_v34 = vrot.slane %v2226_v25, 4  ;;  %v1682_v44 = vshrl.u32 %v10172_v38, 16  ;;  %11022 = vmatpush3.bf16.msra.mxu1 %v12282_v4 }
  0xa8   : > { %v2227_v33 = vsel %vm13123_vm5, %v10282_v24, %v2226_v25  ;;  %v1685_v53 = vshll.u32 %v10172_v38, 16  ;;  %v1701_v59 = vshll.u32 %v10174_v43, 16  ;;  %v12283_v38 = vld [vmem:[%s12957_s24 + $0x90] sm:$0xff]   ;;  %11023 = vmatprep.subr.bf16.mxu1 %v12285_v31 }
  0xa9   : > { %v2230_v46 = vsel %vm13123_vm5, %v2228_v34, %v2229_v29  ;;  %v1684_v52 = vrot.slane %v1682_v44, 4  ;;  %v10242_v44 = vld [vmem:[%s12957_s24 + $0x30] sm:$0xe]  ;;  %v1210_v31 = vld [vmem:[%s12957_s24 + $0x94] sm:$0xf] }
  0xaa   : > { %4322 = vmatmul.mubr.bf16.gmra.mrb[40].mxu1 %v10111_v11  ;;  %4193 = vmatmul.mubr.bf16.gmra.mrb[40].mxu0 %v12267_v1  ;;  %v10171_v1 = vld [vmem:[%s12957_s24 + $0x14] sm:$0x1]  ;;  %v1660_v11 = vrot.slane %v1658_v2, 4  ;;  %v10298_v51 = vcombine.low %v2227_v33, %v2230_v46  ;;  %v1687_v0 = vrot.slane %v1685_v53, 5  ;;  %v10283_v2 = vrot.slane %v10239_v55, 9 }
  0xab   : > { %4329 = vmatprep.mubr.bf16.mxu1 %v12272_v19  ;;  %4200 = vmatprep.mubr.bf16.mxu0 %v10084_v57  ;;  %v1677_v7 = vshll.u32 %v10171_v1, 16  ;;  %v1341_v57 = vsel %vm13123_vm5, %v1339_v48, %v1340_v41  ;;  %v1703_v6 = vrot.slane %v1701_v59, 5  ;;  %v10243_v46 = vld [vmem:[%s12957_s24 + $0x34] sm:$0xf]  ;;  %v1206_v53 = vld [vmem:[%s12957_s24 + $0x84] sm:$0xe] }
  0xac   : > { %v1664_v19 = vor.u32 %v1663_v12, %v1660_v11  ;;  %v10114_v63 = vcombine.low %v1338_v47, %v1341_v57  ;;  %v10099_v11 = vrot.slane %v1203_v3, 9  ;;  %v1344_v12 = vrot.slane %v1204_v9, 5  ;;  %v10244_v47 = vld [vmem:[%s12957_s24 + $0x38] sm:$0x1]  ;;  %v1208_v57 = vld [vmem:[%s12957_s24 + $0x8c] sm:$0x1] }
  0xad   : > { %v1679_v15 = vrot.slane %v1677_v7, 5  ;;  %v2233_v7 = vrot.slane %v10240_v61, 5  ;;  %v2243_v55 = vrot.slane %v10244_v47, 5  ;;  %v10100_v61 = vrot.slane %v1206_v53, 9  ;;  %v10180_v3 = vld [vmem:[%s12957_s24 + $0x38] sm:$0x1] }
  0xae   : > { %v1665_v27 = vrot.slane %v1664_v19, 4  ;;  %v10177_v19 = vld [vmem:[%s12957_s24 + $0x2c] sm:$0x1]  ;;  %v1345_v21 = vsel %vm13123_vm5, %v10099_v11, %v1344_v12  ;;  %v1346_v22 = vrot.slane %v1344_v12, 4  ;;  %v10183_v47 = vld [vmem:[%s12957_s24 + $0x44] sm:$0x1] }
  0xaf   : > { %v1680_v40 = vsel %vm12979_vm2, %v1675_v28, %v1679_v15  ;;  %v2234_v15 = vsel %vm13123_vm5, %v10283_v2, %v2233_v7  ;;  %v2235_v16 = vrot.slane %v2233_v7, 4  ;;  %v1354_v2 = vrot.slane %v1208_v57, 5 }
  0xb2   : > { %4330 = vmatmul.mubr.bf16.gmra.mrb[44].mxu1 %v10112_v58  ;;  %4201 = vmatmul.mubr.bf16.gmra.mrb[44].mxu0 %v12273_v39  ;;  %v1670_v39 = vsel %vm12979_vm2, %v1665_v27, %v1669_v13  ;;  %v10175_v13 = vld [vmem:[%s12957_s24 + $0x24] sm:$0xf] }
  0xb3   : > { %4337 = vmatprep.mubr.bf16.mxu1 %v12274_v42  ;;  %4434 = vmatprep.mubr.bf16.mxu0 %v10297_v8  ;;  %v10173_v42 = vld [vmem:[%s12957_s24 + $0x1c] sm:$0xf]  ;;  %v13350_v45 = vcombine.low %v1670_v39, %v1680_v40  ;;  %v2236_v8 = vrot.slane %v10241_v62, 5  ;;  %v1706_v23 = vshrl.u32 %v10175_v13, 16  ;;  %v1709_v26 = vshll.u32 %v10175_v13, 16 }
  0xb4   : > { %v1691_v54 = vshll.u32 %v10173_v42, 16  ;;  %v1695_v58 = vshrl.u32 %v10173_v42, 16  ;;  %v1725_v42 = vshll.u32 %v10177_v19, 16  ;;  %v10178_v62 = vld [vmem:[%s12957_s24 + $0x30] sm:$0xf]  ;;  %v12284_v19 = vld [vmem:[%s12957_s24 + $0x9c] sm:$0xff]  }
  0xb5   : > { %17227 = vst [vmem:[#allocation15_spill] sm:$0xff] %v13350_v45  ;;  %v2237_v25 = vsel %vm13123_vm5, %v2235_v16, %v2236_v8  ;;  %v1708_v30 = vrot.slane %v1706_v23, 4  ;;  %v1711_v35 = vrot.slane %v1709_v26, 5  ;;  %v1730_v4 = vshrl.u32 %v10178_v62, 16  ;;  %v1209_v26 = vld [vmem:[%s12957_s24 + $0x90] sm:$0xe] }
  0xb6   : > { %v1693_v1 = vrot.slane %v1691_v54, 5  ;;  %v1697_v5 = vrot.slane %v1695_v58, 4  ;;  %v10299_v34 = vcombine.low %v2234_v15, %v2237_v25  ;;  %v1727_v49 = vrot.slane %v1725_v42, 5 }
  0xb7   : > { %v1712_v43 = vor.u32 %v1711_v35, %v1708_v30  ;;  %v1733_v8 = vshll.u32 %v10178_v62, 16  ;;  %v1732_v13 = vrot.slane %v1730_v4, 4  ;;  %v1749_v23 = vshll.u32 %v10180_v3, 16 }
  0xb8   : > { %v1698_v14 = vor.u32 %v1697_v5, %v1693_v1  ;;  %v12286_v5 = vld [vmem:[%s17122_s1 + $0x210] sm:$0xff]   ;;  %v1773_v4 = vshll.u32 %v10183_v47, 16 }
  0xb9   : > { %v1713_v54 = vrot.slane %v1712_v43, 4  ;;  %v1735_v16 = vrot.slane %v1733_v8, 5  ;;  %v10249_v8 = vld [vmem:[%s12957_s24 + $0x4c] sm:$0xf] }
  0xba   : > { %4338 = vmatmul.mubr.bf16.gmra.mrb[48].mxu1 %v10113_v18  ;;  %4435 = vmatmul.mubr.bf16.vlgmr.msra.gmra.mrb[48].mxu0 %v13350_v45  ;;  %v10176_v18 = vld [vmem:[%s12957_s24 + $0x28] sm:$0xf]  ;;  %v1699_v24 = vrot.slane %v1698_v14, 4  ;;  %v10245_v14 = vld [vmem:[%s12957_s24 + $0x3c] sm:$0xe] }
  0xbb   : > { %4345 = vmatprep.mubr.bf16.mxu1 %v12278_v17  ;;  %11720 = vmatpush3.bf16.msra.mxu0 %v13311_v50  ;;  %v1688_v50 = vor.u32 %v1687_v0, %v1684_v52  ;;  %v1347_v17 = vrot.slane %v1205_v10, 5  ;;  %v1715_v27 = vshll.u32 %v10176_v18, 16  ;;  %v1719_v41 = vshrl.u32 %v10176_v18, 16 }
  0xbc   : > { %4442 = vmatprep.mubr.bf16.mxu0 %v10298_v51  ;;  %11721 = vmatprep.subr.bf16.mxu0 %v12281_v56  ;;  %v1704_v33 = vsel %vm12979_vm2, %v1699_v24, %v1703_v6  ;;  %v10284_v51 = vrot.slane %v10242_v44, 9  ;;  %v2240_v52 = vrot.slane %v10243_v46, 5  ;;  %v10247_v24 = vld [vmem:[%s12957_s24 + $0x44] sm:$0x1]  ;;  %v10285_v25 = vrot.slane %v10245_v14, 9  ;;  %v12290_v14 = vld [vmem:[%s17122_s1 + $0x1f8] sm:$0xff]  }
  0xbd   : > { %v1689_v20 = vrot.slane %v1688_v50, 4  ;;  %v1348_v29 = vsel %vm13123_vm5, %v1346_v22, %v1347_v17  ;;  %v1717_v36 = vrot.slane %v1715_v27, 5  ;;  %v1721_v48 = vrot.slane %v1719_v41, 4  ;;  %v12287_v50 = vld [vmem:[%s17122_s1 + $0x1b0] sm:$0xff]   ;;  %v10182_v46 = vld [vmem:[%s12957_s24 + $0x40] sm:$0xf] }
  0xbe   : > { %v10115_v40 = vcombine.low %v1345_v21, %v1348_v29  ;;  %v2241_v59 = vsel %vm13123_vm5, %v10284_v51, %v2240_v52  ;;  %11024 = vmatpush3.bf16.msra.mxu1 %v12287_v50  ;;  %v2250_v35 = vrot.slane %v10247_v24, 5 }
  0xbf   : > { %11722 = vmatpush3.bf16.msra.mxu0 %v12281_v56  ;;  %v1694_v28 = vsel %vm12979_vm2, %v1689_v20, %v1693_v1  ;;  %v1207_v56 = vld [vmem:[%s12957_s24 + $0x88] sm:$0xf]  ;;  %v1722_v58 = vor.u32 %v1721_v48, %v1717_v36  ;;  %v1718_v0 = vsel %vm12979_vm2, %v1713_v54, %v1717_v36  ;;  %v10246_v20 = vld [vmem:[%s12957_s24 + $0x40] sm:$0xf]  ;;  %v10101_v36 = vrot.slane %v1209_v26, 9  ;;  %11025 = vmatprep.subr.bf16.mxu1 %v12290_v14  ;;  %v12291_v26 = vld [vmem:[%s17122_s1 + $0x218] sm:$0xff]  }
  0xc0   : > { %v13395_v39 = vcombine.low %v1694_v28, %v1704_v33  ;;  %v1351_v1 = vrot.slane %v1207_v56, 5  ;;  %11723 = vmatprep.subr.bf16.mxu0 %v12286_v5  ;;  %v1736_v28 = vor.u32 %v1735_v16, %v1732_v13  ;;  %v2247_v30 = vrot.slane %v10246_v20, 5  ;;  %v1211_v33 = vld [vmem:[%s12957_s24 + $0x98] sm:$0x1]  ;;  %v1212_v13 = vld [vmem:[%s12957_s24 + $0x9c] sm:$0xe] }
  0xc1   : > { %v1723_v6 = vrot.slane %v1722_v58, 4  ;;  %v1361_v51 = vrot.slane %v1211_v33, 5 }
  0xc2   : > { %4346 = vmatmul.mubr.bf16.gmra.mrb[52].mxu1 %v10114_v63  ;;  %17228 = vst [vmem:[#allocation16_spill] sm:$0xff] %v13395_v39  ;;  %4443 = vmatmul.mubr.bf16.gmra.mrb[52].mxu0 %v13395_v39  ;;  %v10179_v63 = vld [vmem:[%s12957_s24 + $0x34] sm:$0xf]  ;;  %v1352_v11 = vsel %vm13123_vm5, %v10100_v61, %v1351_v1  ;;  %v1353_v12 = vrot.slane %v1351_v1, 4  ;;  %v1737_v41 = vrot.slane %v1736_v28, 4  ;;  %v2248_v43 = vsel %vm13123_vm5, %v10285_v25, %v2247_v30  ;;  %v12288_v61 = vld [vmem:[%s12957_s24 + $0xa8] sm:$0xff]  }
  0xc3   : > { %4353 = vmatprep.mubr.bf16.mxu1 %v12279_v60  ;;  %4450 = vmatprep.mubr.bf16.mxu0 %v10299_v34  ;;  %v2242_v60 = vrot.slane %v2240_v52, 4  ;;  %v1739_v9 = vshll.u32 %v10179_v63, 16  ;;  %v1728_v15 = vsel %vm12979_vm2, %v1723_v6, %v1727_v49  ;;  %v1743_v18 = vshrl.u32 %v10179_v63, 16  ;;  %v10184_v25 = vld [vmem:[%s12957_s24 + $0x48] sm:$0xf] }
  0xc4   : > { %11724 = vmatpush3.bf16.msra.mxu0 %v12286_v5  ;;  %v13426_v21 = vcombine.low %v1718_v0, %v1728_v15  ;;  %v1355_v22 = vsel %vm13123_vm5, %v1353_v12, %v1354_v2  ;;  %v1751_v34 = vrot.slane %v1749_v23, 5  ;;  %v2249_v44 = vrot.slane %v2247_v30, 4  ;;  %v10248_v5 = vld [vmem:[%s12957_s24 + $0x48] sm:$0xe]  ;;  %v10186_v30 = vld [vmem:[%s12957_s24 + $0x50] sm:$0x1] }
  0xc5   : > { %v2244_v7 = vsel %vm13123_vm5, %v2242_v60, %v2243_v55  ;;  %v1741_v17 = vrot.slane %v1739_v9, 5  ;;  %v10116_v27 = vcombine.low %v1352_v11, %v1355_v22  ;;  %v1745_v29 = vrot.slane %v1743_v18, 4  ;;  %v10250_v9 = vld [vmem:[%s12957_s24 + $0x50] sm:$0x1]  ;;  %v1214_v18 = vld [vmem:[%s12957_s24 + $0xa4] sm:$0x1]  ;;  %11725 = vmatprep.subr.bf16.mxu0 %v12291_v26 }
  0xc6   : > { %v10300_v10 = vcombine.low %v2241_v59, %v2244_v7  ;;  %17229 = vst [vmem:[#allocation17_spill] sm:$0xff] %v13426_v21  ;;  %v2251_v55 = vsel %vm13123_vm5, %v2249_v44, %v2250_v35  ;;  %v1763_v60 = vshll.u32 %v10182_v46, 16  ;;  %v1767_v1 = vshrl.u32 %v10182_v46, 16  ;;  %v10251_v44 = vld [vmem:[%s12957_s24 + $0x54] sm:$0xe] }
  0xc7   : > { %v1746_v42 = vor.u32 %v1745_v29, %v1741_v17  ;;  %v1742_v53 = vsel %vm12979_vm2, %v1737_v41, %v1741_v17  ;;  %v10301_v57 = vcombine.low %v2248_v43, %v2251_v55  ;;  %v10286_v50 = vrot.slane %v10248_v5, 9  ;;  %v1213_v17 = vld [vmem:[%s12957_s24 + $0xa0] sm:$0xf]  ;;  %v10185_v29 = vld [vmem:[%s12957_s24 + $0x4c] sm:$0xf] }
  0xc8   : > { %v1765_v3 = vrot.slane %v1763_v60, 5  ;;  %v1769_v7 = vrot.slane %v1767_v1, 4  ;;  %v2254_v11 = vrot.slane %v10249_v8, 5  ;;  %v2257_v12 = vrot.slane %v10250_v9, 5  ;;  %v10252_v46 = vld [vmem:[%s12957_s24 + $0x58] sm:$0xf]  ;;  %11726 = vmatpush3.bf16.msra.mxu0 %v12291_v26 }
  0xc9   : > { %v1747_v54 = vrot.slane %v1746_v42, 4  ;;  %v1365_v23 = vrot.slane %v1213_v17, 5  ;;  %v1368_v24 = vrot.slane %v1214_v18, 5  ;;  %v1787_v43 = vshll.u32 %v10185_v29, 16 }
  0xca   : > { %4354 = vmatmul.mubr.bf16.gmra.mrb[56].mxu1 %v10115_v40  ;;  %4451 = vmatmul.mubr.bf16.gmra.mrb[56].mxu0 %v13426_v21  ;;  %v10181_v40 = vld [vmem:[%s12957_s24 + $0x3c] sm:$0xf]  ;;  %v1770_v16 = vor.u32 %v1769_v7, %v1765_v3  ;;  %v2255_v20 = vsel %vm13123_vm5, %v10286_v50, %v2254_v11  ;;  %v2256_v22 = vrot.slane %v2254_v11, 4 }
  0xcb   : > { %4361 = vmatprep.mubr.bf16.mxu1 %v12283_v38  ;;  %v1358_v38 = vrot.slane %v1210_v31, 5  ;;  %4458 = vmatprep.mubr.bf16.mxu0 %v10300_v10  ;;  %v1754_v52 = vshrl.u32 %v10181_v40, 16  ;;  %v1757_v56 = vshll.u32 %v10181_v40, 16  ;;  %v1752_v62 = vsel %vm12979_vm2, %v1747_v54, %v1751_v34  ;;  %v10189_v11 = vld [vmem:[%s12957_s24 + $0x5c] sm:$0x1] }
  0xcc   : > { %v13451_v2 = vcombine.low %v1742_v53, %v1752_v62  ;;  %v1775_v10 = vrot.slane %v1773_v4, 5  ;;  %v1771_v28 = vrot.slane %v1770_v16, 4  ;;  %v1778_v31 = vshrl.u32 %v10184_v25, 16  ;;  %v1215_v53 = vld [vmem:[%s12957_s24 + $0xa8] sm:$0xe] }
  0xcd   : > { %v1359_v48 = vsel %vm13123_vm5, %v10101_v36, %v1358_v38  ;;  %v1360_v49 = vrot.slane %v1358_v38, 4  ;;  %v1756_v59 = vrot.slane %v1754_v52, 4  ;;  %v1759_v0 = vrot.slane %v1757_v56, 5  ;;  %v12289_v38 = vld [vmem:[%s12957_s24 + $0xb4] sm:$0xff]   ;;  %v10253_v52 = vld [vmem:[%s12957_s24 + $0x5c] sm:$0x1] }
  0xce   : > { %17230 = vst [vmem:[#allocation18_spill] sm:$0xff] %v13451_v2  ;;  %v2258_v33 = vsel %vm13123_vm5, %v2256_v22, %v2257_v12  ;;  %v1367_v35 = vrot.slane %v1365_v23, 4  ;;  %v1781_v36 = vshll.u32 %v10184_v25, 16  ;;  %v1776_v40 = vsel %vm12979_vm2, %v1771_v28, %v1775_v10  ;;  %v10188_v10 = vld [vmem:[%s12957_s24 + $0x58] sm:$0xf] }
  0xcf   : > { %v1362_v58 = vsel %vm13123_vm5, %v1360_v49, %v1361_v51  ;;  %v1760_v6 = vor.u32 %v1759_v0, %v1756_v59  ;;  %v10302_v41 = vcombine.low %v2255_v20, %v2258_v33  ;;  %v1780_v42 = vrot.slane %v1778_v31, 4  ;;  %v12292_v59 = vld [vmem:[%s17122_s1 + $0x1b8] sm:$0xff]   ;;  %v1217_v0 = vld [vmem:[%s12957_s24 + $0xb0] sm:$0x1]  ;;  %v12293_v20 = vld [vmem:[%s12957_s24 + $0xc0] sm:$0xff]  }
  0xd0   : > { %v10117_v63 = vcombine.low %v1359_v48, %v1362_v58  ;;  %v1369_v48 = vsel %vm13123_vm5, %v1367_v35, %v1368_v24  ;;  %v1783_v49 = vrot.slane %v1781_v36, 5  ;;  %v1791_v51 = vshrl.u32 %v10185_v29, 16  ;;  %v1216_v58 = vld [vmem:[%s12957_s24 + $0xac] sm:$0xf]  ;;  %11026 = vmatpush3.bf16.msra.mxu1 %v12292_v59  ;;  %v12295_v35 = vld [vmem:[%s17122_s1 + $0x220] sm:$0xff]  }
  0xd1   : > { %v1761_v15 = vrot.slane %v1760_v6, 4  ;;  %v1789_v55 = vrot.slane %v1787_v43, 5  ;;  %v1797_v56 = vshll.u32 %v10186_v30, 16  ;;  %v2261_v62 = vrot.slane %v10252_v46, 5  ;;  %v10187_v6 = vld [vmem:[%s12957_s24 + $0x54] sm:$0xf]  ;;  %11727 = vmatprep.subr.bf16.mxu0 %v12295_v35 }
  0xd2   : > { %4362 = vmatmul.mubr.bf16.gmra.mrb[60].mxu1 %v10116_v27  ;;  %4459 = vmatmul.mubr.bf16.gmra.mrb[60].mxu0 %v13451_v2  ;;  %v1784_v60 = vor.u32 %v1783_v49, %v1780_v42  ;;  %v1372_v4 = vrot.slane %v1216_v58, 5  ;;  %v1375_v5 = vrot.slane %v1217_v0, 5  ;;  %v1802_v14 = vshrl.u32 %v10187_v6, 16  ;;  %v1218_v46 = vld [vmem:[%s12957_s24 + $0xb4] sm:$0xe] }
  0xd3   : > { %4369 = vmatprep.mubr.bf16.mxu1 %v12284_v19  ;;  %4466 = vmatprep.mubr.bf16.mxu0 %v10301_v57  ;;  %v10102_v19 = vrot.slane %v1212_v13, 9  ;;  %v1766_v27 = vsel %vm12979_vm2, %v1761_v15, %v1765_v3  ;;  %v10287_v57 = vrot.slane %v10251_v44, 9  ;;  %v1799_v1 = vrot.slane %v1797_v56, 5  ;;  %v10190_v58 = vld [vmem:[%s12957_s24 + $0x60] sm:$0xf] }
  0xd4   : > { %v13482_v47 = vcombine.low %v1766_v27, %v1776_v40  ;;  %v10103_v3 = vrot.slane %v1215_v53, 9  ;;  %v1785_v7 = vrot.slane %v1784_v60, 4  ;;  %v2263_v50 = vrot.slane %v2261_v62, 4  ;;  %v10256_v40 = vld [vmem:[%s12957_s24 + $0x68] sm:$0x1]  ;;  %11728 = vmatpush3.bf16.msra.mxu0 %v12295_v35 }
  0xd5   : > { %v1366_v34 = vsel %vm13123_vm5, %v10102_v19, %v1365_v23  ;;  %v2262_v9 = vsel %vm13123_vm5, %v10287_v57, %v2261_v62  ;;  %v1374_v13 = vrot.slane %v1372_v4, 4  ;;  %v1805_v15 = vshll.u32 %v10187_v6, 16  ;;  %v10191_v59 = vld [vmem:[%s12957_s24 + $0x64] sm:$0xf]  ;;  %v10192_v62 = vld [vmem:[%s12957_s24 + $0x68] sm:$0x1] }
  0xd6   : > { %17231 = vst [vmem:[#allocation19_spill] sm:$0xff] %v13482_v47  ;;  %v10118_v54 = vcombine.low %v1366_v34, %v1369_v48  ;;  %v1373_v12 = vsel %vm13123_vm5, %v10103_v3, %v1372_v4  ;;  %v1790_v16 = vsel %vm12979_vm2, %v1785_v7, %v1789_v55  ;;  %v1811_v19 = vshll.u32 %v10188_v10, 16  ;;  %v10254_v34 = vld [vmem:[%s12957_s24 + $0x60] sm:$0xe]  ;;  %v10257_v6 = vld [vmem:[%s12957_s24 + $0x6c] sm:$0xe] }
  0xd7   : > { %v1376_v23 = vsel %vm13123_vm5, %v1374_v13, %v1375_v5  ;;  %v1804_v24 = vrot.slane %v1802_v14, 4  ;;  %v1807_v25 = vrot.slane %v1805_v15, 5  ;;  %v1815_v29 = vshrl.u32 %v10188_v10, 16  ;;  %v10258_v7 = vld [vmem:[%s12957_s24 + $0x70] sm:$0xf] }
  0xd8   : > { %v10119_v27 = vcombine.low %v1373_v12, %v1376_v23  ;;  %v1813_v28 = vrot.slane %v1811_v19, 5  ;;  %v1821_v33 = vshll.u32 %v10189_v11, 16  ;;  %v2271_v44 = vrot.slane %v10256_v40, 5  ;;  %v10259_v11 = vld [vmem:[%s12957_s24 + $0x74] sm:$0x1] }
  0xd9   : > { %v1808_v31 = vor.u32 %v1807_v25, %v1804_v24  ;;  %v1817_v36 = vrot.slane %v1815_v29, 4  ;;  %v10104_v53 = vrot.slane %v1218_v46, 9  ;;  %v1829_v0 = vshll.u32 %v10190_v58, 16  ;;  %v10361_v12 = vld [vmem:[%s12957_s24 + $0x18] sm:$0xf] }
  0xda   : > { %4370 = vmatmul.mubr.bf16.gmra.mrb[64].mxu1 %v10117_v63  ;;  %4467 = vmatmul.mubr.bf16.gmra.mrb[64].mxu0 %v13482_v47  ;;  %v2264_v63 = vrot.slane %v10253_v52, 5  ;;  %v1823_v49 = vrot.slane %v1821_v33, 5  ;;  %v1220_v52 = vld [vmem:[%s12957_s24 + $0xbc] sm:$0x1]  ;;  %v1835_v5 = vshll.u32 %v10191_v59, 16  ;;  %v2275_v25 = vrot.slane %v10258_v7, 5 }
  0xdb   : > { %4377 = vmatprep.mubr.bf16.mxu1 %v12288_v61  ;;  %v1793_v61 = vrot.slane %v1791_v51, 4  ;;  %4474 = vmatprep.mubr.bf16.mxu0 %v10302_v41  ;;  %v10288_v41 = vrot.slane %v10254_v34, 9  ;;  %v1809_v42 = vrot.slane %v1808_v31, 4  ;;  %v1818_v48 = vor.u32 %v1817_v36, %v1813_v28  ;;  %v1219_v51 = vld [vmem:[%s12957_s24 + $0xb8] sm:$0xf] }
  0xdc   : > { %v2265_v18 = vsel %vm13123_vm5, %v2263_v50, %v2264_v63  ;;  %v1379_v57 = vrot.slane %v1219_v51, 5  ;;  %v1826_v63 = vshrl.u32 %v10190_v58, 16  ;;  %v1831_v10 = vrot.slane %v1829_v0, 5  ;;  %v10363_v23 = vld [vmem:[%s12957_s24 + $0x20] sm:$0x1] }
  0xdd   : > { %v1794_v8 = vor.u32 %v1793_v61, %v1789_v55  ;;  %v10303_v22 = vcombine.low %v2262_v9, %v2265_v18  ;;  %v1819_v60 = vrot.slane %v1818_v48, 4  ;;  %v1382_v61 = vrot.slane %v1220_v52, 5  ;;  %v10194_v35 = vld [vmem:[%s12957_s24 + $0x70] sm:$0xf]  ;;  %v10261_v0 = vld [vmem:[%s12957_s24 + $0x7c] sm:$0xf] }
  0xde   : > { %v1380_v3 = vsel %vm13123_vm5, %v10104_v53, %v1379_v57  ;;  %v1381_v4 = vrot.slane %v1379_v57, 4  ;;  %v1828_v50 = vrot.slane %v1826_v63, 4  ;;  %v1837_v15 = vrot.slane %v1835_v5, 5  ;;  %v12298_v53 = vld [vmem:[%s17122_s1 + $0x228] sm:$0xff]   ;;  %v10195_v57 = vld [vmem:[%s12957_s24 + $0x74] sm:$0x1] }
  0xdf   : > { %v1795_v17 = vrot.slane %v1794_v8, 4  ;;  %v1824_v8 = vsel %vm12979_vm2, %v1819_v60, %v1823_v49  ;;  %v2606_v33 = vshll.u32 %v10361_v12, 16  ;;  %v2277_v40 = vrot.slane %v2275_v25, 4  ;;  %11729 = vmatprep.subr.bf16.mxu0 %v12298_v53  ;;  %v10364_v7 = vld [vmem:[%s12957_s24 + $0x24] sm:$0xf] }
  0xe0   : > { %v1383_v14 = vsel %vm13123_vm5, %v1381_v4, %v1382_v61  ;;  %v1832_v19 = vor.u32 %v1831_v10, %v1828_v50  ;;  %v2622_v51 = vshll.u32 %v10363_v23, 16  ;;  %v1859_v63 = vshll.u32 %v10194_v35, 16  ;;  %11730 = vmatpush3.bf16.msra.mxu0 %v12298_v53 }
  0xe1   : > { %v1800_v26 = vsel %vm12979_vm2, %v1795_v17, %v1799_v1  ;;  %v10362_v17 = vld [vmem:[%s12957_s24 + $0x1c] sm:$0xf]  ;;  %v10120_v18 = vcombine.low %v1380_v3, %v1383_v14  ;;  %v1869_v50 = vshll.u32 %v10195_v57, 16 }
  0xe2   : > { %4378 = vmatmul.mubr.bf16.gmra.mrb[68].mxu1 %v10118_v54  ;;  %v13510_v30 = vcombine.low %v1790_v16, %v1800_v26  ;;  %v1814_v54 = vsel %vm12979_vm2, %v1809_v42, %v1813_v28  ;;  %v1839_v16 = vshrl.u32 %v10191_v59, 16  ;;  %v2278_v26 = vrot.slane %v10259_v11, 5  ;;  %v10193_v28 = vld [vmem:[%s12957_s24 + $0x6c] sm:$0xf]  ;;  %v10260_v59 = vld [vmem:[%s12957_s24 + $0x78] sm:$0xe] }
  0xe3   : > { %4385 = vmatprep.mubr.bf16.mxu1 %v12289_v38  ;;  %v10255_v38 = vld [vmem:[%s12957_s24 + $0x64] sm:$0xf]  ;;  %v13539_v13 = vcombine.low %v1814_v54, %v1824_v8  ;;  %v1833_v29 = vrot.slane %v1832_v19, 4  ;;  %v2612_v34 = vshll.u32 %v10362_v17, 16  ;;  %v2616_v46 = vshrl.u32 %v10362_v17, 16 }
  0xe4   : > { %17232 = vst [vmem:[#allocation20_spill] sm:$0xff] %v13510_v30  ;;  %4475 = vmatmul.mubr.bf16.gmra.mrb[68].mxu0 %v13510_v30  ;;  %v2268_v43 = vrot.slane %v10255_v38, 5  ;;  %v1841_v24 = vrot.slane %v1839_v16, 4  ;;  %v2279_v49 = vsel %vm13123_vm5, %v2277_v40, %v2278_v26  ;;  %v1850_v52 = vshrl.u32 %v10193_v28, 16  ;;  %v10365_v17 = vld [vmem:[%s12957_s24 + $0x28] sm:$0xf] }
  0xe5   : > { %4482 = vmatprep.mubr.bf16.mxu0 %v10303_v22  ;;  %17233 = vst [vmem:[#allocation21_spill] sm:$0xff] %v13539_v13  ;;  %v10289_v22 = vrot.slane %v10257_v6, 9  ;;  %v1838_v42 = vsel %vm12979_vm2, %v1833_v29, %v1837_v15  ;;  %v1853_v58 = vshll.u32 %v10193_v28, 16  ;;  %v2624_v61 = vrot.slane %v2622_v51, 5  ;;  %v10262_v6 = vld [vmem:[%s12957_s24 + $0x80] sm:$0x1] }
  0xe6   : > { %v2269_v55 = vsel %vm13123_vm5, %v10288_v41, %v2268_v43  ;;  %v2270_v56 = vrot.slane %v2268_v43, 4  ;;  %v1842_v36 = vor.u32 %v1841_v24, %v1837_v15  ;;  %v2608_v43 = vrot.slane %v2606_v33, 5  ;;  %v12294_v15 = vld [vmem:[%s12957_s24 + $0x18] sm:$0xff]  }
  0xe7   : > { %v2276_v38 = vsel %vm13123_vm5, %v10289_v22, %v2275_v25  ;;  %v1855_v5 = vrot.slane %v1853_v58, 5  ;;  %v1861_v8 = vrot.slane %v1859_v63, 5  ;;  %v10290_v10 = vrot.slane %v10260_v59, 9  ;;  %v10264_v59 = vld [vmem:[%s12957_s24 + $0x88] sm:$0xf] }
  0xe8   : > { %v2272_v1 = vsel %vm13123_vm5, %v2270_v56, %v2271_v44  ;;  %v2614_v44 = vrot.slane %v2612_v34, 5  ;;  %v1843_v48 = vrot.slane %v1842_v36, 4  ;;  %v10305_v54 = vcombine.low %v2276_v38, %v2279_v49  ;;  %v10196_v34 = vld [vmem:[%s12957_s24 + $0x78] sm:$0xf] }
  0xe9   : > { %v10304_v9 = vcombine.low %v2269_v55, %v2272_v1  ;;  %v2618_v56 = vrot.slane %v2616_v46, 4  ;;  %v2282_v16 = vrot.slane %v10261_v0, 5  ;;  %v1871_v19 = vrot.slane %v1869_v50, 5 }
  0xea   : > { %4386 = vmatmul.mubr.bf16.gmra.mrb[72].mxu1 %v10119_v27  ;;  %v2603_v27 = vshrl.u32 %v10361_v12, 16  ;;  %v2627_v22 = vshrl.u32 %v10364_v7, 16  ;;  %v2630_v33 = vshll.u32 %v10364_v7, 16  ;;  %v2636_v38 = vshll.u32 %v10365_v17, 16 }
  0xeb   : > { %4393 = vmatprep.mubr.bf16.mxu1 %v12293_v20  ;;  %v1845_v20 = vshll.u32 %v10192_v62, 16  ;;  %v1852_v62 = vrot.slane %v1850_v52, 4  ;;  %v2619_v4 = vor.u32 %v2618_v56, %v2614_v44  ;;  %v2283_v25 = vsel %vm13123_vm5, %v10290_v10, %v2282_v16 }
  0xec   : > { %4483 = vmatmul.mubr.bf16.gmra.mrb[72].mxu0 %v13539_v13  ;;  %v2605_v41 = vrot.slane %v2603_v27, 4  ;;  %v2284_v26 = vrot.slane %v2282_v16, 4  ;;  %v10366_v27 = vld [vmem:[%s12957_s24 + $0x2c] sm:$0x1]  ;;  %v2640_v40 = vshrl.u32 %v10365_v17, 16  ;;  %v2638_v49 = vrot.slane %v2636_v38, 5 }
  0xed   : > { %4490 = vmatprep.mubr.bf16.mxu0 %v10304_v9  ;;  %v1847_v31 = vrot.slane %v1845_v20, 5  ;;  %v1863_v9 = vshrl.u32 %v10194_v35, 16  ;;  %v2620_v12 = vrot.slane %v2619_v4, 4  ;;  %v1856_v14 = vor.u32 %v1855_v5, %v1852_v62  ;;  %v10368_v17 = vld [vmem:[%s12957_s24 + $0x34] sm:$0xf] }
  0xee   : > { %v2609_v55 = vor.u32 %v2608_v43, %v2605_v41  ;;  %v2285_v20 = vrot.slane %v10262_v6, 5  ;;  %v10197_v41 = vld [vmem:[%s12957_s24 + $0x7c] sm:$0xf]  ;;  %v2646_v46 = vshll.u32 %v10366_v27, 16  ;;  %v2642_v51 = vrot.slane %v2640_v40, 4 }
  0xef   : > { %v1848_v60 = vsel %vm12979_vm2, %v1843_v48, %v1847_v31  ;;  %v2625_v23 = vsel %vm12979_vm2, %v2620_v12, %v2624_v61  ;;  %v1857_v24 = vrot.slane %v1856_v14, 4  ;;  %v2629_v31 = vrot.slane %v2627_v22, 4  ;;  %v10198_v48 = vld [vmem:[%s12957_s24 + $0x80] sm:$0x1] }
  0xf0   : > { %v13562_v1 = vcombine.low %v1838_v42, %v1848_v60  ;;  %v2610_v3 = vrot.slane %v2609_v55, 4  ;;  %v2286_v36 = vsel %vm13123_vm5, %v2284_v26, %v2285_v20  ;;  %v1874_v52 = vshrl.u32 %v10196_v34, 16  ;;  %v10265_v60 = vld [vmem:[%s12957_s24 + $0x8c] sm:$0x1]  ;;  %v12296_v20 = vld [vmem:[%s12957_s24 + $0x24] sm:$0xff]  }
  0xf1   : > { %v1862_v35 = vsel %vm12979_vm2, %v1857_v24, %v1861_v8  ;;  %v10306_v43 = vcombine.low %v2283_v25, %v2286_v36  ;;  %v1877_v53 = vshll.u32 %v10196_v34, 16  ;;  %v2648_v57 = vrot.slane %v2646_v46, 5  ;;  %v10369_v26 = vld [vmem:[%s12957_s24 + $0x38] sm:$0x1]  ;;  %v10200_v36 = vld [vmem:[%s12957_s24 + $0x88] sm:$0xf] }
  0xf2   : > { %4394 = vmatmul.mubr.bf16.gmra.mrb[76].mxu1 %v10120_v18  ;;  %17234 = vst [vmem:[#allocation22_spill] sm:$0xff] %v13562_v1  ;;  %v2615_v11 = vsel %vm12979_vm2, %v2610_v3, %v2614_v44  ;;  %v1865_v18 = vrot.slane %v1863_v9, 4  ;;  %v2632_v44 = vrot.slane %v2630_v33, 5  ;;  %v1883_v58 = vshll.u32 %v10197_v41, 16  ;;  %v10367_v3 = vld [vmem:[%s12957_s24 + $0x30] sm:$0xf] }
  0xf3   : > { %v10409_v28 = vcombine.low %v2615_v11, %v2625_v23  ;;  %v2643_v62 = vor.u32 %v2642_v51, %v2638_v49  ;;  %v1876_v63 = vrot.slane %v1874_v52, 4  ;;  %v1879_v0 = vrot.slane %v1877_v53, 5  ;;  %v12301_v11 = vld [vmem:[%s17122_s1 + $0x230] sm:$0xff]  }
  0xf4   : > { %4491 = vmatmul.mubr.bf16.gmra.mrb[76].mxu0 %v13562_v1  ;;  %v1866_v29 = vor.u32 %v1865_v18, %v1861_v8  ;;  %v2633_v56 = vor.u32 %v2632_v44, %v2629_v31  ;;  %v1885_v5 = vrot.slane %v1883_v58, 5  ;;  %v1887_v6 = vshrl.u32 %v10197_v41, 16  ;;  %11731 = vmatprep.subr.bf16.mxu0 %v12301_v11  ;;  %v10266_v44 = vld [vmem:[%s12957_s24 + $0x90] sm:$0xe]  ;;  %v10267_v52 = vld [vmem:[%s12957_s24 + $0x94] sm:$0xf] }
  0xf5   : > { %4498 = vmatprep.mubr.bf16.mxu0 %v10305_v54  ;;  %4595 = vmatprep.mubr.bf16.mxu1 %v10409_v28  ;;  %v10263_v54 = vld [vmem:[%s12957_s24 + $0x84] sm:$0xe]  ;;  %v1893_v7 = vshll.u32 %v10198_v48, 16  ;;  %v2644_v8 = vrot.slane %v2643_v62, 4  ;;  %v1880_v9 = vor.u32 %v1879_v0, %v1876_v63  ;;  %v2289_v10 = vrot.slane %v10264_v59, 5 }
  0xf6   : > { %v1867_v42 = vrot.slane %v1866_v29, 4  ;;  %v2634_v4 = vrot.slane %v2633_v56, 4  ;;  %v10291_v50 = vrot.slane %v10263_v54, 9  ;;  %v1889_v14 = vrot.slane %v1887_v6, 4  ;;  %v10199_v29 = vld [vmem:[%s12957_s24 + $0x84] sm:$0xf]  ;;  %11732 = vmatpush3.bf16.msra.mxu0 %v12301_v11 }
  0xf7   : > { %v2292_v16 = vrot.slane %v10265_v60, 5  ;;  %v2649_v18 = vsel %vm12979_vm2, %v2644_v8, %v2648_v57  ;;  %v2291_v23 = vrot.slane %v2289_v10, 4  ;;  %v2651_v27 = vshrl.u32 %v10367_v3, 16  ;;  %v10268_v62 = vld [vmem:[%s12957_s24 + $0x98] sm:$0x1] }
  0xf8   : > { %v1872_v55 = vsel %vm12979_vm2, %v1867_v42, %v1871_v19  ;;  %v2639_v12 = vsel %vm12979_vm2, %v2634_v4, %v2638_v49  ;;  %v1881_v19 = vrot.slane %v1880_v9, 4  ;;  %v2290_v22 = vsel %vm13123_vm5, %v10291_v50, %v2289_v10  ;;  %v10370_v9 = vld [vmem:[%s12957_s24 + $0x3c] sm:$0xf] }
  0xf9   : > { %v13588_v61 = vcombine.low %v1862_v35, %v1872_v55  ;;  %v10410_v24 = vcombine.low %v2639_v12, %v2649_v18  ;;  %v1890_v25 = vor.u32 %v1889_v14, %v1885_v5  ;;  %v2654_v28 = vshll.u32 %v10367_v3, 16  ;;  %v12297_v12 = vld [vmem:[%s12957_s24 + $0x30] sm:$0xff]  }
  0xfa   : > { %4596 = vmatmul.mubr.bf16.vlgmr.msra.gmra.mrb[80].mxu1 %v12294_v15  ;;  %v1895_v15 = vrot.slane %v1893_v7, 5  ;;  %v1886_v31 = vsel %vm12979_vm2, %v1881_v19, %v1885_v5  ;;  %v2293_v33 = vsel %vm13123_vm5, %v2291_v23, %v2292_v16  ;;  %v2660_v34 = vshll.u32 %v10368_v17, 16 }
  0xfb   : > { %17235 = vst [vmem:[#allocation23_spill] sm:$0xff] %v13588_v61  ;;  %v2664_v35 = vshrl.u32 %v10368_v17, 16  ;;  %4603 = vmatprep.mubr.bf16.mxu1 %v10410_v24  ;;  %v1891_v38 = vrot.slane %v1890_v25, 4  ;;  %v10307_v40 = vcombine.low %v2290_v22, %v2293_v33  ;;  %v2653_v41 = vrot.slane %v2651_v27, 4  ;;  %v10202_v22 = vld [vmem:[%s12957_s24 + $0x90] sm:$0xf] }
  0xfc   : > { %4499 = vmatmul.mubr.bf16.gmra.mrb[80].mxu0 %v13588_v61  ;;  %v2656_v42 = vrot.slane %v2654_v28, 5  ;;  %v2662_v46 = vrot.slane %v2660_v34, 5  ;;  %v2670_v49 = vshll.u32 %v10369_v26, 16  ;;  %v1898_v51 = vshrl.u32 %v10199_v29, 16  ;;  %v10203_v27 = vld [vmem:[%s12957_s24 + $0x94] sm:$0xf] }
  0xfd   : > { %4506 = vmatprep.mubr.bf16.mxu0 %v10306_v43  ;;  %v10201_v43 = vld [vmem:[%s12957_s24 + $0x8c] sm:$0x1]  ;;  %v2666_v48 = vrot.slane %v2664_v35, 4  ;;  %v1896_v53 = vsel %vm12979_vm2, %v1891_v38, %v1895_v15  ;;  %v1901_v55 = vshll.u32 %v10199_v29, 16  ;;  %v1907_v56 = vshll.u32 %v10200_v36, 16  ;;  %v12304_v34 = vld [vmem:[%s17122_s1 + $0x238] sm:$0xff]  }
  0xfe   : > { %v2657_v54 = vor.u32 %v2656_v42, %v2653_v41  ;;  %v13615_v57 = vcombine.low %v1886_v31, %v1896_v53  ;;  %v2672_v59 = vrot.slane %v2670_v49, 5  ;;  %v1900_v60 = vrot.slane %v1898_v51, 4  ;;  %v10371_v15 = vld [vmem:[%s12957_s24 + $0x40] sm:$0xf]  ;;  %11733 = vmatprep.subr.bf16.mxu0 %v12304_v34  ;;  %v10269_v53 = vld [vmem:[%s12957_s24 + $0x9c] sm:$0xe] }
  0xff   : > { %v2667_v58 = vor.u32 %v2666_v48, %v2662_v46  ;;  %v1903_v0 = vrot.slane %v1901_v55, 5  ;;  %v1909_v3 = vrot.slane %v1907_v56, 5  ;;  %v1911_v4 = vshrl.u32 %v10200_v36, 16  ;;  %11734 = vmatpush3.bf16.msra.mxu0 %v12304_v34  ;;  %v10433_v61 = vld [vmem:[%s12957_s24 + $0x38] sm:$0x1] }
 0x100   : > { %17236 = vst [vmem:[#allocation24_spill] sm:$0xff] %v13615_v57  ;;  %v2658_v63 = vrot.slane %v2657_v54, 4  ;;  %v1917_v6 = vshll.u32 %v10201_v43, 16  ;;  %v10292_v7 = vrot.slane %v10266_v44, 9  ;;  %v2296_v8 = vrot.slane %v10267_v52, 5 }
 0x101   : > { %v2668_v5 = vrot.slane %v2667_v58, 4  ;;  %v1904_v10 = vor.u32 %v1903_v0, %v1900_v60  ;;  %v1913_v11 = vrot.slane %v1911_v4, 4  ;;  %v2299_v14 = vrot.slane %v10268_v62, 5  ;;  %v10271_v60 = vld [vmem:[%s12957_s24 + $0xa4] sm:$0x1] }
 0x102   : > { %4604 = vmatmul.mubr.bf16.gmra.mrb[84].mxu1 %v12296_v20  ;;  %v2663_v50 = vsel %vm12979_vm2, %v2658_v63, %v2662_v46  ;;  %v1919_v17 = vrot.slane %v1917_v6, 5  ;;  %v2297_v18 = vsel %vm13123_vm5, %v10292_v7, %v2296_v8  ;;  %v2298_v19 = vrot.slane %v2296_v8, 4  ;;  %v10372_v20 = vld [vmem:[%s12957_s24 + $0x44] sm:$0x1]  ;;  %v10204_v46 = vld [vmem:[%s12957_s24 + $0x98] sm:$0x1] }
 0x103   : > { %v2673_v16 = vsel %vm12979_vm2, %v2668_v5, %v2672_v59  ;;  %v1905_v24 = vrot.slane %v1904_v10, 4  ;;  %v1914_v25 = vor.u32 %v1913_v11, %v1909_v3  ;;  %v2675_v26 = vshrl.u32 %v10370_v9, 16  ;;  %v10270_v59 = vld [vmem:[%s12957_s24 + $0xa0] sm:$0xf]  ;;  %v10373_v4 = vld [vmem:[%s12957_s24 + $0x48] sm:$0xf] }
 0x104   : > { %4507 = vmatmul.mubr.bf16.gmra.mrb[84].mxu0 %v13615_v57  ;;  %v10411_v23 = vcombine.low %v2663_v50, %v2673_v16  ;;  %v2300_v28 = vsel %vm13123_vm5, %v2298_v19, %v2299_v14  ;;  %v2678_v29 = vshll.u32 %v10370_v9, 16  ;;  %v2684_v31 = vshll.u32 %v10371_v15, 16  ;;  %v12299_v10 = vld [vmem:[%s12957_s24 + $0x3c] sm:$0xff]   ;;  %v10374_v14 = vld [vmem:[%s12957_s24 + $0x4c] sm:$0xf] }
 0x105   : > { %4514 = vmatprep.mubr.bf16.mxu0 %v10307_v40  ;;  %v2688_v33 = vshrl.u32 %v10371_v15, 16  ;;  %v1910_v35 = vsel %vm12979_vm2, %v1905_v24, %v1909_v3  ;;  %v1915_v36 = vrot.slane %v1914_v25, 4  ;;  %v10308_v38 = vcombine.low %v2297_v18, %v2300_v28  ;;  %v10375_v18 = vld [vmem:[%s12957_s24 + $0x50] sm:$0x1] }
 0x106   : > { %4611 = vmatprep.mubr.bf16.mxu1 %v10411_v23  ;;  %v2677_v40 = vrot.slane %v2675_v26, 4  ;;  %v2680_v41 = vrot.slane %v2678_v29, 5  ;;  %v2686_v42 = vrot.slane %v2684_v31, 5  ;;  %v2694_v44 = vshll.u32 %v10372_v20, 16  ;;  %v10205_v20 = vld [vmem:[%s12957_s24 + $0x9c] sm:$0xf] }
 0x107   : > { %v2690_v43 = vrot.slane %v2688_v33, 4  ;;  %v1920_v48 = vsel %vm12979_vm2, %v1915_v36, %v1919_v17  ;;  %v1922_v49 = vshrl.u32 %v10202_v22, 16  ;;  %v1925_v51 = vshll.u32 %v10202_v22, 16 }
 0x108   : > { %v1931_v52 = vshll.u32 %v10203_v27, 16  ;;  %v13642_v54 = vcombine.low %v1910_v35, %v1920_v48  ;;  %v2681_v55 = vor.u32 %v2680_v41, %v2677_v40  ;;  %v2696_v58 = vrot.slane %v2694_v44, 5  ;;  %v10207_v44 = vld [vmem:[%s12957_s24 + $0xa4] sm:$0x1] }
 0x109   : > { %v2691_v56 = vor.u32 %v2690_v43, %v2686_v42  ;;  %v1924_v62 = vrot.slane %v1922_v49, 4  ;;  %v1927_v63 = vrot.slane %v1925_v51, 5  ;;  %v1935_v3 = vshrl.u32 %v10203_v27, 16 }
 0x10a   : > { %4612 = vmatmul.mubr.bf16.gmra.mrb[88].mxu1 %v12297_v12  ;;  %17237 = vst [vmem:[#allocation25_spill] sm:$0xff] %v13642_v54  ;;  %v1933_v0 = vrot.slane %v1931_v52, 5  ;;  %v2682_v5 = vrot.slane %v2681_v55, 4  ;;  %v1941_v7 = vshll.u32 %v10204_v46, 16  ;;  %v10293_v8 = vrot.slane %v10269_v53, 9 }
 0x10b   : > { %v2692_v6 = vrot.slane %v2691_v56, 4  ;;  %v1928_v9 = vor.u32 %v1927_v63, %v1924_v62  ;;  %v1937_v50 = vrot.slane %v1935_v3, 4  ;;  %v2303_v11 = vrot.slane %v10270_v59, 5  ;;  %v10272_v55 = vld [vmem:[%s12957_s24 + $0xa8] sm:$0xe] }
 0x10c   : > { %4515 = vmatmul.mubr.bf16.gmra.mrb[88].mxu0 %v13642_v54  ;;  %v2306_v12 = vrot.slane %v10271_v60, 5  ;;  %v2687_v15 = vsel %vm12979_vm2, %v2682_v5, %v2686_v42  ;;  %v1943_v17 = vrot.slane %v1941_v7, 5  ;;  %v2699_v19 = vshrl.u32 %v10373_v4, 16  ;;  %v10273_v56 = vld [vmem:[%s12957_s24 + $0xac] sm:$0xf] }
 0x10d   : > { %4522 = vmatprep.mubr.bf16.mxu0 %v10308_v38  ;;  %v2697_v16 = vsel %vm12979_vm2, %v2692_v6, %v2696_v58  ;;  %v1929_v23 = vrot.slane %v1928_v9, 4  ;;  %v1938_v24 = vor.u32 %v1937_v50, %v1933_v0  ;;  %v2304_v25 = vsel %vm13123_vm5, %v10293_v8, %v2303_v11  ;;  %v10206_v38 = vld [vmem:[%s12957_s24 + $0xa0] sm:$0xf]  ;;  %v10274_v63 = vld [vmem:[%s12957_s24 + $0xb0] sm:$0x1] }
 0x10e   : > { %v10412_v22 = vcombine.low %v2687_v15, %v2697_v16  ;;  %v2305_v27 = vrot.slane %v2303_v11, 4  ;;  %v2701_v28 = vrot.slane %v2699_v19, 4  ;;  %v2702_v29 = vshll.u32 %v10373_v4, 16  ;;  %v10376_v6 = vld [vmem:[%s12957_s24 + $0x54] sm:$0xf] }
 0x10f   : > { %v2708_v31 = vshll.u32 %v10374_v14, 16  ;;  %v1934_v33 = vsel %vm12979_vm2, %v1929_v23, %v1933_v0  ;;  %v1939_v34 = vrot.slane %v1938_v24, 4  ;;  %v2712_v35 = vshrl.u32 %v10374_v14, 16  ;;  %v10377_v11 = vld [vmem:[%s12957_s24 + $0x58] sm:$0xf] }
 0x110   : > { %4619 = vmatprep.mubr.bf16.mxu1 %v10412_v22  ;;  %v2718_v36 = vshll.u32 %v10375_v18, 16  ;;  %v2307_v41 = vsel %vm13123_vm5, %v2305_v27, %v2306_v12  ;;  %v2704_v42 = vrot.slane %v2702_v29, 5  ;;  %v1946_v46 = vshrl.u32 %v10205_v20, 16  ;;  %v10378_v23 = vld [vmem:[%s12957_s24 + $0x5c] sm:$0x1] }
 0x111   : > { %v2710_v43 = vrot.slane %v2708_v31, 5  ;;  %v1944_v49 = vsel %vm12979_vm2, %v1939_v34, %v1943_v17  ;;  %v10309_v51 = vcombine.low %v2304_v25, %v2307_v41  ;;  %v2714_v52 = vrot.slane %v2712_v35, 4  ;;  %v12300_v17 = vld [vmem:[%s12957_s24 + $0x48] sm:$0xff]  }
 0x112   : > { %4620 = vmatmul.mubr.bf16.gmra.mrb[92].mxu1 %v12299_v10  ;;  %v2720_v53 = vrot.slane %v2718_v36, 5  ;;  %v13674_v58 = vcombine.low %v1934_v33, %v1944_v49  ;;  %v2705_v59 = vor.u32 %v2704_v42, %v2701_v28  ;;  %v1948_v60 = vrot.slane %v1946_v46, 4  ;;  %v10208_v31 = vld [vmem:[%s12957_s24 + $0xa8] sm:$0xf]  ;;  %v10209_v49 = vld [vmem:[%s12957_s24 + $0xac] sm:$0xf] }
 0x113   : > { %v1949_v62 = vshll.u32 %v10205_v20, 16  ;;  %v2715_v0 = vor.u32 %v2714_v52, %v2710_v43  ;;  %v1955_v3 = vshll.u32 %v10206_v38, 16  ;;  %v1959_v4 = vshrl.u32 %v10206_v38, 16  ;;  %v10429_v54 = vld [vmem:[%s12957_s24 + $0x28] sm:$0xf] }
 0x114   : > { %17238 = vst [vmem:[#allocation26_spill] sm:$0xff] %v13674_v58  ;;  %v1965_v5 = vshll.u32 %v10207_v44, 16  ;;  %4523 = vmatmul.mubr.bf16.gmra.mrb[92].mxu0 %v13674_v58  ;;  %v2706_v8 = vrot.slane %v2705_v59, 4  ;;  %v10294_v50 = vrot.slane %v10272_v55, 9  ;;  %v2310_v10 = vrot.slane %v10273_v56, 5 }
 0x115   : > { %v1951_v9 = vrot.slane %v1949_v62, 5  ;;  %4530 = vmatprep.mubr.bf16.mxu0 %v10309_v51  ;;  %v2716_v12 = vrot.slane %v2715_v0, 4  ;;  %v1957_v14 = vrot.slane %v1955_v3, 5  ;;  %v1961_v15 = vrot.slane %v1959_v4, 4 }
 0x116   : > { %v1967_v16 = vrot.slane %v1965_v5, 5  ;;  %v2711_v18 = vsel %vm12979_vm2, %v2706_v8, %v2710_v43  ;;  %v2311_v20 = vsel %vm13123_vm5, %v10294_v50, %v2310_v10  ;;  %v2312_v22 = vrot.slane %v2310_v10, 4  ;;  %v10276_v50 = vld [vmem:[%s12957_s24 + $0xb8] sm:$0xf] }
 0x117   : > { %v1952_v19 = vor.u32 %v1951_v9, %v1948_v60  ;;  %v2721_v25 = vsel %vm12979_vm2, %v2716_v12, %v2720_v53  ;;  %v1962_v27 = vor.u32 %v1961_v15, %v1957_v14  ;;  %v2313_v28 = vrot.slane %v10274_v63, 5  ;;  %v10210_v63 = vld [vmem:[%s12957_s24 + $0xb0] sm:$0x1]  ;;  %v10275_v9 = vld [vmem:[%s12957_s24 + $0xb4] sm:$0xe] }
 0x118   : > { %v2723_v29 = vshrl.u32 %v10376_v6, 16  ;;  %v10413_v33 = vcombine.low %v2711_v18, %v2721_v25  ;;  %v2726_v35 = vshll.u32 %v10376_v6, 16  ;;  %v2732_v36 = vshll.u32 %v10377_v11, 16  ;;  %v10277_v15 = vld [vmem:[%s12957_s24 + $0xbc] sm:$0x1] }
 0x119   : > { %v1953_v34 = vrot.slane %v1952_v19, 4  ;;  %v1963_v42 = vrot.slane %v1962_v27, 4  ;;  %v2314_v43 = vsel %vm13123_vm5, %v2312_v22, %v2313_v28  ;;  %v2736_v46 = vshrl.u32 %v10377_v11, 16  ;;  %v10379_v22 = vld [vmem:[%s12957_s24 + $0x60] sm:$0xf] }
 0x11a   : > { %v2725_v44 = vrot.slane %v2723_v29, 4  ;;  %4627 = vmatprep.mubr.bf16.mxu1 %v10413_v33  ;;  %v10310_v53 = vcombine.low %v2311_v20, %v2314_v43  ;;  %v2728_v55 = vrot.slane %v2726_v35, 5  ;;  %v2734_v56 = vrot.slane %v2732_v36, 5  ;;  %v10380_v29 = vld [vmem:[%s12957_s24 + $0x64] sm:$0xf] }
 0x11b   : > { %v1958_v52 = vsel %vm12979_vm2, %v1953_v34, %v1957_v14  ;;  %v1968_v59 = vsel %vm12979_vm2, %v1963_v42, %v1967_v16  ;;  %4628 = vmatmul.mubr.bf16.gmra.mrb[96].mxu1 %v12300_v17  ;;  %v2738_v60 = vrot.slane %v2736_v46, 4  ;;  %v2742_v62 = vshll.u32 %v10378_v23, 16  ;;  %v10381_v36 = vld [vmem:[%s12957_s24 + $0x68] sm:$0x1] }
 0x11c   : > { %v1970_v0 = vshrl.u32 %v10208_v31, 16  ;;  %v13709_v4 = vcombine.low %v1958_v52, %v1968_v59  ;;  %v2729_v5 = vor.u32 %v2728_v55, %v2725_v44  ;;  %v1973_v6 = vshll.u32 %v10208_v31, 16  ;;  %v12302_v44 = vld [vmem:[%s12957_s24 + $0x54] sm:$0xff]  }
 0x11d   : > { %v1979_v8 = vshll.u32 %v10209_v49, 16  ;;  %v2739_v10 = vor.u32 %v2738_v60, %v2734_v56  ;;  %v2744_v11 = vrot.slane %v2742_v62, 5  ;;  %v1983_v14 = vshrl.u32 %v10209_v49, 16  ;;  %v10211_v52 = vld [vmem:[%s12957_s24 + $0xb4] sm:$0xf] }
 0x11e   : > { %17239 = vst [vmem:[#allocation27_spill] sm:$0xff] %v13709_v4  ;;  %v1972_v12 = vrot.slane %v1970_v0, 4  ;;  %4531 = vmatmul.mubr.bf16.gmra.mrb[96].mxu0 %v13709_v4  ;;  %v2730_v17 = vrot.slane %v2729_v5, 4  ;;  %v1975_v18 = vrot.slane %v1973_v6, 5  ;;  %v1989_v20 = vshll.u32 %v10210_v63, 16 }
 0x11f   : > { %v1981_v19 = vrot.slane %v1979_v8, 5  ;;  %4538 = vmatprep.mubr.bf16.mxu0 %v10310_v53  ;;  %v2740_v23 = vrot.slane %v2739_v10, 4  ;;  %v1985_v25 = vrot.slane %v1983_v14, 4  ;;  %v10295_v27 = vrot.slane %v10275_v9, 9 }
 0x120   : > { %v2317_v28 = vrot.slane %v10276_v50, 5  ;;  %v2735_v31 = vsel %vm12979_vm2, %v2730_v17, %v2734_v56  ;;  %v1976_v33 = vor.u32 %v1975_v18, %v1972_v12  ;;  %v1991_v34 = vrot.slane %v1989_v20, 5  ;;  %v10212_v17 = vld [vmem:[%s12957_s24 + $0xb8] sm:$0xf] }
 0x121   : > { %v2320_v35 = vrot.slane %v10277_v15, 5  ;;  %v2745_v42 = vsel %vm12979_vm2, %v2740_v23, %v2744_v11  ;;  %v1986_v43 = vor.u32 %v1985_v25, %v1981_v19  ;;  %v2747_v60 = vshrl.u32 %v10379_v22, 16  ;;  %v10213_v25 = vld [vmem:[%s12957_s24 + $0xbc] sm:$0x1] }
 0x122   : > { %v2318_v46 = vsel %vm13123_vm5, %v10295_v27, %v2317_v28  ;;  %v2319_v49 = vrot.slane %v2317_v28, 4  ;;  %v10414_v59 = vcombine.low %v2735_v31, %v2745_v42  ;;  %v1977_v56 = vrot.slane %v1976_v33, 4 }
 0x123   : > { %v2750_v62 = vshll.u32 %v10379_v22, 16  ;;  %v1987_v5 = vrot.slane %v1986_v43, 4  ;;  %v2756_v8 = vshll.u32 %v10380_v29, 16  ;;  %v2760_v9 = vshrl.u32 %v10380_v29, 16 }
 0x124   : > { %v2321_v6 = vsel %vm13123_vm5, %v2319_v49, %v2320_v35  ;;  %4635 = vmatprep.mubr.bf16.mxu1 %v10414_v59  ;;  %v1982_v11 = vsel %vm12979_vm2, %v1977_v56, %v1981_v19  ;;  %v2749_v14 = vrot.slane %v2747_v60, 4  ;;  %v2766_v23 = vshll.u32 %v10381_v36, 16  ;;  %v13755_v19 = vld [vmem:[%s17123_s2] ss:$0 sm:$0xff] }
 0x125   : > { %v10311_v12 = vcombine.low %v2318_v46, %v2321_v6  ;;  %v2752_v15 = vrot.slane %v2750_v62, 5  ;;  %v1992_v18 = vsel %vm12979_vm2, %v1987_v5, %v1991_v34  ;;  %4636 = vmatmul.mubr.bf16.gmra.mrb[100].mxu1 %v12302_v44  ;;  %v2758_v20 = vrot.slane %v2756_v8, 5  ;;  %v12303_v62 = vld [vmem:[%s12957_s24 + $0x60] sm:$0xff]  }
 0x126   : > { %v2762_v22 = vrot.slane %v2760_v9, 4  ;;  %v13750_v28 = vcombine.low %v1982_v11, %v1992_v18  ;;  %v1994_v31 = vshrl.u32 %v10211_v52, 16  ;;  %v1997_v33 = vshll.u32 %v10211_v52, 16  ;;  %v10278_v6 = vld [vmem:[%s12957_s24 + $0xc0] sm:$0xe] }
 0x127   : > { %v2753_v29 = vor.u32 %v2752_v15, %v2749_v14  ;;  %v2768_v34 = vrot.slane %v2766_v23, 5  ;;  %v2003_v42 = vshll.u32 %v10212_v17, 16  ;;  %v2007_v43 = vshrl.u32 %v10212_v17, 16  ;;  %v10279_v15 = vld [vmem:[%s12957_s24 + $0xc4] sm:$0xf] }
 0x128   : > { %17240 = vst [vmem:[#allocation28_spill] sm:$0xff] %v13750_v28  ;;  %v2763_v35 = vor.u32 %v2762_v22, %v2758_v20  ;;  %4539 = vmatmul.mubr.bf16.gmra.mrb[100].mxu0 %v13750_v28  ;;  %v1996_v46 = vrot.slane %v1994_v31, 4  ;;  %v1999_v49 = vrot.slane %v1997_v33, 5  ;;  %v2013_v52 = vshll.u32 %v10213_v25, 16  ;;  %v10280_v17 = vld [vmem:[%s12957_s24 + $0xc8] sm:$0x1] }
 0x129   : > { %v2754_v44 = vrot.slane %v2753_v29, 4  ;;  %4546 = vmatprep.mubr.bf16.mxu0 %v10311_v12  ;;  %v2005_v56 = vrot.slane %v2003_v42, 5  ;;  %v2009_v60 = vrot.slane %v2007_v43, 4  ;;  %v10382_v23 = vld [vmem:[%s12957_s24 + $0x6c] sm:$0xf] }
 0x12a   : > { %v2764_v59 = vrot.slane %v2763_v35, 4  ;;  %v2000_v11 = vor.u32 %v1999_v49, %v1996_v46  ;;  %v2015_v14 = vrot.slane %v2013_v52, 5  ;;  %v10383_v25 = vld [vmem:[%s12957_s24 + $0x70] sm:$0xf]  ;;  %v10296_v35 = vrot.slane %v10278_v6, 9 }
 0x12b   : > { %v2759_v9 = vsel %vm12979_vm2, %v2754_v44, %v2758_v20  ;;  %v2327_v44 = vrot.slane %v10280_v17, 5  ;;  %v10384_v46 = vld [vmem:[%s12957_s24 + $0x74] sm:$0x1]  ;;  %v2771_v52 = vshrl.u32 %v10382_v23, 16 }
 0x12c   : > { %v2769_v22 = vsel %vm12979_vm2, %v2764_v59, %v2768_v34  ;;  %v2001_v31 = vrot.slane %v2000_v11, 4  ;;  %v10214_v59 = vld [vmem:[%s12957_s24 + $0xc0] sm:$0xf]  ;;  %v2784_v11 = vshrl.u32 %v10383_v25, 16 }
 0x12d   : > { %v13658_v26 = vpop.f32.mrb[0].mxu0  ;;  %v13663_v40 = vpop.f32.mrb[0].mxu1 }
 0x12e   : > { %v13668_v48 = vpop.f32.mrb[1].mxu0  ;;  %v13678_v7 = vpop.f32.mrb[1].mxu1  ;;  %v2006_v49 = vsel %vm12979_vm2, %v2001_v31, %v2005_v56  ;;  %v2790_v31 = vshll.u32 %v10384_v46, 16 }
 0x12f   : > { %v13688_v24 = vpop.f32.mrb[2].mxu0  ;;  %v13693_v38 = vpop.f32.mrb[2].mxu1  ;;  %v10693_v5 = vadd.f32 %v13668_v48, %v13658_v26  ;;  %v13770_v12 = vadd.f32 %v13678_v7, %v13663_v40  ;;  %v2010_v26 = vor.u32 %v2009_v60, %v2005_v56  ;;  %v10415_v7 = vcombine.low %v2759_v9, %v2769_v22 }
 0x130   : > { %v13695_v41 = vpop.f32.mrb[3].mxu0  ;;  %v13700_v51 = vpop.f32.mrb[3].mxu1  ;;  %v2773_v56 = vrot.slane %v2771_v52, 4 }
 0x131   : > { %17241 = vst [vmem:[#allocation29_spill] sm:$0xff] %v13770_v12  ;;  %v13779_v48 = vadd.f32 %v10693_v5, %v13755_v19  ;;  %v10696_v20 = vadd.f32 %v13695_v41, %v13688_v24  ;;  %v13791_v33 = vadd.f32 %v13700_v51, %v13693_v38  ;;  %v2011_v43 = vrot.slane %v2010_v26, 4  ;;  %4643 = vmatprep.mubr.bf16.mxu1 %v10415_v7 }
 0x132   : > { %v2324_v41 = vrot.slane %v10279_v15, 5  ;;  %v2774_v38 = vshll.u32 %v10382_v23, 16  ;;  %v2780_v51 = vshll.u32 %v10383_v25, 16  ;;  %4644 = vmatmul.mubr.bf16.gmra.mrb[104].mxu1 %v12303_v62  ;;  %v10215_v15 = vld [vmem:[%s12957_s24 + $0xc4] sm:$0xf]  ;;  %v2786_v7 = vrot.slane %v2784_v11, 4 }
 0x133   : > { %17242 = vst [vmem:[#allocation30_spill] sm:$0xff] %v13791_v33  ;;  %v13798_v24 = vadd.f32 %v10696_v20, %v13755_v19  ;;  %v2016_v5 = vsel %vm12979_vm2, %v2011_v43, %v2015_v14  ;;  %v10216_v14 = vld [vmem:[%s12957_s24 + $0xc8] sm:$0x1]  ;;  %v2018_v62 = vshrl.u32 %v10214_v59, 16 }
 0x134   : > { %v2325_v6 = vsel %vm13123_vm5, %v10296_v35, %v2324_v41  ;;  %v2326_v9 = vrot.slane %v2324_v41, 4  ;;  %v13811_v17 = vcombine.low %v2006_v49, %v2016_v5  ;;  %v2776_v22 = vrot.slane %v2774_v38, 5 }
 0x135   : > { %v13707_v3 = vpop.f32.mrb[4].mxu0  ;;  %v13714_v16 = vpop.f32.mrb[4].mxu1  ;;  %v2782_v26 = vrot.slane %v2780_v51, 5  ;;  %v2021_v41 = vshll.u32 %v10214_v59, 16  ;;  %v2027_v49 = vshll.u32 %v10215_v15, 16  ;;  %v2792_v38 = vrot.slane %v2790_v31, 5 }
 0x136   : > { %v13728_v53 = vpop.f32.mrb[5].mxu0  ;;  %v13730_v55 = vpop.f32.mrb[5].mxu1  ;;  %17243 = vst [vmem:[#allocation31_spill] sm:$0xff] %v13811_v17  ;;  %v2328_v23 = vsel %vm13123_vm5, %v2326_v9, %v2327_v44  ;;  %4547 = vmatmul.mubr.bf16.gmra.mrb[104].mxu0 %v13811_v17  ;;  %v2777_v35 = vor.u32 %v2776_v22, %v2773_v56  ;;  %v2020_v51 = vrot.slane %v2018_v62, 4  ;;  %v2031_v5 = vshrl.u32 %v10215_v15, 16 }
 0x137   : > { %v13732_v63 = vpop.f32.mrb[6].mxu0  ;;  %v13734_v0 = vpop.f32.mrb[6].mxu1  ;;  %v10312_v25 = vcombine.low %v2325_v6, %v2328_v23  ;;  %v2787_v52 = vor.u32 %v2786_v7, %v2782_v26  ;;  %v2023_v9 = vrot.slane %v2021_v41, 5  ;;  %v2029_v11 = vrot.slane %v2027_v49, 5  ;;  %v10385_v31 = vld [vmem:[%s12957_s24 + $0x78] sm:$0xf] }
 0x138   : > { %v13738_v50 = vpop.f32.mrb[7].mxu0  ;;  %v13740_v10 = vpop.f32.mrb[7].mxu1  ;;  %v2778_v46 = vrot.slane %v2777_v35, 4  ;;  %v2037_v6 = vshll.u32 %v10216_v14, 16  ;;  %v2033_v23 = vrot.slane %v2031_v5, 4  ;;  %v10699_v15 = vadd.f32 %v13728_v53, %v13707_v3  ;;  %v12305_v41 = vld [vmem:[%s12957_s24 + $0x6c] sm:$0xff]  }
 0x139   : > { %4554 = vmatprep.mubr.bf16.mxu0 %v10312_v25  ;;  %v2788_v22 = vrot.slane %v2787_v52, 4  ;;  %v13833_v7 = vadd.f32 %v13730_v55, %v13714_v16  ;;  %v2024_v25 = vor.u32 %v2023_v9, %v2020_v51  ;;  %v10702_v49 = vadd.f32 %v13738_v50, %v13732_v63  ;;  %v10386_v52 = vld [vmem:[%s12957_s24 + $0x7c] sm:$0xf]  ;;  %v10387_v3 = vld [vmem:[%s12957_s24 + $0x80] sm:$0x1] }
 0x13a   : > { %v2783_v14 = vsel %vm12979_vm2, %v2778_v46, %v2782_v26  ;;  %v2039_v35 = vrot.slane %v2037_v6, 5  ;;  %v2034_v53 = vor.u32 %v2033_v23, %v2029_v11  ;;  %v13848_v55 = vadd.f32 %v10699_v15, %v13755_v19  ;;  %v10425_v26 = vld [vmem:[%s12957_s24 + $0x18] sm:$0xe]  ;;  %v10426_v51 = vld [vmem:[%s12957_s24 + $0x1c] sm:$0xf] }
 0x13b   : > { %17244 = vst [vmem:[#allocation32_spill] sm:$0xff] %v13833_v7  ;;  %v2793_v16 = vsel %vm12979_vm2, %v2788_v22, %v2792_v38  ;;  %v13852_v5 = vadd.f32 %v13740_v10, %v13734_v0  ;;  %v10427_v46 = vld [vmem:[%s12957_s24 + $0x20] sm:$0x1]  ;;  %v2025_v63 = vrot.slane %v2024_v25, 4  ;;  %v13858_v50 = vadd.f32 %v10702_v49, %v13755_v19  ;;  %v10428_v15 = vld [vmem:[%s12957_s24 + $0x24] sm:$0xe] }
 0x13c   : > { %v10416_v9 = vcombine.low %v2783_v14, %v2793_v16  ;;  %v2795_v6 = vshrl.u32 %v10385_v31, 16  ;;  %v2035_v17 = vrot.slane %v2034_v53, 4  ;;  %v2798_v38 = vshll.u32 %v10385_v31, 16  ;;  %v10430_v53 = vld [vmem:[%s12957_s24 + $0x2c] sm:$0x1] }
 0x13d   : > { %v13748_v27 = vpop.f32.mrb[8].mxu0  ;;  %v13757_v36 = vpop.f32.mrb[8].mxu1  ;;  %17245 = vst [vmem:[#allocation33_spill] sm:$0xff] %v13852_v5  ;;  %v2804_v22 = vshll.u32 %v10386_v52, 16  ;;  %v2808_v23 = vshrl.u32 %v10386_v52, 16  ;;  %v2030_v0 = vsel %vm12979_vm2, %v2025_v63, %v2029_v11  ;;  %v2814_v4 = vshll.u32 %v10387_v3, 16 }
 0x13e   : > { %v13764_v8 = vpop.f32.mrb[9].mxu0  ;;  %v13774_v18 = vpop.f32.mrb[9].mxu1  ;;  %4651 = vmatprep.mubr.bf16.mxu1 %v10416_v9  ;;  %v2797_v10 = vrot.slane %v2795_v6, 4  ;;  %v10473_v58 = vrot.slane %v10425_v26, 9  ;;  %v2040_v25 = vsel %vm12979_vm2, %v2035_v17, %v2039_v35  ;;  %v2800_v49 = vrot.slane %v2798_v38, 5 }
 0x13f   : > { %v13785_v29 = vpop.f32.mrb[10].mxu0  ;;  %v13787_v40 = vpop.f32.mrb[10].mxu1  ;;  %4652 = vmatmul.mubr.bf16.gmra.mrb[108].mxu1 %v12305_v41  ;;  %v2806_v31 = vrot.slane %v2804_v22, 5  ;;  %v2810_v16 = vrot.slane %v2808_v23, 4  ;;  %v13871_v9 = vcombine.low %v2030_v0, %v2040_v25  ;;  %v2816_v57 = vrot.slane %v2814_v4, 5 }
 0x140   : > { %v13793_v34 = vpop.f32.mrb[11].mxu0  ;;  %v13795_v42 = vpop.f32.mrb[11].mxu1  ;;  %v3164_v11 = vrot.slane %v10426_v51, 5  ;;  %v3167_v3 = vrot.slane %v10427_v46, 5  ;;  %v2801_v6 = vor.u32 %v2800_v49, %v2797_v10  ;;  %v10474_v35 = vrot.slane %v10428_v15, 9  ;;  %v12306_v49 = vld [vmem:[%s12957_s24 + $0x78] sm:$0xff]  }
 0x141   : > { %17246 = vst [vmem:[#allocation34_spill] sm:$0xff] %v13871_v9  ;;  %v2811_v17 = vor.u32 %v2810_v16, %v2806_v31  ;;  %v3171_v41 = vrot.slane %v10429_v54, 5  ;;  %4555 = vmatmul.mubr.bf16.gmra.mrb[108].mxu0 %v13871_v9  ;;  %v3174_v46 = vrot.slane %v10430_v53, 5  ;;  %v10705_v23 = vadd.f32 %v13764_v8, %v13748_v27  ;;  %v10388_v15 = vld [vmem:[%s12957_s24 + $0x84] sm:$0xf] }
 0x142   : > { %v3165_v4 = vsel %vm13123_vm5, %v10473_v58, %v3164_v11  ;;  %v3166_v51 = vrot.slane %v3164_v11, 4  ;;  %v2802_v10 = vrot.slane %v2801_v6, 4  ;;  %v10389_v11 = vld [vmem:[%s12957_s24 + $0x88] sm:$0xf]  ;;  %v13902_v8 = vadd.f32 %v13774_v18, %v13757_v36  ;;  %v10431_v9 = vld [vmem:[%s12957_s24 + $0x30] sm:$0xe] }
 0x143   : > { %v2812_v25 = vrot.slane %v2811_v17, 4  ;;  %v3172_v58 = vsel %vm13123_vm5, %v10474_v35, %v3171_v41  ;;  %v3173_v16 = vrot.slane %v3171_v41, 4  ;;  %v13898_v27 = vadd.f32 %v10705_v23, %v13755_v19  ;;  %v10390_v17 = vld [vmem:[%s12957_s24 + $0x8c] sm:$0x1]  ;;  %v10432_v35 = vld [vmem:[%s12957_s24 + $0x34] sm:$0xf] }
 0x144   : > { %v3168_v53 = vsel %vm13123_vm5, %v3166_v51, %v3167_v3  ;;  %17247 = vst [vmem:[#allocation35_spill] sm:$0xff] %v13902_v8  ;;  %v10708_v6 = vadd.f32 %v13793_v34, %v13785_v29  ;;  %v2807_v41 = vsel %vm12979_vm2, %v2802_v10, %v2806_v31  ;;  %v13921_v29 = vadd.f32 %v13795_v42, %v13787_v40  ;;  %v10434_v34 = vld [vmem:[%s12957_s24 + $0x3c] sm:$0xe]  ;;  %v10435_v31 = vld [vmem:[%s12957_s24 + $0x40] sm:$0xf] }
 0x145   : > { %v13804_v60 = vpop.f32.mrb[12].mxu0  ;;  %v13818_v43 = vpop.f32.mrb[12].mxu1  ;;  %v2817_v3 = vsel %vm12979_vm2, %v2812_v25, %v2816_v57  ;;  %v10489_v51 = vcombine.low %v3165_v4, %v3168_v53  ;;  %v3175_v23 = vsel %vm13123_vm5, %v3173_v16, %v3174_v46  ;;  %v2819_v10 = vshrl.u32 %v10388_v15, 16  ;;  %v10436_v25 = vld [vmem:[%s12957_s24 + $0x44] sm:$0x1] }
 0x146   : > { %v13813_v20 = vpop.f32.mrb[13].mxu0  ;;  %v13821_v28 = vpop.f32.mrb[13].mxu1  ;;  %v10417_v36 = vcombine.low %v2807_v41, %v2817_v3  ;;  %v10490_v18 = vcombine.low %v3172_v58, %v3175_v23  ;;  %v13917_v1 = vadd.f32 %v10708_v6, %v13755_v19  ;;  %17248 = vst [vmem:[#allocation36_spill] sm:$0xff] %v13921_v29  ;;  %v2822_v13 = vshll.u32 %v10388_v15, 16  ;;  %v10454_v8 = vld [vmem:[%s12957_s24 + $0x8c] sm:$0x1] }
 0x147   : > { %v13823_v44 = vpop.f32.mrb[14].mxu0  ;;  %v13825_v56 = vpop.f32.mrb[14].mxu1  ;;  %11735 = vmatprep.mubr.bf16.mxu0 %v10489_v51  ;;  %v2828_v57 = vshll.u32 %v10389_v11, 16  ;;  %v2832_v4 = vshrl.u32 %v10389_v11, 16  ;;  %v2838_v46 = vshll.u32 %v10390_v17, 16  ;;  %v10475_v16 = vrot.slane %v10431_v9, 9 }
 0x148   : > { %v13827_v59 = vpop.f32.mrb[15].mxu0  ;;  %v13836_v62 = vpop.f32.mrb[15].mxu1  ;;  %4659 = vmatprep.mubr.bf16.mxu1 %v10417_v36  ;;  %v3178_v53 = vrot.slane %v10432_v35, 5  ;;  %v3181_v58 = vrot.slane %v10433_v61, 5  ;;  %v2821_v6 = vrot.slane %v2819_v10, 4  ;;  %v2824_v3 = vrot.slane %v2822_v13, 5 }
 0x149   : > { %4660 = vmatmul.mubr.bf16.gmra.mrb[112].mxu1 %v12306_v49  ;;  %v2830_v40 = vrot.slane %v2828_v57, 5  ;;  %v2834_v42 = vrot.slane %v2832_v4, 4  ;;  %11736 = vmatmul.mubr.bf16.vlgmr.msra.gmra.mrb[112].mxu0 %v10490_v18  ;;  %v2840_v15 = vrot.slane %v2838_v46, 5  ;;  %v10476_v61 = vrot.slane %v10434_v34, 9  ;;  %v10391_v57 = vld [vmem:[%s12957_s24 + $0x90] sm:$0xf] }
 0x14a   : > { %v3179_v11 = vsel %vm13123_vm5, %v10475_v16, %v3178_v53  ;;  %v3180_v9 = vrot.slane %v3178_v53, 4  ;;  %v2825_v13 = vor.u32 %v2824_v3, %v2821_v6  ;;  %v3185_v36 = vrot.slane %v10435_v31, 5  ;;  %v10393_v53 = vld [vmem:[%s12957_s24 + $0x98] sm:$0x1] }
 0x14b   : > { %v2835_v35 = vor.u32 %v2834_v42, %v2830_v40  ;;  %v3188_v10 = vrot.slane %v10436_v25, 5  ;;  %v10711_v34 = vadd.f32 %v13813_v20, %v13804_v60  ;;  %v13949_v16 = vadd.f32 %v13821_v28, %v13818_v43  ;;  %v10392_v25 = vld [vmem:[%s12957_s24 + $0x94] sm:$0xf]  ;;  %v10437_v20 = vld [vmem:[%s12957_s24 + $0x48] sm:$0xe] }
 0x14c   : > { %v3182_v46 = vsel %vm13123_vm5, %v3180_v9, %v3181_v58  ;;  %v10714_v31 = vadd.f32 %v13827_v59, %v13823_v44  ;;  %v2826_v3 = vrot.slane %v2825_v13, 4  ;;  %v3186_v60 = vsel %vm13123_vm5, %v10476_v61, %v3185_v36  ;;  %v10438_v58 = vld [vmem:[%s12957_s24 + $0x4c] sm:$0xf]  ;;  %v12307_v28 = vld [vmem:[%s12957_s24 + $0x84] sm:$0xff]  }
 0x14d   : > { %v13864_v14 = vpop.f32.mrb[16].mxu1  ;;  %v13869_v52 = vpop.f32.mrb[16].mxu0  ;;  %17249 = vst [vmem:[#allocation37_spill] sm:$0xff] %v13949_v16  ;;  %v2836_v42 = vrot.slane %v2835_v35, 4  ;;  %v10491_v30 = vcombine.low %v3179_v11, %v3182_v46  ;;  %v3187_v43 = vrot.slane %v3185_v36, 4  ;;  %v13963_v9 = vadd.f32 %v10711_v34, %v13755_v19 }
 0x14e   : > { %v13873_v26 = vpop.f32.mrb[17].mxu0  ;;  %v13875_v63 = vpop.f32.mrb[17].mxu1  ;;  %v13966_v44 = vadd.f32 %v10714_v31, %v13755_v19  ;;  %v13970_v59 = vadd.f32 %v13836_v62, %v13825_v56  ;;  %v10439_v11 = vld [vmem:[%s12957_s24 + $0x50] sm:$0x1]  ;;  %v2831_v13 = vsel %vm12979_vm2, %v2826_v3, %v2830_v40  ;;  %v2843_v35 = vshrl.u32 %v10391_v57, 16 }
 0x14f   : > { %v13877_v38 = vpop.f32.mrb[18].mxu0  ;;  %v13879_v22 = vpop.f32.mrb[18].mxu1  ;;  %v2841_v61 = vsel %vm12979_vm2, %v2836_v42, %v2840_v15  ;;  %11739 = vmatprep.mubr.bf16.mxu0 %v10491_v30  ;;  %v2846_v36 = vshll.u32 %v10391_v57, 16  ;;  %v10440_v46 = vld [vmem:[%s12957_s24 + $0x54] sm:$0xe]  ;;  %v3189_v19 = vsel %vm13123_vm5, %v3187_v43, %v3188_v10  ;;  %v2852_v31 = vshll.u32 %v10392_v25, 16 }
 0x150   : > { %v13887_v54 = vpop.f32.mrb[19].mxu0  ;;  %v13889_v0 = vpop.f32.mrb[19].mxu1  ;;  %17250 = vst [vmem:[#allocation38_spill] sm:$0xff] %v13970_v59  ;;  %v10441_v34 = vld [vmem:[%s12957_s24 + $0x58] sm:$0xf]  ;;  %v10418_v47 = vcombine.low %v2831_v13, %v2841_v61  ;;  %v2856_v2 = vshrl.u32 %v10392_v25, 16  ;;  %v10492_v21 = vcombine.low %v3186_v60, %v3189_v19 }
 0x151   : > { %v10442_v56 = vld [vmem:[%s12957_s24 + $0x5c] sm:$0x1]  ;;  %v2845_v39 = vrot.slane %v2843_v35, 4  ;;  %v2848_v40 = vrot.slane %v2846_v36, 5  ;;  %v2862_v3 = vshll.u32 %v10393_v53, 16  ;;  %v2854_v15 = vrot.slane %v2852_v31, 5 }
 0x152   : > { %4667 = vmatprep.mubr.bf16.mxu1 %v10418_v47  ;;  %v2858_v57 = vrot.slane %v2856_v2, 4  ;;  %v10477_v42 = vrot.slane %v10437_v20, 9  ;;  %v3192_v13 = vrot.slane %v10438_v58, 5  ;;  %11740 = vmatmul.mubr.bf16.gmra.mrb[116].mxu0 %v10492_v21  ;;  %v3195_v53 = vrot.slane %v10439_v11, 5  ;;  %v10394_v21 = vld [vmem:[%s12957_s24 + $0x9c] sm:$0xf] }
 0x153   : > { %4668 = vmatmul.mubr.bf16.gmra.mrb[116].mxu1 %v12307_v28  ;;  %v2849_v60 = vor.u32 %v2848_v40, %v2845_v39  ;;  %v2864_v43 = vrot.slane %v2862_v3, 5  ;;  %v10478_v61 = vrot.slane %v10440_v46, 9  ;;  %v3199_v28 = vrot.slane %v10441_v34, 5  ;;  %v10395_v31 = vld [vmem:[%s12957_s24 + $0xa0] sm:$0xf] }
 0x154   : > { %v2859_v2 = vor.u32 %v2858_v57, %v2854_v15  ;;  %v3193_v20 = vsel %vm13123_vm5, %v10477_v42, %v3192_v13  ;;  %v3194_v58 = vrot.slane %v3192_v13, 4  ;;  %v3202_v19 = vrot.slane %v10442_v56, 5  ;;  %v10396_v40 = vld [vmem:[%s12957_s24 + $0xa4] sm:$0x1]  ;;  %v12308_v57 = vld [vmem:[%s12957_s24 + $0x90] sm:$0xff]  }
 0x155   : > { %v13926_v41 = vpop.f32.mrb[20].mxu1  ;;  %v13928_v23 = vpop.f32.mrb[20].mxu0  ;;  %v2850_v36 = vrot.slane %v2849_v60, 4  ;;  %v14003_v11 = vadd.f32 %v13873_v26, %v13869_v52  ;;  %v10805_v46 = vadd.f32 %v13875_v63, %v13864_v14  ;;  %v3200_v56 = vsel %vm13123_vm5, %v10478_v61, %v3199_v28  ;;  %v10443_v13 = vld [vmem:[%s12957_s24 + $0x60] sm:$0xe] }
 0x156   : > { %v13930_v51 = vpop.f32.mrb[21].mxu1  ;;  %v13934_v17 = vpop.f32.mrb[21].mxu0  ;;  %v2860_v3 = vrot.slane %v2859_v2, 4  ;;  %v3196_v34 = vsel %vm13123_vm5, %v3194_v58, %v3195_v53  ;;  %v3201_v42 = vrot.slane %v3199_v28, 4  ;;  %v10444_v60 = vld [vmem:[%s12957_s24 + $0x64] sm:$0xf]  ;;  %v14023_v63 = vadd.f32 %v13887_v54, %v13877_v38 }
 0x157   : > { %v13936_v49 = vpop.f32.mrb[22].mxu1  ;;  %v13939_v18 = vpop.f32.mrb[22].mxu0  ;;  %v2855_v52 = vsel %vm12979_vm2, %v2850_v36, %v2854_v15  ;;  %v10493_v26 = vcombine.low %v3193_v20, %v3196_v34  ;;  %v14019_v14 = vadd.f32 %v10805_v46, %v13779_v48  ;;  %v10445_v53 = vld [vmem:[%s12957_s24 + $0x68] sm:$0x1]  ;;  %v10808_v58 = vadd.f32 %v13889_v0, %v13879_v22  ;;  %v10446_v20 = vld [vmem:[%s12957_s24 + $0x6c] sm:$0xe] }
 0x158   : > { %v13941_v4 = vpop.f32.mrb[23].mxu1  ;;  %v13955_v6 = vpop.f32.mrb[23].mxu0  ;;  %v2865_v2 = vsel %vm12979_vm2, %v2860_v3, %v2864_v43  ;;  %v3203_v61 = vsel %vm13123_vm5, %v3201_v42, %v3202_v19  ;;  %v2867_v15 = vshrl.u32 %v10394_v21, 16  ;;  %v10447_v28 = vld [vmem:[%s12957_s24 + $0x70] sm:$0xf]  ;;  %v2870_v38 = vshll.u32 %v10394_v21, 16 }
 0x159   : > { %17251 = vst [vmem:[#allocation39_spill] sm:$0xff] %v14019_v14  ;;  %v10419_v48 = vcombine.low %v2855_v52, %v2865_v2  ;;  %11743 = vmatprep.mubr.bf16.mxu0 %v10493_v26  ;;  %v10494_v46 = vcombine.low %v3200_v56, %v3203_v61  ;;  %v2876_v54 = vshll.u32 %v10395_v31, 16  ;;  %v10448_v34 = vld [vmem:[%s12957_s24 + $0x74] sm:$0x1]  ;;  %v14042_v19 = vadd.f32 %v10808_v58, %v13798_v24 }
 0x15a   : > { %v2869_v3 = vrot.slane %v2867_v15, 4  ;;  %v2880_v22 = vshrl.u32 %v10395_v31, 16  ;;  %v2886_v0 = vshll.u32 %v10396_v40, 16  ;;  %v2872_v56 = vrot.slane %v2870_v38, 5 }
 0x15b   : > { %17252 = vst [vmem:[#allocation40_spill] sm:$0xff] %v14042_v19  ;;  %4675 = vmatprep.mubr.bf16.mxu1 %v10419_v48  ;;  %11744 = vmatmul.mubr.bf16.gmra.mrb[120].mxu0 %v10494_v46  ;;  %v2878_v21 = vrot.slane %v2876_v54, 5  ;;  %v10479_v52 = vrot.slane %v10443_v13, 9  ;;  %v3206_v26 = vrot.slane %v10444_v60, 5  ;;  %v3209_v40 = vrot.slane %v10445_v53, 5 }
 0x15c   : > { %4676 = vmatmul.mubr.bf16.gmra.mrb[120].mxu1 %v12308_v57  ;;  %v2882_v24 = vrot.slane %v2880_v22, 4  ;;  %v2888_v31 = vrot.slane %v2886_v0, 5  ;;  %v10480_v58 = vrot.slane %v10446_v20, 9  ;;  %v2873_v48 = vor.u32 %v2872_v56, %v2869_v3  ;;  %v10397_v20 = vld [vmem:[%s12957_s24 + $0xa8] sm:$0xf] }
 0x15d   : > { %v13982_v62 = vpop.f32.mrb[24].mxu1  ;;  %v13984_v45 = vpop.f32.mrb[24].mxu0  ;;  %v3207_v13 = vsel %vm13123_vm5, %v10479_v52, %v3206_v26  ;;  %v3208_v60 = vrot.slane %v3206_v26, 4  ;;  %v3213_v46 = vrot.slane %v10447_v28, 5  ;;  %v3216_v54 = vrot.slane %v10448_v34, 5 }
 0x15e   : > { %v13986_v30 = vpop.f32.mrb[25].mxu1  ;;  %v13988_v10 = vpop.f32.mrb[25].mxu0  ;;  %v2883_v38 = vor.u32 %v2882_v24, %v2878_v21  ;;  %v14058_v57 = vadd.f32 %v13934_v17, %v13928_v23  ;;  %v10811_v53 = vadd.f32 %v13930_v51, %v13926_v41  ;;  %v10398_v22 = vld [vmem:[%s12957_s24 + $0xac] sm:$0xf]  ;;  %v2874_v0 = vrot.slane %v2873_v48, 4  ;;  %v12309_v17 = vld [vmem:[%s12957_s24 + $0x9c] sm:$0xff]  }
 0x15f   : > { %v13990_v25 = vpop.f32.mrb[26].mxu1  ;;  %v13992_v35 = vpop.f32.mrb[26].mxu0  ;;  %v3210_v3 = vsel %vm13123_vm5, %v3208_v60, %v3209_v40  ;;  %v3214_v28 = vsel %vm13123_vm5, %v10480_v58, %v3213_v46  ;;  %v3215_v34 = vrot.slane %v3213_v46, 4  ;;  %v10399_v56 = vld [vmem:[%s12957_s24 + $0xb0] sm:$0x1]  ;;  %v14076_v41 = vadd.f32 %v13955_v6, %v13939_v18 }
 0x160   : > { %v13994_v47 = vpop.f32.mrb[27].mxu1  ;;  %v13999_v39 = vpop.f32.mrb[27].mxu0  ;;  %v10449_v52 = vld [vmem:[%s12957_s24 + $0x78] sm:$0xe]  ;;  %v2884_v26 = vrot.slane %v2883_v38, 4  ;;  %v10495_v23 = vcombine.low %v3207_v13, %v3210_v3  ;;  %v14072_v24 = vadd.f32 %v10811_v53, %v13848_v55  ;;  %v2879_v58 = vsel %vm12979_vm2, %v2874_v0, %v2878_v21 }
 0x161   : > { %v10450_v51 = vld [vmem:[%s12957_s24 + $0x7c] sm:$0xf]  ;;  %v3217_v48 = vsel %vm13123_vm5, %v3215_v34, %v3216_v54  ;;  %v10814_v13 = vadd.f32 %v13941_v4, %v13936_v49  ;;  %v2891_v60 = vshrl.u32 %v10397_v20, 16  ;;  %v10451_v55 = vld [vmem:[%s12957_s24 + $0x80] sm:$0x1]  ;;  %v2894_v53 = vshll.u32 %v10397_v20, 16 }
 0x162   : > { %17253 = vst [vmem:[#allocation41_spill] sm:$0xff] %v14072_v24  ;;  %v10452_v46 = vld [vmem:[%s12957_s24 + $0x84] sm:$0xe]  ;;  %v2889_v18 = vsel %vm12979_vm2, %v2884_v26, %v2888_v31  ;;  %11747 = vmatprep.mubr.bf16.mxu0 %v10495_v23  ;;  %v10496_v6 = vcombine.low %v3214_v28, %v3217_v48  ;;  %v2900_v3 = vshll.u32 %v10398_v22, 16  ;;  %v10453_v21 = vld [vmem:[%s12957_s24 + $0x88] sm:$0xf] }
 0x163   : > { %v10420_v34 = vcombine.low %v2879_v58, %v2889_v18  ;;  %v14099_v49 = vadd.f32 %v10814_v13, %v13858_v50  ;;  %v2893_v4 = vrot.slane %v2891_v60, 4  ;;  %v2904_v29 = vshrl.u32 %v10398_v22, 16 }
 0x164   : > { %11748 = vmatmul.mubr.bf16.gmra.mrb[124].mxu0 %v10496_v6  ;;  %v2896_v31 = vrot.slane %v2894_v53, 5  ;;  %v2902_v20 = vrot.slane %v2900_v3, 5  ;;  %v2910_v28 = vshll.u32 %v10399_v56, 16  ;;  %v10481_v26 = vrot.slane %v10449_v52, 9 }
 0x165   : > { %v14034_v36 = vpop.f32.mrb[28].mxu1  ;;  %v14037_v59 = vpop.f32.mrb[28].mxu0  ;;  %17254 = vst [vmem:[#allocation42_spill] sm:$0xff] %v14099_v49  ;;  %4683 = vmatprep.mubr.bf16.mxu1 %v10420_v34  ;;  %v2906_v50 = vrot.slane %v2904_v29, 4  ;;  %v3220_v58 = vrot.slane %v10450_v51, 5  ;;  %v3223_v22 = vrot.slane %v10451_v55, 5  ;;  %v14114_v29 = vadd.f32 %v13988_v10, %v13984_v45 }
 0x166   : > { %v14039_v43 = vpop.f32.mrb[29].mxu1  ;;  %v14044_v42 = vpop.f32.mrb[29].mxu0  ;;  %v10482_v13 = vrot.slane %v10452_v46, 9  ;;  %4684 = vmatmul.mubr.bf16.gmra.mrb[124].mxu1 %v12309_v17  ;;  %v2897_v60 = vor.u32 %v2896_v31, %v2893_v4  ;;  %v2912_v18 = vrot.slane %v2910_v28, 5  ;;  %v3227_v6 = vrot.slane %v10453_v21, 5 }
 0x167   : > { %v14046_v16 = vpop.f32.mrb[30].mxu1  ;;  %v14048_v2 = vpop.f32.mrb[30].mxu0  ;;  %v3230_v53 = vrot.slane %v10454_v8, 5  ;;  %v2907_v56 = vor.u32 %v2906_v50, %v2902_v20  ;;  %v3221_v52 = vsel %vm13123_vm5, %v10481_v26, %v3220_v58  ;;  %v3222_v3 = vrot.slane %v3220_v58, 4  ;;  %v10400_v51 = vld [vmem:[%s12957_s24 + $0xb4] sm:$0xf] }
 0x168   : > { %v14050_v61 = vpop.f32.mrb[31].mxu1  ;;  %v14052_v15 = vpop.f32.mrb[31].mxu0  ;;  %v10401_v55 = vld [vmem:[%s12957_s24 + $0xb8] sm:$0xf]  ;;  %v2898_v46 = vrot.slane %v2897_v60, 4  ;;  %v3228_v17 = vsel %vm13123_vm5, %v10482_v13, %v3227_v6  ;;  %v3229_v21 = vrot.slane %v3227_v6, 4  ;;  %v10817_v8 = vadd.f32 %v13986_v30, %v13982_v62 }
 0x169   : > { %v10402_v34 = vld [vmem:[%s12957_s24 + $0xbc] sm:$0x1]  ;;  %v10455_v4 = vld [vmem:[%s12957_s24 + $0x90] sm:$0xe]  ;;  %v2908_v31 = vrot.slane %v2907_v56, 4  ;;  %v3224_v28 = vsel %vm13123_vm5, %v3222_v3, %v3223_v22  ;;  %v14128_v45 = vadd.f32 %v13999_v39, %v13992_v35  ;;  %v10820_v10 = vadd.f32 %v13994_v47, %v13990_v25  ;;  %v12310_v60 = vld [vmem:[%s12957_s24 + $0xa8] sm:$0xff]  }
 0x16a   : > { %v10456_v26 = vld [vmem:[%s12957_s24 + $0x94] sm:$0xf]  ;;  %v10457_v50 = vld [vmem:[%s12957_s24 + $0x98] sm:$0x1]  ;;  %v2903_v62 = vsel %vm12979_vm2, %v2898_v46, %v2902_v20  ;;  %v10497_v30 = vcombine.low %v3221_v52, %v3224_v28  ;;  %v3231_v22 = vsel %vm13123_vm5, %v3229_v21, %v3230_v53  ;;  %v14141_v13 = vadd.f32 %v10817_v8, %v13898_v27  ;;  %v10458_v35 = vld [vmem:[%s12957_s24 + $0x9c] sm:$0xe] }
 0x16b   : > { %v2913_v47 = vsel %vm12979_vm2, %v2908_v31, %v2912_v18  ;;  %v10498_v6 = vcombine.low %v3228_v17, %v3231_v22  ;;  %v14152_v56 = vadd.f32 %v10820_v10, %v13917_v1  ;;  %v2915_v20 = vshrl.u32 %v10400_v51, 16  ;;  %v10459_v52 = vld [vmem:[%s12957_s24 + $0xa0] sm:$0xf]  ;;  %v14156_v3 = vld [vmem:[%s12957_s24 + $0xa4] sm:$0x1] }
 0x16c   : > { %17255 = vst [vmem:[#allocation43_spill] sm:$0xff] %v14141_v13  ;;  %v10421_v46 = vcombine.low %v2903_v62, %v2913_v47  ;;  %11751 = vmatprep.mubr.bf16.mxu0 %v10497_v30  ;;  %v2918_v21 = vshll.u32 %v10400_v51, 16  ;;  %v2924_v8 = vshll.u32 %v10401_v55, 16  ;;  %v2928_v28 = vshrl.u32 %v10401_v55, 16  ;;  %v10403_v47 = vld [vmem:[%s12957_s24 + $0xc0] sm:$0xf] }
 0x16d   : > { %v14079_v40 = vpop.f32.mrb[32].mxu1  ;;  %v14089_v38 = vpop.f32.mrb[32].mxu0  ;;  %17256 = vst [vmem:[#allocation44_spill] sm:$0xff] %v14152_v56  ;;  %11752 = vmatmul.mubr.bf16.gmra.mrb[128].mxu0 %v10498_v6  ;;  %v2917_v1 = vrot.slane %v2915_v20, 4  ;;  %v2934_v31 = vshll.u32 %v10402_v34, 16  ;;  %v10483_v10 = vrot.slane %v10455_v4, 9 }
 0x16e   : > { %v14094_v0 = vpop.f32.mrb[33].mxu0  ;;  %v14096_v54 = vpop.f32.mrb[33].mxu1  ;;  %v3234_v22 = vrot.slane %v10456_v26, 5  ;;  %4691 = vmatprep.mubr.bf16.mxu1 %v10421_v46  ;;  %v2920_v12 = vrot.slane %v2918_v21, 5  ;;  %v2926_v62 = vrot.slane %v2924_v8, 5  ;;  %v2930_v30 = vrot.slane %v2928_v28, 4 }
 0x16f   : > { %v14102_v5 = vpop.f32.mrb[34].mxu0  ;;  %v14104_v7 = vpop.f32.mrb[34].mxu1  ;;  %v3237_v51 = vrot.slane %v10457_v50, 5  ;;  %4692 = vmatmul.mubr.bf16.gmra.mrb[128].mxu1 %v12310_v60  ;;  %v2936_v55 = vrot.slane %v2934_v31, 5  ;;  %v10484_v6 = vrot.slane %v10458_v35, 9  ;;  %v3241_v26 = vrot.slane %v10459_v52, 5 }
 0x170   : > { %v14106_v23 = vpop.f32.mrb[35].mxu0  ;;  %v14108_v48 = vpop.f32.mrb[35].mxu1  ;;  %v3235_v56 = vsel %vm13123_vm5, %v10483_v10, %v3234_v22  ;;  %v3236_v13 = vrot.slane %v3234_v22, 4  ;;  %v10404_v20 = vld [vmem:[%s12957_s24 + $0xc4] sm:$0xf]  ;;  %v2921_v34 = vor.u32 %v2920_v12, %v2917_v1  ;;  %v2931_v4 = vor.u32 %v2930_v30, %v2926_v62 }
 0x171   : > { %v3244_v46 = vrot.slane %v14156_v3, 5  ;;  %v14179_v60 = vadd.f32 %v14044_v42, %v14037_v59  ;;  %v10823_v35 = vadd.f32 %v14039_v43, %v14034_v36  ;;  %v14185_v12 = vadd.f32 %v14052_v15, %v14048_v2  ;;  %v10405_v42 = vld [vmem:[%s12957_s24 + $0xc8] sm:$0x1]  ;;  %v10461_v1 = vld [vmem:[%s12957_s24 + $0xa8] sm:$0xe] }
 0x172   : > { %v3238_v50 = vsel %vm13123_vm5, %v3236_v13, %v3237_v51  ;;  %v2922_v8 = vrot.slane %v2921_v34, 4  ;;  %v2932_v28 = vrot.slane %v2931_v4, 4  ;;  %v3242_v59 = vsel %vm13123_vm5, %v10484_v6, %v3241_v26  ;;  %v10462_v36 = vld [vmem:[%s12957_s24 + $0xac] sm:$0xf]  ;;  %v10463_v43 = vld [vmem:[%s12957_s24 + $0xb0] sm:$0x1] }
 0x173   : > { %17257 = vst [vmem:[#allocation45_spill] sm:$0xff] %v14185_v12  ;;  %v10499_v13 = vcombine.low %v3235_v56, %v3238_v50  ;;  %v3243_v15 = vrot.slane %v3241_v26, 4  ;;  %v14202_v10 = vadd.f32 %v10823_v35, %v13963_v9  ;;  %v10826_v56 = vadd.f32 %v14050_v61, %v14046_v16  ;;  %v10464_v30 = vld [vmem:[%s12957_s24 + $0xb4] sm:$0xe]  ;;  %v10465_v51 = vld [vmem:[%s12957_s24 + $0xb8] sm:$0xf] }
 0x174   : > { %v2939_v22 = vshrl.u32 %v10403_v47, 16  ;;  %v2927_v4 = vsel %vm12979_vm2, %v2922_v8, %v2926_v62  ;;  %v2937_v50 = vsel %vm12979_vm2, %v2932_v28, %v2936_v55  ;;  %v12311_v26 = vld [vmem:[%s12957_s24 + $0xb4] sm:$0xff]   ;;  %v2942_v9 = vshll.u32 %v10403_v47, 16 }
 0x175   : > { %v14134_v58 = vpop.f32.mrb[36].mxu0  ;;  %v14144_v39 = vpop.f32.mrb[36].mxu1  ;;  %17258 = vst [vmem:[#allocation46_spill] sm:$0xff] %v14202_v10  ;;  %11755 = vmatprep.mubr.bf16.mxu0 %v10499_v13  ;;  %v2948_v35 = vshll.u32 %v10404_v20, 16  ;;  %v10466_v10 = vld [vmem:[%s12957_s24 + $0xbc] sm:$0x1]  ;;  %v10422_v16 = vcombine.low %v2927_v4, %v2937_v50  ;;  %v3245_v61 = vsel %vm13123_vm5, %v3243_v15, %v3244_v46  ;;  %v14223_v19 = vadd.f32 %v10826_v56, %v13966_v44 }
 0x176   : > { %v14146_v25 = vpop.f32.mrb[37].mxu0  ;;  %v14158_v53 = vpop.f32.mrb[37].mxu1  ;;  %v2941_v14 = vrot.slane %v2939_v22, 4  ;;  %v10500_v24 = vcombine.low %v3242_v59, %v3245_v61  ;;  %v2944_v62 = vrot.slane %v2942_v9, 5  ;;  %v2952_v12 = vshrl.u32 %v10404_v20, 16 }
 0x177   : > { %v14160_v27 = vpop.f32.mrb[38].mxu0  ;;  %v14162_v18 = vpop.f32.mrb[38].mxu1  ;;  %17259 = vst [vmem:[#allocation47_spill] sm:$0xff] %v14223_v19  ;;  %v2950_v8 = vrot.slane %v2948_v35, 5  ;;  %4699 = vmatprep.mubr.bf16.mxu1 %v10422_v16  ;;  %v2958_v55 = vshll.u32 %v10405_v42, 16  ;;  %v10485_v47 = vrot.slane %v10461_v1, 9  ;;  %v10829_v9 = vadd.f32 %v14096_v54, %v14079_v40 }
 0x178   : > { %v14164_v17 = vpop.f32.mrb[39].mxu0  ;;  %v14166_v33 = vpop.f32.mrb[39].mxu1  ;;  %v3248_v28 = vrot.slane %v10462_v36, 5  ;;  %v3251_v13 = vrot.slane %v10463_v43, 5  ;;  %4700 = vmatmul.mubr.bf16.gmra.mrb[132].mxu1 %v12311_v26  ;;  %11756 = vmatmul.mubr.bf16.gmra.mrb[132].mxu0 %v10500_v24  ;;  %v2945_v4 = vor.u32 %v2944_v62, %v2941_v14  ;;  %v2954_v46 = vrot.slane %v2952_v12, 4 }
 0x179   : > { %v10486_v15 = vrot.slane %v10464_v30, 9  ;;  %v3255_v44 = vrot.slane %v10465_v51, 5  ;;  %v2960_v56 = vrot.slane %v2958_v55, 5  ;;  %v3258_v22 = vrot.slane %v10466_v10, 5  ;;  %v10406_v50 = vld [vmem:[%s12957_s24 + $0xcc] sm:$0xf] }
 0x17a   : > { %v3249_v59 = vsel %vm13123_vm5, %v10485_v47, %v3248_v28  ;;  %v3250_v20 = vrot.slane %v3248_v28, 4  ;;  %v2946_v42 = vrot.slane %v2945_v4, 4  ;;  %v2955_v1 = vor.u32 %v2954_v46, %v2950_v8  ;;  %v10407_v24 = vld [vmem:[%s12957_s24 + $0xd0] sm:$0xf]  ;;  %v10408_v14 = vld [vmem:[%s12957_s24 + $0xd4] sm:$0x1] }
 0x17b   : > { %v3256_v36 = vsel %vm13123_vm5, %v10486_v15, %v3255_v44  ;;  %v3257_v43 = vrot.slane %v3255_v44, 4  ;;  %v14238_v51 = vadd.f32 %v14094_v0, %v14089_v38  ;;  %v14243_v10 = vld [vmem:[%s17123_s2] ss:$0 sm:$0xff]  ;;  %v10467_v35 = vld [vmem:[%s12957_s24 + $0xc0] sm:$0xe]  ;;  %v10838_v32 = vadd.f32 %v14166_v33, %v14162_v18 }
 0x17c   : > { %v3252_v30 = vsel %vm13123_vm5, %v3250_v20, %v3251_v13  ;;  %v4147_v26 = vadd.f32 %v14243_v10, %v14003_v11  ;;  %v2951_v38 = vsel %vm12979_vm2, %v2946_v42, %v2950_v8  ;;  %v2956_v0 = vrot.slane %v2955_v1, 4  ;;  %v10468_v55 = vld [vmem:[%s12957_s24 + $0xc4] sm:$0xf]  ;;  %v10469_v4 = vld [vmem:[%s12957_s24 + $0xc8] sm:$0x1] }
 0x17d   : > { %v14173_v21 = vpop.f32.mrb[40].mxu1  ;;  %v14187_v52 = vpop.f32.mrb[40].mxu0  ;;  %17260 = vst [vmem:[#allocation48_spill] sm:$0xff] %v14238_v51  ;;  %v10501_v62 = vcombine.low %v3249_v59, %v3252_v30  ;;  %v3259_v11 = vsel %vm13123_vm5, %v3257_v43, %v3258_v22  ;;  %v14267_v13 = vadd.f32 %v14106_v23, %v14102_v5  ;;  %v4150_v8 = vadd.f32 %v14243_v10, %v14023_v63  ;;  %v10470_v46 = vld [vmem:[%s12957_s24 + $0xcc] sm:$0xe]  ;;  %v12312_v22 = vld [vmem:[%s12957_s24 + $0xc0] sm:$0xff]  }
 0x17e   : > { %v14189_v3 = vpop.f32.mrb[41].mxu1  ;;  %v14197_v31 = vpop.f32.mrb[41].mxu0  ;;  %v10502_v54 = vcombine.low %v3256_v36, %v3259_v11  ;;  %v14263_v28 = vadd.f32 %v10829_v9, %v4147_v26  ;;  %v10471_v15 = vld [vmem:[%s12957_s24 + $0xd0] sm:$0xf]  ;;  %v2961_v20 = vsel %vm12979_vm2, %v2956_v0, %v2960_v56  ;;  %v10832_v42 = vadd.f32 %v14108_v48, %v14104_v7  ;;  %v10472_v1 = vld [vmem:[%s12957_s24 + $0xd4] sm:$0x1] }
 0x17f   : > { %v14199_v2 = vpop.f32.mrb[42].mxu1  ;;  %v14208_v6 = vpop.f32.mrb[42].mxu0  ;;  %17262 = vst [vmem:[#allocation50_spill] sm:$0xff] %v14267_v13  ;;  %11759 = vmatprep.mubr.bf16.mxu0 %v10501_v62  ;;  %v2963_v5 = vshrl.u32 %v10406_v50, 16  ;;  %v2966_v23 = vshll.u32 %v10406_v50, 16  ;;  %v10423_v63 = vcombine.low %v2951_v38, %v2961_v20  ;;  %v2972_v43 = vshll.u32 %v10407_v24, 16 }
 0x180   : > { %v14210_v34 = vpop.f32.mrb[43].mxu1  ;;  %v14218_v49 = vpop.f32.mrb[43].mxu0  ;;  %17261 = vst [vmem:[#allocation49_spill] sm:$0xff] %v14263_v28  ;;  %v2976_v30 = vshrl.u32 %v10407_v24, 16  ;;  %v2982_v26 = vshll.u32 %v10408_v14, 16  ;;  %11760 = vmatmul.mubr.bf16.gmra.mrb[136].mxu0 %v10502_v54  ;;  %v14286_v9 = vadd.f32 %v10832_v42, %v4150_v8  ;;  %v10487_v56 = vrot.slane %v10467_v35, 9 }
 0x181   : > { %v2965_v11 = vrot.slane %v2963_v5, 4  ;;  %v2968_v28 = vrot.slane %v2966_v23, 5  ;;  %4707 = vmatprep.mubr.bf16.mxu1 %v10423_v63  ;;  %v2974_v0 = vrot.slane %v2972_v43, 5  ;;  %v3262_v7 = vrot.slane %v10468_v55, 5 }
 0x182   : > { %v2978_v62 = vrot.slane %v2976_v30, 4  ;;  %v2984_v19 = vrot.slane %v2982_v26, 5  ;;  %4708 = vmatmul.mubr.bf16.gmra.mrb[136].mxu1 %v12312_v22  ;;  %v3265_v50 = vrot.slane %v10469_v4, 5  ;;  %v10488_v13 = vrot.slane %v10470_v46, 9 }
 0x183   : > { %v2969_v48 = vor.u32 %v2968_v28, %v2965_v11  ;;  %v3269_v51 = vrot.slane %v10471_v15, 5  ;;  %v3263_v24 = vsel %vm13123_vm5, %v10487_v56, %v3262_v7  ;;  %v3264_v14 = vrot.slane %v3262_v7, 4 }
 0x184   : > { %v2979_v20 = vor.u32 %v2978_v62, %v2974_v0  ;;  %v3272_v54 = vrot.slane %v10472_v1, 5  ;;  %v10747_v55 = vadd.f32 %v14146_v25, %v14134_v58  ;;  %v4155_v15 = vadd.f32 %v14243_v10, %v14058_v57  ;;  %v12313_v57 = vld [vmem:[%s12957_s24 + $0xcc] sm:$0xff]   ;;  %s494_s24 = scalar_lea.vmem %s17126_s5, %s12939_s20  ;;  %s17080_s20 = scalar_lea.sflag [#allocation7], %s484_s18 }
 0x185   : > { %v14232_v12 = vpop.f32.mrb[44].mxu1  ;;  %v14250_v16 = vpop.f32.mrb[44].mxu0  ;;  %v2970_v42 = vrot.slane %v2969_v48, 4  ;;  %v3270_v35 = vsel %vm13123_vm5, %v10488_v13, %v3269_v51  ;;  %v3271_v5 = vrot.slane %v3269_v51, 4  ;;  %v3266_v46 = vsel %vm13123_vm5, %v3264_v14, %v3265_v50 }
 0x186   : > { %v14252_v61 = vpop.f32.mrb[45].mxu1  ;;  %v14259_v47 = vpop.f32.mrb[45].mxu0  ;;  %v2980_v4 = vrot.slane %v2979_v20, 4  ;;  %v10835_v22 = vadd.f32 %v14158_v53, %v14144_v39  ;;  %v10503_v51 = vcombine.low %v3263_v24, %v3266_v46  ;;  %v10750_v25 = vadd.f32 %v14164_v17, %v14160_v27  ;;  %v17265_v7 = vld [vmem:[#allocation50_spill] sm:$0xff]  ;;  %v499_v46 = vld [vmem:[%s17133_s12 + $0x18] sm:$0xff] }
 0x187   : > { %v14261_v40 = vpop.f32.mrb[46].mxu1  ;;  %v14274_v44 = vpop.f32.mrb[46].mxu0  ;;  %v2975_v13 = vsel %vm12979_vm2, %v2970_v42, %v2974_v0  ;;  %v3273_v58 = vsel %vm13123_vm5, %v3271_v5, %v3272_v54  ;;  %v4158_v39 = vadd.f32 %v14243_v10, %v14076_v41  ;;  %v10753_v27 = vadd.f32 %v14197_v31, %v14187_v52 }
 0x188   : > { %v14276_v59 = vpop.f32.mrb[47].mxu1  ;;  %v14284_v36 = vpop.f32.mrb[47].mxu0  ;;  %v2985_v43 = vsel %vm12979_vm2, %v2980_v4, %v2984_v19  ;;  %v10504_v30 = vcombine.low %v3270_v35, %v3273_v58  ;;  %v14309_v26 = vadd.f32 %v10835_v22, %v4155_v15  ;;  %11763 = vmatprep.mubr.bf16.mxu0 %v10503_v51  ;;  %v4163_v37 = vadd.f32 %v14243_v10, %v14114_v29 }
 0x189   : > { %v10424_v11 = vcombine.low %v2975_v13, %v2985_v43  ;;  %v10841_v17 = vadd.f32 %v14189_v3, %v14173_v21  ;;  %v10756_v41 = vadd.f32 %v14218_v49, %v14208_v6  ;;  %v4166_v56 = vadd.f32 %v14243_v10, %v14128_v45 }
 0x18a   : > { %11764 = vmatmul.mubr.bf16.gmra.mrb[140].mxu0 %v10504_v30  ;;  %v10844_v33 = vadd.f32 %v14210_v34, %v14199_v2  ;;  %v14327_v18 = vadd.f32 %v10838_v32, %v4158_v39  ;;  %v14331_v29 = vadd.f32 %v14259_v47, %v14250_v16  ;;  %v4171_v52 = vadd.f32 %v14243_v10, %v14179_v60  ;;  %v17263_v2 = vld [vmem:[#allocation45_spill] sm:$0xff] }
 0x18b   : > { %4715 = vmatprep.mubr.bf16.mxu1 %v10424_v11  ;;  %v10847_v21 = vadd.f32 %v14252_v61, %v14232_v12  ;;  %v14337_v3 = vadd.f32 %v10841_v17, %v4163_v37  ;;  %v14343_v31 = vadd.f32 %v14284_v36, %v14274_v44  ;;  %v4174_v6 = vadd.f32 %v14243_v10, %v17263_v2  ;;  %v17264_v12 = vld [vmem:[#allocation48_spill] sm:$0xff]  ;;  %v500_v30 = vld [vmem:[%s17133_s12 + $0x20] sm:$0xff]  ;;  %v501_v11 = vld [vmem:[%s17133_s12 + $0x28] sm:$0xff] }
 0x18c   : > { %4716 = vmatmul.mubr.bf16.gmra.mrb[140].mxu1 %v12313_v57  ;;  %v14339_v45 = vadd.f32 %v10844_v33, %v4166_v56  ;;  %v10850_v60 = vadd.f32 %v14276_v59, %v14261_v40  ;;  %v4179_v61 = vadd.f32 %v14243_v10, %v17264_v12  ;;  %v4182_v48 = vadd.f32 %v14243_v10, %v17265_v7  ;;  %v496_v40 = vld [vmem:[%s17133_s12] sm:$0xff]  ;;  %v497_v59 = vld [vmem:[%s17133_s12 + $0x8] sm:$0xff]  ;;  %v17269_v37 = vld [vmem:[#allocation39_spill] sm:$0xff] }
 0x18d   : > { %v10851_v38 = vpop.f32.mrb[48].mxu1  ;;  %v10915_v23 = vpop.f32.mrb[48].mxu0  ;;  %v14347_v16 = vadd.f32 %v10847_v21, %v4171_v52  ;;  %v4187_v14 = vadd.f32 %v14243_v10, %v10747_v55  ;;  %v498_v55 = vld [vmem:[%s17133_s12 + $0x10] sm:$0xff]  ;;  %v14379_v51 = vpack.c.bf16 %v497_v59, %v496_v40  ;;  %v17161_v57 = vmov 0.0|0.0   ;;  %v17268_v32 = vld [vmem:[#allocation41_spill] sm:$0xff]  ;;  %v17270_v17 = vld [vmem:[#allocation40_spill] sm:$0xff] }
 0x18e   : > { %v10852_v8 = vpop.f32.mrb[49].mxu1  ;;  %v10916_v63 = vpop.f32.mrb[49].mxu0  ;;  %v14355_v20 = vadd.f32 %v10850_v60, %v4174_v6  ;;  %12023 = vmatprep.subr.bf16.mxu1 %v17161_v57  ;;  %v4198_v52 = vadd.f32 %v14243_v10, %v10756_v41  ;;  %v14411_v60 = vpack.c.bf16 %v501_v11, %v500_v30  ;;  %v4203_v7 = vadd.f32 %v14243_v10, %v14331_v29  ;;  %v502_v29 = vld [vmem:[%s17133_s12 + $0x30] sm:$0xff] }
 0x18f   : > { %v10854_v28 = vpop.f32.mrb[50].mxu1  ;;  %v10918_v53 = vpop.f32.mrb[50].mxu0  ;;  %v10853_v47 = vadd.f32 %v10852_v8, %v10851_v38  ;;  %v10917_v62 = vadd.f32 %v10916_v63, %v10915_v23  ;;  %v4190_v8 = vadd.f32 %v14243_v10, %v10750_v25  ;;  %17266 = vst [vmem:[#allocation45_spill] sm:$0xff] %v14379_v51  ;;  %v4195_v25 = vadd.f32 %v14243_v10, %v10753_v27 }
 0x190   : > { %v10855_v1 = vpop.f32.mrb[51].mxu1  ;;  %v10919_v19 = vpop.f32.mrb[51].mxu0  ;;  %12025 = vmatpush3.bf16.msra.mxu1 %v14379_v51  ;;  %17272 = vst [vmem:[#allocation50_spill] sm:$0xff] %v14411_v60  ;;  %v4206_v59 = vadd.f32 %v14243_v10, %v14343_v31 }
 0x191   : > { %v10856_v44 = vadd.f32 %v10855_v1, %v10854_v28  ;;  %v10920_v36 = vadd.f32 %v10919_v19, %v10918_v53  ;;  %v14357_v24 = vadd.f32 %v10853_v47, %v4179_v61  ;;  %v14387_v53 = vpack.c.bf16 %v499_v46, %v498_v55  ;;  %12026 = vmatprep.subr.bf16.mxu1 %v17161_v57 }
 0x192   : > { %v14396_v19 = vadd.f32 %v10917_v62, %v17269_v37 }
 0x193   : > { %v14366_v38 = vadd.f32 %v10856_v44, %v4182_v48  ;;  %17267 = vst [vmem:[#allocation48_spill] sm:$0xff] %v14387_v53  ;;  %v14399_v56 = vadd.f32 %v10920_v36, %v17270_v17 }
 0x194   : > { %12028 = vmatpush3.bf16.msra.mxu1 %v14387_v53 }
 0x195   : > { %v10857_v49 = vpop.f32.mrb[52].mxu1  ;;  %v10921_v35 = vpop.f32.mrb[52].mxu0  ;;  %12029 = vmatprep.subr.bf16.mxu1 %v17161_v57 }
 0x196   : > { %v10858_v34 = vpop.f32.mrb[53].mxu1  ;;  %v10922_v28 = vpop.f32.mrb[53].mxu0 }
 0x197   : > { %v10860_v0 = vpop.f32.mrb[54].mxu1  ;;  %v10859_v54 = vadd.f32 %v10858_v34, %v10857_v49  ;;  %v10923_v15 = vadd.f32 %v10922_v28, %v10921_v35  ;;  %v10924_v22 = vpop.f32.mrb[54].mxu0  ;;  %v17271_v49 = vld [vmem:[#allocation42_spill] sm:$0xff]  ;;  %v17274_v35 = vld [vmem:[#allocation44_spill] sm:$0xff] }
 0x198   : > { %v10861_v50 = vpop.f32.mrb[55].mxu1  ;;  %v10925_v1 = vpop.f32.mrb[55].mxu0  ;;  %12031 = vmatpush3.bf16.msra.mxu1 %v14411_v60 }
 0x199   : > { %v10862_v42 = vadd.f32 %v10861_v50, %v10860_v0  ;;  %v14369_v5 = vadd.f32 %v10859_v54, %v4187_v14  ;;  %v10926_v58 = vadd.f32 %v10925_v1, %v10924_v22  ;;  %v14393_v27 = vadd.f32 %v10923_v15, %v17268_v32  ;;  %v17273_v14 = vld [vmem:[#allocation43_spill] sm:$0xff]  ;;  %12032 = vmatprep.subr.bf16.mxu1 %v17161_v57  ;;  %v17277_v32 = vld [vmem:[#allocation46_spill] sm:$0xff] }
 0x19b   : > { %v14374_v4 = vadd.f32 %v10862_v42, %v4190_v8  ;;  %v14406_v2 = vadd.f32 %v10926_v58, %v17271_v49  ;;  %v503_v42 = vld [vmem:[%s17133_s12 + $0x38] sm:$0xff] }
 0x19c   : > { %v14436_v46 = vpack.c.bf16 %v503_v42, %v502_v29  ;;  %v17281_v42 = vld [vmem:[#allocation49_spill] sm:$0xff] }
 0x19d   : > { %v10863_v23 = vpop.f32.mrb[56].mxu1  ;;  %v10927_v34 = vpop.f32.mrb[56].mxu0 }
 0x19e   : > { %v10864_v13 = vpop.f32.mrb[57].mxu1  ;;  %v10928_v12 = vpop.f32.mrb[57].mxu0  ;;  %17275 = vst [vmem:[#allocation41_spill] sm:$0xff] %v14436_v46  ;;  %12034 = vmatpush3.bf16.msra.mxu1 %v14436_v46 }
 0x19f   : > { %v10865_v63 = vadd.f32 %v10864_v13, %v10863_v23  ;;  %v10866_v43 = vpop.f32.mrb[58].mxu1  ;;  %v10929_v47 = vadd.f32 %v10928_v12, %v10927_v34  ;;  %v10930_v0 = vpop.f32.mrb[58].mxu0  ;;  %12035 = vmatprep.subr.bf16.mxu1 %v17161_v57  ;;  %v17279_v34 = vld [vmem:[#allocation47_spill] sm:$0xff] }
 0x1a0   : > { %v10867_v39 = vpop.f32.mrb[59].mxu1  ;;  %v10931_v62 = vpop.f32.mrb[59].mxu0 }
 0x1a1   : > { %v14401_v33 = vadd.f32 %v10865_v63, %v4195_v25  ;;  %v10868_v21 = vadd.f32 %v10867_v39, %v10866_v43  ;;  %v10932_v36 = vadd.f32 %v10931_v62, %v10930_v0  ;;  %v14418_v54 = vadd.f32 %v10929_v47, %v17273_v14  ;;  %v17276_v25 = vld [vmem:[#allocation29_spill] sm:$0xff] }
 0x1a2   : > { %v4211_v63 = vadd.f32 %v14243_v10, %v17276_v25 }
 0x1a3   : > { %v14408_v6 = vadd.f32 %v10868_v21, %v4198_v52  ;;  %v14432_v55 = vadd.f32 %v10932_v36, %v17274_v35  ;;  %v17278_v52 = vld [vmem:[#allocation30_spill] sm:$0xff]  ;;  %v17280_v36 = vld [vmem:[#allocation32_spill] sm:$0xff] }
 0x1a4   : > { %v4214_v21 = vadd.f32 %v14243_v10, %v17278_v52 }
 0x1a5   : > { %v10869_v61 = vpop.f32.mrb[60].mxu1  ;;  %v10933_v15 = vpop.f32.mrb[60].mxu0 }
 0x1a6   : > { %v10870_v41 = vpop.f32.mrb[61].mxu1  ;;  %v10934_v31 = vpop.f32.mrb[61].mxu0 }
 0x1a7   : > { %v10871_v48 = vadd.f32 %v10870_v41, %v10869_v61  ;;  %v10872_v44 = vpop.f32.mrb[62].mxu1  ;;  %v10935_v23 = vadd.f32 %v10934_v31, %v10933_v15  ;;  %v10936_v1 = vpop.f32.mrb[62].mxu0  ;;  %v17282_v31 = vld [vmem:[#allocation33_spill] sm:$0xff] }
 0x1a8   : > { %v10873_v50 = vpop.f32.mrb[63].mxu1  ;;  %v10937_v58 = vpop.f32.mrb[63].mxu0 }
 0x1a9   : > { %v14420_v40 = vadd.f32 %v10871_v48, %v4203_v7  ;;  %v10874_v8 = vadd.f32 %v10873_v50, %v10872_v44  ;;  %v10938_v39 = vadd.f32 %v10937_v58, %v10936_v1  ;;  %v14443_v37 = vadd.f32 %v10935_v23, %v17277_v32 }
 0x1aa   : > { %v4219_v50 = vadd.f32 %v14243_v10, %v17280_v36 }
 0x1ab   : > { %v14434_v28 = vadd.f32 %v10874_v8, %v4206_v59  ;;  %v14450_v12 = vadd.f32 %v10938_v39, %v17279_v34 }
 0x1ad   : > { %v10875_v22 = vpop.f32.mrb[64].mxu1  ;;  %v10939_v47 = vpop.f32.mrb[64].mxu0 }
 0x1ae   : > { %v10876_v13 = vpop.f32.mrb[65].mxu1  ;;  %v10940_v0 = vpop.f32.mrb[65].mxu0 }
 0x1af   : > { %v10877_v43 = vadd.f32 %v10876_v13, %v10875_v22  ;;  %v10878_v30 = vpop.f32.mrb[66].mxu1  ;;  %v10941_v62 = vadd.f32 %v10940_v0, %v10939_v47  ;;  %v10942_v7 = vpop.f32.mrb[66].mxu0  ;;  %v4222_v22 = vadd.f32 %v14243_v10, %v17282_v31  ;;  %v17285_v0 = vld [vmem:[#allocation36_spill] sm:$0xff] }
 0x1b0   : > { %v10879_v11 = vpop.f32.mrb[67].mxu1  ;;  %v10943_v44 = vpop.f32.mrb[67].mxu0 }
 0x1b1   : > { %v14445_v17 = vadd.f32 %v10877_v43, %v4211_v63  ;;  %v10880_v49 = vadd.f32 %v10879_v11, %v10878_v30  ;;  %v10944_v8 = vadd.f32 %v10943_v44, %v10942_v7  ;;  %v14457_v35 = vadd.f32 %v10941_v62, %v17281_v42  ;;  %v504_v63 = vld [vmem:[%s17133_s12 + $0x40] sm:$0xff]  ;;  %v505_v43 = vld [vmem:[%s17133_s12 + $0x48] sm:$0xff] }
 0x1b2   : > { %v14474_v11 = vpack.c.bf16 %v505_v43, %v504_v63 }
 0x1b3   : > { %v14452_v61 = vadd.f32 %v10880_v49, %v4214_v21  ;;  %v14464_v1 = vadd.f32 %v10944_v8, %v14286_v9  ;;  %v17284_v9 = vld [vmem:[#allocation35_spill] sm:$0xff] }
 0x1b4   : > { %17283 = vst [vmem:[#allocation39_spill] sm:$0xff] %v14474_v11  ;;  %v4227_v21 = vadd.f32 %v14243_v10, %v17284_v9  ;;  %12037 = vmatpush3.bf16.msra.mxu1 %v14474_v11 }
 0x1b5   : > { %v10881_v41 = vpop.f32.mrb[68].mxu1  ;;  %12038 = vmatprep.subr.bf16.mxu1 %v17161_v57 }
 0x1b6   : > { %v10882_v48 = vpop.f32.mrb[69].mxu1 }
 0x1b7   : > { %v10883_v14 = vadd.f32 %v10882_v48, %v10881_v41  ;;  %v10884_v59 = vpop.f32.mrb[70].mxu1  ;;  %v10945_v58 = vpop.f32.mrb[68].mxu0  ;;  %v4230_v41 = vadd.f32 %v14243_v10, %v17285_v0  ;;  %v506_v0 = vld [vmem:[%s17133_s12 + $0x50] sm:$0xff] }
 0x1b8   : > { %v10885_v29 = vpop.f32.mrb[71].mxu1  ;;  %v10946_v30 = vpop.f32.mrb[69].mxu0 }
 0x1b9   : > { %v14459_v15 = vadd.f32 %v10883_v14, %v4219_v50  ;;  %v10886_v23 = vadd.f32 %v10885_v29, %v10884_v59  ;;  %v10947_v32 = vadd.f32 %v10946_v30, %v10945_v58  ;;  %v10948_v52 = vpop.f32.mrb[70].mxu0  ;;  %v17286_v58 = vld [vmem:[#allocation37_spill] sm:$0xff] }
 0x1ba   : > { %v10949_v47 = vpop.f32.mrb[71].mxu0 }
 0x1bb   : > { %v14466_v13 = vadd.f32 %v10886_v23, %v4222_v22  ;;  %v10950_v7 = vadd.f32 %v10949_v47, %v10948_v52  ;;  %v14484_v36 = vadd.f32 %v10947_v32, %v14309_v26 }
 0x1bd   : > { %v10887_v25 = vpop.f32.mrb[72].mxu1  ;;  %v14490_v14 = vadd.f32 %v10950_v7, %v14327_v18  ;;  %v17287_v18 = vld [vmem:[#allocation38_spill] sm:$0xff] }
 0x1be   : > { %v10888_v39 = vpop.f32.mrb[73].mxu1  ;;  %v4238_v52 = vadd.f32 %v14243_v10, %v17287_v18 }
 0x1bf   : > { %v10889_v49 = vadd.f32 %v10888_v39, %v10887_v25  ;;  %v10890_v34 = vpop.f32.mrb[74].mxu1  ;;  %v10951_v59 = vpop.f32.mrb[72].mxu0  ;;  %v4235_v25 = vadd.f32 %v14243_v10, %v17286_v58 }
 0x1c0   : > { %v10891_v62 = vpop.f32.mrb[75].mxu1  ;;  %v10952_v8 = vpop.f32.mrb[73].mxu0 }
 0x1c1   : > { %v14481_v48 = vadd.f32 %v10889_v49, %v4227_v21  ;;  %v10892_v44 = vadd.f32 %v10891_v62, %v10890_v34  ;;  %v10953_v42 = vadd.f32 %v10952_v8, %v10951_v59  ;;  %v10954_v31 = vpop.f32.mrb[74].mxu0 }
 0x1c2   : > { %v10955_v23 = vpop.f32.mrb[75].mxu0 }
 0x1c3   : > { %v14487_v50 = vadd.f32 %v10892_v44, %v4230_v41  ;;  %v10956_v43 = vadd.f32 %v10955_v23, %v10954_v31  ;;  %v14495_v39 = vadd.f32 %v10953_v42, %v14337_v3  ;;  %v507_v3 = vld [vmem:[%s17133_s12 + $0x58] sm:$0xff] }
 0x1c4   : > { %v14512_v7 = vpack.c.bf16 %v507_v3, %v506_v0 }
 0x1c5   : > { %v10893_v29 = vpop.f32.mrb[76].mxu1  ;;  %v14502_v21 = vadd.f32 %v10956_v43, %v14339_v45 }
 0x1c6   : > { %v10894_v22 = vpop.f32.mrb[77].mxu1  ;;  %17288 = vst [vmem:[#allocation40_spill] sm:$0xff] %v14512_v7  ;;  %12040 = vmatpush3.bf16.msra.mxu1 %v14512_v7 }
 0x1c7   : > { %v10895_v63 = vadd.f32 %v10894_v22, %v10893_v29  ;;  %v10896_v26 = vpop.f32.mrb[78].mxu1  ;;  %v10957_v34 = vpop.f32.mrb[76].mxu0  ;;  %12041 = vmatprep.subr.bf16.mxu1 %v17161_v57 }
 0x1c8   : > { %v10897_v30 = vpop.f32.mrb[79].mxu1  ;;  %v10958_v47 = vpop.f32.mrb[77].mxu0 }
 0x1c9   : > { %v14497_v32 = vadd.f32 %v10895_v63, %v4235_v25  ;;  %v10898_v9 = vadd.f32 %v10897_v30, %v10896_v26  ;;  %v10959_v41 = vadd.f32 %v10958_v47, %v10957_v34  ;;  %v10960_v62 = vpop.f32.mrb[78].mxu0 }
 0x1ca   : > { %v10961_v10 = vpop.f32.mrb[79].mxu0 }
 0x1cb   : > { %v14504_v49 = vadd.f32 %v10898_v9, %v4238_v52  ;;  %v10962_v44 = vadd.f32 %v10961_v10, %v10960_v62  ;;  %v14515_v45 = vadd.f32 %v10959_v41, %v14347_v16 }
 0x1cd   : > { %v11027_v59 = vpop.f32.mrb[80].mxu1  ;;  %v14520_v8 = vadd.f32 %v10962_v44, %v14355_v20 }
 0x1ce   : > { %v11028_v29 = vpop.f32.mrb[81].mxu1 }
 0x1cf   : > { %v11029_v42 = vadd.f32 %v11028_v29, %v11027_v59  ;;  %v11030_v31 = vpop.f32.mrb[82].mxu1  ;;  %v10963_v23 = vpop.f32.mrb[80].mxu0 }
 0x1d0   : > { %v11031_v22 = vpop.f32.mrb[83].mxu1  ;;  %v10964_v63 = vpop.f32.mrb[81].mxu0 }
 0x1d1   : > { %v11032_v58 = vadd.f32 %v11031_v22, %v11030_v31  ;;  %v14523_v25 = vadd.f32 %v11029_v42, %v14396_v19  ;;  %v10965_v16 = vadd.f32 %v10964_v63, %v10963_v23  ;;  %v10966_v26 = vpop.f32.mrb[82].mxu0 }
 0x1d2   : > { %v10967_v30 = vpop.f32.mrb[83].mxu0 }
 0x1d3   : > { %v14526_v43 = vadd.f32 %v11032_v58, %v14399_v56  ;;  %v14529_v18 = vadd.f32 %v10965_v16, %v14357_v24  ;;  %v10968_v20 = vadd.f32 %v10967_v30, %v10966_v26  ;;  %v508_v56 = vld [vmem:[%s17133_s12 + $0x60] sm:$0xff]  ;;  %v509_v24 = vld [vmem:[%s17133_s12 + $0x68] sm:$0xff] }
 0x1d4   : > { %v14543_v10 = vpack.c.bf16 %v509_v24, %v508_v56 }
 0x1d5   : > { %v14532_v52 = vadd.f32 %v10968_v20, %v14366_v38  ;;  %v11033_v9 = vpop.f32.mrb[84].mxu1 }
 0x1d6   : > { %v11034_v34 = vpop.f32.mrb[85].mxu1  ;;  %17289 = vst [vmem:[#allocation42_spill] sm:$0xff] %v14543_v10  ;;  %12043 = vmatpush3.bf16.msra.mxu1 %v14543_v10 }
 0x1d7   : > { %v11035_v47 = vadd.f32 %v11034_v34, %v11033_v9  ;;  %v11036_v0 = vpop.f32.mrb[86].mxu1  ;;  %v10969_v3 = vpop.f32.mrb[84].mxu0  ;;  %12044 = vmatprep.subr.bf16.mxu1 %v17161_v57 }
 0x1d8   : > { %v11037_v19 = vpop.f32.mrb[87].mxu1  ;;  %v10970_v38 = vpop.f32.mrb[85].mxu0 }
 0x1d9   : > { %v11038_v41 = vadd.f32 %v11037_v19, %v11036_v0  ;;  %v14535_v62 = vadd.f32 %v11035_v47, %v14393_v27  ;;  %v10971_v44 = vadd.f32 %v10970_v38, %v10969_v3  ;;  %v10972_v59 = vpop.f32.mrb[86].mxu0 }
 0x1da   : > { %v10973_v42 = vpop.f32.mrb[87].mxu0 }
 0x1db   : > { %v14546_v29 = vadd.f32 %v11038_v41, %v14406_v2  ;;  %v14550_v27 = vadd.f32 %v10971_v44, %v14369_v5  ;;  %v10974_v31 = vadd.f32 %v10973_v42, %v10972_v59 }
 0x1dd   : > { %v14554_v22 = vadd.f32 %v10974_v31, %v14374_v4  ;;  %v11039_v23 = vpop.f32.mrb[88].mxu1 }
 0x1de   : > { %v11040_v58 = vpop.f32.mrb[89].mxu1 }
 0x1df   : > { %v11041_v63 = vadd.f32 %v11040_v58, %v11039_v23  ;;  %v11042_v16 = vpop.f32.mrb[90].mxu1  ;;  %v10975_v30 = vpop.f32.mrb[88].mxu0 }
 0x1e0   : > { %v11043_v26 = vpop.f32.mrb[91].mxu1  ;;  %v10976_v9 = vpop.f32.mrb[89].mxu0 }
 0x1e1   : > { %v11044_v2 = vadd.f32 %v11043_v26, %v11042_v16  ;;  %v14557_v20 = vadd.f32 %v11041_v63, %v14418_v54  ;;  %v10977_v34 = vadd.f32 %v10976_v9, %v10975_v30  ;;  %v10978_v5 = vpop.f32.mrb[90].mxu0  ;;  %v511_v30 = vld [vmem:[%s17133_s12 + $0x78] sm:$0xff]  ;;  %v17159_v9 = vmov 0.0  }
 0x1e2   : > { %v10979_v0 = vpop.f32.mrb[91].mxu0  ;;  %11799 = vmatprep.mubr.msk.f32.mxu1 %vm12758_vm6, %v17159_v9 }
 0x1e3   : > { %v14560_v47 = vadd.f32 %v11044_v2, %v14432_v55  ;;  %v14563_v4 = vadd.f32 %v10977_v34, %v14401_v33  ;;  %v10980_v19 = vadd.f32 %v10979_v0, %v10978_v5 }
 0x1e5   : > { %v14566_v3 = vadd.f32 %v10980_v19, %v14408_v6  ;;  %v11045_v41 = vpop.f32.mrb[92].mxu1 }
 0x1e6   : > { %v11046_v56 = vpop.f32.mrb[93].mxu1 }
 0x1e7   : > { %v11047_v24 = vadd.f32 %v11046_v56, %v11045_v41  ;;  %v11048_v38 = vpop.f32.mrb[94].mxu1  ;;  %v10981_v44 = vpop.f32.mrb[92].mxu0 }
 0x1e8   : > { %v11049_v54 = vpop.f32.mrb[95].mxu1  ;;  %v10982_v55 = vpop.f32.mrb[93].mxu0 }
 0x1e9   : > { %v11050_v59 = vadd.f32 %v11049_v54, %v11048_v38  ;;  %v14569_v42 = vadd.f32 %v11047_v24, %v14443_v37  ;;  %v10983_v31 = vadd.f32 %v10982_v55, %v10981_v44  ;;  %v10984_v23 = vpop.f32.mrb[94].mxu0  ;;  %v510_v37 = vld [vmem:[%s17133_s12 + $0x70] sm:$0xff] }
 0x1ea   : > { %v10985_v58 = vpop.f32.mrb[95].mxu0 }
 0x1eb   : > { %v14572_v33 = vadd.f32 %v11050_v59, %v14450_v12  ;;  %v14575_v6 = vadd.f32 %v10983_v31, %v14420_v40  ;;  %v10986_v63 = vadd.f32 %v10985_v58, %v10984_v23  ;;  %v14586_v12 = vpack.c.bf16 %v511_v30, %v510_v37 }
 0x1ed   : > { %v14578_v16 = vadd.f32 %v10986_v63, %v14434_v28  ;;  %17290 = vst [vmem:[#allocation43_spill] sm:$0xff] %v14586_v12  ;;  %12046 = vmatpush3.bf16.msra.mxu1 %v14586_v12 }
 0x1ee   : > { %v11051_v26 = vpop.f32.mrb[96].mxu1  ;;  %11802 = vmatprep.subr.mxu1 %v17159_v9 }
 0x1ef   : > { %v11052_v2 = vpop.f32.mrb[97].mxu1 }
 0x1f0   : > { %v11053_v40 = vadd.f32 %v11052_v2, %v11051_v26  ;;  %v11054_v28 = vpop.f32.mrb[98].mxu1 }
 0x1f1   : > { %v10987_v34 = vpop.f32.mrb[96].mxu0  ;;  %v11055_v5 = vpop.f32.mrb[99].mxu1 }
 0x1f2   : > { %v10988_v0 = vpop.f32.mrb[97].mxu0  ;;  %v11056_v19 = vadd.f32 %v11055_v5, %v11054_v28  ;;  %v14592_v41 = vadd.f32 %v11053_v40, %v14457_v35 }
 0x1f3   : > { %v10989_v56 = vadd.f32 %v10988_v0, %v10987_v34  ;;  %v10990_v24 = vpop.f32.mrb[98].mxu0 }
 0x1f4   : > { %v10991_v38 = vpop.f32.mrb[99].mxu0  ;;  %v14596_v54 = vadd.f32 %v11056_v19, %v14464_v1 }
 0x1f5   : > { %v14599_v44 = vadd.f32 %v10989_v56, %v14445_v17  ;;  %v10992_v59 = vadd.f32 %v10991_v38, %v10990_v24 }
 0x1f7   : > { %v14602_v55 = vadd.f32 %v10992_v59, %v14452_v61 }
 0x1f8   : > { %v11057_v31 = vpop.f32.mrb[100].mxu1 }
 0x1f9   : > { %v11058_v23 = vpop.f32.mrb[101].mxu1 }
 0x1fa   : > { %v11059_v58 = vadd.f32 %v11058_v23, %v11057_v31  ;;  %v11060_v35 = vpop.f32.mrb[102].mxu1 }
 0x1fb   : > { %v10993_v63 = vpop.f32.mrb[100].mxu0  ;;  %v11061_v26 = vpop.f32.mrb[103].mxu1 }
 0x1fc   : > { %v10994_v37 = vpop.f32.mrb[101].mxu0  ;;  %v11062_v30 = vadd.f32 %v11061_v26, %v11060_v35  ;;  %v14605_v2 = vadd.f32 %v11059_v58, %v14484_v36 }
 0x1fd   : > { %v10995_v1 = vadd.f32 %v10994_v37, %v10993_v63  ;;  %v10996_v40 = vpop.f32.mrb[102].mxu0 }
 0x1fe   : > { %v10997_v28 = vpop.f32.mrb[103].mxu0  ;;  %v14608_v17 = vadd.f32 %v11062_v30, %v14490_v14 }
 0x1ff   : > { %v14611_v61 = vadd.f32 %v10995_v1, %v14459_v15  ;;  %v10998_v34 = vadd.f32 %v10997_v28, %v10996_v40 }
 0x201   : > { %v14614_v5 = vadd.f32 %v10998_v34, %v14466_v13 }
 0x205   : > { %v11063_v0 = vpop.f32.mrb[104].mxu1 }
 0x206   : > { %v11064_v19 = vpop.f32.mrb[105].mxu1 }
 0x207   : > { %v11065_v56 = vadd.f32 %v11064_v19, %v11063_v0  ;;  %v11066_v24 = vpop.f32.mrb[106].mxu1 }
 0x208   : > { %v11067_v36 = vpop.f32.mrb[107].mxu1 }
 0x209   : > { %v10999_v38 = vpop.f32.mrb[104].mxu0  ;;  %v11068_v31 = vadd.f32 %v11067_v36, %v11066_v24  ;;  %v14617_v23 = vadd.f32 %v11065_v56, %v14495_v39 }
 0x20a   : > { %v11000_v59 = vpop.f32.mrb[105].mxu0 }
 0x20b   : > { %v11001_v14 = vadd.f32 %v11000_v59, %v10999_v38  ;;  %v11002_v58 = vpop.f32.mrb[106].mxu0  ;;  %v14620_v15 = vadd.f32 %v11068_v31, %v14502_v21 }
 0x20c   : > { %v11003_v35 = vpop.f32.mrb[107].mxu0 }
 0x20d   : > { %v14623_v13 = vadd.f32 %v11001_v14, %v14481_v48  ;;  %v11004_v63 = vadd.f32 %v11003_v35, %v11002_v58 }
 0x20f   : > { %v14626_v26 = vadd.f32 %v11004_v63, %v14487_v50 }
 0x212   : > { %v11069_v37 = vpop.f32.mrb[108].mxu1 }
 0x213   : > { %v11070_v30 = vpop.f32.mrb[109].mxu1 }
 0x214   : > { %v11071_v1 = vadd.f32 %v11070_v30, %v11069_v37  ;;  %v11072_v40 = vpop.f32.mrb[110].mxu1  ;;  %v11005_v28 = vpop.f32.mrb[108].mxu0 }
 0x215   : > { %v11073_v39 = vpop.f32.mrb[111].mxu1  ;;  %v11006_v34 = vpop.f32.mrb[109].mxu0 }
 0x216   : > { %v11074_v0 = vadd.f32 %v11073_v39, %v11072_v40  ;;  %v14629_v19 = vadd.f32 %v11071_v1, %v14515_v45  ;;  %v11007_v21 = vadd.f32 %v11006_v34, %v11005_v28  ;;  %v11008_v56 = vpop.f32.mrb[110].mxu0 }
 0x217   : > { %v11009_v24 = vpop.f32.mrb[111].mxu0 }
 0x218   : > { %v14632_v48 = vadd.f32 %v11074_v0, %v14520_v8  ;;  %v14635_v50 = vadd.f32 %v11007_v21, %v14497_v32  ;;  %v11010_v38 = vadd.f32 %v11009_v24, %v11008_v56 }
 0x21a   : > { %v14638_v36 = vadd.f32 %v11010_v38, %v14504_v49 }
 0x21c   : > { %v11075_v59 = vpop.f32.mrb[112].mxu1  ;;  %v11737_v31 = vpop.f32.mrb[112].mxu0 }
 0x21d   : > { %v11076_v14 = vpop.f32.mrb[113].mxu1  ;;  %v14641_v58 = vadd.f32 %v11737_v31, %v14535_v62  ;;  %v4758_v35 = vpop.f32.mrb[113].mxu0 }
 0x21e   : > { %v11077_v45 = vadd.f32 %v11076_v14, %v11075_v59  ;;  %v11078_v63 = vpop.f32.mrb[114].mxu1  ;;  %v14644_v37 = vadd.f32 %v4758_v35, %v14523_v25  ;;  %v11738_v8 = vpop.f32.mrb[114].mxu0 }
 0x21f   : > { %v11079_v30 = vpop.f32.mrb[115].mxu1  ;;  %v14647_v32 = vadd.f32 %v11738_v8, %v14546_v29  ;;  %v4761_v49 = vpop.f32.mrb[115].mxu0 }
 0x220   : > { %v11080_v1 = vadd.f32 %v11079_v30, %v11078_v63  ;;  %v14650_v40 = vadd.f32 %v11077_v45, %v14529_v18  ;;  %v14653_v28 = vadd.f32 %v4761_v49, %v14526_v43 }
 0x222   : > { %v14656_v62 = vadd.f32 %v11080_v1, %v14532_v52  ;;  %v4887_v25 = vadd.f32 %v14653_v28, %v14644_v37 }
 0x224   : > { %v4888_v39 = vadd.f32 %v4887_v25, %v14641_v58 }
 0x225   : > { %v11741_v0 = vpop.f32.mrb[116].mxu0 }
 0x226   : > { %v11081_v34 = vpop.f32.mrb[116].mxu1  ;;  %v14662_v29 = vadd.f32 %v11741_v0, %v14569_v42  ;;  %v4774_v56 = vpop.f32.mrb[117].mxu0  ;;  %v4889_v18 = vadd.f32 %v4888_v39, %v14647_v32 }
 0x227   : > { %v11082_v21 = vpop.f32.mrb[117].mxu1  ;;  %v14666_v43 = vadd.f32 %v4774_v56, %v14557_v20  ;;  %v11742_v38 = vpop.f32.mrb[118].mxu0 }
 0x228   : > { %v11083_v24 = vadd.f32 %v11082_v21, %v11081_v34  ;;  %v11084_v52 = vpop.f32.mrb[118].mxu1  ;;  %v14669_v59 = vadd.f32 %v11742_v38, %v14572_v33  ;;  %v4777_v14 = vpop.f32.mrb[119].mxu0 }
 0x229   : > { %v11085_v31 = vpop.f32.mrb[119].mxu1  ;;  %v4890_v45 = vadd.f32 %v4889_v18, %v14666_v43  ;;  %v14673_v42 = vadd.f32 %v4777_v14, %v14560_v47 }
 0x22a   : > { %v11086_v35 = vadd.f32 %v11085_v31, %v11084_v52  ;;  %v4670_v63 = vadd.f32 %v11083_v24, %v14550_v27 }
 0x22b   : > { %v4891_v8 = vadd.f32 %v4890_v45, %v14673_v42 }
 0x22c   : > { %v4673_v20 = vadd.f32 %v11086_v35, %v14554_v22 }
 0x22d   : > { %v4892_v30 = vadd.f32 %v4891_v8, %v14662_v29 }
 0x22e   : > { %v11745_v1 = vpop.f32.mrb[120].mxu0 }
 0x22f   : > { %v11087_v49 = vpop.f32.mrb[120].mxu1  ;;  %v14680_v33 = vadd.f32 %v11745_v1, %v14605_v2  ;;  %v4790_v25 = vpop.f32.mrb[121].mxu0  ;;  %v4893_v47 = vadd.f32 %v4892_v30, %v14669_v59 }
 0x230   : > { %v11088_v39 = vpop.f32.mrb[121].mxu1  ;;  %v14683_v34 = vadd.f32 %v4790_v25, %v14592_v41  ;;  %v11746_v0 = vpop.f32.mrb[122].mxu0 }
 0x231   : > { %v11089_v27 = vadd.f32 %v11088_v39, %v11087_v49  ;;  %v11090_v21 = vpop.f32.mrb[122].mxu1  ;;  %v14687_v56 = vadd.f32 %v11746_v0, %v14608_v17  ;;  %v4793_v22 = vpop.f32.mrb[123].mxu0 }
 0x232   : > { %v4894_v18 = vadd.f32 %v4893_v47, %v14683_v34  ;;  %v11091_v24 = vpop.f32.mrb[123].mxu1  ;;  %v14691_v2 = vadd.f32 %v4793_v22, %v14596_v54 }
 0x233   : > { %v11092_v52 = vadd.f32 %v11091_v24, %v11090_v21  ;;  %v4678_v38 = vadd.f32 %v11089_v27, %v14563_v4 }
 0x234   : > { %v4895_v41 = vadd.f32 %v4894_v18, %v14691_v2 }
 0x235   : > { %v4681_v31 = vadd.f32 %v11092_v52, %v14566_v3 }
 0x236   : > { %v4896_v14 = vadd.f32 %v4895_v41, %v14680_v33 }
 0x237   : > { %v11749_v45 = vpop.f32.mrb[124].mxu0 }
 0x238   : > { %v14698_v17 = vadd.f32 %v11749_v45, %v14629_v19  ;;  %v4806_v35 = vpop.f32.mrb[125].mxu0  ;;  %v4897_v8 = vadd.f32 %v4896_v14, %v14687_v56 }
 0x239   : > { %v11093_v30 = vpop.f32.mrb[124].mxu1  ;;  %v14702_v54 = vadd.f32 %v4806_v35, %v14617_v23  ;;  %v11750_v1 = vpop.f32.mrb[126].mxu0 }
 0x23a   : > { %v11094_v49 = vpop.f32.mrb[125].mxu1  ;;  %v14705_v4 = vadd.f32 %v11750_v1, %v14632_v48  ;;  %v4809_v25 = vpop.f32.mrb[127].mxu0 }
 0x23b   : > { %v11095_v3 = vadd.f32 %v11094_v49, %v11093_v30  ;;  %v4898_v39 = vadd.f32 %v4897_v8, %v14702_v54  ;;  %v11096_v47 = vpop.f32.mrb[126].mxu1  ;;  %v14709_v19 = vadd.f32 %v4809_v25, %v14620_v15 }
 0x23c   : > { %v11097_v0 = vpop.f32.mrb[127].mxu1 }
 0x23d   : > { %v11098_v27 = vadd.f32 %v11097_v0, %v11096_v47  ;;  %v4899_v21 = vadd.f32 %v4898_v39, %v14709_v19  ;;  %v4686_v23 = vadd.f32 %v11095_v3, %v14575_v6 }
 0x23f   : > { %v4900_v22 = vadd.f32 %v4899_v21, %v14698_v17  ;;  %v4689_v18 = vadd.f32 %v11098_v27, %v14578_v16 }
 0x240   : > { %v11753_v48 = vpop.f32.mrb[128].mxu0 }
 0x241   : > { %v14715_v24 = vadd.f32 %v11753_v48, %v4670_v63  ;;  %v4822_v52 = vpop.f32.mrb[129].mxu0  ;;  %v4901_v41 = vadd.f32 %v4900_v22, %v14705_v4 }
 0x242   : > { %v11099_v14 = vpop.f32.mrb[128].mxu1  ;;  %v14719_v15 = vadd.f32 %v4822_v52, %v14650_v40  ;;  %v11754_v45 = vpop.f32.mrb[130].mxu0 }
 0x243   : > { %v11100_v35 = vpop.f32.mrb[129].mxu1  ;;  %v14721_v8 = vadd.f32 %v11754_v45, %v4673_v20  ;;  %v4825_v30 = vpop.f32.mrb[131].mxu0 }
 0x244   : > { %v11101_v6 = vadd.f32 %v11100_v35, %v11099_v14  ;;  %v4902_v1 = vadd.f32 %v4901_v41, %v14719_v15  ;;  %v11102_v49 = vpop.f32.mrb[130].mxu1  ;;  %v14725_v16 = vadd.f32 %v4825_v30, %v14656_v62 }
 0x245   : > { %v11103_v63 = vpop.f32.mrb[131].mxu1 }
 0x246   : > { %v11104_v25 = vadd.f32 %v11103_v63, %v11102_v49  ;;  %v4903_v3 = vadd.f32 %v4902_v1, %v14725_v16  ;;  %v4694_v39 = vadd.f32 %v11101_v6, %v14599_v44 }
 0x248   : > { %v4904_v40 = vadd.f32 %v4903_v3, %v14715_v24  ;;  %v4697_v47 = vadd.f32 %v11104_v25, %v14602_v55 }
 0x24a   : > { %v4905_v27 = vadd.f32 %v4904_v40, %v14721_v8 }
 0x24b   : > { %v11105_v20 = vpop.f32.mrb[132].mxu1  ;;  %v11757_v0 = vpop.f32.mrb[132].mxu0 }
 0x24c   : > { %v14732_v21 = vadd.f32 %v11757_v0, %v4686_v23  ;;  %v11106_v22 = vpop.f32.mrb[133].mxu1  ;;  %v4838_v48 = vpop.f32.mrb[133].mxu0 }
 0x24d   : > { %v11107_v62 = vadd.f32 %v11106_v22, %v11105_v20  ;;  %v14734_v52 = vadd.f32 %v4838_v48, %v4678_v38  ;;  %v11108_v41 = vpop.f32.mrb[134].mxu1  ;;  %v11758_v14 = vpop.f32.mrb[134].mxu0 }
 0x24e   : > { %v14736_v45 = vadd.f32 %v11758_v14, %v4689_v18  ;;  %v11109_v44 = vpop.f32.mrb[135].mxu1  ;;  %v4841_v35 = vpop.f32.mrb[135].mxu0 }
 0x24f   : > { %v4906_v30 = vadd.f32 %v4905_v27, %v14734_v52  ;;  %v11110_v55 = vadd.f32 %v11109_v44, %v11108_v41  ;;  %v14739_v6 = vadd.f32 %v4841_v35, %v4681_v31  ;;  %v4702_v1 = vadd.f32 %v11107_v62, %v14611_v61 }
 0x251   : > { %v4907_v23 = vadd.f32 %v4906_v30, %v14739_v6  ;;  %v4705_v49 = vadd.f32 %v11110_v55, %v14614_v5 }
 0x253   : > { %v4908_v38 = vadd.f32 %v4907_v23, %v14732_v21  ;;  %v11761_v63 = vpop.f32.mrb[136].mxu0 }
 0x254   : > { %v14745_v25 = vadd.f32 %v11761_v63, %v4702_v1  ;;  %v4854_v18 = vpop.f32.mrb[137].mxu0 }
 0x255   : > { %v11111_v3 = vpop.f32.mrb[136].mxu1  ;;  %v14747_v40 = vadd.f32 %v4854_v18, %v4694_v39  ;;  %v4909_v20 = vadd.f32 %v4908_v38, %v14736_v45  ;;  %v11762_v0 = vpop.f32.mrb[138].mxu0 }
 0x256   : > { %v11112_v31 = vpop.f32.mrb[137].mxu1  ;;  %v14750_v27 = vadd.f32 %v11762_v0, %v4705_v49  ;;  %v4857_v61 = vpop.f32.mrb[139].mxu0 }
 0x257   : > { %v11113_v22 = vadd.f32 %v11112_v31, %v11111_v3  ;;  %v4910_v48 = vadd.f32 %v4909_v20, %v14747_v40  ;;  %v11114_v5 = vpop.f32.mrb[138].mxu1  ;;  %v14753_v62 = vadd.f32 %v4857_v61, %v4697_v47 }
 0x258   : > { %v11115_v41 = vpop.f32.mrb[139].mxu1 }
 0x259   : > { %v11116_v14 = vadd.f32 %v11115_v41, %v11114_v5  ;;  %v4911_v44 = vadd.f32 %v4910_v48, %v14753_v62  ;;  %v4710_v39 = vadd.f32 %v11113_v22, %v14623_v13 }
 0x25b   : > { %v4912_v35 = vadd.f32 %v4911_v44, %v14745_v25  ;;  %v4713_v30 = vadd.f32 %v11116_v14, %v14626_v26 }
 0x25d   : > { %v11765_v55 = vpop.f32.mrb[140].mxu0  ;;  %v4913_v23 = vadd.f32 %v4912_v35, %v14750_v27 }
 0x25e   : > { %v4870_v1 = vpop.f32.mrb[141].mxu0 }
 0x25f   : > { %v11117_v49 = vpop.f32.mrb[140].mxu1  ;;  %v14760_v38 = vadd.f32 %v4870_v1, %v4710_v39  ;;  %v11766_v63 = vpop.f32.mrb[142].mxu0 }
 0x260   : > { %v11118_v47 = vpop.f32.mrb[141].mxu1  ;;  %v4873_v18 = vpop.f32.mrb[143].mxu0 }
 0x261   : > { %v11119_v3 = vadd.f32 %v11118_v47, %v11117_v49  ;;  %v4914_v20 = vadd.f32 %v4913_v23, %v14760_v38  ;;  %v11120_v0 = vpop.f32.mrb[142].mxu1  ;;  %v14763_v31 = vadd.f32 %v4873_v18, %v4713_v30  ;;  %v5069_v47 = vlaneseq }
 0x262   : > { %v11121_v13 = vpop.f32.mrb[143].mxu1 }
 0x263   : > { %v4718_v61 = vadd.f32 %v11119_v3, %v14635_v50  ;;  %v11122_v26 = vadd.f32 %v11121_v13, %v11120_v0  ;;  %v4915_v22 = vadd.f32 %v4914_v20, %v14763_v31  ;;  %v14779_v50 = vld [vmem:[%s17134_s13] sm:$0xff]  ;;  %v5070_v18 = vshrl.u32 %v5069_v47, 7 }
 0x265   : > { %v14767_v48 = vadd.f32 %v11765_v55, %v4718_v61  ;;  %v4721_v5 = vadd.f32 %v11122_v26, %v14638_v36  ;;  %v14802_v0 = vsub.s32 0, %v5070_v18 }
 0x267   : > { %v14770_v41 = vadd.f32 %v11766_v63, %v4721_v5  ;;  %v4916_v14 = vadd.f32 %v4915_v22, %v14767_v48  ;;  %17291 = vst [vmem:[#allocation44_spill] sm:$0xff] %v14802_v0 }
 0x269   : > { %v4917_v44 = vadd.f32 %v4916_v14, %v14770_v41 }
 0x26b   : > { %v4918_v39 = vrot.slane %v4917_v44, 4 }
 0x26d   : > { %v4919_v35 = vadd.f32 %v4918_v39, %v4917_v44 }
 0x26f   : > { %v4920_v30 = vrot.slane %v4919_v35, 2 }
 0x271   : > { %v4921_v1 = vadd.f32 %v4920_v30, %v4919_v35 }
 0x273   : > { %v4922_v23 = vrot.slane %v4921_v1, 1 }
 0x275   : > { %v4923_v49 = vadd.f32 %v4922_v23, %v4921_v1 }
 0x277   : > { %11800 = vmatmul.mubr.f32.vlgmr.msra.gmra.mrb[144].mxu1 %v4923_v49 }
 0x278   : > { %11804 = vmatprep.mubr.msk.f32.mxu1 %vm12758_vm6, %v17159_v9  ;;  %11803 = vmatpush3.msra.mxu1 %v14779_v50 }
 0x279   : > { %12047 = vmatprep.subr.bf16.mxu1 %v17161_v57 }
 0x34a   : > { %v4990_v36 = vpop.f32.mrb[144].mxu1 }
 0x34b   : > { %v4994_v55 = vmul.f32 0.00390625, %v4990_v36  ;;  %v11801_v63 = vpop.f32.mrb[145].mxu1 }
 0x34d   : > { %11805 = vmatmul.mubr.msk.f32.vlgmr.msra.gmra.mrb[146].mxu1 %vm4995_vm7, %v4994_v55 }
 0x34e   : > { %12049 = vmatpush3.bf16.msra.mxu1 %v14379_v51  ;;  %11839 = vmatprep.mubr.msk.f32.mxu1 %vm12758_vm6, %v17159_v9 }
 0x34f   : > { %12050 = vmatprep.subr.bf16.mxu1 %v17161_v57 }
 0x352   : > { %12052 = vmatpush3.bf16.msra.mxu1 %v14387_v53 }
 0x353   : > { %12053 = vmatprep.subr.bf16.mxu1 %v17161_v57 }
 0x356   : > { %12055 = vmatpush3.bf16.msra.mxu1 %v14411_v60 }
 0x357   : > { %12056 = vmatprep.subr.bf16.mxu1 %v17161_v57 }
 0x35a   : > { %12058 = vmatpush3.bf16.msra.mxu1 %v14436_v46 }
 0x35b   : > { %12059 = vmatprep.subr.bf16.mxu1 %v17161_v57 }
 0x35e   : > { %12061 = vmatpush3.bf16.msra.mxu1 %v14474_v11 }
 0x35f   : > { %12062 = vmatprep.subr.bf16.mxu1 %v17161_v57 }
 0x362   : > { %12064 = vmatpush3.bf16.msra.mxu1 %v14512_v7 }
 0x363   : > { %12065 = vmatprep.subr.bf16.mxu1 %v17161_v57 }
 0x366   : > { %12067 = vmatpush3.bf16.msra.mxu1 %v14543_v10 }
 0x367   : > { %12068 = vmatprep.subr.bf16.mxu1 %v17161_v57 }
 0x36a   : > { %12070 = vmatpush3.bf16.msra.mxu1 %v14586_v12 }
 0x36b   : > { %11842 = vmatprep.subr.mxu1 %v17159_v9 }
 0x420   : > { %v5065_v3 = vpop.f32.mrb[146].mxu1 }
 0x421   : > { %v11806_v20 = vpop.f32.mrb[147].mxu1  ;;  %v14805_v13 = vrot.slane %v5065_v3, %v14802_v0 }
 0x423   : > { %v14809_v61 = vsub.f32 %v14644_v37, %v14805_v13  ;;  %v14813_v26 = vsub.f32 %v14653_v28, %v14805_v13  ;;  %v14817_v22 = vsub.f32 %v14641_v58, %v14805_v13  ;;  %v14825_v44 = vsub.f32 %v14647_v32, %v14805_v13 }
 0x424   : > { %v14829_v37 = vsub.f32 %v14666_v43, %v14805_v13  ;;  %v14835_v58 = vsub.f32 %v14673_v42, %v14805_v13  ;;  %v14841_v32 = vsub.f32 %v14662_v29, %v14805_v13  ;;  %v14847_v23 = vsub.f32 %v14669_v59, %v14805_v13 }
 0x425   : > { %v5105_v5 = vmul.f32 %v14809_v61, %v14809_v61  ;;  %v5106_v14 = vmul.f32 %v14813_v26, %v14813_v26  ;;  %v5107_v28 = vmul.f32 %v14817_v22, %v14817_v22  ;;  %v5108_v35 = vmul.f32 %v14825_v44, %v14825_v44 }
 0x426   : > { %v5109_v43 = vmul.f32 %v14829_v37, %v14829_v37  ;;  %v5110_v42 = vmul.f32 %v14835_v58, %v14835_v58  ;;  %v14853_v36 = vsub.f32 %v14683_v34, %v14805_v13  ;;  %v5111_v29 = vmul.f32 %v14841_v32, %v14841_v32 }
 0x427   : > { %v5137_v39 = vadd.f32 %v5106_v14, %v5105_v5  ;;  %v14859_v63 = vsub.f32 %v14691_v2, %v14805_v13  ;;  %v5112_v59 = vmul.f32 %v14847_v23, %v14847_v23  ;;  %v14865_v18 = vsub.f32 %v14680_v33, %v14805_v13 }
 0x428   : > { %v5113_v34 = vmul.f32 %v14853_v36, %v14853_v36  ;;  %v14871_v20 = vsub.f32 %v14687_v56, %v14805_v13  ;;  %v14877_v14 = vsub.f32 %v14702_v54, %v14805_v13 }
 0x429   : > { %v5138_v30 = vadd.f32 %v5137_v39, %v5107_v28  ;;  %v5114_v2 = vmul.f32 %v14859_v63, %v14859_v63  ;;  %v5115_v33 = vmul.f32 %v14865_v18, %v14865_v18  ;;  %v14883_v39 = vsub.f32 %v14709_v19, %v14805_v13 }
 0x42a   : > { %v5116_v56 = vmul.f32 %v14871_v20, %v14871_v20  ;;  %v5117_v54 = vmul.f32 %v14877_v14, %v14877_v14 }
 0x42b   : > { %v5139_v1 = vadd.f32 %v5138_v30, %v5108_v35  ;;  %v14889_v30 = vsub.f32 %v14698_v17, %v14805_v13  ;;  %v5118_v19 = vmul.f32 %v14883_v39, %v14883_v39 }
 0x42d   : > { %v5140_v49 = vadd.f32 %v5139_v1, %v5109_v43  ;;  %v14895_v1 = vsub.f32 %v14705_v4, %v14805_v13  ;;  %v5119_v17 = vmul.f32 %v14889_v30, %v14889_v30 }
 0x42f   : > { %v5141_v55 = vadd.f32 %v5140_v49, %v5110_v42  ;;  %v14901_v49 = vsub.f32 %v14719_v15, %v14805_v13  ;;  %v5120_v4 = vmul.f32 %v14895_v1, %v14895_v1 }
 0x431   : > { %v5142_v47 = vadd.f32 %v5141_v55, %v5111_v29  ;;  %v14907_v55 = vsub.f32 %v14725_v16, %v14805_v13  ;;  %v5121_v15 = vmul.f32 %v14901_v49, %v14901_v49 }
 0x433   : > { %v5143_v3 = vadd.f32 %v5142_v47, %v5112_v59  ;;  %v14913_v47 = vsub.f32 %v14715_v24, %v14805_v13  ;;  %v5122_v16 = vmul.f32 %v14907_v55, %v14907_v55 }
 0x435   : > { %v5144_v5 = vadd.f32 %v5143_v3, %v5113_v34  ;;  %v14919_v3 = vsub.f32 %v14721_v8, %v14805_v13  ;;  %v5123_v24 = vmul.f32 %v14913_v47, %v14913_v47 }
 0x437   : > { %v5145_v28 = vadd.f32 %v5144_v5, %v5114_v2  ;;  %v14925_v5 = vsub.f32 %v14734_v52, %v14805_v13  ;;  %v5124_v8 = vmul.f32 %v14919_v3, %v14919_v3 }
 0x439   : > { %v5146_v35 = vadd.f32 %v5145_v28, %v5115_v33  ;;  %v14931_v28 = vsub.f32 %v14739_v6, %v14805_v13  ;;  %v5125_v52 = vmul.f32 %v14925_v5, %v14925_v5 }
 0x43b   : > { %v5147_v43 = vadd.f32 %v5146_v35, %v5116_v56  ;;  %v14937_v35 = vsub.f32 %v14732_v21, %v14805_v13  ;;  %v5126_v6 = vmul.f32 %v14931_v28, %v14931_v28 }
 0x43d   : > { %v5148_v42 = vadd.f32 %v5147_v43, %v5117_v54  ;;  %v14943_v43 = vsub.f32 %v14736_v45, %v14805_v13  ;;  %v5127_v21 = vmul.f32 %v14937_v35, %v14937_v35 }
 0x43f   : > { %v5149_v29 = vadd.f32 %v5148_v42, %v5118_v19  ;;  %v14949_v42 = vsub.f32 %v14747_v40, %v14805_v13  ;;  %v5128_v45 = vmul.f32 %v14943_v43, %v14943_v43 }
 0x441   : > { %v5150_v59 = vadd.f32 %v5149_v29, %v5119_v17  ;;  %v14955_v29 = vsub.f32 %v14753_v62, %v14805_v13  ;;  %v5129_v40 = vmul.f32 %v14949_v42, %v14949_v42 }
 0x443   : > { %v5151_v34 = vadd.f32 %v5150_v59, %v5120_v4  ;;  %v14961_v59 = vsub.f32 %v14745_v25, %v14805_v13  ;;  %v5130_v62 = vmul.f32 %v14955_v29, %v14955_v29 }
 0x445   : > { %v5152_v2 = vadd.f32 %v5151_v34, %v5121_v15  ;;  %v14967_v34 = vsub.f32 %v14750_v27, %v14805_v13  ;;  %v5131_v25 = vmul.f32 %v14961_v59, %v14961_v59 }
 0x447   : > { %v5153_v33 = vadd.f32 %v5152_v2, %v5122_v16  ;;  %v14973_v2 = vsub.f32 %v14760_v38, %v14805_v13  ;;  %v5132_v27 = vmul.f32 %v14967_v34, %v14967_v34 }
 0x449   : > { %v5154_v56 = vadd.f32 %v5153_v33, %v5123_v24  ;;  %v14979_v33 = vsub.f32 %v14763_v31, %v14805_v13  ;;  %v5133_v38 = vmul.f32 %v14973_v2, %v14973_v2 }
 0x44b   : > { %v5155_v54 = vadd.f32 %v5154_v56, %v5124_v8  ;;  %v14985_v56 = vsub.f32 %v14767_v48, %v14805_v13  ;;  %v5134_v31 = vmul.f32 %v14979_v33, %v14979_v33 }
 0x44d   : > { %v5156_v19 = vadd.f32 %v5155_v54, %v5125_v52  ;;  %v14991_v54 = vsub.f32 %v14770_v41, %v14805_v13  ;;  %v12314_v13 = vld [vmem:[#allocation5 + $0x40] sm:$0xff]  }
 0x44e   : > { %11185 = vmatprep.subr.bf16.mxu0 %v12314_v13  ;;  %v12325_v13 = vld [vmem:[#allocation5 + $0x28] sm:$0xff]  }
 0x44f   : > { %v5157_v17 = vadd.f32 %v5156_v19, %v5126_v6  ;;  %v5135_v19 = vmul.f32 %v14985_v56, %v14985_v56  ;;  %v5136_v48 = vmul.f32 %v14991_v54, %v14991_v54 }
 0x451   : > { %v5158_v4 = vadd.f32 %v5157_v17, %v5127_v21 }
 0x453   : > { %v5159_v15 = vadd.f32 %v5158_v4, %v5128_v45 }
 0x455   : > { %v5160_v16 = vadd.f32 %v5159_v15, %v5129_v40 }
 0x457   : > { %v5161_v24 = vadd.f32 %v5160_v16, %v5130_v62 }
 0x459   : > { %v5162_v8 = vadd.f32 %v5161_v24, %v5131_v25  ;;  %v12315_v25 = vld [vmem:[#allocation5] sm:$0xff]   ;;  %v12316_v24 = vld [vmem:[#allocation5 + $0x48] sm:$0xff]  }
 0x45a   : > { %11186 = vmatpush3.bf16.msra.mxu0 %v12315_v25  ;;  %v12333_v25 = vld [vmem:[#allocation5 + $0x90] sm:$0xff]  }
 0x45b   : > { %v5163_v52 = vadd.f32 %v5162_v8, %v5132_v27  ;;  %v12317_v27 = vld [vmem:[#allocation5 + $0x8] sm:$0xff]   ;;  %11187 = vmatprep.subr.bf16.mxu0 %v12316_v24  ;;  %v12760_v24 = vmov 0  }
 0x45c   : > { %5664 = vst [vmem:[#allocation2 + $0x8] sm:$0xff] %v12760_v24  ;;  %8129 = vmatprep.mubr.bf16.mxu0 %v12760_v24  ;;  %5663 = vst [vmem:[#allocation2] sm:$0xff] %v12760_v24 }
 0x45d   : > { %v5164_v6 = vadd.f32 %v5163_v52, %v5133_v38  ;;  %5665 = vst [vmem:[#allocation2 + $0x10] sm:$0xff] %v12760_v24  ;;  %5667 = vst [vmem:[#allocation2 + $0x198] sm:$0xff] %v12760_v24 }
 0x45e   : > { %11188 = vmatpush3.bf16.msra.mxu0 %v12317_v27  ;;  %5669 = vst [vmem:[#allocation2 + $0x1a8] sm:$0xff] %v12760_v24  ;;  %5671 = vst [vmem:[#allocation2 + $0x18] sm:$0xff] %v12760_v24  ;;  %v12330_v27 = vld [vmem:[#allocation5 + $0x70] sm:$0xff]  }
 0x45f   : > { %v5165_v21 = vadd.f32 %v5164_v6, %v5134_v31  ;;  %5672 = vst [vmem:[#allocation2 + $0x30] sm:$0xff] %v12760_v24  ;;  %5673 = vst [vmem:[#allocation2 + $0x48] sm:$0xff] %v12760_v24 }
 0x460   : > { %5674 = vst [vmem:[#allocation2 + $0x60] sm:$0xff] %v12760_v24  ;;  %5675 = vst [vmem:[#allocation2 + $0x78] sm:$0xff] %v12760_v24 }
 0x461   : > { %v5166_v17 = vadd.f32 %v5165_v21, %v5135_v19  ;;  %v12319_v19 = vld [vmem:[#allocation5 + $0x10] sm:$0xff]   ;;  %v12320_v21 = vld [vmem:[#allocation5 + $0x58] sm:$0xff]   ;;  %5676 = vst [vmem:[#allocation2 + $0x90] sm:$0xff] %v12760_v24  ;;  %5677 = vst [vmem:[#allocation2 + $0xa8] sm:$0xff] %v12760_v24 }
 0x462   : > { %5678 = vst [vmem:[#allocation2 + $0xc0] sm:$0xff] %v12760_v24  ;;  %5679 = vst [vmem:[#allocation2 + $0xd8] sm:$0xff] %v12760_v24 }
 0x463   : > { %v5167_v45 = vadd.f32 %v5166_v17, %v5136_v48  ;;  %v12326_v48 = vld [vmem:[#allocation5 + $0xc0] sm:$0xff]   ;;  %v12321_v17 = vld [vmem:[#allocation5 + $0x18] sm:$0xff]   ;;  %5680 = vst [vmem:[#allocation2 + $0xf0] sm:$0xff] %v12760_v24  ;;  %5681 = vst [vmem:[#allocation2 + $0x108] sm:$0xff] %v12760_v24 }
 0x464   : > { %5682 = vst [vmem:[#allocation2 + $0x120] sm:$0xff] %v12760_v24  ;;  %5683 = vst [vmem:[#allocation2 + $0x138] sm:$0xff] %v12760_v24 }
 0x465   : > { %v5168_v4 = vrot.slane %v5167_v45, 4  ;;  %5684 = vst [vmem:[#allocation2 + $0x150] sm:$0xff] %v12760_v24  ;;  %5685 = vst [vmem:[#allocation2 + $0x168] sm:$0xff] %v12760_v24 }
 0x466   : > { %5686 = vst [vmem:[#allocation2 + $0x180] sm:$0xff] %v12760_v24  ;;  %5687 = vst [vmem:[#allocation2 + $0x28] sm:$0xff] %v12760_v24 }
 0x467   : > { %v5169_v40 = vadd.f32 %v5168_v4, %v5167_v45  ;;  %v12327_v45 = vld [vmem:[#allocation5 + $0x80] sm:$0xff]   ;;  %5688 = vst [vmem:[#allocation2 + $0x40] sm:$0xff] %v12760_v24  ;;  %5689 = vst [vmem:[#allocation2 + $0x58] sm:$0xff] %v12760_v24 }
 0x468   : > { %v12322_v4 = vld [vmem:[#allocation5 + $0x60] sm:$0xff]   ;;  %5690 = vst [vmem:[#allocation2 + $0x70] sm:$0xff] %v12760_v24  ;;  %5691 = vst [vmem:[#allocation2 + $0x88] sm:$0xff] %v12760_v24 }
 0x469   : > { %v5170_v15 = vrot.slane %v5169_v40, 2  ;;  %5692 = vst [vmem:[#allocation2 + $0xa0] sm:$0xff] %v12760_v24  ;;  %5693 = vst [vmem:[#allocation2 + $0xb8] sm:$0xff] %v12760_v24 }
 0x46a   : > { %5694 = vst [vmem:[#allocation2 + $0xd0] sm:$0xff] %v12760_v24  ;;  %5695 = vst [vmem:[#allocation2 + $0xe8] sm:$0xff] %v12760_v24 }
 0x46b   : > { %v5171_v62 = vadd.f32 %v5170_v15, %v5169_v40  ;;  %v12328_v40 = vld [vmem:[#allocation5 + $0xc8] sm:$0xff]   ;;  %v12323_v15 = vld [vmem:[#allocation5 + $0x20] sm:$0xff]   ;;  %5696 = vst [vmem:[#allocation2 + $0x100] sm:$0xff] %v12760_v24  ;;  %5697 = vst [vmem:[#allocation2 + $0x118] sm:$0xff] %v12760_v24 }
 0x46c   : > { %5698 = vst [vmem:[#allocation2 + $0x130] sm:$0xff] %v12760_v24  ;;  %5699 = vst [vmem:[#allocation2 + $0x148] sm:$0xff] %v12760_v24 }
 0x46d   : > { %v5172_v16 = vrot.slane %v5171_v62, 1  ;;  %5700 = vst [vmem:[#allocation2 + $0x160] sm:$0xff] %v12760_v24  ;;  %5701 = vst [vmem:[#allocation2 + $0x178] sm:$0xff] %v12760_v24 }
 0x46e   : > { %5702 = vst [vmem:[#allocation2 + $0x190] sm:$0xff] %v12760_v24 }
 0x46f   : > { %v5173_v41 = vadd.f32 %v5172_v16, %v5171_v62  ;;  %v12329_v62 = vld [vmem:[#allocation5 + $0x88] sm:$0xff]  }
 0x470   : > { %v12324_v16 = vld [vmem:[#allocation5 + $0x68] sm:$0xff]  }
 0x471   : > { %11840 = vmatmul.mubr.f32.vlgmr.msra.gmra.mrb[148].mxu1 %v5173_v41  ;;  %v12332_v41 = vld [vmem:[#allocation5 + $0xd0] sm:$0xff]  }
 0x472   : > { %11843 = vmatpush3.msra.mxu1 %v14779_v50  ;;  %11844 = vmatprep.mubr.msk.f32.mxu1 %vm12758_vm6, %v17159_v9  ;;  %v12318_v50 = vld [vmem:[#allocation5 + $0x50] sm:$0xff]  }
 0x473   : > { %11189 = vmatprep.subr.bf16.mxu0 %v12318_v50  ;;  %11297 = vmatprep.subr.bf16.mxu1 %v12326_v48  ;;  %v5736_v50 = vld [vmem:[#allocation2] sm:$0x80] }
 0x474   : > { %11190 = vmatpush3.bf16.msra.mxu0 %v12319_v19  ;;  %v12337_v19 = vld [vmem:[#allocation5 + $0x38] sm:$0xff]   ;;  %v5770_v48 = vshrl.u32 %v5736_v50, 16 }
 0x475   : > { %11191 = vmatprep.subr.bf16.mxu0 %v12320_v21  ;;  %v12339_v21 = vld [vmem:[#allocation5 + $0xa0] sm:$0xff]  }
 0x478   : > { %11192 = vmatpush3.bf16.msra.mxu0 %v12321_v17  ;;  %v5776_v17 = vrot.slane %v12760_v24, 7 }
 0x479   : > { %11193 = vmatprep.subr.bf16.mxu0 %v12322_v4  ;;  %v12340_v4 = vld [vmem:[#allocation5 + $0xe8] sm:$0xff]  }
 0x47c   : > { %11194 = vmatpush3.bf16.msra.mxu0 %v12323_v15  ;;  %v12341_v15 = vld [vmem:[#allocation5 + $0xa8] sm:$0xff]  }
 0x47d   : > { %11195 = vmatprep.subr.bf16.mxu0 %v12324_v16  ;;  %v12345_v16 = vld [vmem:[#allocation5 + $0xb0] sm:$0xff]  }
 0x480   : > { %11196 = vmatpush3.bf16.msra.mxu0 %v12325_v13  ;;  %v12344_v13 = vld [vmem:[#allocation5 + $0x100] sm:$0xff]  }
 0x481   : > { %11197 = vmatprep.subr.bf16.mxu0 %v12330_v27  ;;  %v15044_v27 = vrot.slane %v12760_v24, 1  ;;  %v12352_v24 = vld [vmem:[#allocation5 + $0x158] sm:$0xff]  }
 0x544   : > { %v5240_v8 = vpop.f32.mrb[148].mxu1 }
 0x545   : > { %v5244_v38 = vmul.f32 0.00390625, %v5240_v8  ;;  %v11841_v52 = vpop.f32.mrb[149].mxu1  ;;  %v12334_v8 = vld [vmem:[#allocation5 + $0xd8] sm:$0xff]  }
 0x546   : > { %v12335_v52 = vld [vmem:[#allocation5 + $0x98] sm:$0xff]  }
 0x547   : > { %v5245_v31 = vadd.f32 1e-05, %v5244_v38  ;;  %v12331_v38 = vld [vmem:[#allocation5 + $0x30] sm:$0xff]  }
 0x548   : > { %11198 = vmatpush3.bf16.msra.mxu0 %v12331_v38  ;;  %v12348_v38 = vld [vmem:[#allocation5 + $0x148] sm:$0xff]  }
 0x549   : > { %12394 = vrsqrt.f32 %v5245_v31  ;;  %v12336_v31 = vld [vmem:[#allocation5 + $0x78] sm:$0xff]  }
 0x54a   : > { %11199 = vmatprep.subr.bf16.mxu0 %v12336_v31  ;;  %v12350_v31 = vld [vmem:[#allocation5 + $0x150] sm:$0xff]  }
 0x54c   : > { %11200 = vmatpush3.bf16.msra.mxu0 %v12337_v19 }
 0x553   : > { %v12395_v6 = vpop.eup %12394 }
 0x554   : > { %11845 = vmatmul.mubr.msk.f32.vlgmr.msra.gmra.mrb[150].mxu1 %vm4995_vm7, %v12395_v6  ;;  %v12338_v6 = vld [vmem:[#allocation5 + $0xe0] sm:$0xff]  }
 0x555   : > { %11298 = vmatpush3.bf16.msra.mxu1 %v12327_v45  ;;  %v5772_v45 = vrot.slane %v5770_v48, 7  ;;  %v12353_v48 = vld [vmem:[#allocation5 + $0x118] sm:$0xff]  }
 0x556   : > { %11299 = vmatprep.subr.bf16.mxu1 %v12328_v40 }
 0x557   : > { %v5780_v40 = vsel %vm5768_vm8, %v5772_v45, %v5776_v17 }
 0x558   : > { %8130 = vmatmul.mubr.bf16.vlgmr.msra.gmra.mrb[144].mxu0 %v5780_v40 }
 0x559   : > { %11300 = vmatpush3.bf16.msra.mxu1 %v12329_v62  ;;  %v12343_v62 = vld [vmem:[#allocation5 + $0xf0] sm:$0xff]  }
 0x55a   : > { %11301 = vmatprep.subr.bf16.mxu1 %v12332_v41  ;;  %v12342_v41 = vld [vmem:[#allocation5 + $0x140] sm:$0xff]  }
 0x55b   : > { %11409 = vmatprep.subr.bf16.mxu0 %v12342_v41 }
 0x55c   : > { %11410 = vmatpush3.bf16.msra.mxu0 %v12344_v13 }
 0x55d   : > { %11302 = vmatpush3.bf16.msra.mxu1 %v12333_v25  ;;  %v12346_v25 = vld [vmem:[#allocation5 + $0xf8] sm:$0xff]   ;;  %11411 = vmatprep.subr.bf16.mxu0 %v12348_v38 }
 0x55e   : > { %11303 = vmatprep.subr.bf16.mxu1 %v12334_v8  ;;  %v12347_v8 = vld [vmem:[#allocation5 + $0xb8] sm:$0xff]  }
 0x561   : > { %11304 = vmatpush3.bf16.msra.mxu1 %v12335_v52  ;;  %v12349_v52 = vld [vmem:[#allocation5 + $0x108] sm:$0xff]  }
 0x562   : > { %11305 = vmatprep.subr.bf16.mxu1 %v12338_v6  ;;  %11412 = vmatpush3.bf16.msra.mxu0 %v12349_v52  ;;  %v12351_v6 = vld [vmem:[#allocation5 + $0x110] sm:$0xff]  }
 0x563   : > { %11413 = vmatprep.subr.bf16.mxu0 %v12350_v31 }
 0x565   : > { %11306 = vmatpush3.bf16.msra.mxu1 %v12339_v21 }
 0x566   : > { %11307 = vmatprep.subr.bf16.mxu1 %v12340_v4  ;;  %11414 = vmatpush3.bf16.msra.mxu0 %v12351_v6 }
 0x567   : > { %11415 = vmatprep.subr.bf16.mxu0 %v12352_v24 }
 0x569   : > { %11308 = vmatpush3.bf16.msra.mxu1 %v12341_v15 }
 0x56a   : > { %11309 = vmatprep.subr.bf16.mxu1 %v12343_v62  ;;  %11416 = vmatpush3.bf16.msra.mxu0 %v12353_v48 }
 0x56d   : > { %11310 = vmatpush3.bf16.msra.mxu1 %v12345_v16 }
 0x56e   : > { %11311 = vmatprep.subr.bf16.mxu1 %v12346_v25 }
 0x571   : > { %11312 = vmatpush3.bf16.msra.mxu1 %v12347_v8 }
 0x627   : > { %v5316_v50 = vpop.f32.mrb[150].mxu1 }
 0x628   : > { %v11846_v19 = vpop.f32.mrb[151].mxu1  ;;  %v5323_v21 = vrot.slane %v5316_v50, %v14802_v0 }
 0x62a   : > { %v5324_v17 = vmul.f32 %v5323_v21, %v14809_v61  ;;  %v5325_v45 = vmul.f32 %v5323_v21, %v14813_v26  ;;  %v5326_v4 = vmul.f32 %v5323_v21, %v14817_v22  ;;  %v5327_v40 = vmul.f32 %v5323_v21, %v14825_v44 }
 0x62b   : > { %v5328_v15 = vmul.f32 %v5323_v21, %v14829_v37  ;;  %v5329_v62 = vmul.f32 %v5323_v21, %v14835_v58  ;;  %v5330_v16 = vmul.f32 %v5323_v21, %v14841_v32  ;;  %v5331_v41 = vmul.f32 %v5323_v21, %v14847_v23  ;;  %v15067_v23 = vld [vmem:[%s17124_s3] ss:$0 sm:$0xff] }
 0x62c   : > { %v5332_v13 = vmul.f32 %v5323_v21, %v14853_v36  ;;  %v5333_v25 = vmul.f32 %v5323_v21, %v14859_v63  ;;  %v5334_v61 = vmul.f32 %v5323_v21, %v14865_v18  ;;  %v5335_v26 = vmul.f32 %v5323_v21, %v14871_v20 }
 0x62d   : > { %v5336_v22 = vmul.f32 %v5323_v21, %v14877_v14  ;;  %v5337_v44 = vmul.f32 %v5323_v21, %v14883_v39  ;;  %v5338_v37 = vmul.f32 %v5323_v21, %v14889_v30  ;;  %v5339_v58 = vmul.f32 %v5323_v21, %v14895_v1 }
 0x62e   : > { %v5340_v32 = vmul.f32 %v5323_v21, %v14901_v49  ;;  %v5341_v36 = vmul.f32 %v5323_v21, %v14907_v55  ;;  %v5342_v63 = vmul.f32 %v5323_v21, %v14913_v47  ;;  %v5343_v18 = vmul.f32 %v5323_v21, %v14919_v3 }
 0x62f   : > { %v5344_v20 = vmul.f32 %v5323_v21, %v14925_v5  ;;  %v5345_v14 = vmul.f32 %v5323_v21, %v14931_v28  ;;  %v5346_v39 = vmul.f32 %v5323_v21, %v14937_v35  ;;  %v5347_v30 = vmul.f32 %v5323_v21, %v14943_v43 }
 0x630   : > { %v5348_v1 = vmul.f32 %v5323_v21, %v14949_v42  ;;  %v5349_v49 = vmul.f32 %v5323_v21, %v14955_v29  ;;  %v5350_v8 = vmul.f32 %v5323_v21, %v14961_v59  ;;  %v5351_v55 = vmul.f32 %v5323_v21, %v14967_v34  ;;  %v15092_v34 = vld [vmem:[%s17125_s4] ss:$0 sm:$0xff] }
 0x631   : > { %v5352_v47 = vmul.f32 %v5323_v21, %v14973_v2  ;;  %v5353_v3 = vmul.f32 %v5323_v21, %v14979_v33  ;;  %v5354_v5 = vmul.f32 %v5323_v21, %v14985_v56  ;;  %v5355_v28 = vmul.f32 %v5323_v21, %v14991_v54 }
 0x632   : > { %v5362_v35 = vmul.f32 %v15067_v23, %v5324_v17  ;;  %v5363_v43 = vmul.f32 %v15067_v23, %v5325_v45  ;;  %v5364_v42 = vmul.f32 %v15067_v23, %v5326_v4  ;;  %v5365_v29 = vmul.f32 %v15067_v23, %v5327_v40  ;;  %v12354_v40 = vld [vmem:[#allocation5 + $0x160] sm:$0xff]  }
 0x633   : > { %v5366_v59 = vmul.f32 %v15067_v23, %v5328_v15  ;;  %v5367_v2 = vmul.f32 %v15067_v23, %v5329_v62  ;;  %v5368_v33 = vmul.f32 %v15067_v23, %v5330_v16  ;;  %v5369_v56 = vmul.f32 %v15067_v23, %v5331_v41  ;;  %v12355_v15 = vld [vmem:[#allocation5 + $0x1c0] sm:$0xff]   ;;  %11417 = vmatprep.subr.bf16.mxu0 %v12354_v40 }
 0x634   : > { %v5370_v54 = vmul.f32 %v15067_v23, %v5332_v13  ;;  %v5371_v38 = vmul.f32 %v15067_v23, %v5333_v25  ;;  %v5372_v52 = vmul.f32 %v15067_v23, %v5334_v61  ;;  %v5373_v31 = vmul.f32 %v15067_v23, %v5335_v26  ;;  %11521 = vmatprep.subr.bf16.mxu1 %v12355_v15 }
 0x635   : > { %v5374_v6 = vmul.f32 %v15067_v23, %v5336_v22  ;;  %v5375_v50 = vmul.f32 %v15067_v23, %v5337_v44  ;;  %v5376_v19 = vmul.f32 %v15067_v23, %v5338_v37  ;;  %v5377_v21 = vmul.f32 %v15067_v23, %v5339_v58  ;;  %v12356_v22 = vld [vmem:[#allocation5 + $0x120] sm:$0xff]  }
 0x636   : > { %v5378_v24 = vmul.f32 %v15067_v23, %v5340_v32  ;;  %v15107_v48 = vmul.f32 %v15067_v23, %v5341_v36  ;;  %v15110_v17 = vadd.f32 %v15092_v34, %v5362_v35  ;;  %v15113_v45 = vadd.f32 %v15092_v34, %v5363_v43  ;;  %11418 = vmatpush3.bf16.msra.mxu0 %v12356_v22 }
 0x637   : > { %v15116_v4 = vadd.f32 %v15092_v34, %v5364_v42  ;;  %v15119_v62 = vmul.f32 %v15067_v23, %v5342_v63  ;;  %v15122_v16 = vmul.f32 %v15067_v23, %v5343_v18  ;;  %v15125_v41 = vmul.f32 %v15067_v23, %v5344_v20 }
 0x638   : > { %v15128_v13 = vadd.f32 %v15092_v34, %v5365_v29  ;;  %v15131_v25 = vmul.f32 %v15067_v23, %v5345_v14  ;;  %v15134_v61 = vmul.f32 %v15067_v23, %v5346_v39  ;;  %v15137_v26 = vadd.f32 %v15092_v34, %v5366_v59 }
 0x639   : > { %v15140_v44 = vmul.f32 %v15067_v23, %v5347_v30  ;;  %v15143_v37 = vmul.f32 %v15067_v23, %v5348_v1  ;;  %v15146_v58 = vadd.f32 %v15092_v34, %v5367_v2  ;;  %v15149_v32 = vadd.f32 %v15092_v34, %v5368_v33 }
 0x63a   : > { %v15152_v36 = vmul.f32 %v15067_v23, %v5349_v49  ;;  %v5432_v63 = vsub.f32 0.0, %v15110_v17  ;;  %v5433_v18 = vsub.f32 0.0, %v15113_v45  ;;  %v5434_v20 = vsub.f32 0.0, %v15116_v4 }
 0x63b   : > { %v15158_v14 = vmul.f32 %v15067_v23, %v5350_v8  ;;  %v15161_v39 = vmul.f32 %v15067_v23, %v5351_v55  ;;  %v15164_v30 = vadd.f32 %v15092_v34, %v5369_v56  ;;  %v5435_v1 = vsub.f32 0.0, %v15128_v13 }
 0x63c   : > { %v15168_v49 = vmul.f32 %v15067_v23, %v5352_v47  ;;  %v15171_v35 = vmul.f32 %v15067_v23, %v5353_v3  ;;  %v15174_v43 = vadd.f32 %v15092_v34, %v5370_v54  ;;  %v5436_v8 = vsub.f32 0.0, %v15137_v26 }
 0x63d   : > { %v15178_v42 = vmul.f32 %v15067_v23, %v5354_v5  ;;  %v15181_v55 = vadd.f32 %v15092_v34, %v5371_v38  ;;  %v5437_v29 = vsub.f32 0.0, %v15146_v58  ;;  %v5438_v59 = vsub.f32 0.0, %v15149_v32 }
 0x63e   : > { %v15186_v47 = vadd.f32 %v15092_v34, %v5372_v52  ;;  %v5464_v3 = vmul.f32 1.442695, %v5432_v63  ;;  %v5466_v2 = vmul.f32 1.442695, %v5433_v18  ;;  %v5468_v33 = vmul.f32 1.442695, %v5434_v20 }
 0x63f   : > { %v15189_v56 = vmul.f32 %v15067_v23, %v5355_v28  ;;  %v15192_v54 = vadd.f32 %v15092_v34, %v5373_v31  ;;  %v5439_v5 = vsub.f32 0.0, %v15164_v30  ;;  %v5470_v38 = vmul.f32 1.442695, %v5435_v1 }
 0x640   : > { %v15196_v40 = vadd.f32 %v15092_v34, %v5374_v6  ;;  %v5440_v15 = vsub.f32 0.0, %v15174_v43  ;;  %12396 = vpow2.f32 %v5464_v3  ;;  %v5472_v52 = vmul.f32 1.442695, %v5436_v8 }
 0x641   : > { %v15200_v22 = vadd.f32 %v15092_v34, %v5375_v50  ;;  %v5441_v63 = vsub.f32 0.0, %v15181_v55  ;;  %12398 = vpow2.f32 %v5466_v2  ;;  %v5474_v23 = vmul.f32 1.442695, %v5437_v29 }
 0x642   : > { %v15204_v28 = vadd.f32 %v15092_v34, %v5376_v19  ;;  %v5442_v31 = vsub.f32 0.0, %v15186_v47  ;;  %12400 = vpow2.f32 %v5468_v33  ;;  %v5476_v18 = vmul.f32 1.442695, %v5438_v59 }
 0x643   : > { %v15208_v6 = vadd.f32 %v15092_v34, %v5377_v21  ;;  %v5443_v20 = vsub.f32 0.0, %v15192_v54  ;;  %12402 = vpow2.f32 %v5470_v38  ;;  %v5478_v1 = vmul.f32 1.442695, %v5439_v5 }
 0x644   : > { %v15212_v50 = vadd.f32 %v15092_v34, %v5378_v24  ;;  %v5444_v8 = vsub.f32 0.0, %v15196_v40  ;;  %12404 = vpow2.f32 %v5472_v52  ;;  %v5480_v29 = vmul.f32 1.442695, %v5440_v15  ;;  %v12358_v52 = vld [vmem:[#allocation5 + $0x168] sm:$0xff]  }
 0x645   : > { %v15217_v19 = vadd.f32 %v15092_v34, %v15107_v48  ;;  %v5445_v59 = vsub.f32 0.0, %v15200_v22  ;;  %12406 = vpow2.f32 %v5474_v23  ;;  %v5482_v21 = vmul.f32 1.442695, %v5441_v63  ;;  %11419 = vmatprep.subr.bf16.mxu0 %v12358_v52 }
 0x646   : > { %v15222_v3 = vadd.f32 %v15092_v34, %v15119_v62  ;;  %v5446_v2 = vsub.f32 0.0, %v15204_v28  ;;  %12408 = vpow2.f32 %v5476_v18  ;;  %v5484_v24 = vmul.f32 1.442695, %v5442_v31  ;;  %v12360_v31 = vld [vmem:[#allocation5 + $0x128] sm:$0xff]  }
 0x647   : > { %v15227_v33 = vadd.f32 %v15092_v34, %v15122_v16  ;;  %v5447_v5 = vsub.f32 0.0, %v15208_v6  ;;  %12410 = vpow2.f32 %v5478_v1  ;;  %v5486_v48 = vmul.f32 1.442695, %v5443_v20  ;;  %11420 = vmatpush3.bf16.msra.mxu0 %v12360_v31 }
 0x648   : > { %v15232_v38 = vadd.f32 %v15092_v34, %v15125_v41  ;;  %v5448_v15 = vsub.f32 0.0, %v15212_v50  ;;  %12412 = vpow2.f32 %v5480_v29  ;;  %v5488_v62 = vmul.f32 1.442695, %v5444_v8 }
 0x649   : > { %v15237_v63 = vadd.f32 %v15092_v34, %v15131_v25  ;;  %v5449_v16 = vsub.f32 0.0, %v15217_v19  ;;  %12414 = vpow2.f32 %v5482_v21  ;;  %v5490_v23 = vmul.f32 1.442695, %v5445_v59 }
 0x64a   : > { %v15240_v18 = vpop.eup %12396  ;;  %v15244_v41 = vadd.f32 %v15092_v34, %v15134_v61  ;;  %v5450_v20 = vsub.f32 0.0, %v15222_v3  ;;  %12416 = vpow2.f32 %v5484_v24  ;;  %v5492_v1 = vmul.f32 1.442695, %v5446_v2 }
 0x64b   : > { %v15247_v8 = vpop.eup %12398  ;;  %v15251_v25 = vadd.f32 %v15092_v34, %v15140_v44  ;;  %v5451_v29 = vsub.f32 0.0, %v15227_v33  ;;  %12418 = vpow2.f32 %v5486_v48  ;;  %v5494_v59 = vmul.f32 1.442695, %v5447_v5 }
 0x64c   : > { %17292 = vst [vmem:[#allocation29_spill] sm:$0xff] %v15244_v41  ;;  %v15254_v21 = vpop.eup %12400  ;;  %v15258_v61 = vadd.f32 %v15092_v34, %v15143_v37  ;;  %v5452_v2 = vsub.f32 0.0, %v15232_v38  ;;  %12420 = vpow2.f32 %v5488_v62  ;;  %v5496_v24 = vmul.f32 1.442695, %v5448_v15 }
 0x64d   : > { %17293 = vst [vmem:[#allocation46_spill] sm:$0xff] %v15251_v25  ;;  %v15261_v52 = vpop.eup %12402  ;;  %v15265_v44 = vadd.f32 %v15092_v34, %v15152_v36  ;;  %v5453_v48 = vsub.f32 0.0, %v15237_v63  ;;  %12422 = vpow2.f32 %v5490_v23  ;;  %v5498_v5 = vmul.f32 1.442695, %v5449_v16 }
 0x64e   : > { %17294 = vst [vmem:[#allocation30_spill] sm:$0xff] %v15258_v61  ;;  %v15268_v31 = vpop.eup %12404  ;;  %v15272_v37 = vadd.f32 %v15092_v34, %v15158_v14  ;;  %v5454_v9 = vsub.f32 0.0, %v15244_v41  ;;  %12424 = vpow2.f32 %v5492_v1  ;;  %v5500_v15 = vmul.f32 1.442695, %v5450_v20 }
 0x64f   : > { %17295 = vst [vmem:[#allocation47_spill] sm:$0xff] %v15265_v44  ;;  %v15275_v62 = vpop.eup %12406  ;;  %v15279_v36 = vadd.f32 %v15092_v34, %v15161_v39  ;;  %v5455_v57 = vsub.f32 0.0, %v15251_v25  ;;  %12426 = vpow2.f32 %v5494_v59  ;;  %v5502_v16 = vmul.f32 1.442695, %v5451_v29 }
 0x650   : > { %17296 = vst [vmem:[#allocation32_spill] sm:$0xff] %v15272_v37  ;;  %v15282_v23 = vpop.eup %12408  ;;  %v15286_v14 = vadd.f32 %v15092_v34, %v15168_v49  ;;  %v5456_v0 = vsub.f32 0.0, %v15258_v61  ;;  %12428 = vpow2.f32 %v5496_v24  ;;  %v5504_v20 = vmul.f32 1.442695, %v5452_v2 }
 0x651   : > { %17297 = vst [vmem:[#allocation49_spill] sm:$0xff] %v15279_v36  ;;  %v15289_v1 = vpop.eup %12410  ;;  %v15293_v39 = vadd.f32 %v15092_v34, %v15171_v35  ;;  %v5457_v12 = vsub.f32 0.0, %v15265_v44  ;;  %12430 = vpow2.f32 %v5498_v5  ;;  %v5506_v29 = vmul.f32 1.442695, %v5453_v48  ;;  %v6286_v44 = vld [vmem:[#allocation2 + $0x48] sm:$0x80] }
 0x652   : > { %17298 = vst [vmem:[#allocation33_spill] sm:$0xff] %v15286_v14  ;;  %v15296_v59 = vpop.eup %12412  ;;  %v15300_v49 = vadd.f32 %v15092_v34, %v15178_v42  ;;  %v5458_v10 = vsub.f32 0.0, %v15272_v37  ;;  %12432 = vpow2.f32 %v5500_v15  ;;  %v5508_v2 = vmul.f32 1.442695, %v5454_v9  ;;  %v6028_v37 = vld [vmem:[#allocation2 + $0x28] sm:$0x1] }
 0x653   : > { %17299 = vst [vmem:[#allocation35_spill] sm:$0xff] %v15293_v39  ;;  %v15303_v24 = vpop.eup %12414  ;;  %v15307_v35 = vadd.f32 %v15092_v34, %v15189_v56  ;;  %v5459_v7 = vsub.f32 0.0, %v15279_v36  ;;  %12434 = vpow2.f32 %v5502_v16  ;;  %v5510_v48 = vmul.f32 1.442695, %v5455_v57  ;;  %v12362_v16 = vld [vmem:[#allocation5 + $0x170] sm:$0xff]  }
 0x654   : > { %17300 = vst [vmem:[#allocation36_spill] sm:$0xff] %v15300_v49  ;;  %v15310_v5 = vpop.eup %12416  ;;  %v5460_v11 = vsub.f32 0.0, %v15286_v14  ;;  %12436 = vpow2.f32 %v5504_v20  ;;  %v5512_v42 = vmul.f32 1.442695, %v5456_v0  ;;  %v5461_v9 = vsub.f32 0.0, %v15293_v39  ;;  %11421 = vmatprep.subr.bf16.mxu0 %v12362_v16 }
 0x655   : > { %17301 = vst [vmem:[#allocation37_spill] sm:$0xff] %v15307_v35  ;;  %v15313_v46 = vpop.eup %12418  ;;  %12438 = vpow2.f32 %v5506_v29  ;;  %v5514_v15 = vmul.f32 1.442695, %v5457_v12  ;;  %v5462_v34 = vsub.f32 0.0, %v15300_v49  ;;  %v5516_v56 = vmul.f32 1.442695, %v5458_v10 }
 0x656   : > { %v15316_v60 = vpop.eup %12420  ;;  %12440 = vpow2.f32 %v5508_v2  ;;  %v5463_v53 = vsub.f32 0.0, %v15307_v35  ;;  %v5518_v20 = vmul.f32 1.442695, %v5459_v7  ;;  %v5520_v51 = vmul.f32 1.442695, %v5460_v11  ;;  %v12364_v12 = vld [vmem:[#allocation5 + $0x130] sm:$0xff]  }
 0x657   : > { %v15319_v57 = vpop.eup %12422  ;;  %12442 = vpow2.f32 %v5510_v48  ;;  %v6026_v39 = vld [vmem:[#allocation2 + $0x10] sm:$0x1]  ;;  %v5522_v49 = vmul.f32 1.442695, %v5461_v9  ;;  %v5524_v10 = vmul.f32 1.442695, %v5462_v34  ;;  %11422 = vmatpush3.bf16.msra.mxu0 %v12364_v12 }
 0x658   : > { %v15322_v0 = vpop.eup %12424  ;;  %12444 = vpow2.f32 %v5512_v42  ;;  %v5738_v14 = vld [vmem:[#allocation2 + $0x18] sm:$0x80]  ;;  %v5526_v7 = vmul.f32 1.442695, %v5463_v53  ;;  %v6066_v42 = vshll.u32 %v6026_v39, 16  ;;  %v5528_v16 = vadd.f32 1.0, %v15240_v18 }
 0x659   : > { %v15324_v29 = vpop.eup %12426  ;;  %12446 = vpow2.f32 %v5514_v15  ;;  %v6282_v36 = vld [vmem:[#allocation2 + $0x18] sm:$0x80]  ;;  %v6284_v11 = vld [vmem:[#allocation2 + $0x30] sm:$0x80]  ;;  %v5529_v34 = vadd.f32 1.0, %v15247_v8  ;;  %v5530_v53 = vadd.f32 1.0, %v15254_v21 }
 0x65a   : > { %v15326_v2 = vpop.eup %12428  ;;  %12448 = vpow2.f32 %v5516_v56  ;;  %v5740_v15 = vld [vmem:[#allocation2 + $0x30] sm:$0x80]  ;;  %v5782_v56 = vshrl.u32 %v5738_v14, 16  ;;  %v6315_v39 = vshrl.u32 %v6282_v36, 16  ;;  %v6068_v18 = vrot.slane %v6066_v42, 1 }
 0x65b   : > { %v15328_v48 = vpop.eup %12430  ;;  %12450 = vpow2.f32 %v5518_v20  ;;  %v6327_v20 = vshrl.u32 %v6284_v11, 16  ;;  %v5794_v25 = vshrl.u32 %v5740_v15, 16  ;;  %v5532_v8 = vadd.f32 1.0, %v15268_v31  ;;  %v15346_v11 = vld [vmem:[#allocation2 + $0x48] sm:$0x80] }
 0x65c   : > { %v15330_v35 = vpop.eup %12432  ;;  %12452 = vpow2.f32 %v5520_v51  ;;  %v5531_v51 = vadd.f32 1.0, %v15261_v52  ;;  %v6078_v14 = vshll.u32 %v6028_v37, 16  ;;  %v15344_v21 = vrot.slane %v5782_v56, 7  ;;  %v15353_v31 = vld [vmem:[#allocation2 + $0x40] sm:$0x1] }
 0x65d   : > { %v15333_v9 = vpop.eup %12434  ;;  %12454 = vpow2.f32 %v5522_v49  ;;  %v6339_v36 = vshrl.u32 %v6286_v44, 16  ;;  %v5534_v52 = vadd.f32 1.0, %v15282_v23  ;;  %v15349_v42 = vrot.slane %v6315_v39, 7  ;;  %17302 = vst [vmem:[#allocation38_spill] sm:$0xff] %v15353_v31 }
 0x65e   : > { %v15336_v12 = vpop.eup %12436  ;;  %12456 = vpow2.f32 %v5524_v10  ;;  %v5533_v10 = vadd.f32 1.0, %v15275_v62  ;;  %v15351_v15 = vrot.slane %v6327_v20, 7  ;;  %v15358_v62 = vsel %vm6057_vm9, %v15044_v27, %v6068_v18 }
 0x65f   : > { %v15339_v61 = vpop.eup %12438  ;;  %12458 = vpow2.f32 %v5526_v7  ;;  %v15360_v44 = vrot.slane %v5794_v25, 7  ;;  %v5536_v56 = vadd.f32 1.0, %v15296_v59  ;;  %v5538_v18 = vadd.f32 1.0, %v15310_v5  ;;  %v12368_v59 = vld [vmem:[#allocation5 + $0x138] sm:$0xff]  }
 0x660   : > { %v12441_v49 = vpop.eup %12440  ;;  %12460 = vrcp.f32 %v5528_v16  ;;  %v5535_v16 = vadd.f32 1.0, %v15289_v1  ;;  %v5537_v1 = vadd.f32 1.0, %v15303_v24  ;;  %v5540_v24 = vadd.f32 1.0, %v15316_v60 }
 0x661   : > { %v12443_v41 = vpop.eup %12442  ;;  %12462 = vrcp.f32 %v5529_v34  ;;  %17303 = vst [vmem:[#allocation51_spill] sm:$0xff] %v15360_v44  ;;  %v15362_v34 = vld [vmem:[#allocation2 + $0x60] sm:$0x80]  ;;  %v5539_v44 = vadd.f32 1.0, %v15313_v46  ;;  %v5543_v5 = vadd.f32 1.0, %v15324_v29  ;;  %v5544_v46 = vadd.f32 1.0, %v15326_v2 }
 0x662   : > { %v12445_v7 = vpop.eup %12444  ;;  %12464 = vrcp.f32 %v5530_v53  ;;  %17304 = vst [vmem:[#allocation52_spill] sm:$0xff] %v15362_v34  ;;  %v15365_v53 = vrot.slane %v6078_v14, 1  ;;  %v5546_v34 = vadd.f32 1.0, %v15330_v35  ;;  %v5547_v60 = vadd.f32 1.0, %v15333_v9 }
 0x663   : > { %v12447_v37 = vpop.eup %12446  ;;  %12466 = vrcp.f32 %v5531_v51  ;;  %v15369_v51 = vrot.slane %v6339_v36, 7  ;;  %v5542_v36 = vadd.f32 1.0, %v15322_v0  ;;  %v5549_v29 = vadd.f32 1.0, %v15339_v61 }
 0x664   : > { %v12449_v23 = vpop.eup %12448  ;;  %12468 = vrcp.f32 %v5532_v8  ;;  %v12366_v8 = vld [vmem:[#allocation5 + $0x178] sm:$0xff]   ;;  %v5550_v31 = vadd.f32 1.0, %v12441_v49  ;;  %v15391_v2 = vadd.f32 1.0, %v12443_v41 }
 0x665   : > { %v12451_v20 = vpop.eup %12450  ;;  %12470 = vrcp.f32 %v5533_v10  ;;  %v5541_v10 = vadd.f32 1.0, %v15319_v57  ;;  %11423 = vmatprep.subr.bf16.mxu0 %v12366_v8  ;;  %v5548_v57 = vadd.f32 1.0, %v15336_v12  ;;  %v15395_v8 = vadd.f32 1.0, %v12447_v37 }
 0x666   : > { %v12453_v25 = vpop.eup %12452  ;;  %12472 = vrcp.f32 %v5534_v52  ;;  %v5545_v52 = vadd.f32 1.0, %v15328_v48  ;;  %11424 = vmatpush3.bf16.msra.mxu0 %v12368_v59  ;;  %v15398_v12 = vadd.f32 1.0, %v12449_v23 }
 0x667   : > { %v12455_v14 = vpop.eup %12454  ;;  %12474 = vrcp.f32 %v5535_v16  ;;  %v15388_v16 = vld [vmem:[%s494_s24] ss:$0 sm:$0xff]  ;;  %v15403_v49 = vadd.f32 1.0, %v12453_v25  ;;  %s17071_s24 = scalar_lea.hbm %s17135_s14, %s10674_s21 }
 0x668   : > { %v12457_v27 = vpop.eup %12456  ;;  %12476 = vrcp.f32 %v5536_v56  ;;  %v15393_v56 = vadd.f32 1.0, %v12445_v7 }
 0x669   : > { %v12459_v39 = vpop.eup %12458  ;;  %12478 = vrcp.f32 %v5537_v1  ;;  %v15400_v1 = vadd.f32 1.0, %v12451_v20  ;;  %v15411_v59 = vadd.f32 1.0, %v12457_v27 }
 0x66a   : > { %v12461_v0 = vpop.eup %12460  ;;  %12480 = vrcp.f32 %v5538_v18 }
 0x66b   : > { %v12463_v48 = vpop.eup %12462  ;;  %12482 = vrcp.f32 %v5539_v44  ;;  %v5592_v35 = vmul.f32 %v12461_v0, %v15110_v17  ;;  %v15407_v44 = vadd.f32 1.0, %v12455_v14 }
 0x66c   : > { %v12465_v9 = vpop.eup %12464  ;;  %12484 = vrcp.f32 %v5540_v24  ;;  %v5593_v61 = vmul.f32 %v12463_v48, %v15113_v45 }
 0x66d   : > { %v12467_v41 = vpop.eup %12466  ;;  %12486 = vrcp.f32 %v5541_v10  ;;  %v5594_v7 = vmul.f32 %v12465_v9, %v15116_v4  ;;  %v5631_v37 = vadd.f32 %v15388_v16, %v5592_v35 }
 0x66e   : > { %v12469_v18 = vpop.eup %12468  ;;  %12488 = vrcp.f32 %v5542_v36  ;;  %v5595_v17 = vmul.f32 %v12467_v41, %v15128_v13  ;;  %v5632_v23 = vadd.f32 %v15388_v16, %v5593_v61  ;;  %v15419_v13 = vadd.f32 1.0, %v12459_v39 }
 0x66f   : > { %v12471_v20 = vpop.eup %12470  ;;  %12490 = vrcp.f32 %v5543_v5  ;;  %v5596_v45 = vmul.f32 %v12469_v18, %v15137_v26  ;;  %v5633_v25 = vadd.f32 %v15388_v16, %v5594_v7  ;;  %v12374_v18 = vld [vmem:[#allocation5 + $0x200] sm:$0xff]  }
 0x670   : > { %v12473_v24 = vpop.eup %12472  ;;  %12492 = vrcp.f32 %v5544_v46  ;;  %v5597_v4 = vmul.f32 %v12471_v20, %v15146_v58  ;;  %v5634_v14 = vadd.f32 %v15388_v16, %v5595_v17  ;;  %v15417_v10 = vpack.c.bf16 %v5632_v23, %v5631_v37  ;;  %11847 = vmatprep.subr.bf16.mxu0 %v12374_v18 }
 0x671   : > { %v12475_v36 = vpop.eup %12474  ;;  %12494 = vrcp.f32 %v5545_v52  ;;  %v5598_v27 = vmul.f32 %v12473_v24, %v15149_v32  ;;  %v5635_v5 = vadd.f32 %v15388_v16, %v5596_v45 }
 0x672   : > { %v12477_v0 = vpop.eup %12476  ;;  %12496 = vrcp.f32 %v5546_v34  ;;  %v5599_v26 = vmul.f32 %v12475_v36, %v15164_v30  ;;  %v5636_v46 = vadd.f32 %v15388_v16, %v5597_v4  ;;  %v15425_v48 = vpack.c.bf16 %v5634_v14, %v5633_v25  ;;  %5719 = vst [vmem:[#allocation2 + $0x20] sm:$0xff] %v15417_v10  ;;  %8137 = vmatprep.mubr.bf16.mxu0 %v15417_v10 }
 0x673   : > { %v12479_v58 = vpop.eup %12478  ;;  %12498 = vrcp.f32 %v5547_v60  ;;  %v5600_v39 = vmul.f32 %v12477_v0, %v15174_v43  ;;  %v5637_v32 = vadd.f32 %v15388_v16, %v5598_v27  ;;  %v5786_v52 = vshrl.u32 %v15417_v10, 16 }
 0x674   : > { %v12481_v35 = vpop.eup %12480  ;;  %12500 = vrcp.f32 %v5548_v57  ;;  %v5601_v30 = vmul.f32 %v12479_v58, %v15181_v55  ;;  %v5638_v34 = vadd.f32 %v15388_v16, %v5599_v26  ;;  %v15434_v9 = vpack.c.bf16 %v5636_v46, %v5635_v5  ;;  %5720 = vst [vmem:[#allocation2 + $0x38] sm:$0xff] %v15425_v48 }
 0x675   : > { %v12483_v61 = vpop.eup %12482  ;;  %12502 = vrcp.f32 %v5549_v29  ;;  %v5602_v60 = vmul.f32 %v12481_v35, %v15186_v47  ;;  %v5639_v43 = vadd.f32 %v15388_v16, %v5600_v39  ;;  %v5788_v41 = vrot.slane %v5786_v52, 7 }
 0x676   : > { %v12485_v7 = vpop.eup %12484  ;;  %12504 = vrcp.f32 %v5550_v31  ;;  %v5603_v57 = vmul.f32 %v12483_v61, %v15192_v54  ;;  %v5640_v55 = vadd.f32 %v15388_v16, %v5601_v30  ;;  %v15443_v37 = vpack.c.bf16 %v5638_v34, %v5637_v32  ;;  %5721 = vst [vmem:[#allocation2 + $0x50] sm:$0xff] %v15434_v9 }
 0x677   : > { %v12487_v17 = vpop.eup %12486  ;;  %12506 = vrcp.f32 %v15391_v2  ;;  %v5604_v47 = vmul.f32 %v12485_v7, %v15196_v40  ;;  %v5641_v29 = vadd.f32 %v15388_v16, %v5602_v60  ;;  %v5789_v23 = vshll.u32 %v15417_v10, 16  ;;  %v17305_v60 = vld [vmem:[#allocation29_spill] sm:$0xff] }
 0x678   : > { %v12489_v20 = vpop.eup %12488  ;;  %12508 = vrcp.f32 %v15393_v56  ;;  %v5605_v54 = vmul.f32 %v12487_v17, %v15200_v22  ;;  %v5642_v31 = vadd.f32 %v15388_v16, %v5603_v57  ;;  %v15453_v45 = vpack.c.bf16 %v5640_v55, %v5639_v43  ;;  %5722 = vst [vmem:[#allocation2 + $0x68] sm:$0xff] %v15443_v37  ;;  %v12363_v7 = vld [vmem:[#allocation5 + $0x1d0] sm:$0xff]   ;;  %v17306_v55 = vld [vmem:[#allocation46_spill] sm:$0xff] }
 0x679   : > { %v12491_v25 = vpop.eup %12490  ;;  %12510 = vrcp.f32 %v15395_v8  ;;  %v5606_v40 = vmul.f32 %v12489_v20, %v15204_v28  ;;  %v5643_v2 = vadd.f32 %v15388_v16, %v5604_v47  ;;  %v5791_v24 = vor.u32 %v5789_v23, %v5788_v41 }
 0x67a   : > { %v12493_v56 = vpop.eup %12492  ;;  %12512 = vrcp.f32 %v15398_v12  ;;  %v5607_v22 = vmul.f32 %v12491_v25, %v15208_v6  ;;  %v5644_v4 = vadd.f32 %v15388_v16, %v5605_v54  ;;  %v15464_v14 = vpack.c.bf16 %v5642_v31, %v5641_v29  ;;  %5723 = vst [vmem:[#allocation2 + $0x80] sm:$0xff] %v15453_v45  ;;  %v17307_v54 = vld [vmem:[#allocation30_spill] sm:$0xff] }
 0x67b   : > { %v12495_v36 = vpop.eup %12494  ;;  %12514 = vrcp.f32 %v15400_v1  ;;  %v5608_v28 = vmul.f32 %v12493_v56, %v15212_v50  ;;  %v5645_v8 = vadd.f32 %v15388_v16, %v5606_v40  ;;  %v5792_v27 = vsel %vm5768_vm8, %v15344_v21, %v5791_v24  ;;  %v12357_v1 = vld [vmem:[#allocation5 + $0x180] sm:$0xff]  }
 0x67c   : > { %v12497_v5 = vpop.eup %12496  ;;  %12516 = vrcp.f32 %v15403_v49  ;;  %v5609_v6 = vmul.f32 %v12495_v36, %v15217_v19  ;;  %v5646_v12 = vadd.f32 %v15388_v16, %v5607_v22  ;;  %v15475_v0 = vpack.c.bf16 %v5644_v4, %v5643_v2  ;;  %5724 = vst [vmem:[#allocation2 + $0x98] sm:$0xff] %v15464_v14  ;;  %8138 = vmatmul.mubr.bf16.gmra.mrb[148].mxu0 %v5792_v27  ;;  %v12359_v19 = vld [vmem:[#allocation5 + $0x1c8] sm:$0xff]  }
 0x67d   : > { %v12499_v26 = vpop.eup %12498  ;;  %12518 = vrcp.f32 %v15407_v44  ;;  %v5610_v50 = vmul.f32 %v12497_v5, %v15222_v3  ;;  %v5647_v21 = vadd.f32 %v15388_v16, %v5608_v28  ;;  %v6325_v49 = vsel %vm5768_vm8, %v15349_v42, %v5791_v24  ;;  %8145 = vmatprep.mubr.bf16.mxu0 %v15425_v48  ;;  %v17308_v24 = vld [vmem:[#allocation47_spill] sm:$0xff] }
 0x67e   : > { %v12501_v46 = vpop.eup %12500  ;;  %12520 = vrcp.f32 %v15411_v59  ;;  %v5611_v58 = vmul.f32 %v12499_v26, %v15227_v33  ;;  %v5648_v39 = vadd.f32 %v15388_v16, %v5609_v6  ;;  %v15487_v32 = vpack.c.bf16 %v5646_v12, %v5645_v8  ;;  %5725 = vst [vmem:[#allocation2 + $0xb0] sm:$0xff] %v15475_v0  ;;  %8290 = vmatprep.mubr.bf16.mxu1 %v6325_v49  ;;  %v17309_v8 = vld [vmem:[#allocation32_spill] sm:$0xff]  ;;  %v12365_v12 = vld [vmem:[#allocation5 + $0x190] sm:$0xff]  }
 0x67f   : > { %v12503_v3 = vpop.eup %12502  ;;  %12522 = vrcp.f32 %v15419_v13  ;;  %v5612_v42 = vmul.f32 %v12501_v46, %v15232_v38  ;;  %v5649_v44 = vadd.f32 %v15388_v16, %v5610_v50  ;;  %8291 = vmatmul.mubr.bf16.vlgmr.msra.gmra.mrb[152].mxu1 %v15358_v62  ;;  %v6331_v59 = vshrl.u32 %v15425_v48, 16  ;;  %v12361_v13 = vld [vmem:[#allocation5 + $0x188] sm:$0xff]   ;;  %v17311_v26 = vld [vmem:[#allocation49_spill] sm:$0xff]  ;;  %v12367_v46 = vld [vmem:[#allocation5 + $0x1d8] sm:$0xff]  }
 0x680   : > { %v12505_v35 = vpop.eup %12504  ;;  %v5613_v33 = vmul.f32 %v12503_v3, %v15237_v63  ;;  %v5650_v30 = vadd.f32 %v15388_v16, %v5611_v58  ;;  %v15497_v34 = vpack.c.bf16 %v5648_v39, %v5647_v21  ;;  %5726 = vst [vmem:[#allocation2 + $0xc8] sm:$0xff] %v15487_v32  ;;  %v6334_v61 = vshll.u32 %v15425_v48, 16  ;;  %11522 = vmatpush3.bf16.msra.mxu1 %v12357_v1  ;;  %v17312_v39 = vld [vmem:[#allocation33_spill] sm:$0xff] }
 0x681   : > { %v12507_v38 = vpop.eup %12506  ;;  %v5614_v43 = vmul.f32 %v12505_v35, %v17305_v60  ;;  %v5651_v62 = vadd.f32 %v15388_v16, %v5612_v42  ;;  %v6333_v41 = vrot.slane %v6331_v59, 7  ;;  %v6075_v63 = vrot.slane %v5789_v23, 1  ;;  %11523 = vmatprep.subr.bf16.mxu1 %v12359_v19 }
 0x682   : > { %v12509_v57 = vpop.eup %12508  ;;  %v5615_v18 = vmul.f32 %v12507_v38, %v17306_v55  ;;  %v5652_v17 = vadd.f32 %v15388_v16, %v5613_v33  ;;  %v15509_v47 = vpack.c.bf16 %v5650_v30, %v5649_v44  ;;  %5727 = vst [vmem:[#allocation2 + $0xe0] sm:$0xff] %v15497_v34  ;;  %v6343_v29 = vshrl.u32 %v15434_v9, 16  ;;  %v17313_v33 = vld [vmem:[#allocation35_spill] sm:$0xff]  ;;  %v17316_v55 = vld [vmem:[#allocation37_spill] sm:$0xff] }
 0x683   : > { %v12511_v20 = vpop.eup %12510  ;;  %v5616_v31 = vmul.f32 %v12509_v57, %v17307_v54  ;;  %v5653_v25 = vadd.f32 %v15388_v16, %v5614_v43  ;;  %v6336_v40 = vor.u32 %v6334_v61, %v6333_v41  ;;  %v6076_v23 = vor.u32 %v6075_v63, %v5786_v52  ;;  %v17310_v52 = vld [vmem:[#allocation51_spill] sm:$0xff] }
 0x684   : > { %v12513_v2 = vpop.eup %12512  ;;  %v5617_v56 = vmul.f32 %v12511_v20, %v17308_v24  ;;  %v5654_v22 = vadd.f32 %v15388_v16, %v5615_v18  ;;  %v5713_v4 = vpack.c.bf16 %v5652_v17, %v5651_v62  ;;  %5728 = vst [vmem:[#allocation2 + $0xf8] sm:$0xff] %v15509_v47  ;;  %v6345_v36 = vrot.slane %v6343_v29, 7  ;;  %11524 = vmatpush3.bf16.msra.mxu1 %v12361_v13  ;;  %v17314_v62 = vld [vmem:[#allocation36_spill] sm:$0xff] }
 0x685   : > { %v12515_v28 = vpop.eup %12514  ;;  %v5618_v27 = vmul.f32 %v12513_v2, %v17309_v8  ;;  %v5655_v5 = vadd.f32 %v15388_v16, %v5616_v31  ;;  %v6337_v10 = vsel %vm5768_vm8, %v15351_v15, %v6336_v40  ;;  %v5804_v6 = vsel %vm5768_vm8, %v17310_v52, %v6336_v40  ;;  %11525 = vmatprep.subr.bf16.mxu1 %v12363_v7  ;;  %v5744_v31 = vld [vmem:[#allocation2 + $0x60] sm:$0x80]  ;;  %v12371_v52 = vld [vmem:[#allocation5 + $0x1a0] sm:$0xff]  }
 0x686   : > { %v12517_v1 = vpop.eup %12516  ;;  %v5619_v50 = vmul.f32 %v12515_v28, %v17311_v26  ;;  %v5656_v21 = vadd.f32 %v15388_v16, %v5617_v56  ;;  %v5714_v49 = vpack.c.bf16 %v5654_v22, %v5653_v25  ;;  %5729 = vst [vmem:[#allocation2 + $0x110] sm:$0xff] %v5713_v4  ;;  %8298 = vmatprep.mubr.bf16.mxu1 %v6337_v10  ;;  %v6346_v19 = vshll.u32 %v15434_v9, 16  ;;  %v12370_v25 = vld [vmem:[#allocation5 + $0x1e0] sm:$0xff]  }
 0x687   : > { %8146 = vmatmul.mubr.bf16.gmra.mrb[152].mxu0 %v5804_v6  ;;  %v12519_v58 = vpop.eup %12518  ;;  %v5620_v15 = vmul.f32 %v12517_v1, %v17312_v39  ;;  %v5657_v3 = vadd.f32 %v15388_v16, %v5618_v27  ;;  %v6081_v42 = vsel %vm6057_vm9, %v6076_v23, %v15365_v53  ;;  %v6087_v44 = vrot.slane %v6334_v61, 1  ;;  %v12369_v61 = vld [vmem:[#allocation5 + $0x198] sm:$0xff]   ;;  %v6032_v27 = vld [vmem:[#allocation2 + $0x58] sm:$0x1] }
 0x688   : > { %8153 = vmatprep.mubr.bf16.mxu0 %v15434_v9  ;;  %v12521_v35 = vpop.eup %12520  ;;  %v5621_v30 = vmul.f32 %v12519_v58, %v17313_v33  ;;  %v5658_v13 = vadd.f32 %v15388_v16, %v5619_v50  ;;  %v5715_v38 = vpack.c.bf16 %v5656_v21, %v5655_v5  ;;  %5730 = vst [vmem:[#allocation2 + $0x128] sm:$0xff] %v5714_v49  ;;  %v17315_v7 = vshrl.u32 %v15346_v11, 16  ;;  %v17317_v23 = vld [vmem:[#allocation38_spill] sm:$0xff]  ;;  %v12373_v39 = vld [vmem:[#allocation5 + $0x1a8] sm:$0xff]  }
 0x689   : > { %8299 = vmatmul.mubr.bf16.gmra.mrb[156].mxu1 %v6081_v42  ;;  %v6348_v60 = vor.u32 %v6346_v19, %v6345_v36  ;;  %v12523_v43 = vpop.eup %12522  ;;  %v5622_v41 = vmul.f32 %v12521_v35, %v17314_v62  ;;  %v5659_v63 = vadd.f32 %v15388_v16, %v5620_v15  ;;  %v6355_v53 = vshrl.u32 %v15443_v37, 16  ;;  %v12375_v42 = vld [vmem:[#allocation5 + $0x1f0] sm:$0xff]  }
 0x68a   : > { %v5808_v57 = vrot.slane %v17315_v7, 7  ;;  %11526 = vmatpush3.bf16.msra.mxu1 %v12365_v12  ;;  %v5623_v18 = vmul.f32 %v12523_v43, %v17316_v55  ;;  %v5660_v17 = vadd.f32 %v15388_v16, %v5621_v30  ;;  %v5716_v20 = vpack.c.bf16 %v5658_v13, %v5657_v3  ;;  %5731 = vst [vmem:[#allocation2 + $0x140] sm:$0xff] %v5715_v38  ;;  %v12372_v12 = vld [vmem:[#allocation5 + $0x1e8] sm:$0xff]   ;;  %v6034_v30 = vld [vmem:[#allocation2 + $0x70] sm:$0x1]  ;;  %v12376_v62 = vld [vmem:[#allocation5 + $0x1b0] sm:$0xff]  }
 0x68b   : > { %v6349_v54 = vsel %vm5768_vm8, %v15369_v51, %v6348_v60  ;;  %11527 = vmatprep.subr.bf16.mxu1 %v12367_v46  ;;  %v5661_v40 = vadd.f32 %v15388_v16, %v5622_v41  ;;  %v6088_v11 = vor.u32 %v6331_v59, %v6087_v44  ;;  %v17318_v2 = vshll.u32 %v17317_v23, 16  ;;  %v17319_v51 = vld [vmem:[#allocation52_spill] sm:$0xff]  ;;  %v6292_v43 = vld [vmem:[#allocation2 + $0x90] sm:$0x80] }
 0x68c   : > { %8306 = vmatprep.mubr.bf16.mxu1 %v6349_v54  ;;  %v6357_v56 = vrot.slane %v6355_v53, 7  ;;  %v5662_v22 = vadd.f32 %v15388_v16, %v5623_v18  ;;  %v5717_v4 = vpack.c.bf16 %v5660_v17, %v5659_v63  ;;  %5732 = vst [vmem:[#allocation2 + $0x158] sm:$0xff] %v5716_v20  ;;  %v17320_v36 = vshrl.u32 %v17319_v51, 16  ;;  %v6290_v59 = vld [vmem:[#allocation2 + $0x78] sm:$0x80]  ;;  %v12377_v63 = vld [vmem:[#allocation5 + $0x1f8] sm:$0xff]  }
 0x68d   : > { %v6092_v24 = vrot.slane %v17318_v2, 1  ;;  %v6358_v8 = vshll.u32 %v15443_v37, 16  ;;  %v5816_v5 = vsel %vm5768_vm8, %v5808_v57, %v6348_v60  ;;  %v5818_v48 = vshrl.u32 %v5744_v31, 16  ;;  %v5746_v3 = vld [vmem:[#allocation2 + $0x78] sm:$0x80]  ;;  %v12378_v20 = vld [vmem:[#allocation5 + $0x1b8] sm:$0xff]  }
 0x68e   : > { %v6353_v28 = vrot.slane %v17320_v36, 7  ;;  %v6367_v10 = vshrl.u32 %v15453_v45, 16  ;;  %11528 = vmatpush3.bf16.msra.mxu1 %v12369_v61  ;;  %v5718_v6 = vpack.c.bf16 %v5662_v22, %v5661_v40  ;;  %5733 = vst [vmem:[#allocation2 + $0x170] sm:$0xff] %v5717_v4  ;;  %v6099_v26 = vrot.slane %v6346_v19, 1  ;;  %v5748_v17 = vld [vmem:[#allocation2 + $0x90] sm:$0x80] }
 0x68f   : > { %8154 = vmatmul.mubr.bf16.gmra.mrb[156].mxu0 %v5816_v5  ;;  %v6360_v16 = vor.u32 %v6358_v8, %v6357_v56  ;;  %11529 = vmatprep.subr.bf16.mxu1 %v12370_v25  ;;  %v6093_v1 = vsel %vm6057_vm9, %v6088_v11, %v6092_v24  ;;  %v6102_v50 = vshll.u32 %v6032_v27, 16  ;;  %v6363_v49 = vshrl.u32 %v6290_v59, 16  ;;  %v6036_v11 = vld [vmem:[#allocation2 + $0x88] sm:$0x1]  ;;  %v6294_v56 = vld [vmem:[#allocation2 + $0xa8] sm:$0x80] }
 0x690   : > { %8161 = vmatprep.mubr.bf16.mxu0 %v15443_v37  ;;  %5734 = vst [vmem:[#allocation2 + $0x188] sm:$0xff] %v5718_v6  ;;  %v6369_v46 = vrot.slane %v6367_v10, 7  ;;  %v5820_v58 = vrot.slane %v5818_v48, 7  ;;  %v6370_v15 = vshll.u32 %v15453_v45, 16  ;;  %v6100_v19 = vor.u32 %v6343_v29, %v6099_v26  ;;  %v5750_v5 = vld [vmem:[#allocation2 + $0xa8] sm:$0x80] }
 0x691   : > { %8307 = vmatmul.mubr.bf16.gmra.mrb[160].mxu1 %v6093_v1  ;;  %v6361_v21 = vsel %vm5768_vm8, %v6353_v28, %v6360_v16  ;;  %v6104_v44 = vrot.slane %v6102_v50, 1  ;;  %v6365_v35 = vrot.slane %v6363_v49, 7  ;;  %v6379_v13 = vshrl.u32 %v15464_v14, 16  ;;  %v6296_v50 = vld [vmem:[#allocation2 + $0xc0] sm:$0x80] }
 0x692   : > { %8314 = vmatprep.mubr.bf16.mxu1 %v6361_v21  ;;  %11530 = vmatpush3.bf16.msra.mxu1 %v12371_v52  ;;  %v6372_v33 = vor.u32 %v6370_v15, %v6369_v46  ;;  %v5828_v38 = vsel %vm5768_vm8, %v5820_v58, %v6360_v16  ;;  %v5830_v60 = vshrl.u32 %v5746_v3, 16  ;;  %v6111_v9 = vrot.slane %v6358_v8, 1  ;;  %v6038_v16 = vld [vmem:[#allocation2 + $0xa0] sm:$0x1]  ;;  %v5752_v3 = vld [vmem:[#allocation2 + $0xc0] sm:$0x80] }
 0x693   : > { %11531 = vmatprep.subr.bf16.mxu1 %v12372_v12  ;;  %v6105_v41 = vsel %vm6057_vm9, %v6100_v19, %v6104_v44  ;;  %v6114_v29 = vshll.u32 %v6034_v30, 16  ;;  %v6375_v57 = vshrl.u32 %v6292_v43, 16  ;;  %v6381_v61 = vrot.slane %v6379_v13, 7  ;;  %v6298_v43 = vld [vmem:[#allocation2 + $0xd8] sm:$0x80] }
 0x694   : > { %v6373_v7 = vsel %vm5768_vm8, %v6365_v35, %v6372_v33  ;;  %v5832_v55 = vrot.slane %v5830_v60, 7  ;;  %v6382_v18 = vshll.u32 %v15464_v14, 16  ;;  %v6112_v54 = vor.u32 %v6355_v53, %v6111_v9 }
 0x695   : > { %v6116_v31 = vrot.slane %v6114_v29, 1  ;;  %v6377_v25 = vrot.slane %v6375_v57, 7  ;;  %v6391_v23 = vshrl.u32 %v15475_v0, 16  ;;  %v5842_v24 = vshrl.u32 %v5748_v17, 16  ;;  %v5754_v57 = vld [vmem:[#allocation2 + $0xd8] sm:$0x80] }
 0x696   : > { %11532 = vmatpush3.bf16.msra.mxu1 %v12373_v39  ;;  %v6384_v40 = vor.u32 %v6382_v18, %v6381_v61  ;;  %v5840_v2 = vsel %vm5768_vm8, %v5832_v55, %v6372_v33  ;;  %v6123_v4 = vrot.slane %v6370_v15, 1  ;;  %v6126_v37 = vshll.u32 %v6036_v11, 16  ;;  %v6040_v33 = vld [vmem:[#allocation2 + $0xb8] sm:$0x1] }
 0x697   : > { %8162 = vmatmul.mubr.bf16.gmra.mrb[160].mxu0 %v5828_v38  ;;  %11533 = vmatprep.subr.bf16.mxu1 %v12375_v42  ;;  %v6117_v22 = vsel %vm6057_vm9, %v6112_v54, %v6116_v31  ;;  %v17321_v53 = vmov 0.0|0.0   ;;  %v6387_v36 = vshrl.u32 %v6294_v56, 16  ;;  %v6393_v28 = vrot.slane %v6391_v23, 7 }
 0x698   : > { %8169 = vmatprep.mubr.bf16.mxu0 %v15453_v45  ;;  %v6385_v51 = vsel %vm5768_vm8, %v6377_v25, %v6384_v40  ;;  %v5844_v8 = vrot.slane %v5842_v24, 7  ;;  %v6394_v27 = vshll.u32 %v15475_v0, 16  ;;  %v6124_v48 = vor.u32 %v6367_v10, %v6123_v4  ;;  %v5757_v24 = vld [vmem:[#allocation2 + $0xf8] sm:$0xff] }
 0x699   : > { %8315 = vmatmul.mubr.bf16.gmra.mrb[164].mxu1 %v6105_v41  ;;  %v6128_v59 = vrot.slane %v6126_v37, 1  ;;  %v6389_v52 = vrot.slane %v6387_v36, 7  ;;  %v6403_v12 = vshrl.u32 %v15487_v32, 16  ;;  %v5854_v26 = vshrl.u32 %v5750_v5, 16  ;;  %v6004_v37 = vld [vmem:[#allocation2 + $0x110] sm:$0xff] }
 0x69a   : > { %8322 = vmatprep.mubr.bf16.mxu1 %v6373_v7  ;;  %11534 = vmatpush3.bf16.msra.mxu1 %v12376_v62  ;;  %v6396_v6 = vor.u32 %v6394_v27, %v6393_v28  ;;  %v5852_v1 = vsel %vm5768_vm8, %v5844_v8, %v6384_v40  ;;  %v6135_v49 = vrot.slane %v6382_v18, 1  ;;  %v6138_v46 = vshll.u32 %v6038_v16, 16  ;;  %v6042_v18 = vld [vmem:[#allocation2 + $0xd0] sm:$0x1]  ;;  %v6300_v40 = vld [vmem:[#allocation2 + $0xf0] sm:$0x80] }
 0x69b   : > { %11535 = vmatprep.subr.bf16.mxu1 %v12377_v63  ;;  %v6129_v21 = vsel %vm6057_vm9, %v6124_v48, %v6128_v59  ;;  %v6399_v10 = vshrl.u32 %v6296_v50, 16  ;;  %v6405_v58 = vrot.slane %v6403_v12, 7  ;;  %v5856_v39 = vrot.slane %v5854_v26, 7  ;;  %v5756_v5 = vld [vmem:[#allocation2 + $0xf0] sm:$0x80] }
 0x69c   : > { %v6397_v45 = vsel %vm5768_vm8, %v6389_v52, %v6396_v6  ;;  %v6406_v15 = vshll.u32 %v15487_v32, 16  ;;  %v6136_v42 = vor.u32 %v6379_v13, %v6135_v49  ;;  %v6140_v19 = vrot.slane %v6138_v46, 1  ;;  %v6044_v59 = vld [vmem:[#allocation2 + $0xe8] sm:$0x1]  ;;  %v15622_v46 = vld [vmem:[#allocation2 + $0x140] sm:$0xff] }
 0x69d   : > { %v6401_v44 = vrot.slane %v6399_v10, 7  ;;  %v6415_v30 = vshrl.u32 %v15497_v34, 16  ;;  %v5864_v38 = vsel %vm5768_vm8, %v5856_v39, %v6396_v6  ;;  %v5866_v60 = vshrl.u32 %v5752_v3, 16  ;;  %v6302_v6 = vld [vmem:[#allocation2 + $0x108] sm:$0x80] }
 0x69e   : > { %11536 = vmatpush3.bf16.msra.mxu1 %v12378_v20  ;;  %v6408_v35 = vor.u32 %v6406_v15, %v6405_v58  ;;  %v6141_v62 = vsel %vm6057_vm9, %v6136_v42, %v6140_v19  ;;  %v6147_v41 = vrot.slane %v6394_v27, 1  ;;  %v6150_v9 = vshll.u32 %v6040_v33, 16 }
 0x69f   : > { %8170 = vmatmul.mubr.bf16.gmra.mrb[164].mxu0 %v5840_v2  ;;  %12071 = vmatprep.subr.bf16.mxu1 %v17321_v53  ;;  %v6411_v13 = vshrl.u32 %v6298_v43, 16  ;;  %v6417_v29 = vrot.slane %v6415_v30, 7  ;;  %v5868_v63 = vrot.slane %v5866_v60, 7  ;;  %v6418_v7 = vshll.u32 %v15497_v34, 16 }
 0x6a0   : > { %8177 = vmatprep.mubr.bf16.mxu0 %v15464_v14  ;;  %v6409_v14 = vsel %vm5768_vm8, %v6401_v44, %v6408_v35  ;;  %v6148_v61 = vor.u32 %v6391_v23, %v6147_v41  ;;  %v6152_v55 = vrot.slane %v6150_v9, 1  ;;  %v6427_v54 = vshrl.u32 %v15509_v47, 16  ;;  %v5758_v9 = vld [vmem:[#allocation2 + $0x108] sm:$0x80] }
 0x6a1   : > { %8323 = vmatmul.mubr.bf16.gmra.mrb[168].mxu1 %v6117_v22  ;;  %v6413_v17 = vrot.slane %v6411_v13, 7  ;;  %v6420_v20 = vor.u32 %v6418_v7, %v6417_v29  ;;  %v5876_v31 = vsel %vm5768_vm8, %v5868_v63, %v6408_v35  ;;  %v5878_v25 = vshrl.u32 %v5754_v57, 16  ;;  %v6046_v29 = vld [vmem:[#allocation2 + $0x100] sm:$0x1] }
 0x6a2   : > { %8330 = vmatprep.mubr.bf16.mxu1 %v6385_v51  ;;  %v6159_v11 = vrot.slane %v6406_v15, 1  ;;  %v6162_v2 = vshll.u32 %v6042_v18, 16  ;;  %v6153_v56 = vsel %vm6057_vm9, %v6148_v61, %v6152_v55  ;;  %v6423_v22 = vshrl.u32 %v6300_v40, 16  ;;  %v6304_v61 = vld [vmem:[#allocation2 + $0x120] sm:$0x80] }
 0x6a3   : > { %v6421_v23 = vsel %vm5768_vm8, %v6413_v17, %v6420_v20  ;;  %v6429_v4 = vrot.slane %v6427_v54, 7  ;;  %v5880_v51 = vrot.slane %v5878_v25, 7  ;;  %v5894_v36 = vshrl.u32 %v5757_v24, 16 }
 0x6a4   : > { %v5897_v28 = vshll.u32 %v5757_v24, 16  ;;  %v6160_v8 = vor.u32 %v6403_v12, %v6159_v11  ;;  %v6164_v27 = vrot.slane %v6162_v2, 1  ;;  %v6442_v16 = vshll.u32 %v6004_v37, 16 }
 0x6a5   : > { %v6439_v50 = vshrl.u32 %v6004_v37, 16  ;;  %v5888_v49 = vsel %vm5768_vm8, %v5880_v51, %v6420_v20  ;;  %v5896_v12 = vrot.slane %v5894_v36, 7  ;;  %v6174_v58 = vshll.u32 %v6044_v59, 16  ;;  %v15656_v51 = vld [vmem:[#allocation2 + $0x188] sm:$0xff] }
 0x6a6   : > { %v6165_v10 = vsel %vm6057_vm9, %v6160_v8, %v6164_v27  ;;  %v6435_v39 = vshrl.u32 %v6302_v6, 16  ;;  %v6727_v44 = vrot.slane %v6442_v16, 1  ;;  %v6466_v30 = vshll.u32 %v15622_v46, 16 }
 0x6a7   : > { %8178 = vmatmul.mubr.bf16.gmra.mrb[168].mxu0 %v5852_v1  ;;  %v6425_v1 = vrot.slane %v6423_v22, 7  ;;  %v6441_v33 = vrot.slane %v6439_v50, 7  ;;  %v5899_v43 = vor.u32 %v5897_v28, %v5896_v12  ;;  %v6176_v41 = vrot.slane %v6174_v58, 1 }
 0x6a8   : > { %8185 = vmatprep.mubr.bf16.mxu0 %v15475_v0  ;;  %v15611_v0 = vld [vmem:[#allocation2 + $0xe0] sm:$0xff]  ;;  %v6437_v13 = vrot.slane %v6435_v39, 7  ;;  %v6463_v55 = vshrl.u32 %v15622_v46, 16  ;;  %v6751_v17 = vrot.slane %v6466_v30, 1  ;;  %v5902_v54 = vshrl.u32 %v5758_v9, 16 }
 0x6a9   : > { %8331 = vmatmul.mubr.bf16.gmra.mrb[172].mxu1 %v6129_v21  ;;  %v6167_v48 = vshrl.u32 %v15611_v0, 16  ;;  %v6169_v52 = vshll.u32 %v15611_v0, 16  ;;  %v15619_v21 = vld [vmem:[#allocation2 + $0x128] sm:$0xff]  ;;  %v6444_v57 = vor.u32 %v6442_v16, %v6441_v33  ;;  %v6186_v40 = vshll.u32 %v6046_v29, 16 }
 0x6aa   : > { %8338 = vmatprep.mubr.bf16.mxu1 %v6397_v45  ;;  %v6715_v45 = vrot.slane %v5897_v28, 1  ;;  %v6454_v42 = vshll.u32 %v15619_v21, 16  ;;  %v6451_v63 = vshrl.u32 %v15619_v21, 16  ;;  %v15649_v11 = vor.u32 %v6751_v17, %v6463_v55 }
 0x6ab   : > { %v6950_v15 = vrot.slane %v6167_v48, 7  ;;  %v6171_v3 = vrot.slane %v6169_v52, 1  ;;  %v6447_v24 = vshrl.u32 %v6304_v61, 16  ;;  %v5904_v28 = vrot.slane %v5902_v54, 7 }
 0x6ac   : > { %v15627_v19 = vor.u32 %v6715_v45, %v5894_v36  ;;  %v6739_v7 = vrot.slane %v6454_v42, 1  ;;  %v6188_v27 = vrot.slane %v6186_v40, 1  ;;  %v6499_v12 = vshrl.u32 %v15656_v51, 16 }
 0x6ad   : > { %v5912_v16 = vsel %vm5768_vm8, %v5904_v28, %v6444_v57  ;;  %v6465_v39 = vrot.slane %v6463_v55, 7  ;;  %v15697_v55 = vld [vmem:[#allocation2 + $0x140] sm:$0xff] }
 0x6ae   : > { %v15647_v25 = vor.u32 %v6739_v7, %v6451_v63 }
 0x6af   : > { %8186 = vmatmul.mubr.bf16.gmra.mrb[172].mxu0 %v5864_v38  ;;  %v15631_v38 = vor.u32 %v6950_v15, %v6169_v52 }
 0x6b0   : > { %8193 = vmatprep.mubr.bf16.mxu0 %v15487_v32  ;;  %v5890_v32 = vshrl.u32 %v5756_v5, 16  ;;  %v6502_v5 = vshll.u32 %v15656_v51, 16 }
 0x6b1   : > { %8339 = vmatmul.mubr.bf16.gmra.mrb[176].mxu1 %v6141_v62  ;;  %v15633_v62 = vld [vmem:[#allocation2 + $0x158] sm:$0xff] }
 0x6b2   : > { %8346 = vmatprep.mubr.bf16.mxu1 %v6409_v14  ;;  %v5892_v60 = vrot.slane %v5890_v32, 7  ;;  %v15637_v14 = vor.u32 %v6171_v3, %v6167_v48  ;;  %v6478_v18 = vshll.u32 %v15633_v62, 16  ;;  %v6475_v22 = vshrl.u32 %v15633_v62, 16 }
 0x6b3   : > { %v6449_v48 = vrot.slane %v6447_v24, 7  ;;  %v6189_v32 = vsel %vm6057_vm9, %v15627_v19, %v6188_v27  ;;  %v6787_v45 = vrot.slane %v6502_v5, 1  ;;  %v5764_v24 = vld [vmem:[#allocation2 + $0x150] sm:$0x80] }
 0x6b4   : > { %v5900_v20 = vsel %vm5768_vm8, %v5892_v60, %v5899_v43  ;;  %v6177_v2 = vsel %vm6057_vm9, %v15637_v14, %v6176_v41  ;;  %v6763_v36 = vrot.slane %v6478_v18, 1  ;;  %v6468_v60 = vor.u32 %v6466_v30, %v6465_v39  ;;  %v15686_v43 = vld [vmem:[#allocation2 + $0x110] sm:$0xff]  ;;  %v15688_v41 = vld [vmem:[#allocation2 + $0x128] sm:$0xff]  ;;  %v15731_v39 = vld [vmem:[#allocation2 + $0x20] sm:$0xff] }
 0x6b5   : > { %v15680_v3 = vor.u32 %v6787_v45, %v6499_v12  ;;  %v17197_v61 = vshll.u32 %v15686_v43, 16  ;;  %v17195_v30 = vshll.u32 %v15688_v41, 16  ;;  %v6477_v54 = vrot.slane %v6475_v22, 7 }
 0x6b6   : > { %v15660_v8 = vor.u32 %v6763_v36, %v6475_v22  ;;  %v17198_v28 = vshrl.u32 %v15686_v43, 16 }
 0x6b7   : > { %8194 = vmatmul.mubr.bf16.gmra.mrb[176].mxu0 %v5876_v31  ;;  %v15645_v31 = vld [vmem:[#allocation2 + $0x170] sm:$0xff]  ;;  %v7260_v27 = vrot.slane %v17197_v61, 1  ;;  %v7272_v22 = vrot.slane %v17195_v30, 1  ;;  %v6837_v30 = vld [vmem:[#allocation2 + $0xa8] sm:$0x80] }
 0x6b8   : > { %8201 = vmatprep.mubr.bf16.mxu0 %v15497_v34  ;;  %v6430_v34 = vshll.u32 %v15509_v47, 16  ;;  %v6487_v52 = vshrl.u32 %v15645_v31, 16 }
 0x6b9   : > { %8347 = vmatmul.mubr.bf16.gmra.mrb[180].mxu1 %v6153_v56  ;;  %v6453_v56 = vrot.slane %v6451_v63, 7  ;;  %v6308_v63 = vld [vmem:[#allocation2 + $0x150] sm:$0x80] }
 0x6ba   : > { %8354 = vmatprep.mubr.bf16.mxu1 %v6421_v23  ;;  %v6432_v26 = vor.u32 %v6430_v34, %v6429_v4  ;;  %v6445_v23 = vsel %vm5768_vm8, %v6437_v13, %v6444_v57  ;;  %v6490_v4 = vshll.u32 %v15645_v31, 16  ;;  %v6048_v34 = vld [vmem:[#allocation2 + $0x118] sm:$0x1] }
 0x6bb   : > { %v6456_v59 = vor.u32 %v6454_v42, %v6453_v56  ;;  %v6050_v42 = vld [vmem:[#allocation2 + $0x130] sm:$0x1] }
 0x6bc   : > { %v6433_v35 = vsel %vm5768_vm8, %v6425_v1, %v6432_v26  ;;  %v6775_v6 = vrot.slane %v6490_v4, 1  ;;  %v6306_v26 = vld [vmem:[#allocation2 + $0x138] sm:$0x80]  ;;  %v6210_v29 = vshll.u32 %v6050_v42, 16 }
 0x6bd   : > { %v6459_v58 = vshrl.u32 %v6306_v26, 16  ;;  %v6310_v26 = vld [vmem:[#allocation2 + $0x168] sm:$0x80] }
 0x6be   : > { %v6483_v42 = vshrl.u32 %v6310_v26, 16  ;;  %v6572_v26 = vld [vmem:[#allocation2 + $0x38] sm:$0xff] }
 0x6bf   : > { %8202 = vmatmul.mubr.bf16.gmra.mrb[180].mxu0 %v5888_v49  ;;  %v15669_v49 = vor.u32 %v6775_v6, %v6487_v52  ;;  %v6461_v33 = vrot.slane %v6459_v58, 7 }
 0x6c0   : > { %8209 = vmatprep.mubr.bf16.mxu0 %v15509_v47  ;;  %v15635_v47 = vor.u32 %v6727_v44, %v6439_v50  ;;  %v6198_v50 = vshll.u32 %v6048_v34, 16 }
 0x6c1   : > { %8355 = vmatmul.mubr.bf16.gmra.mrb[184].mxu1 %v6165_v10  ;;  %v6457_v10 = vsel %vm5768_vm8, %v6449_v48, %v6456_v59  ;;  %v6469_v17 = vsel %vm5768_vm8, %v6461_v33, %v6468_v60  ;;  %v6480_v48 = vor.u32 %v6478_v18, %v6477_v54  ;;  %v17194_v18 = vshrl.u32 %v15697_v55, 16  ;;  %v6571_v54 = vld [vmem:[#allocation2 + $0x28] sm:$0x1] }
 0x6c2   : > { %8362 = vmatprep.mubr.bf16.mxu1 %v6433_v35  ;;  %v6200_v44 = vrot.slane %v6198_v50, 1  ;;  %v15682_v35 = vld [vmem:[#allocation2 + $0xf8] sm:$0xff]  ;;  %v15719_v50 = vor.u32 %v7260_v27, %v17198_v28  ;;  %v6587_v28 = vld [vmem:[#allocation2 + $0xe8] sm:$0x1] }
 0x6c3   : > { %v17199_v7 = vshll.u32 %v15682_v35, 16  ;;  %v6960_v56 = vshrl.u32 %v15682_v35, 16 }
 0x6c4   : > { %v6201_v57 = vsel %vm6057_vm9, %v15635_v47, %v6200_v44  ;;  %v6489_v44 = vrot.slane %v6487_v52, 7 }
 0x6c5   : > { %v7248_v36 = vrot.slane %v17199_v7, 1  ;;  %v6839_v7 = vld [vmem:[#allocation2 + $0xc0] sm:$0x80] }
 0x6c6   : > { %v6492_v52 = vor.u32 %v6490_v4, %v6489_v44  ;;  %v6603_v4 = vshrl.u32 %v15731_v39, 16 }
 0x6c7   : > { %8210 = vmatmul.mubr.bf16.gmra.mrb[184].mxu0 %v5900_v20  ;;  %v6471_v20 = vshrl.u32 %v6308_v63, 16  ;;  %v15714_v6 = vor.u32 %v7248_v36, %v6960_v56  ;;  %v5766_v63 = vld [vmem:[#allocation2 + $0x168] sm:$0x80] }
 0x6c8   : > { %8217 = vmatprep.mubr.bf16.mxu0 %v6004_v37  ;;  %v5760_v37 = vld [vmem:[#allocation2 + $0x120] sm:$0x80]  ;;  %v5950_v27 = vshrl.u32 %v5766_v63, 16  ;;  %v6056_v63 = vld [vmem:[#allocation2 + $0x178] sm:$0x1] }
 0x6c9   : > { %8363 = vmatmul.mubr.bf16.gmra.mrb[188].mxu1 %v6177_v2  ;;  %v5914_v1 = vshrl.u32 %v5760_v37, 16  ;;  %v6212_v2 = vrot.slane %v6210_v29, 1  ;;  %v17196_v37 = vshrl.u32 %v15688_v41, 16  ;;  %v6473_v34 = vrot.slane %v6471_v20, 7 }
 0x6ca   : > { %8370 = vmatprep.mubr.bf16.mxu1 %v6445_v23  ;;  %v17193_v23 = vshll.u32 %v15697_v55, 16 }
 0x6cb   : > { %v5916_v15 = vrot.slane %v5914_v1, 7  ;;  %v5938_v1 = vshrl.u32 %v5764_v24, 16  ;;  %v6054_v24 = vld [vmem:[#allocation2 + $0x160] sm:$0x1] }
 0x6cc   : > { %v7284_v45 = vrot.slane %v17193_v23, 1 }
 0x6cd   : > { %v5924_v9 = vsel %vm5768_vm8, %v5916_v15, %v6456_v59  ;;  %v6052_v59 = vld [vmem:[#allocation2 + $0x148] sm:$0x1]  ;;  %v11201_v15 = vpop.f32.mrb[144].mxu0 }
 0x6ce   : > { %v6222_v58 = vshll.u32 %v6052_v59, 16  ;;  %v11202_v33 = vpop.f32.mrb[145].mxu0  ;;  %v6610_v59 = vshll.u32 %v6571_v54, 16 }
 0x6cf   : > { %8218 = vmatmul.mubr.bf16.gmra.mrb[188].mxu0 %v5912_v16  ;;  %v11204_v29 = vpop.f32.mrb[146].mxu0 }
 0x6d0   : > { %8225 = vmatprep.mubr.bf16.mxu0 %v15619_v21  ;;  %v5762_v21 = vld [vmem:[#allocation2 + $0x138] sm:$0x80]  ;;  %v6224_v20 = vrot.slane %v6222_v58, 1  ;;  %v5952_v58 = vrot.slane %v5950_v27, 7  ;;  %v6615_v27 = vshrl.u32 %v6572_v26, 16 }
 0x6d1   : > { %8371 = vmatmul.mubr.bf16.gmra.mrb[192].mxu1 %v6189_v32  ;;  %v5926_v13 = vshrl.u32 %v5762_v21, 16  ;;  %v15723_v32 = vor.u32 %v7272_v22, %v17196_v37  ;;  %v6481_v21 = vsel %vm5768_vm8, %v6473_v34, %v6480_v48  ;;  %v6312_v22 = vld [vmem:[#allocation2 + $0x180] sm:$0x80] }
 0x6d2   : > { %8378 = vmatprep.mubr.bf16.mxu1 %v6457_v10  ;;  %v6213_v10 = vsel %vm6057_vm9, %v15647_v25, %v6212_v2  ;;  %v6485_v2 = vrot.slane %v6483_v42, 7  ;;  %v6617_v42 = vshll.u32 %v6572_v26, 16 }
 0x6d3   : > { %v5928_v40 = vrot.slane %v5926_v13, 7  ;;  %v15740_v13 = vadd.f32 %v11202_v33, %v11201_v15  ;;  %v6573_v33 = vld [vmem:[#allocation2 + $0x40] sm:$0x1] }
 0x6d4   : > { %v6622_v54 = vshll.u32 %v6573_v33, 16 }
 0x6d5   : > { %v5936_v16 = vsel %vm5768_vm8, %v5928_v40, %v6468_v60  ;;  %v15738_v60 = vor.u32 %v7284_v45, %v17194_v18  ;;  %v6493_v45 = vsel %vm5768_vm8, %v6485_v2, %v6492_v52  ;;  %v6246_v2 = vshll.u32 %v6056_v63, 16 }
 0x6d7   : > { %8226 = vmatmul.mubr.bf16.gmra.mrb[192].mxu0 %v5924_v9  ;;  %v5940_v9 = vrot.slane %v5938_v1, 7  ;;  %v6234_v1 = vshll.u32 %v6054_v24, 16  ;;  %v15761_v24 = vld [vmem:[#allocation2 + $0x50] sm:$0xff] }
 0x6d8   : > { %8233 = vmatprep.mubr.bf16.mxu0 %v15622_v46  ;;  %v6627_v33 = vshrl.u32 %v15761_v24, 16 }
 0x6d9   : > { %8379 = vmatmul.mubr.bf16.gmra.mrb[196].mxu1 %v6201_v57  ;;  %v6605_v57 = vshll.u32 %v15731_v39, 16  ;;  %v5948_v36 = vsel %vm5768_vm8, %v5940_v9, %v6480_v48  ;;  %v6501_v48 = vrot.slane %v6499_v12, 7  ;;  %v6236_v44 = vrot.slane %v6234_v1, 1  ;;  %v12379_v1 = vld [vmem:[#allocation5 + $0x208] sm:$0xff]  }
 0x6da   : > { %8386 = vmatprep.mubr.bf16.mxu1 %v6469_v17  ;;  %v11205_v17 = vpop.f32.mrb[147].mxu0 }
 0x6db   : > { %v15743_v40 = vadd.f32 %v11205_v17, %v11204_v29  ;;  %v6607_v34 = vrot.slane %v6605_v57, 1  ;;  %v6504_v29 = vor.u32 %v6502_v5, %v6501_v48  ;;  %v5960_v57 = vsel %vm5768_vm8, %v5952_v58, %v6492_v52  ;;  %v12655_v58 = vld [vmem:[#allocation5 + $0x200] sm:$0xff]  }
 0x6dc   : > { %v6237_v12 = vsel %vm6057_vm9, %v15660_v8, %v6236_v44  ;;  %v6624_v52 = vrot.slane %v6622_v54, 1  ;;  %v15772_v44 = vld [vmem:[#allocation2 + $0x68] sm:$0xff] }
 0x6dd   : > { %v6608_v15 = vor.u32 %v6607_v34, %v6603_v4  ;;  %v6248_v34 = vrot.slane %v6246_v2, 1  ;;  %v6641_v63 = vshll.u32 %v15772_v44, 16  ;;  %v6829_v54 = vld [vmem:[#allocation2 + $0x48] sm:$0x80] }
 0x6df   : > { %8234 = vmatmul.mubr.bf16.gmra.mrb[196].mxu0 %v5936_v16  ;;  %v6225_v16 = vsel %vm6057_vm9, %v15649_v11, %v6224_v20  ;;  %v6619_v20 = vrot.slane %v6617_v42, 1  ;;  %v6249_v48 = vsel %vm6057_vm9, %v15669_v49, %v6248_v34  ;;  %v6872_v34 = vshrl.u32 %v6829_v54, 16 }
 0x6e0   : > { %8241 = vmatprep.mubr.bf16.mxu0 %v15633_v62 }
 0x6e1   : > { %8387 = vmatmul.mubr.bf16.gmra.mrb[200].mxu1 %v6213_v10  ;;  %v6495_v10 = vshrl.u32 %v6312_v22, 16  ;;  %v15764_v5 = vor.u32 %v6619_v20, %v6615_v27  ;;  %v6629_v22 = vshll.u32 %v15761_v24, 16  ;;  %v6577_v20 = vld [vmem:[#allocation2 + $0x70] sm:$0x1] }
 0x6e2   : > { %8394 = vmatprep.mubr.bf16.mxu1 %v6481_v21  ;;  %v6612_v21 = vrot.slane %v6610_v59, 1  ;;  %v6575_v59 = vld [vmem:[#allocation2 + $0x58] sm:$0x1] }
 0x6e3   : > { %v6497_v9 = vrot.slane %v6495_v10, 7  ;;  %v6631_v4 = vrot.slane %v6629_v22, 1  ;;  %v6634_v10 = vshll.u32 %v6575_v59, 16  ;;  %v6878_v59 = vrot.slane %v6627_v33, 7 }
 0x6e4   : > { %v6613_v17 = vsel %vm6057_vm9, %v6608_v15, %v6612_v21  ;;  %v6866_v21 = vrot.slane %v6615_v27, 7  ;;  %v6646_v27 = vshll.u32 %v6577_v20, 16 }
 0x6e7   : > { %8242 = vmatmul.mubr.bf16.gmra.mrb[200].mxu0 %v5948_v36  ;;  %v6505_v36 = vsel %vm5768_vm8, %v6497_v9, %v6504_v29  ;;  %v15775_v9 = vor.u32 %v6631_v4, %v6627_v33  ;;  %v6636_v29 = vrot.slane %v6634_v10, 1  ;;  %v6648_v4 = vrot.slane %v6646_v27, 1  ;;  %v12383_v33 = vld [vmem:[#allocation5 + $0x228] sm:$0xff]  }
 0x6e8   : > { %8249 = vmatprep.mubr.bf16.mxu0 %v15645_v31 }
 0x6e9   : > { %8395 = vmatmul.mubr.bf16.gmra.mrb[204].mxu1 %v6225_v16  ;;  %v6827_v16 = vld [vmem:[#allocation2 + $0x30] sm:$0x80]  ;;  %v6637_v2 = vsel %vm6057_vm9, %v15775_v9, %v6636_v29 }
 0x6ea   : > { %8402 = vmatprep.mubr.bf16.mxu1 %v6493_v45  ;;  %v6625_v45 = vsel %vm6057_vm9, %v15764_v5, %v6624_v52  ;;  %v6860_v15 = vshrl.u32 %v6827_v16, 16  ;;  %v15781_v16 = vld [vmem:[#allocation2 + $0x80] sm:$0xff] }
 0x6eb   : > { %v6653_v10 = vshll.u32 %v15781_v16, 16 }
 0x6ef   : > { %8250 = vmatmul.mubr.bf16.gmra.mrb[204].mxu0 %v5960_v57  ;;  %v6862_v57 = vrot.slane %v6860_v15, 7  ;;  %v6579_v15 = vld [vmem:[#allocation2 + $0x88] sm:$0x1] }
 0x6f0   : > { %8451 = vmatprep.mubr.bf16.mxu0 %v6613_v17  ;;  %v6869_v17 = vor.u32 %v6866_v21, %v6617_v42  ;;  %v6639_v42 = vshrl.u32 %v15772_v44, 16  ;;  %v6831_v21 = vld [vmem:[#allocation2 + $0x60] sm:$0x80] }
 0x6f1   : > { %8403 = vmatmul.mubr.bf16.gmra.mrb[208].mxu1 %v6237_v12  ;;  %v12381_v12 = vld [vmem:[#allocation5 + $0x218] sm:$0xff]  }
 0x6f2   : > { %8410 = vmatprep.mubr.bf16.mxu1 %v6505_v36  ;;  %v6643_v36 = vrot.slane %v6641_v63, 1  ;;  %v6870_v52 = vsel %vm5768_vm8, %v6862_v57, %v6869_v17  ;;  %v6655_v57 = vrot.slane %v6653_v10, 1  ;;  %v6658_v17 = vshll.u32 %v6579_v15, 16 }
 0x6f3   : > { %v6890_v54 = vrot.slane %v6639_v42, 7 }
 0x6f7   : > { %8452 = vmatmul.mubr.bf16.vlgmr.msra.gmra.mrb[208].mxu0 %v15731_v39  ;;  %v12380_v39 = vld [vmem:[#allocation5 + $0x210] sm:$0xff]  }
 0x6f8   : > { %8459 = vmatprep.mubr.bf16.mxu0 %v6625_v45  ;;  %11848 = vmatpush3.bf16.msra.mxu0 %v12655_v58  ;;  %v15786_v45 = vor.u32 %v6643_v36, %v6639_v42  ;;  %v6881_v58 = vor.u32 %v6878_v59, %v6629_v22  ;;  %v6884_v22 = vshrl.u32 %v6831_v21, 16  ;;  %v17324_v36 = vld [vmem:[#allocation50_spill] sm:$0xff]  ;;  %v6893_v42 = vor.u32 %v6890_v54, %v6641_v63 }
 0x6f9   : > { %8411 = vmatmul.mubr.bf16.gmra.mrb[212].mxu1 %v6249_v48  ;;  %11849 = vmatprep.subr.bf16.mxu0 %v12379_v1  ;;  %v6874_v48 = vrot.slane %v6872_v34, 7 }
 0x6fa   : > { %8612 = vmatprep.mubr.bf16.mxu1 %v6572_v26  ;;  %v6649_v29 = vsel %vm6057_vm9, %v15786_v45, %v6648_v4  ;;  %v6886_v59 = vrot.slane %v6884_v22, 7  ;;  %v6581_v4 = vld [vmem:[#allocation2 + $0xa0] sm:$0x1] }
 0x6fb   : > { %v6882_v20 = vsel %vm5768_vm8, %v6874_v48, %v6881_v58  ;;  %v12385_v48 = vld [vmem:[#allocation5 + $0x238] sm:$0xff]   ;;  %v17325_v58 = vld [vmem:[#allocation41_spill] sm:$0xff] }
 0x6fc   : > { %11850 = vmatpush3.bf16.msra.mxu0 %v12379_v1  ;;  %v12382_v1 = vld [vmem:[#allocation5 + $0x220] sm:$0xff]  }
 0x6fd   : > { %11851 = vmatprep.subr.bf16.mxu0 %v12380_v39 }
 0x6ff   : > { %8460 = vmatmul.mubr.bf16.gmra.mrb[212].mxu0 %v6572_v26  ;;  %v17322_v26 = vld [vmem:[#allocation45_spill] sm:$0xff] }
 0x700   : > { %8467 = vmatprep.mubr.bf16.mxu0 %v6637_v2  ;;  %11852 = vmatpush3.bf16.msra.mxu0 %v12380_v39  ;;  %v17323_v39 = vld [vmem:[#allocation48_spill] sm:$0xff]  ;;  %v6651_v2 = vshrl.u32 %v15781_v16, 16 }
 0x701   : > { %8613 = vmatmul.mubr.bf16.vlgmr.msra.gmra.mrb[216].mxu1 %v6870_v52  ;;  %11853 = vmatprep.subr.bf16.mxu0 %v12381_v12  ;;  %v6660_v52 = vrot.slane %v6658_v17, 1 }
 0x702   : > { %8620 = vmatprep.mubr.bf16.mxu1 %v15761_v24  ;;  %12073 = vmatpush3.bf16.msra.mxu1 %v17322_v26  ;;  %v15801_v27 = vor.u32 %v6655_v57, %v6651_v2  ;;  %v6894_v57 = vsel %vm5768_vm8, %v6886_v59, %v6893_v42  ;;  %v6902_v17 = vrot.slane %v6651_v2, 7  ;;  %v6583_v42 = vld [vmem:[#allocation2 + $0xb8] sm:$0x1]  ;;  %v6835_v2 = vld [vmem:[#allocation2 + $0x90] sm:$0x80] }
 0x703   : > { %12074 = vmatprep.subr.bf16.mxu1 %v17321_v53 }
 0x704   : > { %11854 = vmatpush3.bf16.msra.mxu0 %v12381_v12  ;;  %v15796_v12 = vld [vmem:[#allocation2 + $0x98] sm:$0xff]  ;;  %v6661_v15 = vsel %vm6057_vm9, %v15801_v27, %v6660_v52  ;;  %v6905_v59 = vor.u32 %v6902_v17, %v6653_v10  ;;  %v6584_v10 = vld [vmem:[#allocation2 + $0xc8] sm:$0xff] }
 0x705   : > { %11855 = vmatprep.subr.bf16.mxu0 %v12382_v1  ;;  %v6665_v34 = vshll.u32 %v15796_v12, 16  ;;  %v17328_v17 = vld [vmem:[#allocation42_spill] sm:$0xff] }
 0x706   : > { %12076 = vmatpush3.bf16.msra.mxu1 %v17323_v39 }
 0x707   : > { %8468 = vmatmul.mubr.bf16.gmra.mrb[216].mxu0 %v15761_v24  ;;  %12077 = vmatprep.subr.bf16.mxu1 %v17321_v53  ;;  %v12384_v24 = vld [vmem:[#allocation5 + $0x230] sm:$0xff]   ;;  %v6667_v21 = vrot.slane %v6665_v34, 1 }
 0x708   : > { %8475 = vmatprep.mubr.bf16.mxu0 %v6649_v29  ;;  %11856 = vmatpush3.bf16.msra.mxu0 %v12382_v1  ;;  %v6833_v1 = vld [vmem:[#allocation2 + $0x78] sm:$0x80]  ;;  %v6670_v29 = vshll.u32 %v6581_v4, 16 }
 0x709   : > { %8621 = vmatmul.mubr.bf16.gmra.mrb[220].mxu1 %v6882_v20  ;;  %11857 = vmatprep.subr.bf16.mxu0 %v12383_v33  ;;  %v6896_v63 = vshrl.u32 %v6833_v1, 16  ;;  %v6663_v20 = vshrl.u32 %v15796_v12, 16 }
 0x70a   : > { %8628 = vmatprep.mubr.bf16.mxu1 %v15772_v44  ;;  %12079 = vmatpush3.bf16.msra.mxu1 %v17324_v36  ;;  %v6672_v54 = vrot.slane %v6670_v29, 1  ;;  %v6908_v29 = vshrl.u32 %v6835_v2, 16 }
 0x70b   : > { %12080 = vmatprep.subr.bf16.mxu1 %v17321_v53  ;;  %v15814_v22 = vor.u32 %v6667_v21, %v6663_v20  ;;  %v6898_v4 = vrot.slane %v6896_v63, 7  ;;  %v6914_v63 = vrot.slane %v6663_v20, 7 }
 0x70c   : > { %11858 = vmatpush3.bf16.msra.mxu0 %v12383_v33  ;;  %v6582_v33 = vld [vmem:[#allocation2 + $0xb0] sm:$0xff] }
 0x70d   : > { %11859 = vmatprep.subr.bf16.mxu0 %v12384_v24  ;;  %v6677_v52 = vshll.u32 %v6582_v33, 16  ;;  %v6673_v1 = vsel %vm6057_vm9, %v15814_v22, %v6672_v54  ;;  %v6906_v21 = vsel %vm5768_vm8, %v6898_v4, %v6905_v59  ;;  %v6689_v54 = vshll.u32 %v6584_v10, 16  ;;  %v17329_v4 = vld [vmem:[#allocation43_spill] sm:$0xff] }
 0x70e   : > { %12082 = vmatpush3.bf16.msra.mxu1 %v17325_v58  ;;  %v6917_v18 = vor.u32 %v6914_v63, %v6665_v34  ;;  %v6687_v34 = vshrl.u32 %v6584_v10, 16 }
 0x70f   : > { %8476 = vmatmul.mubr.bf16.gmra.mrb[220].mxu0 %v15772_v44  ;;  %12083 = vmatprep.subr.bf16.mxu1 %v17321_v53  ;;  %v17326_v44 = vld [vmem:[#allocation39_spill] sm:$0xff]  ;;  %v6691_v59 = vrot.slane %v6689_v54, 1 }
 0x710   : > { %8483 = vmatprep.mubr.bf16.mxu0 %v6661_v15  ;;  %11860 = vmatpush3.bf16.msra.mxu0 %v12384_v24  ;;  %v17327_v24 = vld [vmem:[#allocation40_spill] sm:$0xff]  ;;  %v6679_v15 = vrot.slane %v6677_v52, 1 }
 0x711   : > { %8629 = vmatmul.mubr.bf16.gmra.mrb[224].mxu1 %v6894_v57  ;;  %11861 = vmatprep.subr.bf16.mxu0 %v12385_v48  ;;  %v6682_v57 = vshll.u32 %v6583_v42, 16  ;;  %v6910_v42 = vrot.slane %v6908_v29, 7  ;;  %v15834_v29 = vor.u32 %v6691_v59, %v6687_v34 }
 0x712   : > { %8636 = vmatprep.mubr.bf16.mxu1 %v15781_v16  ;;  %12085 = vmatpush3.bf16.msra.mxu1 %v17326_v44 }
 0x713   : > { %12086 = vmatprep.subr.bf16.mxu1 %v17321_v53  ;;  %v6684_v23 = vrot.slane %v6682_v57, 1  ;;  %v6920_v57 = vshrl.u32 %v6837_v30, 16  ;;  %v6932_v30 = vshrl.u32 %v6839_v7, 16 }
 0x714   : > { %11862 = vmatpush3.bf16.msra.mxu0 %v12385_v48  ;;  %v6675_v48 = vshrl.u32 %v6582_v33, 16 }
 0x715   : > { %v6922_v61 = vrot.slane %v6920_v57, 7  ;;  %v6591_v57 = vld [vmem:[#allocation2 + $0x118] sm:$0x1] }
 0x716   : > { %12088 = vmatpush3.bf16.msra.mxu1 %v17327_v24  ;;  %v6926_v37 = vrot.slane %v6675_v48, 7 }
 0x717   : > { %8484 = vmatmul.mubr.bf16.gmra.mrb[224].mxu0 %v15781_v16  ;;  %12089 = vmatprep.subr.bf16.mxu1 %v17321_v53  ;;  %v15825_v16 = vor.u32 %v6679_v15, %v6675_v48  ;;  %v6918_v15 = vsel %vm5768_vm8, %v6910_v42, %v6917_v18  ;;  %v6938_v48 = vrot.slane %v6687_v34, 7  ;;  %v6843_v34 = vld [vmem:[#allocation2 + $0xf0] sm:$0x80] }
 0x718   : > { %8491 = vmatprep.mubr.bf16.mxu0 %v6673_v1  ;;  %v6585_v1 = vld [vmem:[#allocation2 + $0xd0] sm:$0x1] }
 0x719   : > { %8637 = vmatmul.mubr.bf16.gmra.mrb[228].mxu1 %v6906_v21  ;;  %v6685_v20 = vsel %vm6057_vm9, %v15825_v16, %v6684_v23  ;;  %v6694_v2 = vshll.u32 %v6585_v1, 16  ;;  %v17330_v21 = vmov 0.0   ;;  %v6706_v1 = vshll.u32 %v6587_v28, 16 }
 0x71a   : > { %8644 = vmatprep.mubr.bf16.mxu1 %v15796_v12  ;;  %12091 = vmatpush3.bf16.msra.mxu1 %v17328_v17  ;;  %v6941_v59 = vor.u32 %v6938_v48, %v6689_v54  ;;  %v6730_v54 = vshll.u32 %v6591_v57, 16  ;;  %v6845_v48 = vld [vmem:[#allocation2 + $0x108] sm:$0x80]  ;;  %v17334_v57 = vshrl.u32 %v15688_v41, 16 }
 0x71b   : > { %12092 = vmatprep.subr.bf16.mxu1 %v17321_v53  ;;  %v6696_v63 = vrot.slane %v6694_v2, 1  ;;  %v6708_v42 = vrot.slane %v6706_v1, 1  ;;  %v6589_v2 = vld [vmem:[#allocation2 + $0x100] sm:$0x1] }
 0x71d   : > { %v6697_v23 = vsel %vm6057_vm9, %v15834_v29, %v6696_v63  ;;  %v6956_v63 = vshrl.u32 %v6843_v34, 16  ;;  %v6986_v34 = vrot.slane %v17334_v57, 7 }
 0x71e   : > { %12094 = vmatpush3.bf16.msra.mxu1 %v17329_v4 }
 0x71f   : > { %8492 = vmatmul.mubr.bf16.gmra.mrb[228].mxu0 %v15796_v12  ;;  %11930 = vmatprep.subr.mxu1 %v17330_v21  ;;  %v6929_v12 = vor.u32 %v6926_v37, %v6677_v52  ;;  %v6709_v37 = vsel %vm6057_vm9, %v15637_v14, %v6708_v42  ;;  %v6958_v1 = vrot.slane %v6956_v63, 7  ;;  %v17335_v63 = vshll.u32 %v15688_v41, 16 }
 0x720   : > { %8499 = vmatprep.mubr.bf16.mxu0 %v6685_v20  ;;  %v6934_v20 = vrot.slane %v6932_v30, 7  ;;  %v6593_v30 = vld [vmem:[#allocation2 + $0x130] sm:$0x1] }
 0x721   : > { %8645 = vmatmul.mubr.bf16.gmra.mrb[232].mxu1 %v6918_v15  ;;  %v6930_v18 = vsel %vm5768_vm8, %v6922_v61, %v6929_v12  ;;  %v6841_v15 = vld [vmem:[#allocation2 + $0xd8] sm:$0x80]  ;;  %v6962_v12 = vrot.slane %v6960_v56, 7  ;;  %v6968_v56 = vshrl.u32 %v6845_v48, 16 }
 0x722   : > { %8652 = vmatprep.mubr.bf16.mxu1 %v6582_v33  ;;  %v6942_v28 = vsel %vm5768_vm8, %v6934_v20, %v6941_v59  ;;  %v6944_v52 = vshrl.u32 %v6841_v15, 16  ;;  %v17332_v20 = vshrl.u32 %v15686_v43, 16 }
 0x723   : > { %v6970_v15 = vrot.slane %v6968_v56, 7 }
 0x724   : > { %v6946_v61 = vrot.slane %v6944_v52, 7  ;;  %v6974_v59 = vrot.slane %v17332_v20, 7  ;;  %v6599_v20 = vld [vmem:[#allocation2 + $0x178] sm:$0x1] }
 0x726   : > { %v6954_v14 = vsel %vm5768_vm8, %v6946_v61, %v15631_v38  ;;  %v6742_v38 = vshll.u32 %v6593_v30, 16  ;;  %v17336_v30 = vshrl.u32 %v15697_v55, 16 }
 0x727   : > { %8500 = vmatmul.mubr.bf16.gmra.mrb[232].mxu0 %v6582_v33  ;;  %v6718_v33 = vshll.u32 %v6589_v2, 16 }
 0x728   : > { %8507 = vmatprep.mubr.bf16.mxu0 %v6697_v23  ;;  %v6732_v23 = vrot.slane %v6730_v54, 1  ;;  %v6744_v2 = vrot.slane %v6742_v38, 1  ;;  %v6597_v54 = vld [vmem:[#allocation2 + $0x160] sm:$0x1]  ;;  %v6998_v48 = vrot.slane %v17336_v30, 7 }
 0x729   : > { %8653 = vmatmul.mubr.bf16.gmra.mrb[236].mxu1 %v6930_v18  ;;  %v6720_v7 = vrot.slane %v6718_v33, 1  ;;  %v17331_v18 = vshll.u32 %v15682_v35, 16  ;;  %v6601_v30 = vld [vmem:[#allocation2 + $0x190] sm:$0x1] }
 0x72a   : > { %8660 = vmatprep.mubr.bf16.mxu1 %v6584_v10 }
 0x72f   : > { %8508 = vmatmul.mubr.bf16.gmra.mrb[236].mxu0 %v6584_v10  ;;  %v6721_v10 = vsel %vm6057_vm9, %v15627_v19, %v6720_v7  ;;  %v6733_v19 = vsel %vm6057_vm9, %v15635_v47, %v6732_v23  ;;  %v6745_v47 = vsel %vm6057_vm9, %v15647_v25, %v6744_v2  ;;  %v6766_v23 = vshll.u32 %v6597_v54, 16 }
 0x730   : > { %8515 = vmatprep.mubr.bf16.mxu0 %v6709_v37  ;;  %v17333_v37 = vshll.u32 %v15686_v43, 16 }
 0x731   : > { %8661 = vmatmul.mubr.bf16.gmra.mrb[240].mxu1 %v6942_v28  ;;  %v6847_v28 = vld [vmem:[#allocation2 + $0x120] sm:$0x80]  ;;  %v6768_v56 = vrot.slane %v6766_v23, 1 }
 0x732   : > { %8668 = vmatprep.mubr.bf16.mxu1 %v15611_v0  ;;  %v6977_v33 = vor.u32 %v17333_v37, %v6974_v59  ;;  %v6980_v61 = vshrl.u32 %v6847_v28, 16 }
 0x734   : > { %v6978_v7 = vsel %vm5768_vm8, %v6970_v15, %v6977_v33  ;;  %v6851_v15 = vld [vmem:[#allocation2 + $0x150] sm:$0x80] }
 0x735   : > { %v7004_v54 = vshrl.u32 %v6851_v15, 16 }
 0x737   : > { %8516 = vmatmul.mubr.bf16.gmra.mrb[240].mxu0 %v15611_v0  ;;  %v6965_v0 = vor.u32 %v17331_v18, %v6962_v12  ;;  %v6849_v12 = vld [vmem:[#allocation2 + $0x138] sm:$0x80] }
 0x738   : > { %8523 = vmatprep.mubr.bf16.mxu0 %v6721_v10 }
 0x739   : > { %8669 = vmatmul.mubr.bf16.gmra.mrb[244].mxu1 %v6954_v14  ;;  %v6966_v42 = vsel %vm5768_vm8, %v6958_v1, %v6965_v0  ;;  %v6982_v14 = vrot.slane %v6980_v61, 7  ;;  %v6992_v0 = vshrl.u32 %v6849_v12, 16 }
 0x73a   : > { %8676 = vmatprep.mubr.bf16.mxu1 %v15682_v35 }
 0x73b   : > { %v6994_v28 = vrot.slane %v6992_v0, 7  ;;  %v7006_v0 = vrot.slane %v7004_v54, 7  ;;  %v15919_v54 = vld [vmem:[#allocation2 + $0x188] sm:$0xff] }
 0x73f   : > { %8524 = vmatmul.mubr.bf16.gmra.mrb[244].mxu0 %v15682_v35  ;;  %v6595_v35 = vld [vmem:[#allocation2 + $0x148] sm:$0x1] }
 0x740   : > { %8531 = vmatprep.mubr.bf16.mxu0 %v6733_v19  ;;  %v6754_v52 = vshll.u32 %v6595_v35, 16  ;;  %v15877_v19 = vld [vmem:[#allocation2 + $0x158] sm:$0xff] }
 0x741   : > { %8677 = vmatmul.mubr.bf16.gmra.mrb[248].mxu1 %v6966_v42  ;;  %v15882_v42 = vld [vmem:[%s17128_s7] ss:$0 sm:$0xff]  ;;  %v7008_v37 = vshrl.u32 %v15877_v19, 16 }
 0x742   : > { %8684 = vmatprep.mubr.bf16.mxu1 %v15686_v43  ;;  %v6756_v10 = vrot.slane %v6754_v52, 1 }
 0x743   : > { %v7010_v12 = vrot.slane %v7008_v37, 7 }
 0x744   : > { %v6757_v25 = vsel %vm6057_vm9, %v15649_v11, %v6756_v10  ;;  %v6778_v10 = vshll.u32 %v6599_v20, 16 }
 0x747   : > { %8532 = vmatmul.mubr.bf16.gmra.mrb[248].mxu0 %v15686_v43  ;;  %v6989_v43 = vor.u32 %v17335_v63, %v6986_v34  ;;  %v6769_v34 = vsel %vm6057_vm9, %v15660_v8, %v6768_v56  ;;  %v7011_v8 = vshll.u32 %v15877_v19, 16  ;;  %v6853_v56 = vld [vmem:[#allocation2 + $0x168] sm:$0x80] }
 0x748   : > { %8539 = vmatprep.mubr.bf16.mxu0 %v6745_v47  ;;  %v17337_v47 = vshll.u32 %v15697_v55, 16 }
 0x749   : > { %8685 = vmatmul.mubr.bf16.gmra.mrb[252].mxu1 %v6978_v7  ;;  %v6990_v1 = vsel %vm5768_vm8, %v6982_v14, %v6989_v43  ;;  %v8132_v7 = vadd.f32 %v15740_v13, %v15882_v42  ;;  %v8135_v14 = vadd.f32 %v15743_v40, %v15882_v42 }
 0x74a   : > { %8692 = vmatprep.mubr.bf16.mxu1 %v15688_v41  ;;  %v7001_v52 = vor.u32 %v17337_v47, %v6998_v48 }
 0x74c   : > { %v7002_v13 = vsel %vm5768_vm8, %v6994_v28, %v7001_v52 }
 0x74f   : > { %8540 = vmatmul.mubr.bf16.gmra.mrb[252].mxu0 %v15688_v41  ;;  %v11207_v18 = vpop.f32.mrb[148].mxu0 }
 0x750   : > { %8547 = vmatprep.mubr.bf16.mxu0 %v6757_v25  ;;  %v11208_v38 = vpop.f32.mrb[149].mxu0  ;;  %v15903_v25 = vld [vmem:[#allocation2 + $0x170] sm:$0xff] }
 0x751   : > { %8693 = vmatmul.mubr.bf16.gmra.mrb[0].mxu1 %v6990_v1  ;;  %v11209_v11 = vadd.f32 %v11208_v38, %v11207_v18  ;;  %v11210_v41 = vpop.f32.mrb[150].mxu0  ;;  %v6780_v18 = vrot.slane %v6778_v10, 1  ;;  %v17203_v20 = vshrl.u32 %v15903_v25, 16 }
 0x752   : > { %8700 = vmatprep.mubr.bf16.mxu1 %v15622_v46  ;;  %v11313_v59 = vpop.f32.mrb[152].mxu1  ;;  %v11211_v2 = vpop.f32.mrb[151].mxu0 }
 0x753   : > { %v11314_v33 = vpop.f32.mrb[153].mxu1  ;;  %v11212_v35 = vadd.f32 %v11211_v2, %v11210_v41  ;;  %v8140_v15 = vadd.f32 %v11209_v11, %v15882_v42  ;;  %v6781_v52 = vsel %vm6057_vm9, %v15669_v49, %v6780_v18  ;;  %v7022_v11 = vrot.slane %v17203_v20, 7 }
 0x754   : > { %v11315_v61 = vadd.f32 %v11314_v33, %v11313_v59  ;;  %v11316_v46 = vpop.f32.mrb[154].mxu1 }
 0x755   : > { %v11317_v57 = vpop.f32.mrb[155].mxu1 }
 0x756   : > { %v15894_v63 = vadd.f32 %v11315_v61, %v8132_v7  ;;  %v11318_v43 = vadd.f32 %v11317_v57, %v11316_v46  ;;  %v6790_v61 = vshll.u32 %v6601_v30, 16  ;;  %v7016_v46 = vshrl.u32 %v6853_v56, 16 }
 0x757   : > { %8548 = vmatmul.mubr.bf16.gmra.mrb[0].mxu0 %v15697_v55  ;;  %v7013_v55 = vor.u32 %v7011_v8, %v7010_v12  ;;  %v8143_v57 = vadd.f32 %v11212_v35, %v15882_v42  ;;  %v6855_v35 = vld [vmem:[#allocation2 + $0x180] sm:$0x80] }
 0x758   : > { %8555 = vmatprep.mubr.bf16.mxu0 %v6769_v34  ;;  %v15900_v23 = vadd.f32 %v11318_v43, %v8135_v14  ;;  %v7023_v43 = vshll.u32 %v15903_v25, 16 }
 0x759   : > { %8701 = vmatmul.mubr.bf16.gmra.mrb[4].mxu1 %v7002_v13  ;;  %v7014_v7 = vsel %vm5768_vm8, %v7006_v0, %v7013_v55  ;;  %v6792_v13 = vrot.slane %v6790_v61, 1  ;;  %v7018_v55 = vrot.slane %v7016_v46, 7 }
 0x75a   : > { %8708 = vmatprep.mubr.bf16.mxu1 %v15633_v62  ;;  %v11213_v40 = vpop.f32.mrb[152].mxu0  ;;  %v7025_v30 = vor.u32 %v7023_v43, %v7022_v11 }
 0x75b   : > { %v11214_v1 = vpop.f32.mrb[153].mxu0 }
 0x75c   : > { %v11215_v48 = vadd.f32 %v11214_v1, %v11213_v40  ;;  %v11319_v38 = vpop.f32.mrb[156].mxu1  ;;  %v11216_v41 = vpop.f32.mrb[154].mxu0  ;;  %v17200_v40 = vshrl.u32 %v15919_v54, 16 }
 0x75d   : > { %v11320_v59 = vpop.f32.mrb[157].mxu1  ;;  %v11217_v2 = vpop.f32.mrb[155].mxu0 }
 0x75e   : > { %v11321_v33 = vadd.f32 %v11320_v59, %v11319_v38  ;;  %v11218_v62 = vadd.f32 %v11217_v2, %v11216_v41  ;;  %v11322_v28 = vpop.f32.mrb[158].mxu1  ;;  %v7116_v38 = vld [vmem:[#allocation2 + $0x40] sm:$0x1] }
 0x75f   : > { %v11323_v47 = vpop.f32.mrb[159].mxu1  ;;  %8556 = vmatmul.mubr.bf16.gmra.mrb[4].mxu0 %v15877_v19 }
 0x760   : > { %v15915_v34 = vadd.f32 %v11321_v33, %v8140_v15  ;;  %v11324_v10 = vadd.f32 %v11323_v47, %v11322_v28  ;;  %8563 = vmatprep.mubr.bf16.mxu0 %v6781_v52  ;;  %v6793_v28 = vsel %vm6057_vm9, %v15680_v3, %v6792_v13  ;;  %v7028_v47 = vshrl.u32 %v6855_v35, 16  ;;  %v15942_v13 = vld [vmem:[#allocation2 + $0x8] sm:$0xff] }
 0x761   : > { %8709 = vmatmul.mubr.bf16.gmra.mrb[8].mxu1 %v7014_v7  ;;  %v7034_v52 = vrot.slane %v17200_v40, 7  ;;  %v7155_v7 = vshll.u32 %v7116_v38, 16  ;;  %v8151_v61 = vadd.f32 %v11218_v62, %v15882_v42  ;;  %v17201_v62 = vshrl.u32 %v15942_v13, 16 }
 0x762   : > { %v15921_v14 = vadd.f32 %v11324_v10, %v8143_v57  ;;  %8716 = vmatprep.mubr.bf16.mxu1 %v15645_v31  ;;  %v11219_v49 = vpop.f32.mrb[156].mxu0  ;;  %v8148_v31 = vadd.f32 %v11215_v48, %v15882_v42  ;;  %v7026_v48 = vsel %vm5768_vm8, %v7018_v55, %v7025_v30  ;;  %v7118_v10 = vld [vmem:[#allocation2 + $0x58] sm:$0x1]  ;;  %v7030_v55 = vrot.slane %v7028_v47, 7 }
 0x763   : > { %v11220_v12 = vpop.f32.mrb[157].mxu0 }
 0x764   : > { %v11221_v1 = vadd.f32 %v11220_v12, %v11219_v49  ;;  %v11325_v18 = vpop.f32.mrb[160].mxu1  ;;  %v11222_v0 = vpop.f32.mrb[158].mxu0  ;;  %v7035_v49 = vshll.u32 %v15919_v54, 16  ;;  %v6857_v12 = vld [vmem:[#allocation2 + $0x198] sm:$0x80] }
 0x765   : > { %v11326_v41 = vpop.f32.mrb[161].mxu1  ;;  %v11223_v56 = vpop.f32.mrb[159].mxu0 }
 0x766   : > { %v11327_v59 = vadd.f32 %v11326_v41, %v11325_v18  ;;  %v11224_v2 = vadd.f32 %v11223_v56, %v11222_v0  ;;  %v11328_v15 = vpop.f32.mrb[162].mxu1  ;;  %v7157_v18 = vrot.slane %v7155_v7, 1  ;;  %v7037_v30 = vor.u32 %v7035_v49, %v7034_v52  ;;  %v7120_v56 = vld [vmem:[#allocation2 + $0x70] sm:$0x1] }
 0x767   : > { %v11329_v33 = vpop.f32.mrb[163].mxu1  ;;  %8564 = vmatmul.mubr.bf16.gmra.mrb[8].mxu0 %v15903_v25  ;;  %v7046_v7 = vrot.slane %v17201_v62, 7  ;;  %v7179_v52 = vshll.u32 %v7120_v56, 16 }
 0x768   : > { %v15935_v46 = vadd.f32 %v11327_v59, %v8148_v31  ;;  %v11330_v57 = vadd.f32 %v11329_v33, %v11328_v15  ;;  %8571 = vmatprep.mubr.bf16.mxu0 %v6793_v28  ;;  %v7167_v15 = vshll.u32 %v7118_v10, 16  ;;  %v7040_v33 = vshrl.u32 %v6857_v12, 16 }
 0x769   : > { %8717 = vmatmul.mubr.bf16.gmra.mrb[12].mxu1 %v7026_v48  ;;  %v17202_v28 = vshll.u32 %v15942_v13, 16  ;;  %v7158_v47 = vsel %vm6057_vm9, %v15764_v5, %v7157_v18  ;;  %v8159_v10 = vadd.f32 %v11224_v2, %v15882_v42  ;;  %v7122_v18 = vld [vmem:[#allocation2 + $0x88] sm:$0x1]  ;;  %v7181_v2 = vrot.slane %v7179_v52, 1 }
 0x76a   : > { %v15938_v11 = vadd.f32 %v11330_v57, %v8151_v61  ;;  %8724 = vmatprep.mubr.bf16.mxu1 %v15656_v51  ;;  %v11225_v3 = vpop.f32.mrb[160].mxu0  ;;  %v8156_v61 = vadd.f32 %v11221_v1, %v15882_v42  ;;  %v7038_v1 = vsel %vm5768_vm8, %v7030_v55, %v7037_v30 }
 0x76b   : > { %v11226_v35 = vpop.f32.mrb[161].mxu0  ;;  %v7049_v5 = vor.u32 %v17202_v28, %v7046_v7  ;;  %v7182_v52 = vsel %vm6057_vm9, %v15786_v45, %v7181_v2 }
 0x76c   : > { %v11227_v0 = vadd.f32 %v11226_v35, %v11225_v3  ;;  %v11331_v38 = vpop.f32.mrb[164].mxu1  ;;  %v11228_v41 = vpop.f32.mrb[162].mxu0 }
 0x76d   : > { %v11332_v31 = vpop.f32.mrb[165].mxu1  ;;  %v11229_v59 = vpop.f32.mrb[163].mxu0 }
 0x76e   : > { %v11333_v57 = vadd.f32 %v11332_v31, %v11331_v38  ;;  %v11230_v48 = vadd.f32 %v11229_v59, %v11228_v41  ;;  %v11334_v40 = vpop.f32.mrb[166].mxu1  ;;  %v7169_v38 = vrot.slane %v7167_v15, 1 }
 0x76f   : > { %v11335_v3 = vpop.f32.mrb[167].mxu1  ;;  %8572 = vmatmul.mubr.bf16.gmra.mrb[12].mxu0 %v15656_v51  ;;  %v7042_v51 = vrot.slane %v7040_v33, 7 }
 0x770   : > { %v15955_v12 = vadd.f32 %v11333_v57, %v8156_v61  ;;  %v11336_v35 = vadd.f32 %v11335_v3, %v11334_v40  ;;  %11863 = vmatprep.mubr.bf16.mxu0 %v7158_v47  ;;  %v7124_v57 = vld [vmem:[#allocation2 + $0xa0] sm:$0x1]  ;;  %v7170_v15 = vsel %vm6057_vm9, %v15775_v9, %v7169_v38  ;;  %v7191_v3 = vshll.u32 %v7122_v18, 16  ;;  %v7126_v18 = vld [vmem:[#allocation2 + $0xb8] sm:$0x1] }
 0x771   : > { %8725 = vmatmul.mubr.bf16.gmra.mrb[16].mxu1 %v7038_v1  ;;  %v8164_v47 = vadd.f32 %v11227_v0, %v15882_v42  ;;  %v7050_v7 = vsel %vm5768_vm8, %v7042_v51, %v7049_v5 }
 0x772   : > { %v15958_v41 = vadd.f32 %v11336_v35, %v8159_v10  ;;  %v11231_v31 = vpop.f32.mrb[164].mxu0  ;;  %8732 = vmatprep.mubr.bf16.mxu1 %v15942_v13  ;;  %v7193_v38 = vrot.slane %v7191_v3, 1 }
 0x773   : > { %v11232_v56 = vpop.f32.mrb[165].mxu0 }
 0x774   : > { %v11233_v59 = vadd.f32 %v11232_v56, %v11231_v31  ;;  %v11337_v61 = vpop.f32.mrb[168].mxu1  ;;  %v11234_v40 = vpop.f32.mrb[166].mxu0  ;;  %v7203_v31 = vshll.u32 %v7124_v57, 16  ;;  %v8167_v56 = vadd.f32 %v11230_v48, %v15882_v42  ;;  %v7194_v3 = vsel %vm6057_vm9, %v15801_v27, %v7193_v38 }
 0x775   : > { %v11338_v55 = vpop.f32.mrb[169].mxu1  ;;  %v11235_v30 = vpop.f32.mrb[167].mxu0 }
 0x776   : > { %v11339_v10 = vadd.f32 %v11338_v55, %v11337_v61  ;;  %v11236_v33 = vadd.f32 %v11235_v30, %v11234_v40  ;;  %v11340_v35 = vpop.f32.mrb[170].mxu1  ;;  %v7205_v5 = vrot.slane %v7203_v31, 1  ;;  %v7128_v40 = vld [vmem:[#allocation2 + $0xd0] sm:$0x1]  ;;  %v7215_v55 = vshll.u32 %v7126_v18, 16 }
 0x777   : > { %v11341_v1 = vpop.f32.mrb[171].mxu1  ;;  %11864 = vmatmul.mubr.bf16.vlgmr.msra.gmra.mrb[16].mxu0 %v7170_v15  ;;  %v8172_v30 = vadd.f32 %v11233_v59, %v15882_v42 }
 0x778   : > { %v15970_v62 = vadd.f32 %v11339_v10, %v8164_v47  ;;  %v11342_v28 = vadd.f32 %v11341_v1, %v11340_v35  ;;  %11867 = vmatprep.mubr.bf16.mxu0 %v7182_v52  ;;  %v7206_v35 = vsel %vm6057_vm9, %v15814_v22, %v7205_v5  ;;  %v7129_v1 = vld [vmem:[#allocation2 + $0xe0] sm:$0xff]  ;;  %v8175_v52 = vadd.f32 %v11236_v33, %v15882_v42 }
 0x779   : > { %8733 = vmatmul.mubr.bf16.gmra.mrb[20].mxu1 %v7050_v7  ;;  %v7227_v7 = vshll.u32 %v7128_v40, 16  ;;  %v7217_v59 = vrot.slane %v7215_v55, 1  ;;  %v7132_v22 = vld [vmem:[#allocation2 + $0x100] sm:$0x1] }
 0x77a   : > { %v15972_v9 = vadd.f32 %v11342_v28, %v8167_v56  ;;  %v11237_v0 = vpop.f32.mrb[168].mxu0  ;;  %11927 = vmatprep.mubr.msk.f32.mxu1 %vm12758_vm6, %v17330_v21 }
 0x77b   : > { %v11238_v51 = vpop.f32.mrb[169].mxu0  ;;  %v7229_v38 = vrot.slane %v7227_v7, 1  ;;  %v7218_v33 = vsel %vm6057_vm9, %v15825_v16, %v7217_v59  ;;  %v7232_v16 = vshrl.u32 %v7129_v1, 16 }
 0x77c   : > { %v11239_v61 = vadd.f32 %v11238_v51, %v11237_v0  ;;  %v11343_v45 = vpop.f32.mrb[172].mxu1  ;;  %v11240_v2 = vpop.f32.mrb[170].mxu0  ;;  %v7130_v51 = vld [vmem:[#allocation2 + $0xe8] sm:$0x1] }
 0x77d   : > { %v11344_v48 = vpop.f32.mrb[173].mxu1  ;;  %v11241_v57 = vpop.f32.mrb[171].mxu0  ;;  %v7230_v7 = vsel %vm6057_vm9, %v15834_v29, %v7229_v38  ;;  %v7136_v29 = vld [vmem:[#allocation2 + $0x130] sm:$0x1] }
 0x77e   : > { %v11345_v15 = vadd.f32 %v11344_v48, %v11343_v45  ;;  %v11242_v28 = vadd.f32 %v11241_v57, %v11240_v2  ;;  %v11346_v47 = vpop.f32.mrb[174].mxu1  ;;  %v7234_v45 = vshll.u32 %v7129_v1, 16 }
 0x77f   : > { %v11347_v10 = vpop.f32.mrb[175].mxu1  ;;  %11868 = vmatmul.mubr.bf16.gmra.mrb[20].mxu0 %v7194_v3 }
 0x780   : > { %v15982_v31 = vadd.f32 %v11345_v15, %v8172_v30  ;;  %v11348_v56 = vadd.f32 %v11347_v10, %v11346_v47  ;;  %11871 = vmatprep.mubr.bf16.mxu0 %v7206_v35  ;;  %v7239_v30 = vshll.u32 %v7130_v51, 16  ;;  %v8180_v15 = vadd.f32 %v11239_v61, %v15882_v42 }
 0x781   : > { %v7236_v10 = vrot.slane %v7234_v45, 1 }
 0x782   : > { %v15984_v0 = vadd.f32 %v11348_v56, %v8175_v52  ;;  %v11243_v18 = vpop.f32.mrb[172].mxu0  ;;  %v7251_v52 = vshll.u32 %v7132_v22, 16  ;;  %v8183_v56 = vadd.f32 %v11242_v28, %v15882_v42 }
 0x783   : > { %v11244_v27 = vpop.f32.mrb[173].mxu0  ;;  %v7237_v51 = vor.u32 %v7236_v10, %v7232_v16  ;;  %v7275_v10 = vshll.u32 %v7136_v29, 16 }
 0x784   : > { %v11245_v2 = vadd.f32 %v11244_v27, %v11243_v18  ;;  %v11349_v48 = vpop.f32.mrb[176].mxu1  ;;  %v11246_v57 = vpop.f32.mrb[174].mxu0 }
 0x785   : > { %v11350_v5 = vpop.f32.mrb[177].mxu1  ;;  %v11247_v40 = vpop.f32.mrb[175].mxu0 }
 0x786   : > { %v11351_v55 = vadd.f32 %v11350_v5, %v11349_v48  ;;  %v11248_v47 = vadd.f32 %v11247_v40, %v11246_v57  ;;  %v11352_v3 = vpop.f32.mrb[178].mxu1  ;;  %v7241_v48 = vrot.slane %v7239_v30, 1  ;;  %v7134_v57 = vld [vmem:[#allocation2 + $0x118] sm:$0x1]  ;;  %v7253_v5 = vrot.slane %v7251_v52, 1 }
 0x787   : > { %v11353_v35 = vpop.f32.mrb[179].mxu1  ;;  %11872 = vmatmul.mubr.bf16.gmra.mrb[24].mxu0 %v7218_v33  ;;  %v7263_v28 = vshll.u32 %v7134_v57, 16 }
 0x788   : > { %v15992_v18 = vadd.f32 %v11351_v55, %v8180_v15  ;;  %v11354_v27 = vadd.f32 %v11353_v35, %v11352_v3  ;;  %11875 = vmatprep.mubr.bf16.mxu0 %v7230_v7  ;;  %v8188_v15 = vadd.f32 %v11245_v2, %v15882_v42  ;;  %v7242_v35 = vsel %vm6057_vm9, %v7237_v51, %v7241_v48 }
 0x789   : > { %v7254_v30 = vsel %vm6057_vm9, %v15714_v6, %v7253_v5  ;;  %v8191_v52 = vadd.f32 %v11248_v47, %v15882_v42 }
 0x78a   : > { %v15994_v59 = vadd.f32 %v11354_v27, %v8183_v56  ;;  %v11249_v61 = vpop.f32.mrb[176].mxu0 }
 0x78b   : > { %v11250_v45 = vpop.f32.mrb[177].mxu0 }
 0x78c   : > { %v11251_v40 = vadd.f32 %v11250_v45, %v11249_v61  ;;  %v11355_v33 = vpop.f32.mrb[180].mxu1  ;;  %v11252_v20 = vpop.f32.mrb[178].mxu0  ;;  %v7265_v61 = vrot.slane %v7263_v28, 1  ;;  %v7277_v45 = vrot.slane %v7275_v10, 1 }
 0x78d   : > { %v11356_v38 = vpop.f32.mrb[181].mxu1  ;;  %v11253_v22 = vpop.f32.mrb[179].mxu0 }
 0x78e   : > { %v11357_v55 = vadd.f32 %v11356_v38, %v11355_v33  ;;  %v11254_v3 = vadd.f32 %v11253_v22, %v11252_v20  ;;  %v11358_v1 = vpop.f32.mrb[182].mxu1  ;;  %v7138_v20 = vld [vmem:[#allocation2 + $0x148] sm:$0x1]  ;;  %v7140_v38 = vld [vmem:[#allocation2 + $0x160] sm:$0x1]  ;;  %v8196_v47 = vadd.f32 %v11251_v40, %v15882_v42  ;;  %v7278_v28 = vsel %vm6057_vm9, %v15723_v32, %v7277_v45 }
 0x78f   : > { %v11359_v7 = vpop.f32.mrb[183].mxu1  ;;  %11876 = vmatmul.mubr.bf16.gmra.mrb[28].mxu0 %v7242_v35  ;;  %v7287_v5 = vshll.u32 %v7138_v20, 16 }
 0x790   : > { %v16001_v56 = vadd.f32 %v11357_v55, %v8188_v15  ;;  %v11360_v27 = vadd.f32 %v11359_v7, %v11358_v1  ;;  %11879 = vmatprep.mubr.bf16.mxu0 %v7254_v30  ;;  %v7266_v1 = vsel %vm6057_vm9, %v15719_v50, %v7265_v61  ;;  %v7296_v7 = vrot.slane %v7011_v8, 1  ;;  %v7142_v50 = vld [vmem:[#allocation2 + $0x178] sm:$0x1] }
 0x791   : > { %v7299_v30 = vshll.u32 %v7140_v38, 16  ;;  %v8199_v10 = vadd.f32 %v11254_v3, %v15882_v42  ;;  %v7289_v20 = vrot.slane %v7287_v5, 1 }
 0x792   : > { %v16003_v16 = vadd.f32 %v11360_v27, %v8191_v52  ;;  %v11255_v2 = vpop.f32.mrb[180].mxu0 }
 0x793   : > { %v11256_v57 = vpop.f32.mrb[181].mxu0  ;;  %v7301_v32 = vrot.slane %v7299_v30, 1  ;;  %v7290_v19 = vsel %vm6057_vm9, %v15738_v60, %v7289_v20  ;;  %v17338_v60 = vshrl.u32 %v15903_v25, 16 }
 0x794   : > { %v11257_v51 = vadd.f32 %v11256_v57, %v11255_v2  ;;  %v11361_v48 = vpop.f32.mrb[184].mxu1  ;;  %v11258_v33 = vpop.f32.mrb[182].mxu0  ;;  %v7297_v57 = vor.u32 %v7296_v7, %v7008_v37 }
 0x795   : > { %v11362_v22 = vpop.f32.mrb[185].mxu1  ;;  %v11259_v6 = vpop.f32.mrb[183].mxu0 }
 0x796   : > { %v11363_v29 = vadd.f32 %v11362_v22, %v11361_v48  ;;  %v11260_v15 = vadd.f32 %v11259_v6, %v11258_v33  ;;  %v11364_v55 = vpop.f32.mrb[186].mxu1  ;;  %v7144_v33 = vld [vmem:[#allocation2 + $0x190] sm:$0x1]  ;;  %v7308_v22 = vrot.slane %v7023_v43, 1  ;;  %v7311_v6 = vshll.u32 %v7142_v50, 16 }
 0x797   : > { %v11365_v35 = vpop.f32.mrb[187].mxu1  ;;  %11880 = vmatmul.mubr.bf16.gmra.mrb[32].mxu0 %v7266_v1  ;;  %v7302_v1 = vsel %vm6057_vm9, %v7297_v57, %v7301_v32  ;;  %v17340_v32 = vshll.u32 %v15942_v13, 16 }
 0x798   : > { %v16013_v52 = vadd.f32 %v11363_v29, %v8196_v47  ;;  %v11366_v40 = vadd.f32 %v11365_v35, %v11364_v55  ;;  %11883 = vmatprep.mubr.bf16.mxu0 %v7278_v28  ;;  %v8204_v47 = vadd.f32 %v11257_v51, %v15882_v42  ;;  %v7320_v35 = vrot.slane %v7035_v49, 1  ;;  %v7146_v51 = vld [vmem:[#allocation2 + $0x1a8] sm:$0x1] }
 0x799   : > { %v7323_v28 = vshll.u32 %v7144_v33, 16  ;;  %v8207_v7 = vadd.f32 %v11260_v15, %v15882_v42  ;;  %v7313_v20 = vrot.slane %v7311_v6, 1  ;;  %v7332_v15 = vrot.slane %v17340_v32, 1 }
 0x79a   : > { %v16015_v27 = vadd.f32 %v11366_v40, %v8199_v10  ;;  %v11261_v2 = vpop.f32.mrb[184].mxu0 }
 0x79b   : > { %v11262_v61 = vpop.f32.mrb[185].mxu0  ;;  %v7325_v49 = vrot.slane %v7323_v28, 1 }
 0x79c   : > { %v11263_v45 = vadd.f32 %v11262_v61, %v11261_v2  ;;  %v11367_v48 = vpop.f32.mrb[188].mxu1  ;;  %v11264_v8 = vpop.f32.mrb[186].mxu0  ;;  %v7309_v2 = vor.u32 %v7308_v22, %v17338_v60  ;;  %v17339_v61 = vshrl.u32 %v15919_v54, 16 }
 0x79d   : > { %v11368_v38 = vpop.f32.mrb[189].mxu1  ;;  %v11265_v3 = vpop.f32.mrb[187].mxu0 }
 0x79e   : > { %v11369_v29 = vadd.f32 %v11368_v38, %v11367_v48  ;;  %v11266_v5 = vadd.f32 %v11265_v3, %v11264_v8  ;;  %v11370_v55 = vpop.f32.mrb[190].mxu1  ;;  %v7321_v57 = vor.u32 %v7320_v35, %v17339_v61  ;;  %v7335_v38 = vshll.u32 %v7146_v51, 16 }
 0x79f   : > { %v11371_v37 = vpop.f32.mrb[191].mxu1  ;;  %11884 = vmatmul.mubr.bf16.gmra.mrb[36].mxu0 %v7290_v19  ;;  %v7314_v6 = vsel %vm6057_vm9, %v7309_v2, %v7313_v20 }
 0x7a0   : > { %v16028_v43 = vadd.f32 %v11369_v29, %v8204_v47  ;;  %v11372_v30 = vadd.f32 %v11371_v37, %v11370_v55  ;;  %11887 = vmatprep.mubr.bf16.mxu0 %v7302_v1  ;;  %v8212_v29 = vadd.f32 %v11263_v45, %v15882_v42  ;;  %v7326_v54 = vsel %vm6057_vm9, %v7321_v57, %v7325_v49 }
 0x7a1   : > { %v17341_v37 = vshrl.u32 %v15942_v13, 16  ;;  %v8215_v35 = vadd.f32 %v11266_v5, %v15882_v42 }
 0x7a2   : > { %v16030_v10 = vadd.f32 %v11372_v30, %v8207_v7  ;;  %v11267_v40 = vpop.f32.mrb[188].mxu0  ;;  %v7337_v30 = vrot.slane %v7335_v38, 1 }
 0x7a3   : > { %v11268_v50 = vpop.f32.mrb[189].mxu0  ;;  %v7333_v1 = vor.u32 %v7332_v15, %v17341_v37 }
 0x7a4   : > { %v11269_v48 = vadd.f32 %v11268_v50, %v11267_v40  ;;  %v11373_v8 = vpop.f32.mrb[192].mxu1  ;;  %v11270_v33 = vpop.f32.mrb[190].mxu0 }
 0x7a5   : > { %v11374_v3 = vpop.f32.mrb[193].mxu1  ;;  %v11271_v47 = vpop.f32.mrb[191].mxu0  ;;  %v7338_v50 = vsel %vm6057_vm9, %v7333_v1, %v7337_v30 }
 0x7a6   : > { %v11375_v55 = vadd.f32 %v11374_v3, %v11373_v8  ;;  %v11272_v25 = vadd.f32 %v11271_v47, %v11270_v33  ;;  %v11376_v22 = vpop.f32.mrb[194].mxu1  ;;  %v8220_v13 = vadd.f32 %v11269_v48, %v15882_v42  ;;  %v17342_v3 = vld [vmem:[#allocation15_spill] sm:$0xff] }
 0x7a7   : > { %v11377_v19 = vpop.f32.mrb[195].mxu1  ;;  %11888 = vmatmul.mubr.bf16.gmra.mrb[40].mxu0 %v7314_v6 }
 0x7a8   : > { %v16044_v28 = vadd.f32 %v11375_v55, %v8212_v29  ;;  %v11378_v7 = vadd.f32 %v11377_v19, %v11376_v22  ;;  %11891 = vmatprep.mubr.bf16.mxu0 %v7326_v54  ;;  %v8223_v8 = vadd.f32 %v11272_v25, %v15882_v42 }
 0x7aa   : > { %v16046_v45 = vadd.f32 %v11378_v7, %v8215_v35  ;;  %v11273_v51 = vpop.f32.mrb[192].mxu0 }
 0x7ab   : > { %v11274_v40 = vpop.f32.mrb[193].mxu0 }
 0x7ac   : > { %v11275_v60 = vadd.f32 %v11274_v40, %v11273_v51  ;;  %v11379_v2 = vpop.f32.mrb[196].mxu1  ;;  %v11276_v20 = vpop.f32.mrb[194].mxu0 }
 0x7ad   : > { %v11380_v61 = vpop.f32.mrb[197].mxu1  ;;  %v11277_v57 = vpop.f32.mrb[195].mxu0 }
 0x7ae   : > { %v11381_v49 = vadd.f32 %v11380_v61, %v11379_v2  ;;  %v11278_v5 = vadd.f32 %v11277_v57, %v11276_v20  ;;  %v11382_v32 = vpop.f32.mrb[198].mxu1  ;;  %v8228_v37 = vadd.f32 %v11275_v60, %v15882_v42 }
 0x7af   : > { %v11383_v15 = vpop.f32.mrb[199].mxu1  ;;  %11892 = vmatmul.mubr.bf16.gmra.mrb[44].mxu0 %v7338_v50 }
 0x7b0   : > { %v16051_v33 = vadd.f32 %v11381_v49, %v8220_v13  ;;  %v11384_v38 = vadd.f32 %v11383_v15, %v11382_v32  ;;  %11991 = vmatprep.mubr.bf16.mxu0 %v17342_v3  ;;  %v8231_v30 = vadd.f32 %v11278_v5, %v15882_v42 }
 0x7b2   : > { %v16054_v47 = vadd.f32 %v11384_v38, %v8223_v8  ;;  %v11279_v29 = vpop.f32.mrb[196].mxu0 }
 0x7b3   : > { %v11280_v55 = vpop.f32.mrb[197].mxu0 }
 0x7b4   : > { %v11281_v22 = vadd.f32 %v11280_v55, %v11279_v29  ;;  %v11385_v6 = vpop.f32.mrb[200].mxu1  ;;  %v11282_v19 = vpop.f32.mrb[198].mxu0 }
 0x7b5   : > { %v11386_v48 = vpop.f32.mrb[201].mxu1  ;;  %v11283_v54 = vpop.f32.mrb[199].mxu0 }
 0x7b6   : > { %v11387_v1 = vadd.f32 %v11386_v48, %v11385_v6  ;;  %v11284_v35 = vadd.f32 %v11283_v54, %v11282_v19  ;;  %v11388_v7 = vpop.f32.mrb[202].mxu1  ;;  %v8236_v60 = vadd.f32 %v11281_v22, %v15882_v42 }
 0x7b7   : > { %v11389_v25 = vpop.f32.mrb[203].mxu1 }
 0x7b8   : > { %v16058_v51 = vadd.f32 %v11387_v1, %v8228_v37  ;;  %v11390_v40 = vadd.f32 %v11389_v25, %v11388_v7  ;;  %v8239_v5 = vadd.f32 %v11284_v35, %v15882_v42 }
 0x7ba   : > { %v16060_v2 = vadd.f32 %v11390_v40, %v8231_v30  ;;  %v11285_v20 = vpop.f32.mrb[200].mxu0 }
 0x7bb   : > { %v11286_v50 = vpop.f32.mrb[201].mxu0 }
 0x7bc   : > { %v11287_v61 = vadd.f32 %v11286_v50, %v11285_v20  ;;  %v11391_v57 = vpop.f32.mrb[204].mxu1  ;;  %v11288_v13 = vpop.f32.mrb[202].mxu0 }
 0x7bd   : > { %v11392_v49 = vpop.f32.mrb[205].mxu1  ;;  %v11289_v32 = vpop.f32.mrb[203].mxu0 }
 0x7be   : > { %v11393_v15 = vadd.f32 %v11392_v49, %v11391_v57  ;;  %v11290_v8 = vadd.f32 %v11289_v32, %v11288_v13  ;;  %v11394_v38 = vpop.f32.mrb[206].mxu1  ;;  %v8244_v22 = vadd.f32 %v11287_v61, %v15882_v42 }
 0x7bf   : > { %v11395_v3 = vpop.f32.mrb[207].mxu1 }
 0x7c0   : > { %v16064_v29 = vadd.f32 %v11393_v15, %v8236_v60  ;;  %v11396_v55 = vadd.f32 %v11395_v3, %v11394_v38  ;;  %v8247_v35 = vadd.f32 %v11290_v8, %v15882_v42 }
 0x7c2   : > { %v16066_v6 = vadd.f32 %v11396_v55, %v8239_v5  ;;  %v11291_v19 = vpop.f32.mrb[204].mxu0 }
 0x7c3   : > { %v11292_v48 = vpop.f32.mrb[205].mxu0 }
 0x7c4   : > { %v11293_v54 = vadd.f32 %v11292_v48, %v11291_v19  ;;  %v11397_v37 = vpop.f32.mrb[208].mxu1  ;;  %v11294_v1 = vpop.f32.mrb[206].mxu0 }
 0x7c5   : > { %v11398_v7 = vpop.f32.mrb[209].mxu1  ;;  %v11295_v25 = vpop.f32.mrb[207].mxu0 }
 0x7c6   : > { %v11399_v30 = vadd.f32 %v11398_v7, %v11397_v37  ;;  %v11296_v40 = vadd.f32 %v11295_v25, %v11294_v1  ;;  %v11400_v20 = vpop.f32.mrb[210].mxu1  ;;  %v8252_v61 = vadd.f32 %v11293_v54, %v15882_v42 }
 0x7c7   : > { %v11401_v50 = vpop.f32.mrb[211].mxu1 }
 0x7c8   : > { %v16070_v57 = vadd.f32 %v11399_v30, %v8244_v22  ;;  %v11402_v13 = vadd.f32 %v11401_v50, %v11400_v20  ;;  %v8255_v7 = vadd.f32 %v11296_v40, %v15882_v42 }
 0x7ca   : > { %v16072_v49 = vadd.f32 %v11402_v13, %v8247_v35  ;;  %v11425_v32 = vpop.f32.mrb[208].mxu0 }
 0x7cb   : > { %v11426_v60 = vpop.f32.mrb[209].mxu0 }
 0x7cc   : > { %v11403_v15 = vpop.f32.mrb[212].mxu1  ;;  %v11427_v38 = vadd.f32 %v11426_v60, %v11425_v32  ;;  %v11428_v3 = vpop.f32.mrb[210].mxu0 }
 0x7cd   : > { %v11404_v5 = vpop.f32.mrb[213].mxu1  ;;  %v11429_v55 = vpop.f32.mrb[211].mxu0 }
 0x7ce   : > { %v8454_v19 = vadd.f32 %v11427_v38, %v15894_v63  ;;  %v11405_v48 = vadd.f32 %v11404_v5, %v11403_v15  ;;  %v11406_v37 = vpop.f32.mrb[214].mxu1  ;;  %v11430_v1 = vadd.f32 %v11429_v55, %v11428_v3 }
 0x7cf   : > { %v11407_v8 = vpop.f32.mrb[215].mxu1 }
 0x7d0   : > { %v16077_v25 = vadd.f32 %v11405_v48, %v8252_v61  ;;  %v8457_v22 = vadd.f32 %v11430_v1, %v15900_v23  ;;  %v11408_v30 = vadd.f32 %v11407_v8, %v11406_v37 }
 0x7d2   : > { %v16080_v20 = vadd.f32 %v11408_v30, %v8255_v7  ;;  %v11431_v50 = vpop.f32.mrb[212].mxu0 }
 0x7d3   : > { %v11432_v35 = vpop.f32.mrb[213].mxu0 }
 0x7d4   : > { %v11433_v13 = vadd.f32 %v11432_v35, %v11431_v50  ;;  %v11537_v32 = vpop.f32.mrb[216].mxu1  ;;  %v11434_v54 = vpop.f32.mrb[214].mxu0 }
 0x7d5   : > { %v11538_v60 = vpop.f32.mrb[217].mxu1  ;;  %v11435_v63 = vpop.f32.mrb[215].mxu0 }
 0x7d6   : > { %v8462_v15 = vadd.f32 %v11433_v13, %v15915_v34  ;;  %v11539_v38 = vadd.f32 %v11538_v60, %v11537_v32  ;;  %v11436_v3 = vadd.f32 %v11435_v63, %v11434_v54  ;;  %v11540_v5 = vpop.f32.mrb[218].mxu1 }
 0x7d7   : > { %v11541_v42 = vpop.f32.mrb[219].mxu1 }
 0x7d8   : > { %v8465_v40 = vadd.f32 %v11436_v3, %v15921_v14  ;;  %v11542_v55 = vadd.f32 %v11541_v42, %v11540_v5  ;;  %v16084_v23 = vadd.f32 %v11539_v38, %v8454_v19 }
 0x7da   : > { %v11437_v61 = vpop.f32.mrb[216].mxu0  ;;  %v16086_v48 = vadd.f32 %v11542_v55, %v8457_v22 }
 0x7db   : > { %v11438_v37 = vpop.f32.mrb[217].mxu0 }
 0x7dc   : > { %v11439_v1 = vadd.f32 %v11438_v37, %v11437_v61  ;;  %v11543_v8 = vpop.f32.mrb[220].mxu1  ;;  %v11440_v7 = vpop.f32.mrb[218].mxu0 }
 0x7dd   : > { %v11544_v30 = vpop.f32.mrb[221].mxu1  ;;  %v11441_v50 = vpop.f32.mrb[219].mxu0 }
 0x7de   : > { %v8470_v34 = vadd.f32 %v11439_v1, %v15935_v46  ;;  %v11545_v35 = vadd.f32 %v11544_v30, %v11543_v8  ;;  %v11442_v13 = vadd.f32 %v11441_v50, %v11440_v7  ;;  %v11546_v32 = vpop.f32.mrb[222].mxu1 }
 0x7df   : > { %v11547_v54 = vpop.f32.mrb[223].mxu1 }
 0x7e0   : > { %v8473_v14 = vadd.f32 %v11442_v13, %v15938_v11  ;;  %v11548_v60 = vadd.f32 %v11547_v54, %v11546_v32  ;;  %v16090_v19 = vadd.f32 %v11545_v35, %v8462_v15 }
 0x7e2   : > { %v11443_v63 = vpop.f32.mrb[220].mxu0  ;;  %v16092_v22 = vadd.f32 %v11548_v60, %v8465_v40 }
 0x7e3   : > { %v11444_v38 = vpop.f32.mrb[221].mxu0 }
 0x7e4   : > { %v11445_v3 = vadd.f32 %v11444_v38, %v11443_v63  ;;  %v11549_v5 = vpop.f32.mrb[224].mxu1  ;;  %v11446_v42 = vpop.f32.mrb[222].mxu0 }
 0x7e5   : > { %v11550_v55 = vpop.f32.mrb[225].mxu1  ;;  %v11447_v61 = vpop.f32.mrb[223].mxu0 }
 0x7e6   : > { %v8478_v46 = vadd.f32 %v11445_v3, %v15955_v12  ;;  %v11551_v37 = vadd.f32 %v11550_v55, %v11549_v5  ;;  %v11448_v1 = vadd.f32 %v11447_v61, %v11446_v42  ;;  %v11552_v8 = vpop.f32.mrb[226].mxu1 }
 0x7e7   : > { %v11553_v7 = vpop.f32.mrb[227].mxu1 }
 0x7e8   : > { %v8481_v11 = vadd.f32 %v11448_v1, %v15958_v41  ;;  %v11554_v30 = vadd.f32 %v11553_v7, %v11552_v8  ;;  %v16096_v15 = vadd.f32 %v11551_v37, %v8470_v34 }
 0x7ea   : > { %v11449_v50 = vpop.f32.mrb[224].mxu0  ;;  %v16098_v40 = vadd.f32 %v11554_v30, %v8473_v14 }
 0x7eb   : > { %v11450_v35 = vpop.f32.mrb[225].mxu0 }
 0x7ec   : > { %v11451_v13 = vadd.f32 %v11450_v35, %v11449_v50  ;;  %v11555_v32 = vpop.f32.mrb[228].mxu1  ;;  %v11452_v54 = vpop.f32.mrb[226].mxu0 }
 0x7ed   : > { %v11556_v60 = vpop.f32.mrb[229].mxu1  ;;  %v11453_v63 = vpop.f32.mrb[227].mxu0 }
 0x7ee   : > { %v8486_v12 = vadd.f32 %v11451_v13, %v15970_v62  ;;  %v11557_v38 = vadd.f32 %v11556_v60, %v11555_v32  ;;  %v11454_v3 = vadd.f32 %v11453_v63, %v11452_v54  ;;  %v11558_v5 = vpop.f32.mrb[230].mxu1 }
 0x7ef   : > { %v11559_v42 = vpop.f32.mrb[231].mxu1 }
 0x7f0   : > { %v8489_v41 = vadd.f32 %v11454_v3, %v15972_v9  ;;  %v11560_v55 = vadd.f32 %v11559_v42, %v11558_v5  ;;  %v16102_v34 = vadd.f32 %v11557_v38, %v8478_v46 }
 0x7f2   : > { %v11455_v61 = vpop.f32.mrb[228].mxu0  ;;  %v16104_v14 = vadd.f32 %v11560_v55, %v8481_v11 }
 0x7f3   : > { %v11456_v37 = vpop.f32.mrb[229].mxu0 }
 0x7f4   : > { %v11457_v1 = vadd.f32 %v11456_v37, %v11455_v61  ;;  %v11561_v8 = vpop.f32.mrb[232].mxu1  ;;  %v11458_v7 = vpop.f32.mrb[230].mxu0 }
 0x7f5   : > { %v11562_v30 = vpop.f32.mrb[233].mxu1  ;;  %v11459_v50 = vpop.f32.mrb[231].mxu0 }
 0x7f6   : > { %v8494_v62 = vadd.f32 %v11457_v1, %v15982_v31  ;;  %v11563_v35 = vadd.f32 %v11562_v30, %v11561_v8  ;;  %v11460_v13 = vadd.f32 %v11459_v50, %v11458_v7  ;;  %v11564_v32 = vpop.f32.mrb[234].mxu1 }
 0x7f7   : > { %v11565_v54 = vpop.f32.mrb[235].mxu1 }
 0x7f8   : > { %v8497_v9 = vadd.f32 %v11460_v13, %v15984_v0  ;;  %v11566_v60 = vadd.f32 %v11565_v54, %v11564_v32  ;;  %v16108_v46 = vadd.f32 %v11563_v35, %v8486_v12 }
 0x7fa   : > { %v11461_v63 = vpop.f32.mrb[232].mxu0  ;;  %v16110_v11 = vadd.f32 %v11566_v60, %v8489_v41 }
 0x7fb   : > { %v11462_v38 = vpop.f32.mrb[233].mxu0 }
 0x7fc   : > { %v11463_v3 = vadd.f32 %v11462_v38, %v11461_v63  ;;  %v11567_v5 = vpop.f32.mrb[236].mxu1  ;;  %v11464_v42 = vpop.f32.mrb[234].mxu0 }
 0x7fd   : > { %v11568_v55 = vpop.f32.mrb[237].mxu1  ;;  %v11465_v61 = vpop.f32.mrb[235].mxu0 }
 0x7fe   : > { %v8502_v31 = vadd.f32 %v11463_v3, %v15992_v18  ;;  %v11569_v37 = vadd.f32 %v11568_v55, %v11567_v5  ;;  %v11466_v1 = vadd.f32 %v11465_v61, %v11464_v42  ;;  %v11570_v8 = vpop.f32.mrb[238].mxu1 }
 0x7ff   : > { %v11571_v7 = vpop.f32.mrb[239].mxu1 }
 0x800   : > { %v8505_v0 = vadd.f32 %v11466_v1, %v15994_v59  ;;  %v11572_v30 = vadd.f32 %v11571_v7, %v11570_v8  ;;  %v16114_v12 = vadd.f32 %v11569_v37, %v8494_v62 }
 0x802   : > { %v11467_v50 = vpop.f32.mrb[236].mxu0  ;;  %v16116_v41 = vadd.f32 %v11572_v30, %v8497_v9 }
 0x803   : > { %v11468_v35 = vpop.f32.mrb[237].mxu0 }
 0x804   : > { %v11469_v13 = vadd.f32 %v11468_v35, %v11467_v50  ;;  %v11573_v32 = vpop.f32.mrb[240].mxu1  ;;  %v11470_v54 = vpop.f32.mrb[238].mxu0 }
 0x805   : > { %v11574_v60 = vpop.f32.mrb[241].mxu1  ;;  %v11471_v63 = vpop.f32.mrb[239].mxu0 }
 0x806   : > { %v8510_v18 = vadd.f32 %v11469_v13, %v16001_v56  ;;  %v11575_v38 = vadd.f32 %v11574_v60, %v11573_v32  ;;  %v11472_v3 = vadd.f32 %v11471_v63, %v11470_v54  ;;  %v11576_v5 = vpop.f32.mrb[242].mxu1 }
 0x807   : > { %v11577_v42 = vpop.f32.mrb[243].mxu1 }
 0x808   : > { %v8513_v59 = vadd.f32 %v11472_v3, %v16003_v16  ;;  %v11578_v55 = vadd.f32 %v11577_v42, %v11576_v5  ;;  %v16120_v62 = vadd.f32 %v11575_v38, %v8502_v31 }
 0x80a   : > { %v11473_v61 = vpop.f32.mrb[240].mxu0  ;;  %v16122_v9 = vadd.f32 %v11578_v55, %v8505_v0 }
 0x80b   : > { %v11474_v37 = vpop.f32.mrb[241].mxu0 }
 0x80c   : > { %v11475_v1 = vadd.f32 %v11474_v37, %v11473_v61  ;;  %v11579_v8 = vpop.f32.mrb[244].mxu1  ;;  %v11476_v7 = vpop.f32.mrb[242].mxu0 }
 0x80d   : > { %v11580_v30 = vpop.f32.mrb[245].mxu1  ;;  %v11477_v50 = vpop.f32.mrb[243].mxu0 }
 0x80e   : > { %v8518_v56 = vadd.f32 %v11475_v1, %v16013_v52  ;;  %v11581_v35 = vadd.f32 %v11580_v30, %v11579_v8  ;;  %v11478_v13 = vadd.f32 %v11477_v50, %v11476_v7  ;;  %v11582_v32 = vpop.f32.mrb[246].mxu1 }
 0x80f   : > { %v11583_v54 = vpop.f32.mrb[247].mxu1 }
 0x810   : > { %v8521_v16 = vadd.f32 %v11478_v13, %v16015_v27  ;;  %v11584_v60 = vadd.f32 %v11583_v54, %v11582_v32  ;;  %v16126_v31 = vadd.f32 %v11581_v35, %v8510_v18 }
 0x812   : > { %v11479_v63 = vpop.f32.mrb[244].mxu0  ;;  %v16128_v0 = vadd.f32 %v11584_v60, %v8513_v59 }
 0x813   : > { %v11480_v38 = vpop.f32.mrb[245].mxu0 }
 0x814   : > { %v11481_v3 = vadd.f32 %v11480_v38, %v11479_v63  ;;  %v11585_v5 = vpop.f32.mrb[248].mxu1  ;;  %v11482_v42 = vpop.f32.mrb[246].mxu0 }
 0x815   : > { %v11586_v55 = vpop.f32.mrb[249].mxu1  ;;  %v11483_v61 = vpop.f32.mrb[247].mxu0 }
 0x816   : > { %v8526_v52 = vadd.f32 %v11481_v3, %v16028_v43  ;;  %v11587_v37 = vadd.f32 %v11586_v55, %v11585_v5  ;;  %v11484_v1 = vadd.f32 %v11483_v61, %v11482_v42  ;;  %v11588_v8 = vpop.f32.mrb[250].mxu1 }
 0x817   : > { %v11589_v7 = vpop.f32.mrb[251].mxu1 }
 0x818   : > { %v8529_v27 = vadd.f32 %v11484_v1, %v16030_v10  ;;  %v11590_v30 = vadd.f32 %v11589_v7, %v11588_v8  ;;  %v16132_v18 = vadd.f32 %v11587_v37, %v8518_v56 }
 0x81a   : > { %v11485_v50 = vpop.f32.mrb[248].mxu0  ;;  %v16134_v59 = vadd.f32 %v11590_v30, %v8521_v16 }
 0x81b   : > { %v11486_v35 = vpop.f32.mrb[249].mxu0 }
 0x81c   : > { %v11487_v13 = vadd.f32 %v11486_v35, %v11485_v50  ;;  %v11591_v32 = vpop.f32.mrb[252].mxu1  ;;  %v11488_v54 = vpop.f32.mrb[250].mxu0 }
 0x81d   : > { %v11592_v60 = vpop.f32.mrb[253].mxu1  ;;  %v11489_v63 = vpop.f32.mrb[251].mxu0 }
 0x81e   : > { %v8534_v43 = vadd.f32 %v11487_v13, %v16044_v28  ;;  %v11593_v38 = vadd.f32 %v11592_v60, %v11591_v32  ;;  %v11490_v3 = vadd.f32 %v11489_v63, %v11488_v54  ;;  %v11594_v5 = vpop.f32.mrb[254].mxu1 }
 0x81f   : > { %v11595_v42 = vpop.f32.mrb[255].mxu1 }
 0x820   : > { %v8537_v10 = vadd.f32 %v11490_v3, %v16046_v45  ;;  %v11596_v55 = vadd.f32 %v11595_v42, %v11594_v5  ;;  %v16138_v56 = vadd.f32 %v11593_v38, %v8526_v52 }
 0x822   : > { %v11491_v61 = vpop.f32.mrb[252].mxu0  ;;  %v16140_v16 = vadd.f32 %v11596_v55, %v8529_v27 }
 0x823   : > { %v11492_v37 = vpop.f32.mrb[253].mxu0 }
 0x824   : > { %v11493_v1 = vadd.f32 %v11492_v37, %v11491_v61  ;;  %v11597_v8 = vpop.f32.mrb[0].mxu1  ;;  %v11494_v7 = vpop.f32.mrb[254].mxu0 }
 0x825   : > { %v11598_v30 = vpop.f32.mrb[1].mxu1  ;;  %v11495_v50 = vpop.f32.mrb[255].mxu0 }
 0x826   : > { %v8542_v28 = vadd.f32 %v11493_v1, %v16051_v33  ;;  %v11599_v35 = vadd.f32 %v11598_v30, %v11597_v8  ;;  %v11496_v13 = vadd.f32 %v11495_v50, %v11494_v7  ;;  %v11600_v32 = vpop.f32.mrb[2].mxu1 }
 0x827   : > { %v11601_v54 = vpop.f32.mrb[3].mxu1 }
 0x828   : > { %v8545_v45 = vadd.f32 %v11496_v13, %v16054_v47  ;;  %v11602_v60 = vadd.f32 %v11601_v54, %v11600_v32  ;;  %v16144_v52 = vadd.f32 %v11599_v35, %v8534_v43 }
 0x82a   : > { %v11497_v63 = vpop.f32.mrb[0].mxu0  ;;  %v16146_v27 = vadd.f32 %v11602_v60, %v8537_v10 }
 0x82b   : > { %v11498_v38 = vpop.f32.mrb[1].mxu0 }
 0x82c   : > { %v11499_v3 = vadd.f32 %v11498_v38, %v11497_v63  ;;  %v11603_v5 = vpop.f32.mrb[4].mxu1  ;;  %v11500_v42 = vpop.f32.mrb[2].mxu0 }
 0x82d   : > { %v11604_v55 = vpop.f32.mrb[5].mxu1  ;;  %v11501_v61 = vpop.f32.mrb[3].mxu0 }
 0x82e   : > { %v8550_v33 = vadd.f32 %v11499_v3, %v16058_v51  ;;  %v11605_v37 = vadd.f32 %v11604_v55, %v11603_v5  ;;  %v11502_v1 = vadd.f32 %v11501_v61, %v11500_v42  ;;  %v11606_v8 = vpop.f32.mrb[6].mxu1 }
 0x82f   : > { %v11607_v7 = vpop.f32.mrb[7].mxu1 }
 0x830   : > { %v8553_v47 = vadd.f32 %v11502_v1, %v16060_v2  ;;  %v11608_v30 = vadd.f32 %v11607_v7, %v11606_v8  ;;  %v16150_v43 = vadd.f32 %v11605_v37, %v8542_v28 }
 0x832   : > { %v11503_v50 = vpop.f32.mrb[4].mxu0  ;;  %v16152_v10 = vadd.f32 %v11608_v30, %v8545_v45 }
 0x833   : > { %v11504_v35 = vpop.f32.mrb[5].mxu0 }
 0x834   : > { %v11505_v13 = vadd.f32 %v11504_v35, %v11503_v50  ;;  %v11609_v32 = vpop.f32.mrb[8].mxu1  ;;  %v11506_v54 = vpop.f32.mrb[6].mxu0 }
 0x835   : > { %v11610_v60 = vpop.f32.mrb[9].mxu1  ;;  %v11507_v63 = vpop.f32.mrb[7].mxu0 }
 0x836   : > { %v8558_v51 = vadd.f32 %v11505_v13, %v16064_v29  ;;  %v11611_v38 = vadd.f32 %v11610_v60, %v11609_v32  ;;  %v11508_v3 = vadd.f32 %v11507_v63, %v11506_v54  ;;  %v11612_v5 = vpop.f32.mrb[10].mxu1 }
 0x837   : > { %v11613_v42 = vpop.f32.mrb[11].mxu1 }
 0x838   : > { %v8561_v2 = vadd.f32 %v11508_v3, %v16066_v6  ;;  %v11614_v55 = vadd.f32 %v11613_v42, %v11612_v5  ;;  %v16156_v28 = vadd.f32 %v11611_v38, %v8550_v33 }
 0x83a   : > { %v11509_v61 = vpop.f32.mrb[8].mxu0  ;;  %v16158_v45 = vadd.f32 %v11614_v55, %v8553_v47 }
 0x83b   : > { %v11510_v37 = vpop.f32.mrb[9].mxu0 }
 0x83c   : > { %v11511_v1 = vadd.f32 %v11510_v37, %v11509_v61  ;;  %v11615_v8 = vpop.f32.mrb[12].mxu1  ;;  %v11512_v7 = vpop.f32.mrb[10].mxu0 }
 0x83d   : > { %v11616_v30 = vpop.f32.mrb[13].mxu1  ;;  %v11513_v50 = vpop.f32.mrb[11].mxu0 }
 0x83e   : > { %v8566_v29 = vadd.f32 %v11511_v1, %v16070_v57  ;;  %v11617_v35 = vadd.f32 %v11616_v30, %v11615_v8  ;;  %v11514_v13 = vadd.f32 %v11513_v50, %v11512_v7  ;;  %v11618_v32 = vpop.f32.mrb[14].mxu1 }
 0x83f   : > { %v11619_v54 = vpop.f32.mrb[15].mxu1 }
 0x840   : > { %v8569_v6 = vadd.f32 %v11514_v13, %v16072_v49  ;;  %v11620_v60 = vadd.f32 %v11619_v54, %v11618_v32  ;;  %v16162_v33 = vadd.f32 %v11617_v35, %v8558_v51 }
 0x842   : > { %v11515_v63 = vpop.f32.mrb[12].mxu0  ;;  %v16164_v47 = vadd.f32 %v11620_v60, %v8561_v2 }
 0x843   : > { %v11516_v38 = vpop.f32.mrb[13].mxu0 }
 0x844   : > { %v11517_v3 = vadd.f32 %v11516_v38, %v11515_v63  ;;  %v11621_v5 = vpop.f32.mrb[16].mxu1  ;;  %v11518_v42 = vpop.f32.mrb[14].mxu0 }
 0x845   : > { %v11622_v55 = vpop.f32.mrb[17].mxu1  ;;  %v11519_v61 = vpop.f32.mrb[15].mxu0 }
 0x846   : > { %v8574_v57 = vadd.f32 %v11517_v3, %v16077_v25  ;;  %v11623_v37 = vadd.f32 %v11622_v55, %v11621_v5  ;;  %v11520_v1 = vadd.f32 %v11519_v61, %v11518_v42  ;;  %v11624_v8 = vpop.f32.mrb[18].mxu1 }
 0x847   : > { %v11625_v7 = vpop.f32.mrb[19].mxu1 }
 0x848   : > { %v8577_v49 = vadd.f32 %v11520_v1, %v16080_v20  ;;  %v11626_v30 = vadd.f32 %v11625_v7, %v11624_v8  ;;  %v16168_v51 = vadd.f32 %v11623_v37, %v8566_v29 }
 0x84a   : > { %v11865_v50 = vpop.f32.mrb[16].mxu0  ;;  %v16170_v2 = vadd.f32 %v11626_v30, %v8569_v6 }
 0x84b   : > { %v16173_v35 = vadd.f32 %v11865_v50, %v16090_v19  ;;  %v8775_v13 = vpop.f32.mrb[17].mxu0 }
 0x84c   : > { %v11627_v32 = vpop.f32.mrb[20].mxu1  ;;  %v16176_v54 = vadd.f32 %v8775_v13, %v16084_v23  ;;  %v11866_v25 = vpop.f32.mrb[18].mxu0 }
 0x84d   : > { %v11628_v60 = vpop.f32.mrb[21].mxu1  ;;  %v16179_v63 = vadd.f32 %v11866_v25, %v16092_v22  ;;  %v8778_v20 = vpop.f32.mrb[19].mxu0 }
 0x84e   : > { %v11629_v38 = vadd.f32 %v11628_v60, %v11627_v32  ;;  %v11630_v29 = vpop.f32.mrb[22].mxu1  ;;  %v16182_v3 = vadd.f32 %v8778_v20, %v16086_v48 }
 0x84f   : > { %v11631_v6 = vpop.f32.mrb[23].mxu1 }
 0x850   : > { %v8904_v19 = vadd.f32 %v16182_v3, %v16176_v54  ;;  %v11632_v5 = vadd.f32 %v11631_v6, %v11630_v29  ;;  %v16186_v42 = vadd.f32 %v11629_v38, %v8574_v57 }
 0x852   : > { %v8905_v23 = vadd.f32 %v8904_v19, %v16173_v35  ;;  %v11869_v55 = vpop.f32.mrb[20].mxu0  ;;  %v16189_v61 = vadd.f32 %v11632_v5, %v8577_v49 }
 0x853   : > { %v16192_v22 = vadd.f32 %v11869_v55, %v16102_v34  ;;  %v8791_v37 = vpop.f32.mrb[21].mxu0 }
 0x854   : > { %v16195_v1 = vadd.f32 %v8791_v37, %v16096_v15  ;;  %v8906_v48 = vadd.f32 %v8905_v23, %v16179_v63  ;;  %v11870_v8 = vpop.f32.mrb[22].mxu0 }
 0x855   : > { %v16199_v7 = vadd.f32 %v11870_v8, %v16104_v14  ;;  %v8794_v57 = vpop.f32.mrb[23].mxu0 }
 0x856   : > { %v8907_v30 = vadd.f32 %v8906_v48, %v16195_v1  ;;  %v16203_v50 = vadd.f32 %v8794_v57, %v16098_v40 }
 0x858   : > { %v8908_v49 = vadd.f32 %v8907_v30, %v16203_v50 }
 0x85a   : > { %v8909_v34 = vadd.f32 %v8908_v49, %v16192_v22  ;;  %v11873_v13 = vpop.f32.mrb[24].mxu0 }
 0x85b   : > { %v16208_v15 = vadd.f32 %v11873_v13, %v16114_v12  ;;  %v8807_v32 = vpop.f32.mrb[25].mxu0 }
 0x85c   : > { %v16211_v25 = vadd.f32 %v8807_v32, %v16108_v46  ;;  %v8910_v14 = vadd.f32 %v8909_v34, %v16199_v7  ;;  %v11874_v60 = vpop.f32.mrb[26].mxu0 }
 0x85d   : > { %v16215_v20 = vadd.f32 %v11874_v60, %v16116_v41  ;;  %v8810_v40 = vpop.f32.mrb[27].mxu0 }
 0x85e   : > { %v8911_v38 = vadd.f32 %v8910_v14, %v16211_v25  ;;  %v16219_v29 = vadd.f32 %v8810_v40, %v16110_v11 }
 0x860   : > { %v8912_v6 = vadd.f32 %v8911_v38, %v16219_v29 }
 0x862   : > { %v8913_v12 = vadd.f32 %v8912_v6, %v16208_v15  ;;  %v11877_v19 = vpop.f32.mrb[28].mxu0 }
 0x863   : > { %v16224_v46 = vadd.f32 %v11877_v19, %v16126_v31  ;;  %v8823_v5 = vpop.f32.mrb[29].mxu0 }
 0x864   : > { %v16227_v23 = vadd.f32 %v8823_v5, %v16120_v62  ;;  %v8914_v41 = vadd.f32 %v8913_v12, %v16215_v20  ;;  %v11878_v55 = vpop.f32.mrb[30].mxu0 }
 0x865   : > { %v16231_v37 = vadd.f32 %v11878_v55, %v16128_v0  ;;  %v8826_v11 = vpop.f32.mrb[31].mxu0 }
 0x866   : > { %v8915_v48 = vadd.f32 %v8914_v41, %v16227_v23  ;;  %v16235_v8 = vadd.f32 %v8826_v11, %v16122_v9 }
 0x868   : > { %v8916_v57 = vadd.f32 %v8915_v48, %v16235_v8 }
 0x86a   : > { %v8917_v31 = vadd.f32 %v8916_v57, %v16224_v46  ;;  %v11881_v30 = vpop.f32.mrb[32].mxu0 }
 0x86b   : > { %v16240_v62 = vadd.f32 %v11881_v30, %v16138_v56  ;;  %v8839_v49 = vpop.f32.mrb[33].mxu0 }
 0x86c   : > { %v16243_v34 = vadd.f32 %v8839_v49, %v16132_v18  ;;  %v8918_v0 = vadd.f32 %v8917_v31, %v16231_v37  ;;  %v11882_v13 = vpop.f32.mrb[34].mxu0 }
 0x86d   : > { %v16247_v32 = vadd.f32 %v11882_v13, %v16140_v16  ;;  %v8842_v9 = vpop.f32.mrb[35].mxu0 }
 0x86e   : > { %v8919_v14 = vadd.f32 %v8918_v0, %v16243_v34  ;;  %v16251_v60 = vadd.f32 %v8842_v9, %v16134_v59 }
 0x870   : > { %v8920_v40 = vadd.f32 %v8919_v14, %v16251_v60 }
 0x872   : > { %v8921_v56 = vadd.f32 %v8920_v40, %v16240_v62  ;;  %v11885_v38 = vpop.f32.mrb[36].mxu0 }
 0x873   : > { %v16256_v18 = vadd.f32 %v11885_v38, %v16150_v43  ;;  %v8855_v6 = vpop.f32.mrb[37].mxu0 }
 0x874   : > { %v16259_v12 = vadd.f32 %v8855_v6, %v16144_v52  ;;  %v8922_v16 = vadd.f32 %v8921_v56, %v16247_v32  ;;  %v11886_v19 = vpop.f32.mrb[38].mxu0 }
 0x875   : > { %v16263_v5 = vadd.f32 %v11886_v19, %v16152_v10  ;;  %v8858_v59 = vpop.f32.mrb[39].mxu0 }
 0x876   : > { %v8923_v41 = vadd.f32 %v8922_v16, %v16259_v12  ;;  %v16267_v55 = vadd.f32 %v8858_v59, %v16146_v27 }
 0x878   : > { %v8924_v11 = vadd.f32 %v8923_v41, %v16267_v55 }
 0x87a   : > { %v8925_v43 = vadd.f32 %v8924_v11, %v16256_v18  ;;  %v11889_v48 = vpop.f32.mrb[40].mxu0 }
 0x87b   : > { %v16272_v52 = vadd.f32 %v11889_v48, %v16162_v33  ;;  %v8871_v57 = vpop.f32.mrb[41].mxu0 }
 0x87c   : > { %v16275_v31 = vadd.f32 %v8871_v57, %v16156_v28  ;;  %v8926_v10 = vadd.f32 %v8925_v43, %v16263_v5  ;;  %v11890_v30 = vpop.f32.mrb[42].mxu0 }
 0x87d   : > { %v16279_v49 = vadd.f32 %v11890_v30, %v16164_v47  ;;  %v8874_v27 = vpop.f32.mrb[43].mxu0 }
 0x87e   : > { %v8927_v0 = vadd.f32 %v8926_v10, %v16275_v31  ;;  %v16283_v13 = vadd.f32 %v8874_v27, %v16158_v45 }
 0x880   : > { %v8928_v9 = vadd.f32 %v8927_v0, %v16283_v13 }
 0x882   : > { %v8929_v33 = vadd.f32 %v8928_v9, %v16272_v52  ;;  %v11893_v14 = vpop.f32.mrb[44].mxu0  ;;  %v17344_v9 = vld [vmem:[#allocation17_spill] sm:$0xff] }
 0x883   : > { %v16288_v28 = vadd.f32 %v11893_v14, %v16186_v42  ;;  %v8887_v40 = vpop.f32.mrb[45].mxu0  ;;  %v17345_v14 = vld [vmem:[#allocation44_spill] sm:$0xff] }
 0x884   : > { %v16291_v56 = vadd.f32 %v8887_v40, %v16168_v51  ;;  %v8930_v47 = vadd.f32 %v8929_v33, %v16279_v49  ;;  %v11894_v38 = vpop.f32.mrb[46].mxu0 }
 0x885   : > { %v16295_v6 = vadd.f32 %v11894_v38, %v16189_v61  ;;  %v8890_v45 = vpop.f32.mrb[47].mxu0  ;;  %v16307_v61 = vld [vmem:[%s17134_s13] sm:$0xff]  ;;  %v17347_v38 = vld [vmem:[#allocation19_spill] sm:$0xff] }
 0x886   : > { %v8931_v16 = vadd.f32 %v8930_v47, %v16291_v56  ;;  %v16299_v19 = vadd.f32 %v8890_v45, %v16170_v2  ;;  %v17346_v47 = vld [vmem:[#allocation18_spill] sm:$0xff] }
 0x888   : > { %v8932_v59 = vadd.f32 %v8931_v16, %v16299_v19 }
 0x88a   : > { %v8933_v42 = vadd.f32 %v8932_v59, %v16288_v28 }
 0x88c   : > { %v8934_v41 = vadd.f32 %v8933_v42, %v16295_v6 }
 0x88e   : > { %v8935_v51 = vrot.slane %v8934_v41, 4 }
 0x890   : > { %v8936_v11 = vadd.f32 %v8935_v51, %v8934_v41  ;;  %v17348_v51 = vld [vmem:[#allocation20_spill] sm:$0xff] }
 0x892   : > { %v8937_v43 = vrot.slane %v8936_v11, 2 }
 0x894   : > { %v8938_v48 = vadd.f32 %v8937_v43, %v8936_v11  ;;  %v17349_v11 = vld [vmem:[#allocation21_spill] sm:$0xff] }
 0x896   : > { %v8939_v57 = vrot.slane %v8938_v48, 1 }
 0x898   : > { %v8940_v10 = vadd.f32 %v8939_v57, %v8938_v48 }
 0x89a   : > { %11928 = vmatmul.mubr.f32.vlgmr.msra.gmra.mrb[24].mxu1 %v8940_v10 }
 0x89b   : > { %11931 = vmatpush3.msra.mxu1 %v16307_v61  ;;  %11932 = vmatprep.mubr.msk.f32.mxu1 %vm12758_vm6, %v17330_v21 }
 0x89c   : > { %12095 = vmatprep.subr.bf16.mxu1 %v17321_v53 }
 0x96d   : > { %v9007_v2 = vpop.f32.mrb[24].mxu1 }
 0x96e   : > { %v9011_v30 = vmul.f32 0.00390625, %v9007_v2  ;;  %v11929_v27 = vpop.f32.mrb[25].mxu1 }
 0x96f   : > { %v17351_v27 = vld [vmem:[#allocation23_spill] sm:$0xff] }
 0x970   : > { %11933 = vmatmul.mubr.msk.f32.vlgmr.msra.gmra.mrb[26].mxu1 %vm4995_vm7, %v9011_v30  ;;  %v17350_v30 = vld [vmem:[#allocation22_spill] sm:$0xff] }
 0x971   : > { %12097 = vmatpush3.bf16.msra.mxu1 %v17322_v26  ;;  %11967 = vmatprep.mubr.msk.f32.mxu1 %vm12758_vm6, %v17330_v21  ;;  %v12386_v26 = vld [vmem:[%s17131_s10] sm:$0xff]  }
 0x972   : > { %12098 = vmatprep.subr.bf16.mxu1 %v17321_v53  ;;  %11975 = vmatprep.subr.bf16.mxu0 %v12386_v26 }
 0x973   : > { %11976 = vmatpush3.bf16.msra.mxu0 %v12386_v26 }
 0x975   : > { %12100 = vmatpush3.bf16.msra.mxu1 %v17323_v39  ;;  %v12387_v39 = vld [vmem:[%s17131_s10 + $0x8] sm:$0xff]  }
 0x976   : > { %12101 = vmatprep.subr.bf16.mxu1 %v17321_v53  ;;  %11977 = vmatprep.subr.bf16.mxu0 %v12387_v39 }
 0x977   : > { %11978 = vmatpush3.bf16.msra.mxu0 %v12387_v39 }
 0x979   : > { %12103 = vmatpush3.bf16.msra.mxu1 %v17324_v36  ;;  %v12388_v36 = vld [vmem:[%s17131_s10 + $0x10] sm:$0xff]  }
 0x97a   : > { %12104 = vmatprep.subr.bf16.mxu1 %v17321_v53  ;;  %11979 = vmatprep.subr.bf16.mxu0 %v12388_v36 }
 0x97b   : > { %11980 = vmatpush3.bf16.msra.mxu0 %v12388_v36 }
 0x97d   : > { %12106 = vmatpush3.bf16.msra.mxu1 %v17325_v58  ;;  %v12390_v58 = vld [vmem:[%s17131_s10 + $0x20] sm:$0xff]  }
 0x97e   : > { %12107 = vmatprep.subr.bf16.mxu1 %v17321_v53 }
 0x981   : > { %12109 = vmatpush3.bf16.msra.mxu1 %v17326_v44  ;;  %v12391_v44 = vld [vmem:[%s17131_s10 + $0x28] sm:$0xff]  }
 0x982   : > { %12110 = vmatprep.subr.bf16.mxu1 %v17321_v53 }
 0x985   : > { %12112 = vmatpush3.bf16.msra.mxu1 %v17327_v24  ;;  %v12392_v24 = vld [vmem:[%s17131_s10 + $0x30] sm:$0xff]  }
 0x986   : > { %12113 = vmatprep.subr.bf16.mxu1 %v17321_v53 }
 0x989   : > { %12115 = vmatpush3.bf16.msra.mxu1 %v17328_v17  ;;  %v12393_v17 = vld [vmem:[%s17131_s10 + $0x38] sm:$0xff]  }
 0x98a   : > { %12116 = vmatprep.subr.bf16.mxu1 %v17321_v53  ;;  %v12389_v53 = vld [vmem:[%s17131_s10 + $0x18] sm:$0xff]  }
 0x98b   : > { %11981 = vmatprep.subr.bf16.mxu0 %v12389_v53 }
 0x98c   : > { %11982 = vmatpush3.bf16.msra.mxu0 %v12389_v53 }
 0x98d   : > { %12118 = vmatpush3.bf16.msra.mxu1 %v17329_v4  ;;  %11983 = vmatprep.subr.bf16.mxu0 %v12390_v58  ;;  %v17343_v4 = vld [vmem:[#allocation16_spill] sm:$0xff] }
 0x98e   : > { %11970 = vmatprep.subr.mxu1 %v17330_v21 }
 0x990   : > { %11984 = vmatpush3.bf16.msra.mxu0 %v12390_v58 }
 0x991   : > { %11985 = vmatprep.subr.bf16.mxu0 %v12391_v44 }
 0x994   : > { %11986 = vmatpush3.bf16.msra.mxu0 %v12391_v44 }
 0x995   : > { %11987 = vmatprep.subr.bf16.mxu0 %v12392_v24 }
 0x998   : > { %11988 = vmatpush3.bf16.msra.mxu0 %v12392_v24 }
 0x999   : > { %11989 = vmatprep.subr.bf16.mxu0 %v12393_v17 }
 0x99c   : > { %11990 = vmatpush3.bf16.msra.mxu0 %v12393_v17 }
 0x99f   : > { %11992 = vmatmul.mubr.bf16.vlgmr.msra.gmra.mrb[48].mxu0 %v17343_v4  ;;  %v17352_v4 = vld [vmem:[#allocation24_spill] sm:$0xff] }
 0x9a0   : > { %11995 = vmatprep.mubr.bf16.mxu0 %v17344_v9 }
 0x9a7   : > { %11996 = vmatmul.mubr.bf16.gmra.mrb[52].mxu0 %v17346_v47 }
 0x9a8   : > { %11999 = vmatprep.mubr.bf16.mxu0 %v17347_v38 }
 0x9af   : > { %12000 = vmatmul.mubr.bf16.gmra.mrb[56].mxu0 %v17348_v51 }
 0x9b0   : > { %12003 = vmatprep.mubr.bf16.mxu0 %v17349_v11 }
 0x9b7   : > { %12004 = vmatmul.mubr.bf16.gmra.mrb[60].mxu0 %v17350_v30 }
 0x9b8   : > { %12007 = vmatprep.mubr.bf16.mxu0 %v17351_v27 }
 0x9bf   : > { %12008 = vmatmul.mubr.bf16.gmra.mrb[64].mxu0 %v17352_v4 }
 0xa43   : > { %v9081_v0 = vpop.f32.mrb[26].mxu1 }
 0xa44   : > { %v11934_v33 = vpop.f32.mrb[27].mxu1  ;;  %v16359_v40 = vrot.slane %v9081_v0, %v17345_v14  ;;  %v17353_v0 = vld [vmem:[#allocation25_spill] sm:$0xff] }
 0xa45   : > { %12011 = vmatprep.mubr.bf16.mxu0 %v17353_v0 }
 0xa46   : > { %v16365_v45 = vsub.f32 %v16176_v54, %v16359_v40  ;;  %v16369_v16 = vsub.f32 %v16182_v3, %v16359_v40  ;;  %v16373_v59 = vsub.f32 %v16173_v35, %v16359_v40  ;;  %v16383_v54 = vsub.f32 %v16179_v63, %v16359_v40 }
 0xa47   : > { %v16387_v3 = vsub.f32 %v16195_v1, %v16359_v40  ;;  %v16393_v48 = vsub.f32 %v16203_v50, %v16359_v40  ;;  %v16399_v63 = vsub.f32 %v16192_v22, %v16359_v40  ;;  %v16407_v50 = vsub.f32 %v16199_v7, %v16359_v40 }
 0xa48   : > { %v9121_v42 = vmul.f32 %v16365_v45, %v16365_v45  ;;  %v9122_v41 = vmul.f32 %v16369_v16, %v16369_v16  ;;  %v9123_v35 = vmul.f32 %v16373_v59, %v16373_v59  ;;  %v9124_v57 = vmul.f32 %v16383_v54, %v16383_v54 }
 0xa49   : > { %v9125_v1 = vmul.f32 %v16387_v3, %v16387_v3  ;;  %v9126_v26 = vmul.f32 %v16393_v48, %v16393_v48  ;;  %v16413_v22 = vsub.f32 %v16211_v25, %v16359_v40  ;;  %v9127_v36 = vmul.f32 %v16399_v63, %v16399_v63 }
 0xa4a   : > { %v9153_v43 = vadd.f32 %v9122_v41, %v9121_v42  ;;  %v16419_v58 = vsub.f32 %v16219_v29, %v16359_v40  ;;  %v9128_v7 = vmul.f32 %v16407_v50, %v16407_v50  ;;  %v16425_v24 = vsub.f32 %v16208_v15, %v16359_v40 }
 0xa4b   : > { %v9129_v25 = vmul.f32 %v16413_v22, %v16413_v22  ;;  %v16433_v29 = vsub.f32 %v16215_v20, %v16359_v40  ;;  %v16439_v15 = vsub.f32 %v16227_v23, %v16359_v40  ;;  %v16445_v42 = vsub.f32 %v16235_v8, %v16359_v40 }
 0xa4c   : > { %v9154_v10 = vadd.f32 %v9153_v43, %v9123_v35  ;;  %v9130_v9 = vmul.f32 %v16419_v58, %v16419_v58  ;;  %v9131_v47 = vmul.f32 %v16425_v24, %v16425_v24  ;;  %v16451_v51 = vsub.f32 %v16224_v46, %v16359_v40  ;;  %v17354_v35 = vld [vmem:[#allocation26_spill] sm:$0xff]  ;;  %v17355_v43 = vld [vmem:[#allocation27_spill] sm:$0xff] }
 0xa4d   : > { %v9132_v20 = vmul.f32 %v16433_v29, %v16433_v29  ;;  %v9133_v23 = vmul.f32 %v16439_v15, %v16439_v15  ;;  %12012 = vmatmul.mubr.bf16.gmra.mrb[68].mxu0 %v17354_v35  ;;  %v16459_v8 = vsub.f32 %v16231_v37, %v16359_v40  ;;  %v16465_v46 = vsub.f32 %v16243_v34, %v16359_v40 }
 0xa4e   : > { %v9155_v2 = vadd.f32 %v9154_v10, %v9124_v57  ;;  %12015 = vmatprep.mubr.bf16.mxu0 %v17355_v43  ;;  %v9134_v57 = vmul.f32 %v16445_v42, %v16445_v42  ;;  %v16471_v30 = vsub.f32 %v16251_v60, %v16359_v40  ;;  %v16485_v60 = vsub.f32 %v16247_v32, %v16359_v40 }
 0xa4f   : > { %v9136_v37 = vmul.f32 %v16459_v8, %v16459_v8  ;;  %v9137_v34 = vmul.f32 %v16465_v46, %v16465_v46  ;;  %v16497_v4 = vsub.f32 %v16267_v55, %v16359_v40  ;;  %v16528_v43 = vsub.f32 %v16272_v52, %v16359_v40 }
 0xa50   : > { %v9156_v39 = vadd.f32 %v9155_v2, %v9125_v1  ;;  %v9135_v1 = vmul.f32 %v16451_v51, %v16451_v51  ;;  %v9140_v32 = vmul.f32 %v16485_v60, %v16485_v60 }
 0xa51   : > { %v9142_v55 = vmul.f32 %v16497_v4, %v16497_v4  ;;  %v9147_v52 = vmul.f32 %v16528_v43, %v16528_v43 }
 0xa52   : > { %v9157_v53 = vadd.f32 %v9156_v39, %v9126_v26  ;;  %v16477_v26 = vsub.f32 %v16240_v62, %v16359_v40  ;;  %v16491_v62 = vsub.f32 %v16259_v12, %v16359_v40 }
 0xa54   : > { %v9158_v44 = vadd.f32 %v9157_v53, %v9127_v36  ;;  %v17356_v36 = vld [vmem:[#allocation28_spill] sm:$0xff]  ;;  %v17357_v53 = vld [vmem:[#allocation31_spill] sm:$0xff]  ;;  %v9141_v12 = vmul.f32 %v16491_v62, %v16491_v62 }
 0xa55   : > { %12016 = vmatmul.mubr.bf16.gmra.mrb[72].mxu0 %v17356_v36 }
 0xa56   : > { %v9159_v17 = vadd.f32 %v9158_v44, %v9128_v7  ;;  %12019 = vmatprep.mubr.bf16.mxu0 %v17357_v53  ;;  %v9138_v7 = vmul.f32 %v16471_v30, %v16471_v30  ;;  %v16558_v53 = vsub.f32 %v16295_v6, %v16359_v40 }
 0xa58   : > { %v9160_v33 = vadd.f32 %v9159_v17, %v9129_v25  ;;  %v9139_v25 = vmul.f32 %v16477_v26, %v16477_v26 }
 0xa5a   : > { %v9161_v38 = vadd.f32 %v9160_v33, %v9130_v9  ;;  %v16503_v9 = vsub.f32 %v16256_v18, %v16359_v40 }
 0xa5c   : > { %v9162_v41 = vadd.f32 %v9161_v38, %v9131_v47  ;;  %v17358_v47 = vld [vmem:[#allocation34_spill] sm:$0xff]  ;;  %v16510_v38 = vsub.f32 %v16263_v5, %v16359_v40  ;;  %v9143_v18 = vmul.f32 %v16503_v9, %v16503_v9 }
 0xa5d   : > { %12020 = vmatmul.mubr.bf16.gmra.mrb[76].mxu0 %v17358_v47 }
 0xa5e   : > { %v9163_v11 = vadd.f32 %v9162_v41, %v9132_v20  ;;  %v16516_v41 = vsub.f32 %v16275_v31, %v16359_v40  ;;  %v9144_v5 = vmul.f32 %v16510_v38, %v16510_v38 }
 0xa60   : > { %v9164_v10 = vadd.f32 %v9163_v11, %v9133_v23  ;;  %v16522_v11 = vsub.f32 %v16283_v13, %v16359_v40  ;;  %v9145_v31 = vmul.f32 %v16516_v41, %v16516_v41 }
 0xa62   : > { %v9165_v2 = vadd.f32 %v9164_v10, %v9134_v57  ;;  %v16534_v10 = vsub.f32 %v16279_v49, %v16359_v40  ;;  %v9146_v13 = vmul.f32 %v16522_v11, %v16522_v11 }
 0xa64   : > { %v9166_v27 = vadd.f32 %v9165_v2, %v9135_v1  ;;  %v16540_v2 = vsub.f32 %v16291_v56, %v16359_v40  ;;  %v9148_v49 = vmul.f32 %v16534_v10, %v16534_v10 }
 0xa66   : > { %v9167_v39 = vadd.f32 %v9166_v27, %v9136_v37  ;;  %v16546_v27 = vsub.f32 %v16299_v19, %v16359_v40  ;;  %v9149_v56 = vmul.f32 %v16540_v2, %v16540_v2 }
 0xa68   : > { %v9168_v44 = vadd.f32 %v9167_v39, %v9137_v34  ;;  %v16552_v39 = vsub.f32 %v16288_v28, %v16359_v40  ;;  %v9150_v19 = vmul.f32 %v16546_v27, %v16546_v27  ;;  %v9152_v28 = vmul.f32 %v16558_v53, %v16558_v53 }
 0xa6a   : > { %v9169_v17 = vadd.f32 %v9168_v44, %v9138_v7  ;;  %v9151_v44 = vmul.f32 %v16552_v39, %v16552_v39 }
 0xa6c   : > { %v9170_v0 = vadd.f32 %v9169_v17, %v9139_v25 }
 0xa6e   : > { %v9171_v33 = vadd.f32 %v9170_v0, %v9140_v32 }
 0xa70   : > { %v9172_v20 = vadd.f32 %v9171_v33, %v9141_v12 }
 0xa72   : > { %v9173_v23 = vadd.f32 %v9172_v20, %v9142_v55  ;;  %v11993_v40 = vpop.f32.mrb[48].mxu0 }
 0xa73   : > { %v9761_v20 = vpop.f32.mrb[49].mxu0 }
 0xa74   : > { %v9174_v35 = vadd.f32 %v9173_v23, %v9143_v18  ;;  %v11994_v18 = vpop.f32.mrb[50].mxu0 }
 0xa75   : > { %v9764_v23 = vpop.f32.mrb[51].mxu0 }
 0xa76   : > { %v9175_v57 = vadd.f32 %v9174_v35, %v9144_v5 }
 0xa78   : > { %v9176_v1 = vadd.f32 %v9175_v57, %v9145_v31 }
 0xa7a   : > { %v9177_v37 = vadd.f32 %v9176_v1, %v9146_v13  ;;  %v11997_v5 = vpop.f32.mrb[52].mxu0 }
 0xa7b   : > { %v9777_v35 = vpop.f32.mrb[53].mxu0 }
 0xa7c   : > { %v9178_v34 = vadd.f32 %v9177_v37, %v9147_v52  ;;  %v11998_v31 = vpop.f32.mrb[54].mxu0 }
 0xa7d   : > { %v9780_v57 = vpop.f32.mrb[55].mxu0 }
 0xa7e   : > { %v9179_v36 = vadd.f32 %v9178_v34, %v9148_v49 }
 0xa80   : > { %v9180_v7 = vadd.f32 %v9179_v36, %v9149_v56 }
 0xa82   : > { %v9181_v25 = vadd.f32 %v9180_v7, %v9150_v19  ;;  %v12001_v13 = vpop.f32.mrb[56].mxu0 }
 0xa83   : > { %v9793_v1 = vpop.f32.mrb[57].mxu0 }
 0xa84   : > { %v9182_v17 = vadd.f32 %v9181_v25, %v9151_v44  ;;  %v12002_v52 = vpop.f32.mrb[58].mxu0 }
 0xa85   : > { %v9796_v37 = vpop.f32.mrb[59].mxu0 }
 0xa86   : > { %v9183_v32 = vadd.f32 %v9182_v17, %v9152_v28 }
 0xa88   : > { %v9184_v0 = vrot.slane %v9183_v32, 4 }
 0xa8a   : > { %v9185_v12 = vadd.f32 %v9184_v0, %v9183_v32  ;;  %v12005_v49 = vpop.f32.mrb[60].mxu0 }
 0xa8c   : > { %v9186_v33 = vrot.slane %v9185_v12, 2 }
 0xa8e   : > { %v9187_v47 = vadd.f32 %v9186_v33, %v9185_v12 }
 0xa90   : > { %v9188_v55 = vrot.slane %v9187_v47, 1 }
 0xa92   : > { %v9189_v6 = vadd.f32 %v9188_v55, %v9187_v47 }
 0xa94   : > { %11968 = vmatmul.mubr.f32.vlgmr.msra.gmra.mrb[28].mxu1 %v9189_v6 }
 0xa95   : > { %11971 = vmatpush3.msra.mxu1 %v16307_v61  ;;  %11972 = vmatprep.mubr.msk.f32.mxu1 %vm12758_vm6, %v17330_v21  ;;  %v9809_v21 = vpop.f32.mrb[61].mxu0 }
 0xa96   : > { %v16570_v7 = vpop.f32.mrb[62].mxu0 }
 0xa97   : > { %17359 = vst [vmem:[#allocation29_spill] sm:$0xff] %v16570_v7  ;;  %v16572_v44 = vpop.f32.mrb[63].mxu0 }
 0xa98   : > { %17360 = vst [vmem:[#allocation46_spill] sm:$0xff] %v16572_v44  ;;  %v16574_v25 = vpop.f32.mrb[64].mxu0 }
 0xa99   : > { %17361 = vst [vmem:[#allocation30_spill] sm:$0xff] %v16574_v25  ;;  %v16576_v28 = vpop.f32.mrb[65].mxu0 }
 0xa9a   : > { %17362 = vst [vmem:[#allocation47_spill] sm:$0xff] %v16576_v28  ;;  %v16578_v17 = vpop.f32.mrb[66].mxu0 }
 0xa9b   : > { %17363 = vst [vmem:[#allocation32_spill] sm:$0xff] %v16578_v17  ;;  %v16580_v32 = vpop.f32.mrb[67].mxu0 }
 0xa9c   : > { %17364 = vst [vmem:[#allocation51_spill] sm:$0xff] %v16580_v32 }
 0xb20   : > { %v16582_v0 = vpop.f32.mrb[68].mxu0 }
 0xb21   : > { %17365 = vst [vmem:[#allocation49_spill] sm:$0xff] %v16582_v0  ;;  %v16584_v12 = vpop.f32.mrb[69].mxu0 }
 0xb22   : > { %17366 = vst [vmem:[#allocation33_spill] sm:$0xff] %v16584_v12  ;;  %v16586_v33 = vpop.f32.mrb[70].mxu0 }
 0xb23   : > { %17367 = vst [vmem:[#allocation35_spill] sm:$0xff] %v16586_v33  ;;  %v16588_v47 = vpop.f32.mrb[71].mxu0 }
 0xb24   : > { %17368 = vst [vmem:[#allocation36_spill] sm:$0xff] %v16588_v47 }
 0xb28   : > { %v16590_v55 = vpop.f32.mrb[72].mxu0 }
 0xb29   : > { %17369 = vst [vmem:[#allocation37_spill] sm:$0xff] %v16590_v55  ;;  %v16592_v6 = vpop.f32.mrb[73].mxu0  ;;  %v16609_v55 = vld [vmem:[%s17132_s11] ss:$0 sm:$0xff] }
 0xb2a   : > { %17370 = vst [vmem:[#allocation38_spill] sm:$0xff] %v16592_v6  ;;  %17377 = vst [vmem:[#allocation40_spill] sm:$0xff] %v16609_v55 }
 0xb67   : > { %v9256_v34 = vpop.f32.mrb[28].mxu1 }
 0xb68   : > { %v9260_v56 = vmul.f32 0.00390625, %v9256_v34  ;;  %v11969_v36 = vpop.f32.mrb[29].mxu1  ;;  %v16594_v34 = vpop.f32.mrb[74].mxu0 }
 0xb69   : > { %17371 = vst [vmem:[#allocation52_spill] sm:$0xff] %v16594_v34 }
 0xb6a   : > { %v9261_v61 = vadd.f32 1e-05, %v9260_v56  ;;  %v16596_v56 = vpop.f32.mrb[75].mxu0 }
 0xb6b   : > { %17372 = vst [vmem:[#allocation45_spill] sm:$0xff] %v16596_v56  ;;  %v16598_v36 = vpop.f32.mrb[76].mxu0  ;;  %v16615_v56 = vadd.f32 %v11993_v40, %v16609_v55  ;;  %v16636_v40 = vadd.f32 %v16609_v55, %v9780_v57  ;;  %v16655_v57 = vld [vmem:[%s17129_s8] ss:$0 sm:$0xff] }
 0xb6c   : > { %12524 = vrsqrt.f32 %v9261_v61  ;;  %17373 = vst [vmem:[#allocation48_spill] sm:$0xff] %v16598_v36  ;;  %v16600_v61 = vpop.f32.mrb[77].mxu0  ;;  %v16618_v36 = vadd.f32 %v16609_v55, %v9761_v20  ;;  %v16639_v20 = vadd.f32 %v12001_v13, %v16609_v55  ;;  %v16658_v13 = vadd.f32 %v12002_v52, %v16609_v55 }
 0xb6d   : > { %17374 = vst [vmem:[#allocation50_spill] sm:$0xff] %v16600_v61  ;;  %v16630_v61 = vadd.f32 %v16609_v55, %v9777_v35  ;;  %v16675_v52 = vadd.f32 %v16609_v55, %v9809_v21 }
 0xb6f   : > { %17379 = vst [vmem:[#allocation43_spill] sm:$0xff] %v16675_v52 }
 0xb76   : > { %v12525_v19 = vpop.eup %12524 }
 0xb77   : > { %11973 = vmatmul.mubr.msk.f32.vlgmr.msra.gmra.mrb[30].mxu1 %vm4995_vm7, %v12525_v19  ;;  %v16602_v19 = vpop.f32.mrb[78].mxu0 }
 0xb78   : > { %17375 = vst [vmem:[#allocation41_spill] sm:$0xff] %v16602_v19  ;;  %v16604_v0 = vpop.f32.mrb[79].mxu0  ;;  %v16621_v19 = vadd.f32 %v11994_v18, %v16609_v55  ;;  %v16642_v18 = vadd.f32 %v16609_v55, %v9793_v1  ;;  %v16661_v1 = vadd.f32 %v16609_v55, %v9796_v37 }
 0xb79   : > { %17376 = vst [vmem:[#allocation39_spill] sm:$0xff] %v16604_v0  ;;  %v16624_v0 = vadd.f32 %v16609_v55, %v9764_v23 }
 0xc4a   : > { %v9332_v12 = vpop.f32.mrb[30].mxu1 }
 0xc4b   : > { %v11974_v33 = vpop.f32.mrb[31].mxu1  ;;  %v16612_v6 = vrot.slane %v9332_v12, %v17345_v14  ;;  %v16633_v14 = vadd.f32 %v11998_v31, %v16609_v55 }
 0xc4c   : > { %v16627_v33 = vadd.f32 %v11997_v5, %v16609_v55 }
 0xc4d   : > { %v9340_v23 = vmul.f32 %v16612_v6, %v16365_v45  ;;  %v9341_v5 = vmul.f32 %v16612_v6, %v16369_v16  ;;  %v9342_v35 = vmul.f32 %v16612_v6, %v16373_v59  ;;  %v9343_v31 = vmul.f32 %v16612_v6, %v16383_v54 }
 0xc4e   : > { %v16664_v45 = vadd.f32 %v12005_v49, %v16609_v55  ;;  %v9344_v16 = vmul.f32 %v16612_v6, %v16387_v3  ;;  %v9345_v59 = vmul.f32 %v16612_v6, %v16393_v48  ;;  %v9346_v54 = vmul.f32 %v16612_v6, %v16399_v63 }
 0xc4f   : > { %v9347_v12 = vmul.f32 %v16612_v6, %v16407_v50  ;;  %v9348_v37 = vmul.f32 %v16612_v6, %v16413_v22  ;;  %v9349_v49 = vmul.f32 %v16612_v6, %v16419_v58  ;;  %v9350_v3 = vmul.f32 %v16612_v6, %v16425_v24  ;;  %v16692_v22 = vld [vmem:[%s17130_s9] ss:$0 sm:$0xff] }
 0xc50   : > { %17378 = vst [vmem:[#allocation42_spill] sm:$0xff] %v16664_v45  ;;  %v9351_v48 = vmul.f32 %v16612_v6, %v16433_v29  ;;  %v9378_v63 = vmul.f32 %v16655_v57, %v9340_v23  ;;  %v9379_v34 = vmul.f32 %v16655_v57, %v9341_v5  ;;  %v9380_v50 = vmul.f32 %v16655_v57, %v9342_v35 }
 0xc51   : > { %v9381_v21 = vmul.f32 %v16655_v57, %v9343_v31  ;;  %v9352_v58 = vmul.f32 %v16612_v6, %v16439_v15  ;;  %v16698_v24 = vmul.f32 %v16612_v6, %v16445_v42  ;;  %v9354_v29 = vmul.f32 %v16612_v6, %v16451_v51 }
 0xc52   : > { %v9382_v23 = vmul.f32 %v16655_v57, %v9344_v16  ;;  %v16705_v5 = vmul.f32 %v16612_v6, %v16459_v8  ;;  %v16709_v35 = vmul.f32 %v16612_v6, %v16465_v46  ;;  %v9383_v31 = vmul.f32 %v16655_v57, %v9345_v59 }
 0xc53   : > { %v9384_v15 = vmul.f32 %v16655_v57, %v9346_v54  ;;  %v16715_v42 = vmul.f32 %v16612_v6, %v16471_v30  ;;  %v16719_v51 = vmul.f32 %v16612_v6, %v16477_v26  ;;  %v16723_v8 = vmul.f32 %v16612_v6, %v16485_v60 }
 0xc54   : > { %v9385_v16 = vmul.f32 %v16655_v57, %v9347_v12  ;;  %v16727_v46 = vadd.f32 %v16692_v22, %v9378_v63  ;;  %v16730_v59 = vadd.f32 %v16692_v22, %v9379_v34  ;;  %v16733_v54 = vadd.f32 %v16692_v22, %v9380_v50 }
 0xc55   : > { %v16736_v30 = vadd.f32 %v16692_v22, %v9381_v21  ;;  %v16740_v26 = vmul.f32 %v16612_v6, %v16491_v62  ;;  %v16744_v60 = vmul.f32 %v16612_v6, %v16497_v4  ;;  %v9386_v12 = vmul.f32 %v16655_v57, %v9348_v37 }
 0xc56   : > { %v16748_v63 = vadd.f32 %v16692_v22, %v9382_v23  ;;  %v16752_v34 = vmul.f32 %v16612_v6, %v16503_v9  ;;  %v9387_v50 = vmul.f32 %v16655_v57, %v9349_v49  ;;  %v16756_v21 = vadd.f32 %v16692_v22, %v9383_v31 }
 0xc57   : > { %v16759_v62 = vadd.f32 %v16692_v22, %v9384_v15  ;;  %v16763_v4 = vmul.f32 %v16612_v6, %v16510_v38  ;;  %v9388_v37 = vmul.f32 %v16655_v57, %v9350_v3  ;;  %v9448_v23 = vsub.f32 0.0, %v16727_v46 }
 0xc58   : > { %v9449_v47 = vsub.f32 0.0, %v16730_v59  ;;  %v9389_v9 = vmul.f32 %v16655_v57, %v9351_v48  ;;  %v16770_v49 = vadd.f32 %v16692_v22, %v9385_v16  ;;  %v9450_v31 = vsub.f32 0.0, %v16733_v54 }
 0xc59   : > { %v9451_v15 = vsub.f32 0.0, %v16736_v30  ;;  %v16776_v32 = vmul.f32 %v16612_v6, %v16516_v41  ;;  %v9390_v38 = vmul.f32 %v16655_v57, %v9352_v58  ;;  %v16780_v3 = vadd.f32 %v16692_v22, %v9386_v12 }
 0xc5a   : > { %v9452_v17 = vsub.f32 0.0, %v16748_v63  ;;  %v9392_v48 = vmul.f32 %v16655_v57, %v9354_v29  ;;  %v16785_v16 = vadd.f32 %v16692_v22, %v9387_v50  ;;  %v9453_v28 = vsub.f32 0.0, %v16756_v21 }
 0xc5b   : > { %v9454_v25 = vsub.f32 0.0, %v16759_v62  ;;  %v16790_v44 = vadd.f32 %v16692_v22, %v9388_v37  ;;  %v9480_v41 = vmul.f32 1.442695, %v9448_v23  ;;  %v9482_v7 = vmul.f32 1.442695, %v9449_v47 }
 0xc5c   : > { %v9484_v58 = vmul.f32 1.442695, %v9450_v31  ;;  %v16794_v12 = vmul.f32 %v16612_v6, %v16522_v11  ;;  %v16797_v55 = vadd.f32 %v16692_v22, %v9389_v9  ;;  %v9455_v29 = vsub.f32 0.0, %v16770_v49 }
 0xc5d   : > { %v9486_v50 = vmul.f32 1.442695, %v9451_v15  ;;  %v16801_v45 = vadd.f32 %v16692_v22, %v9390_v38  ;;  %v9456_v52 = vsub.f32 0.0, %v16780_v3  ;;  %12526 = vpow2.f32 %v9480_v41 }
 0xc5e   : > { %v9488_v37 = vmul.f32 1.442695, %v9452_v17  ;;  %v16805_v47 = vadd.f32 %v16692_v22, %v9392_v48  ;;  %v9457_v23 = vsub.f32 0.0, %v16785_v16  ;;  %12528 = vpow2.f32 %v9482_v7 }
 0xc5f   : > { %v9490_v11 = vmul.f32 1.442695, %v9453_v28  ;;  %v9366_v9 = vmul.f32 %v16612_v6, %v16528_v43  ;;  %v9458_v31 = vsub.f32 0.0, %v16790_v44  ;;  %12530 = vpow2.f32 %v9484_v58 }
 0xc60   : > { %v9492_v15 = vmul.f32 1.442695, %v9454_v25  ;;  %v9367_v38 = vmul.f32 %v16612_v6, %v16534_v10  ;;  %v9459_v41 = vsub.f32 0.0, %v16797_v55  ;;  %12532 = vpow2.f32 %v9486_v50 }
 0xc61   : > { %v9494_v17 = vmul.f32 1.442695, %v9455_v29  ;;  %v16816_v48 = vmul.f32 %v16612_v6, %v16540_v2  ;;  %v9460_v7 = vsub.f32 0.0, %v16801_v45  ;;  %12534 = vpow2.f32 %v9488_v37 }
 0xc62   : > { %v9496_v28 = vmul.f32 1.442695, %v9456_v52  ;;  %v16821_v43 = vmul.f32 %v16612_v6, %v16546_v27  ;;  %v9462_v25 = vsub.f32 0.0, %v16805_v47  ;;  %12536 = vpow2.f32 %v9490_v11 }
 0xc63   : > { %v9498_v10 = vmul.f32 1.442695, %v9457_v23  ;;  %v16826_v58 = vmul.f32 %v16612_v6, %v16552_v39  ;;  %v9393_v2 = vmul.f32 %v16655_v57, %v16705_v5  ;;  %12538 = vpow2.f32 %v9492_v15 }
 0xc64   : > { %v9500_v29 = vmul.f32 1.442695, %v9458_v31  ;;  %v9391_v52 = vmul.f32 %v16655_v57, %v16698_v24  ;;  %v9394_v27 = vmul.f32 %v16655_v57, %v16709_v35  ;;  %12540 = vpow2.f32 %v9494_v17 }
 0xc65   : > { %v9502_v50 = vmul.f32 1.442695, %v9459_v41  ;;  %v9395_v37 = vmul.f32 %v16655_v57, %v16715_v42  ;;  %v9396_v39 = vmul.f32 %v16655_v57, %v16719_v51  ;;  %12542 = vpow2.f32 %v9496_v28 }
 0xc66   : > { %v9504_v23 = vmul.f32 1.442695, %v9460_v7  ;;  %v9397_v5 = vmul.f32 %v16655_v57, %v16723_v8  ;;  %v9398_v11 = vmul.f32 %v16655_v57, %v16740_v26  ;;  %12544 = vpow2.f32 %v9498_v10 }
 0xc67   : > { %v9508_v24 = vmul.f32 1.442695, %v9462_v25  ;;  %v12527_v31 = vpop.eup %12526  ;;  %v16844_v35 = vmul.f32 %v16655_v57, %v16744_v60  ;;  %v9400_v42 = vmul.f32 %v16655_v57, %v16752_v34  ;;  %12546 = vpow2.f32 %v9500_v29 }
 0xc68   : > { %v16849_v51 = vadd.f32 %v16692_v22, %v9393_v2  ;;  %v12529_v15 = vpop.eup %12528  ;;  %v9401_v8 = vmul.f32 %v16655_v57, %v16763_v4  ;;  %12548 = vpow2.f32 %v9502_v50  ;;  %v9544_v26 = vadd.f32 1.0, %v12527_v31 }
 0xc69   : > { %v16854_v41 = vadd.f32 %v16692_v22, %v9391_v52  ;;  %v12531_v17 = vpop.eup %12530  ;;  %v16858_v60 = vmul.f32 %v16655_v57, %v16776_v32  ;;  %v16861_v34 = vmul.f32 %v16655_v57, %v9366_v9  ;;  %12550 = vpow2.f32 %v9504_v23 }
 0xc6a   : > { %17380 = vst [vmem:[#allocation15_spill] sm:$0xff] %v16849_v51  ;;  %v9545_v7 = vadd.f32 1.0, %v12529_v15  ;;  %v12533_v28 = vpop.eup %12532  ;;  %12552 = vpow2.f32 %v9508_v24  ;;  %v9546_v25 = vadd.f32 1.0, %v12531_v17  ;;  %v16864_v4 = vadd.f32 %v16692_v22, %v9396_v39 }
 0xc6b   : > { %17381 = vst [vmem:[#allocation16_spill] sm:$0xff] %v16854_v41  ;;  %v16867_v10 = vadd.f32 %v16692_v22, %v9394_v27  ;;  %v12535_v2 = vpop.eup %12534  ;;  %v16870_v29 = vmul.f32 %v16655_v57, %v9367_v38  ;;  %v9547_v32 = vadd.f32 1.0, %v12533_v28  ;;  %12554 = vrcp.f32 %v9544_v26 }
 0xc6c   : > { %17382 = vst [vmem:[#allocation17_spill] sm:$0xff] %v16864_v4  ;;  %v9463_v9 = vsub.f32 0.0, %v16849_v51  ;;  %v12537_v52 = vpop.eup %12536  ;;  %v9548_v50 = vadd.f32 1.0, %v12535_v2  ;;  %12556 = vrcp.f32 %v9545_v7  ;;  %v9461_v23 = vsub.f32 0.0, %v16854_v41 }
 0xc6d   : > { %17383 = vst [vmem:[#allocation44_spill] sm:$0xff] %v16867_v10  ;;  %v16875_v24 = vadd.f32 %v16692_v22, %v9397_v5  ;;  %v12539_v39 = vpop.eup %12538  ;;  %v9549_v31 = vadd.f32 1.0, %v12537_v52  ;;  %12558 = vrcp.f32 %v9546_v25  ;;  %v16878_v27 = vadd.f32 %v16692_v22, %v9395_v37 }
 0xc6e   : > { %v16881_v38 = vadd.f32 %v16692_v22, %v9400_v42  ;;  %v12541_v15 = vpop.eup %12540  ;;  %v9550_v26 = vadd.f32 1.0, %v12539_v39  ;;  %12560 = vrcp.f32 %v9547_v32  ;;  %v9466_v17 = vsub.f32 0.0, %v16864_v4 }
 0xc6f   : > { %17384 = vst [vmem:[#allocation18_spill] sm:$0xff] %v16875_v24  ;;  %v9464_v7 = vsub.f32 0.0, %v16867_v10  ;;  %v12543_v28 = vpop.eup %12542  ;;  %v9551_v5 = vadd.f32 1.0, %v12541_v15  ;;  %12562 = vrcp.f32 %v9548_v50  ;;  %v9510_v2 = vmul.f32 1.442695, %v9463_v9 }
 0xc70   : > { %v16886_v25 = vadd.f32 %v16692_v22, %v9398_v11  ;;  %v12545_v37 = vpop.eup %12544  ;;  %v9552_v52 = vadd.f32 1.0, %v12543_v28  ;;  %12564 = vrcp.f32 %v9549_v31  ;;  %v9506_v42 = vmul.f32 1.442695, %v9461_v23 }
 0xc71   : > { %v9467_v41 = vsub.f32 0.0, %v16875_v24  ;;  %v12547_v51 = vpop.eup %12546  ;;  %v9553_v32 = vadd.f32 1.0, %v12545_v37  ;;  %12566 = vrcp.f32 %v9550_v26  ;;  %v9465_v39 = vsub.f32 0.0, %v16878_v27 }
 0xc72   : > { %17385 = vst [vmem:[#allocation19_spill] sm:$0xff] %v16886_v25  ;;  %v9470_v15 = vsub.f32 0.0, %v16881_v38  ;;  %v12549_v50 = vpop.eup %12548  ;;  %v9554_v9 = vadd.f32 1.0, %v12547_v51  ;;  %12568 = vrcp.f32 %v9551_v5  ;;  %v9516_v11 = vmul.f32 1.442695, %v9466_v17 }
 0xc73   : > { %v9512_v10 = vmul.f32 1.442695, %v9464_v7  ;;  %v12551_v4 = vpop.eup %12550  ;;  %v9555_v28 = vadd.f32 1.0, %v12549_v50  ;;  %12570 = vrcp.f32 %v9552_v52  ;;  %v9468_v23 = vsub.f32 0.0, %v16886_v25 }
 0xc74   : > { %v16894_v31 = vadd.f32 %v16692_v22, %v9401_v8  ;;  %v12553_v24 = vpop.eup %12552  ;;  %v9556_v26 = vadd.f32 1.0, %v12551_v4  ;;  %12572 = vrcp.f32 %v9553_v32  ;;  %v9518_v37 = vmul.f32 1.442695, %v9467_v41 }
 0xc75   : > { %v16902_v51 = vadd.f32 %v16692_v22, %v16844_v35  ;;  %v12555_v17 = vpop.eup %12554  ;;  %v9558_v7 = vadd.f32 1.0, %v12553_v24  ;;  %12574 = vrcp.f32 %v9554_v9  ;;  %v9514_v5 = vmul.f32 1.442695, %v9465_v39 }
 0xc76   : > { %v9524_v52 = vmul.f32 1.442695, %v9470_v15  ;;  %v12557_v50 = vpop.eup %12556  ;;  %12576 = vrcp.f32 %v9555_v28  ;;  %v9608_v8 = vmul.f32 %v12555_v17, %v16727_v46  ;;  %v16907_v25 = vadd.f32 %v16692_v22, %v16861_v34 }
 0xc77   : > { %v16911_v41 = vadd.f32 %v16692_v22, %v16858_v60  ;;  %v12559_v4 = vpop.eup %12558  ;;  %12578 = vrcp.f32 %v9556_v26  ;;  %v9609_v35 = vmul.f32 %v12557_v50, %v16730_v59  ;;  %v9520_v24 = vmul.f32 1.442695, %v9468_v23 }
 0xc78   : > { %v9471_v32 = vsub.f32 0.0, %v16894_v31  ;;  %v12561_v39 = vpop.eup %12560  ;;  %12580 = vrcp.f32 %v9558_v7  ;;  %v9610_v46 = vmul.f32 %v12559_v4, %v16733_v54  ;;  %v9888_v15 = vadd.f32 %v16618_v36, %v9608_v8 }
 0xc79   : > { %v9469_v34 = vsub.f32 0.0, %v16902_v51  ;;  %v12563_v9 = vpop.eup %12562  ;;  %v9611_v60 = vmul.f32 %v12561_v39, %v16736_v30  ;;  %v9889_v28 = vadd.f32 %v16624_v0, %v9609_v35  ;;  %12582 = vpow2.f32 %v9510_v2 }
 0xc7a   : > { %v16922_v59 = vadd.f32 %v16692_v22, %v16870_v29  ;;  %v12565_v23 = vpop.eup %12564  ;;  %v9612_v26 = vmul.f32 %v12563_v9, %v16748_v63  ;;  %v9890_v17 = vadd.f32 %v16615_v56, %v9610_v46  ;;  %9920 = vst [vmem:[%s16927_s28] sm:$0xff] %v9888_v15  ;;  %12584 = vpow2.f32 %v9506_v42 }
 0xc7b   : > { %v9474_v36 = vsub.f32 0.0, %v16907_v25  ;;  %v12567_v0 = vpop.eup %12566  ;;  %v9613_v54 = vmul.f32 %v12565_v23, %v16756_v21  ;;  %v9891_v30 = vadd.f32 %v16621_v19, %v9611_v60  ;;  %9921 = vst [vmem:[%s16927_s28 + $0x8] sm:$0xff] %v9889_v28  ;;  %12586 = vpow2.f32 %v9516_v11 }
 0xc7c   : > { %v9526_v63 = vmul.f32 1.442695, %v9471_v32  ;;  %v12569_v56 = vpop.eup %12568  ;;  %v9614_v29 = vmul.f32 %v12567_v0, %v16759_v62  ;;  %v9892_v2 = vadd.f32 %v16630_v61, %v9612_v26  ;;  %9922 = vst [vmem:[%s16927_s28 + $0x10] sm:$0xff] %v9890_v17  ;;  %12588 = vpow2.f32 %v9512_v10 }
 0xc7d   : > { %v9472_v42 = vsub.f32 0.0, %v16911_v41  ;;  %v12571_v7 = vpop.eup %12570  ;;  %v9615_v50 = vmul.f32 %v12569_v56, %v16770_v49  ;;  %v9893_v21 = vadd.f32 %v16636_v40, %v9613_v54  ;;  %9923 = vst [vmem:[%s16927_s28 + $0x18] sm:$0xff] %v9891_v30  ;;  %12590 = vpow2.f32 %v9518_v37 }
 0xc7e   : > { %v9475_v19 = vsub.f32 0.0, %v16922_v59  ;;  %v12573_v11 = vpop.eup %12572  ;;  %v9616_v62 = vmul.f32 %v12571_v7, %v16780_v3  ;;  %v9894_v61 = vadd.f32 %v16627_v33, %v9614_v29  ;;  %9924 = vst [vmem:[%s16927_s28 + $0x20] sm:$0xff] %v9892_v2  ;;  %12592 = vpow2.f32 %v9514_v5 }
 0xc7f   : > { %v9522_v10 = vmul.f32 1.442695, %v9469_v34  ;;  %v12575_v8 = vpop.eup %12574  ;;  %v9617_v4 = vmul.f32 %v12573_v11, %v16785_v16  ;;  %v9895_v49 = vadd.f32 %v16633_v14, %v9615_v50  ;;  %9925 = vst [vmem:[%s16927_s28 + $0x28] sm:$0xff] %v9893_v21  ;;  %12594 = vpow2.f32 %v9524_v52 }
 0xc80   : > { %v9532_v40 = vmul.f32 1.442695, %v9474_v36  ;;  %v12577_v37 = vpop.eup %12576  ;;  %v9618_v35 = vmul.f32 %v12575_v8, %v16790_v44  ;;  %v9896_v3 = vadd.f32 %v16642_v18, %v9616_v62  ;;  %9926 = vst [vmem:[%s16927_s28 + $0x30] sm:$0xff] %v9894_v61  ;;  %12596 = vpow2.f32 %v9520_v24 }
 0xc81   : > { %v9528_v33 = vmul.f32 1.442695, %v9472_v42  ;;  %v12579_v5 = vpop.eup %12578  ;;  %v9619_v32 = vmul.f32 %v12577_v37, %v16797_v55  ;;  %v9897_v16 = vadd.f32 %v16661_v1, %v9617_v4  ;;  %9927 = vst [vmem:[%s16927_s28 + $0x38] sm:$0xff] %v9895_v49  ;;  %12598 = vpow2.f32 %v9526_v63 }
 0xc82   : > { %v9534_v14 = vmul.f32 1.442695, %v9475_v19  ;;  %v12581_v52 = vpop.eup %12580  ;;  %v9371_v39 = vmul.f32 %v16612_v6, %v16558_v53  ;;  %v9620_v44 = vmul.f32 %v12579_v5, %v16801_v45  ;;  %v9898_v18 = vadd.f32 %v16639_v20, %v9618_v35  ;;  %9928 = vst [vmem:[%s16927_s28 + $0x40] sm:$0xff] %v9896_v3  ;;  %v17386_v6 = vld [vmem:[#allocation43_spill] sm:$0xff]  ;;  %v17389_v5 = vld [vmem:[#allocation29_spill] sm:$0xff] }
 0xc83   : > { %12600 = vpow2.f32 %v9522_v10  ;;  %v12583_v24 = vpop.eup %12582  ;;  %v9403_v55 = vmul.f32 %v16655_v57, %v16794_v12  ;;  %v9622_v1 = vmul.f32 %v12581_v52, %v16805_v47  ;;  %v9899_v46 = vadd.f32 %v16658_v13, %v9619_v32  ;;  %9929 = vst [vmem:[%s16927_s28 + $0x48] sm:$0xff] %v9897_v16  ;;  %v17387_v47 = vld [vmem:[#allocation42_spill] sm:$0xff] }
 0xc84   : > { %12602 = vpow2.f32 %v9532_v40  ;;  %v12585_v15 = vpop.eup %12584  ;;  %v9408_v53 = vmul.f32 %v16655_v57, %v16826_v58  ;;  %v9900_v20 = vadd.f32 %v17386_v6, %v9620_v44  ;;  %9930 = vst [vmem:[%s16927_s28 + $0x50] sm:$0xff] %v9898_v18  ;;  %v9559_v45 = vadd.f32 1.0, %v12583_v24  ;;  %v17391_v18 = vld [vmem:[#allocation46_spill] sm:$0xff] }
 0xc85   : > { %12604 = vpow2.f32 %v9528_v33  ;;  %v12587_v34 = vpop.eup %12586  ;;  %v9406_v12 = vmul.f32 %v16655_v57, %v16816_v48  ;;  %v9902_v9 = vadd.f32 %v17387_v47, %v9622_v1  ;;  %9931 = vst [vmem:[%s16927_s28 + $0x58] sm:$0xff] %v9899_v46  ;;  %v9557_v13 = vadd.f32 1.0, %v12585_v15  ;;  %v17388_v33 = vld [vmem:[#allocation40_spill] sm:$0xff] }
 0xc86   : > { %12606 = vpow2.f32 %v9534_v14  ;;  %v12589_v60 = vpop.eup %12588  ;;  %v9409_v28 = vmul.f32 %v16655_v57, %v9371_v39  ;;  %9932 = vst [vmem:[%s16927_s28 + $0x60] sm:$0xff] %v9900_v20  ;;  %v9562_v58 = vadd.f32 1.0, %v12587_v34  ;;  %v9407_v26 = vmul.f32 %v16655_v57, %v16821_v43  ;;  %v17390_v39 = vld [vmem:[#allocation15_spill] sm:$0xff]  ;;  %v17392_v46 = vld [vmem:[#allocation16_spill] sm:$0xff] }
 0xc87   : > { %12608 = vrcp.f32 %v9559_v45  ;;  %v12591_v23 = vpop.eup %12590  ;;  %9934 = vst [vmem:[%s16927_s28 + $0x70] sm:$0xff] %v9902_v9  ;;  %v9560_v17 = vadd.f32 1.0, %v12589_v60  ;;  %v16978_v48 = vadd.f32 %v16692_v22, %v9403_v55  ;;  %v16981_v54 = vadd.f32 %v16692_v22, %v9408_v53  ;;  %v17393_v53 = vld [vmem:[#allocation30_spill] sm:$0xff] }
 0xc88   : > { %12610 = vrcp.f32 %v9557_v13  ;;  %v12593_v36 = vpop.eup %12592  ;;  %v9563_v0 = vadd.f32 1.0, %v12591_v23  ;;  %v16984_v56 = vadd.f32 %v16692_v22, %v9406_v12  ;;  %v16987_v43 = vadd.f32 %v16692_v22, %v9409_v28  ;;  %v17394_v12 = vld [vmem:[#allocation17_spill] sm:$0xff]  ;;  %v17395_v28 = vld [vmem:[#allocation44_spill] sm:$0xff]  ;;  %v17396_v23 = vld [vmem:[#allocation47_spill] sm:$0xff] }
 0xc89   : > { %12612 = vrcp.f32 %v9562_v58  ;;  %v12595_v30 = vpop.eup %12594  ;;  %v9561_v63 = vadd.f32 1.0, %v12593_v36  ;;  %v9473_v7 = vsub.f32 0.0, %v16978_v48  ;;  %v16991_v50 = vadd.f32 %v16692_v22, %v9407_v26 }
 0xc8a   : > { %12614 = vrcp.f32 %v9560_v17  ;;  %v12597_v29 = vpop.eup %12596  ;;  %v9566_v57 = vadd.f32 1.0, %v12595_v30  ;;  %v9478_v11 = vsub.f32 0.0, %v16981_v54  ;;  %v9476_v10 = vsub.f32 0.0, %v16984_v56 }
 0xc8b   : > { %12616 = vrcp.f32 %v9563_v0  ;;  %v12599_v2 = vpop.eup %12598  ;;  %v9564_v42 = vadd.f32 1.0, %v12597_v29  ;;  %v9479_v49 = vsub.f32 0.0, %v16987_v43  ;;  %v9530_v22 = vmul.f32 1.442695, %v9473_v7  ;;  %v17397_v0 = vld [vmem:[#allocation18_spill] sm:$0xff]  ;;  %v17399_v7 = vld [vmem:[#allocation51_spill] sm:$0xff] }
 0xc8c   : > { %12618 = vrcp.f32 %v9561_v63  ;;  %v9567_v19 = vadd.f32 1.0, %v12599_v2  ;;  %v9477_v35 = vsub.f32 0.0, %v16991_v50  ;;  %v9821_v32 = vadd.f32 %v17389_v5, %v17388_v33  ;;  %v17398_v63 = vld [vmem:[#allocation32_spill] sm:$0xff] }
 0xc8d   : > { %v12601_v21 = vpop.eup %12600  ;;  %12620 = vrcp.f32 %v9566_v57  ;;  %v9540_v14 = vmul.f32 1.442695, %v9478_v11  ;;  %v9813_v24 = vadd.f32 %v17388_v33, %v17391_v18  ;;  %v9536_v55 = vmul.f32 1.442695, %v9476_v10 }
 0xc8e   : > { %v12603_v62 = vpop.eup %12602  ;;  %12622 = vrcp.f32 %v9564_v42  ;;  %v9565_v61 = vadd.f32 1.0, %v12601_v21  ;;  %v9834_v6 = vadd.f32 %v17393_v53, %v17388_v33  ;;  %v9542_v20 = vmul.f32 1.442695, %v9479_v49  ;;  %v17401_v49 = vld [vmem:[#allocation19_spill] sm:$0xff]  ;;  %v17406_v53 = vld [vmem:[#allocation38_spill] sm:$0xff] }
 0xc8f   : > { %v12605_v8 = vpop.eup %12604  ;;  %12624 = vrcp.f32 %v9567_v19  ;;  %v9570_v4 = vadd.f32 1.0, %v12603_v62  ;;  %v9538_v9 = vmul.f32 1.442695, %v9477_v35  ;;  %v9826_v26 = vadd.f32 %v17388_v33, %v17396_v23 }
 0xc90   : > { %v12607_v40 = vpop.eup %12606  ;;  %12626 = vrcp.f32 %v9565_v61  ;;  %v9568_v37 = vadd.f32 1.0, %v12605_v8  ;;  %v9837_v29 = vadd.f32 %v17398_v63, %v17388_v33  ;;  %v9829_v21 = vadd.f32 %v17388_v33, %v17399_v7  ;;  %v17400_v61 = vld [vmem:[#allocation49_spill] sm:$0xff] }
 0xc91   : > { %v12609_v3 = vpop.eup %12608  ;;  %12628 = vrcp.f32 %v9570_v4  ;;  %v9571_v16 = vadd.f32 1.0, %v12607_v40  ;;  %v9850_v10 = vadd.f32 %v17400_v61, %v17388_v33  ;;  %v17402_v40 = vld [vmem:[#allocation33_spill] sm:$0xff] }
 0xc92   : > { %v12611_v52 = vpop.eup %12610  ;;  %v9623_v44 = vmul.f32 %v12609_v3, %v17390_v39  ;;  %12630 = vrcp.f32 %v9568_v37  ;;  %v9842_v37 = vadd.f32 %v17388_v33, %v17402_v40 }
 0xc93   : > { %v12613_v1 = vpop.eup %12612  ;;  %v9621_v15 = vmul.f32 %v12611_v52, %v17392_v46  ;;  %12632 = vrcp.f32 %v9571_v16  ;;  %v17404_v52 = vld [vmem:[#allocation36_spill] sm:$0xff] }
 0xc94   : > { %v12615_v45 = vpop.eup %12614  ;;  %v9903_v34 = vadd.f32 %v9821_v32, %v9623_v44  ;;  %v9626_v47 = vmul.f32 %v12613_v1, %v17394_v12  ;;  %12634 = vpow2.f32 %v9530_v22  ;;  %v9845_v39 = vadd.f32 %v17388_v33, %v17404_v52 }
 0xc95   : > { %v12617_v13 = vpop.eup %12616  ;;  %v9901_v60 = vadd.f32 %v9813_v24, %v9621_v15  ;;  %v9624_v58 = vmul.f32 %v12615_v45, %v17395_v28  ;;  %12636 = vpow2.f32 %v9540_v14 }
 0xc96   : > { %v12619_v17 = vpop.eup %12618  ;;  %9935 = vst [vmem:[%s16927_s28 + $0x78] sm:$0xff] %v9903_v34  ;;  %v9906_v36 = vadd.f32 %v9834_v6, %v9626_v47  ;;  %v9627_v30 = vmul.f32 %v12617_v13, %v17397_v0  ;;  %12638 = vpow2.f32 %v9536_v55 }
 0xc97   : > { %v12621_v57 = vpop.eup %12620  ;;  %9933 = vst [vmem:[%s16927_s28 + $0x68] sm:$0xff] %v9901_v60  ;;  %v9904_v2 = vadd.f32 %v9826_v26, %v9624_v58  ;;  %v9625_v42 = vmul.f32 %v12619_v17, %v16878_v27  ;;  %12640 = vpow2.f32 %v9542_v20 }
 0xc98   : > { %v12623_v19 = vpop.eup %12622  ;;  %9938 = vst [vmem:[%s16927_s28 + $0x90] sm:$0xff] %v9906_v36  ;;  %v9907_v11 = vadd.f32 %v9837_v29, %v9627_v30  ;;  %v9630_v62 = vmul.f32 %v12621_v57, %v16881_v38  ;;  %12642 = vpow2.f32 %v9538_v9  ;;  %v17403_v38 = vld [vmem:[#allocation35_spill] sm:$0xff]  ;;  %v17408_v30 = vld [vmem:[#allocation45_spill] sm:$0xff] }
 0xc99   : > { %v12625_v8 = vpop.eup %12624  ;;  %9936 = vst [vmem:[%s16927_s28 + $0x80] sm:$0xff] %v9904_v2  ;;  %v9905_v4 = vadd.f32 %v9829_v21, %v9625_v42  ;;  %v9628_v27 = vmul.f32 %v12623_v19, %v17401_v49  ;;  %v9853_v5 = vadd.f32 %v17403_v38, %v17388_v33  ;;  %v9861_v63 = vadd.f32 %v17388_v33, %v17408_v30  ;;  %v17409_v2 = vld [vmem:[#allocation48_spill] sm:$0xff]  ;;  %v17412_v49 = vld [vmem:[#allocation39_spill] sm:$0xff] }
 0xc9a   : > { %v12627_v22 = vpop.eup %12626  ;;  %9939 = vst [vmem:[%s16927_s28 + $0x98] sm:$0xff] %v9907_v11  ;;  %v9910_v35 = vadd.f32 %v9850_v10, %v9630_v62  ;;  %v9631_v3 = vmul.f32 %v12625_v8, %v16894_v31  ;;  %v17405_v31 = vld [vmem:[#allocation37_spill] sm:$0xff]  ;;  %v9882_v42 = vadd.f32 %v17409_v2, %v17388_v33  ;;  %v17410_v11 = vld [vmem:[#allocation50_spill] sm:$0xff] }
 0xc9b   : > { %v12629_v32 = vpop.eup %12628  ;;  %9937 = vst [vmem:[%s16927_s28 + $0x88] sm:$0xff] %v9905_v4  ;;  %v9908_v16 = vadd.f32 %v9842_v37, %v9628_v27  ;;  %v9629_v14 = vmul.f32 %v12627_v22, %v16902_v51  ;;  %v9866_v55 = vadd.f32 %v17405_v31, %v17388_v33  ;;  %v9858_v51 = vadd.f32 %v17388_v33, %v17406_v53  ;;  %v17411_v10 = vld [vmem:[#allocation41_spill] sm:$0xff] }
 0xc9c   : > { %v12631_v44 = vpop.eup %12630  ;;  %9942 = vst [vmem:[%s16927_s28 + $0xb0] sm:$0xff] %v9910_v35  ;;  %v9911_v18 = vadd.f32 %v9853_v5, %v9631_v3  ;;  %v9634_v24 = vmul.f32 %v12629_v32, %v16907_v25  ;;  %v17407_v25 = vld [vmem:[#allocation52_spill] sm:$0xff]  ;;  %v9874_v62 = vadd.f32 %v17388_v33, %v17410_v11  ;;  %v9885_v8 = vadd.f32 %v17411_v10, %v17388_v33 }
 0xc9d   : > { %v12633_v1 = vpop.eup %12632  ;;  %9940 = vst [vmem:[%s16927_s28 + $0xa0] sm:$0xff] %v9908_v16  ;;  %v9909_v46 = vadd.f32 %v9845_v39, %v9629_v14  ;;  %v9632_v15 = vmul.f32 %v12631_v44, %v16911_v41  ;;  %v9869_v34 = vadd.f32 %v17407_v25, %v17388_v33  ;;  %v9877_v27 = vadd.f32 %v17388_v33, %v17412_v49 }
 0xc9e   : > { %v12635_v6 = vpop.eup %12634  ;;  %9943 = vst [vmem:[%s16927_s28 + $0xb8] sm:$0xff] %v9911_v18  ;;  %v9914_v20 = vadd.f32 %v9866_v55, %v9634_v24  ;;  %v9635_v45 = vmul.f32 %v12633_v1, %v16922_v59 }
 0xc9f   : > { %v12637_v12 = vpop.eup %12636  ;;  %9941 = vst [vmem:[%s16927_s28 + $0xa8] sm:$0xff] %v9909_v46  ;;  %v9912_v47 = vadd.f32 %v9858_v51, %v9632_v15  ;;  %v9569_v9 = vadd.f32 1.0, %v12635_v6 }
 0xca0   : > { %v12639_v13 = vpop.eup %12638  ;;  %9946 = vst [vmem:[%s16927_s28 + $0xd0] sm:$0xff] %v9914_v20  ;;  %v9915_v41 = vadd.f32 %v9869_v34, %v9635_v45  ;;  %v9574_v60 = vadd.f32 1.0, %v12637_v12 }
 0xca1   : > { %v12641_v28 = vpop.eup %12640  ;;  %9944 = vst [vmem:[%s16927_s28 + $0xc0] sm:$0xff] %v9912_v47  ;;  %12644 = vrcp.f32 %v9569_v9  ;;  %v9572_v58 = vadd.f32 1.0, %v12639_v13 }
 0xca2   : > { %v12643_v23 = vpop.eup %12642  ;;  %9947 = vst [vmem:[%s16927_s28 + $0xd8] sm:$0xff] %v9915_v41  ;;  %12646 = vrcp.f32 %v9574_v60  ;;  %v9575_v26 = vadd.f32 1.0, %v12641_v28 }
 0xca3   : > { %12648 = vrcp.f32 %v9572_v58  ;;  %v9573_v59 = vadd.f32 1.0, %v12643_v23 }
 0xca4   : > { %12650 = vrcp.f32 %v9575_v26 }
 0xca5   : > { %12652 = vrcp.f32 %v9573_v59 }
 0xcab   : > { %v12645_v17 = vpop.eup %12644 }
 0xcac   : > { %v12647_v36 = vpop.eup %12646  ;;  %v9633_v0 = vmul.f32 %v12645_v17, %v16978_v48 }
 0xcad   : > { %v12649_v29 = vpop.eup %12648  ;;  %v9638_v57 = vmul.f32 %v12647_v36, %v16981_v54 }
 0xcae   : > { %v12651_v7 = vpop.eup %12650  ;;  %v9913_v21 = vadd.f32 %v9861_v63, %v9633_v0  ;;  %v9636_v19 = vmul.f32 %v12649_v29, %v16984_v56 }
 0xcaf   : > { %v12653_v48 = vpop.eup %12652  ;;  %v9918_v61 = vadd.f32 %v9882_v42, %v9638_v57  ;;  %v9639_v54 = vmul.f32 %v12651_v7, %v16987_v43 }
 0xcb0   : > { %9945 = vst [vmem:[%s16927_s28 + $0xc8] sm:$0xff] %v9913_v21  ;;  %v9916_v4 = vadd.f32 %v9874_v62, %v9636_v19  ;;  %v9637_v56 = vmul.f32 %v12653_v48, %v16991_v50 }
 0xcb1   : > { %9950 = vst [vmem:[%s16927_s28 + $0xf0] sm:$0xff] %v9918_v61  ;;  %v9919_v40 = vadd.f32 %v9885_v8, %v9639_v54 }
 0xcb2   : > { %9948 = vst [vmem:[%s16927_s28 + $0xe0] sm:$0xff] %v9916_v4  ;;  %v9917_v43 = vadd.f32 %v9877_v27, %v9637_v56 }
 0xcb3   : > { %9951 = vst [vmem:[%s16927_s28 + $0xf8] sm:$0xff] %v9919_v40 }
 0xcb4   : > { %9949 = vst [vmem:[%s16927_s28 + $0xe8] sm:$0xff] %v9917_v43 }
 0xcb5   : > { %12699 = shalt.err (!%p12696_p7)
}
 0xcb6   : > { %s12700_s18 = scalar_lea.hbm %s17071_s24, 4096  ;;  %s12704_s17 = scalar_lea.hbm %s17135_s14, 8192 }
 0xcb7   : > { %p12701_p8 = scmp.ne.s32.totalorder %s17071_s24, %s12700_s18  ;;  %p12705_p1 = scmp.lt.u32.totalorder %s17071_s24, %s17135_s14 }
 0xcb8   : > { %p12706_p0 = scmp.lt.u32.totalorder %s12704_s17, %s12700_s18  ;;  %p12708_p6 = scmp.lt.u32.totalorder %s12700_s18, %s17071_s24 }
 0xcb9   : > { %p12702_p11 = pnand %p12701_p8, %p17413_p9 }
 0xcba   : > { %p12707_p5 = por %p12706_p0, %p12705_p1 }
 0xcbb   : > { %p12703_p13 = pneg %p12702_p11 }
 0xcbc   : > { %p12709_p10 = por %p12708_p6, %p12707_p5 }
 0xcbe   : > { %p12710_p12 = pnand %p12709_p10, %p12703_p13 }
 0xcc0   : > { %12713 = shalt.err (!%p12710_p12)
}
 0xcc1   : > { %s12762_s25 = smov 128   ;;  %s12763_s22 = smov 8  }
 0xcc2   : > { %12140 = dma.vmem_to_hbm [thread:$0]  (%p17413_p9), %s17073_s27, 4096, %s17071_s24, %s17080_s20, %s12762_s25, %s12762_s25, %s12763_s22  }
 0xcc3 PF: > { %s17414_s19 = sld [smem:[#allocation14_spill]]  ;;  %p12152_p2 = scmp.ge.s32.totalorder %s12752_s16, 2 }
 0xcc4   : > { %s9981_s28 = sand.u32 1, %s12740_s29  }
 0xcc5   : > { %s9982_s18 = scalar_lea.sflag [#allocation7], %s9981_s28 }
 0xcc9   : > { %p17415_p3 = scmp.ne.s32.totalorder %s17414_s19, 0 }
 0xccb   : > { %p12147_p4 = pnand %p12152_p2, %p17415_p3 }
 0xccd   : > { %12735 = dma.done.wait (!%p12147_p4), %s9982_s18, 4096  }
 0xcce   : > { %12737 = vsyncadd (!%p12147_p4), %s9982_s18, 4294963200  ;;  %s17416_s16 = sld [smem:[#allocation12_spill]]  ;;  %s17417_s21 = sld [smem:[#allocation11_spill]] }
 0xccf   : > { %s17418_s15 = sld [smem:[#allocation13_spill]]  ;;  %s17419_s29 = smov %s12744_s30 }
 0xcd4   : > { %p25_p7 = scmp.ge.s32.totalorder %s17416_s16, 4   ;;  %s17420_s30 = smov %s17417_s21 }
 0xcd6   :  { %27 = sbr.rel (!%p25_p7) target bundleno = 4 (0x4), region = 124 }
 0xcdd   :  { %9987 = vsyncpa [#allocation6], 1 }
 0xcde   :  { %9989 = vsyncpa [#allocation6 + $0x1], 1 }
 0xcdf   :  { %9990 = vsyncpa [#allocation7], 1 }
 0xce0   :  { %9992 = vsyncpa [#allocation7 + $0x1], 1 }

</bundles_post_ra>
